<compile_context>
chip_gen: v7x
topology: tpu7x:2x2x1
jax: 0.10.0
libtpu: 0.0.40
codegen_flags: <defaults>
</compile_context>

<pallas_src>
import functools

import jax
import jax.numpy as jnp
from jax.experimental import pallas as pl
from jax.experimental.pallas import tpu as pltpu


_VMEM_LIMIT_CACHE = None


def _vmem_limit():
    """Generation-aware scoped-VMEM budget (7/8 of physical, clamped)."""
    global _VMEM_LIMIT_CACHE
    if _VMEM_LIMIT_CACHE is None:
        try:
            cap = int(pltpu.get_tpu_info().vmem_capacity_bytes)
        except Exception:
            cap = 64 * 1024 * 1024          # safe on every generation (>= v7x)
        _VMEM_LIMIT_CACHE = min(int(cap * 7 // 8), 112 * 1024 * 1024)
    return _VMEM_LIMIT_CACHE


def _pick_tile(n, cap, align):
    """Largest tile <= cap that divides n (multiples of `align`); full n if n <= cap."""
    if n <= cap:
        return n
    t = (cap // align) * align
    while t >= align:
        if n % t == 0:
            return t
        t -= align
    return n


# ------------------------------ Pallas kernels ------------------------------

def _make_level_kernel(has_res, has_gate):
    """1x1-conv level: out = (relu((x @ w) * scale + bias) [+ res]) [* gate].

    Grid (B, M, K); K is the reduction axis (last, 'arbitrary'); the f32 VMEM
    scratch accumulates partial dots, the epilogue runs on the last K step.
    """

    def kernel(*refs):
        x_ref, w_ref, scale_ref, bias_ref = refs[:4]
        i = 4
        res_ref = None
        gate_ref = None
        if has_res:
            res_ref = refs[i]
            i += 1
        if has_gate:
            gate_ref = refs[i]
            i += 1
        o_ref, acc_ref = refs[i], refs[i + 1]

        k = pl.program_id(2)

        @pl.when(k == 0)
        def _():
            acc_ref[...] = jnp.zeros_like(acc_ref)

        acc_ref[...] += jnp.dot(x_ref[0], w_ref[...],
                                preferred_element_type=jnp.float32)

        @pl.when(k == pl.num_programs(2) - 1)
        def _():
            y = acc_ref[...] * scale_ref[...] + bias_ref[...]   # folded BatchNorm
            y = jnp.maximum(y, 0.0)                             # ReLU (f32 epilogue)
            if has_res:
                y = y + res_ref[0].astype(jnp.float32)          # lateral residual
            if has_gate:
                y = y * gate_ref[0]                             # language gate
            o_ref[0] = y.astype(o_ref.dtype)

    return kernel


def _make_conv3x3_kernel(n_in, H, W, Wp2):
    """3x3 conv (pad=1) + BN + ReLU over `n_in` channel-concatenated inputs.

    Each input arrives as a flattened zero-padded image (1, (H+3)*Wp2, C); tap
    (ky, kx) is a row-shifted window of that slab, so the 9 tap matmuls are
    accumulated in vregs without any HBM im2col.  When n_in > 1 the tap
    windows are concatenated along the lane dim (K-packing: one deep matmul
    per tap).  Flat rows with w in {W, W+1} are wrap junk; the epilogue stores
    only the valid W columns of every output row (in-kernel crop).
    """
    L = H * Wp2

    def kernel(*refs):
        x_refs = refs[:n_in]
        w_ref, scale_ref, bias_ref, o_ref = refs[n_in:n_in + 4]

        acc = None
        for ky in range(3):
            for kx in range(3):
                off = ky * Wp2 + kx                             # static shift
                if n_in == 1:
                    lhs = x_refs[0][0, pl.ds(off, L), :]        # (L, C) window
                else:
                    # lane-dim concat -> (L, sum C): one full-depth MXU pass.
                    lhs = jnp.concatenate(
                        [x_refs[i][0, pl.ds(off, L), :] for i in range(n_in)],
                        axis=-1)
                contrib = jnp.dot(lhs, w_ref[ky * 3 + kx],
                                  preferred_element_type=jnp.float32)
                acc = contrib if acc is None else acc + contrib

        y = acc * scale_ref[...] + bias_ref[...]                # folded BatchNorm
        y = jnp.maximum(y, 0.0)                                 # ReLU
        # In-kernel crop: per-row stores of width W (drops the 2 wrap columns).
        for h in range(H):
            o_ref[0, h] = y[h * Wp2:h * Wp2 + W, :].astype(o_ref.dtype)

    return kernel


def linear_kernel(x_ref, w_ref, b_ref, o_ref):
    """All three lang_proj Linears folded into one (D, 3N) matmul."""
    o_ref[...] = (jnp.dot(x_ref[...], w_ref[...],
                          preferred_element_type=jnp.float32) + b_ref[...])


def avgpool_kernel(x_ref, o_ref):
    """2x2/stride-2 average pool; input pre-reshaped (free) to (B,Ho,2,Wo,2C)."""
    C = o_ref.shape[-1]
    v = x_ref[...]                                   # (1, Ho, 2, Wo, 2C)
    a = v[0, :, 0].astype(jnp.float32)               # rows 2i
    b = v[0, :, 1].astype(jnp.float32)               # rows 2i+1
    s = a + b                                        # (Ho, Wo, 2C)
    o_ref[0] = ((s[..., :C] + s[..., C:]) * 0.25).astype(o_ref.dtype)


# ------------------------------ Pallas wrappers ------------------------------

def fused_level(x_flat, w, scale, bias, res=None, gate=None, *,
                out_dtype=jnp.bfloat16, tm_cap=512, tk_cap=512):
    # Working set at tm=512/tk=512 is ~2 MiB double-buffered, so the same caps
    # are fine on v5e/v6e/v7x; fewer grid steps amortise pipeline overhead.
    B, HW, K = x_flat.shape
    N = w.shape[1]
    tm = _pick_tile(HW, tm_cap, 16)                        # 16: bf16 sublane pack
    tk_align = 256 if (K % 256 == 0 and tk_cap >= 256) else 128
    tk = _pick_tile(K, tk_cap, tk_align)
    has_res, has_gate = res is not None, gate is not None

    args = [x_flat.astype(jnp.bfloat16), w.astype(jnp.bfloat16),
            scale.reshape(1, N).astype(jnp.float32),
            bias.reshape(1, N).astype(jnp.float32)]
    in_specs = [pl.BlockSpec((1, tm, tk), lambda b, m, k: (b, m, k)),
                pl.BlockSpec((tk, N), lambda b, m, k: (k, 0)),
                pl.BlockSpec((1, N), lambda b, m, k: (0, 0)),
                pl.BlockSpec((1, N), lambda b, m, k: (0, 0))]
    if has_res:
        args.append(res.astype(jnp.bfloat16))
        in_specs.append(pl.BlockSpec((1, tm, N), lambda b, m, k: (b, m, 0)))
    if has_gate:
        args.append(gate.reshape(B, 1, N).astype(jnp.float32))
        in_specs.append(pl.BlockSpec((1, 1, N), lambda b, m, k: (b, 0, 0)))

    return pl.pallas_call(
        _make_level_kernel(has_res, has_gate),
        out_shape=jax.ShapeDtypeStruct((B, HW, N), out_dtype),
        grid_spec=pltpu.PrefetchScalarGridSpec(
            num_scalar_prefetch=0,
            grid=(B, HW // tm, K // tk),
            in_specs=in_specs,
            out_specs=pl.BlockSpec((1, tm, N), lambda b, m, k: (b, m, 0)),
            scratch_shapes=[pltpu.VMEM((tm, N), jnp.float32)],
        ),
        compiler_params=pltpu.CompilerParams(
            dimension_semantics=("parallel", "parallel", "arbitrary"),
            vmem_limit_bytes=_vmem_limit()),
    )(*args)


def conv3x3_level(xs, ws, scale, bias, *, out_dtype=jnp.bfloat16):
    """conv_layer(.,.,3,1): 3x3 conv (bias=False) -> BN(eval) -> ReLU.

    `xs` is a list of NHWC inputs treated as a channel concat; `ws` the matching
    list of (9, Ci, N) tap-major weights (stacked along K inside the wrapper).
    No HBM im2col, no HBM channel concat, no post-kernel crop pass.
    """
    B, H, W, _ = xs[0].shape
    N = ws[0].shape[-1]
    Wp2 = W + 2
    # One extra bottom image row keeps every tap window (max offset 2*Wp2+2)
    # inside the flattened slab -> no OOB reads.
    Lp = (H + 3) * Wp2

    xflats, x_specs = [], []
    for x in xs:
        C = x.shape[-1]
        xp = jnp.pad(x.astype(jnp.bfloat16), ((0, 0), (1, 2), (1, 1), (0, 0)))
        xflats.append(xp.reshape(B, Lp, C))                  # free reshape
        x_specs.append(pl.BlockSpec((1, Lp, C), lambda b: (b, 0, 0)))

    # K-packed weights: (9, sum Ci, N) so each tap is one full-depth MXU pass.
    w_all = jnp.concatenate([w.astype(jnp.bfloat16) for w in ws], axis=1)
    Ctot = w_all.shape[1]

    scale = scale.reshape(1, N).astype(jnp.float32)
    bias = bias.reshape(1, N).astype(jnp.float32)

    # TODO(synk): at real CLIPort resolutions add an M (row-band) grid axis with
    # a 1-row halo so the per-batch slab + accumulator stays under v7x VMEM and
    # both TensorCores are fed; at these FPN test sizes a per-batch slab is tiny.
    return pl.pallas_call(
        _make_conv3x3_kernel(len(xs), H, W, Wp2),
        out_shape=jax.ShapeDtypeStruct((B, H, W, N), out_dtype),
        grid_spec=pltpu.PrefetchScalarGridSpec(
            num_scalar_prefetch=0,
            grid=(B,),
            in_specs=x_specs + [pl.BlockSpec((9, Ctot, N), lambda b: (0, 0, 0)),
                                pl.BlockSpec((1, N), lambda b: (0, 0)),
                                pl.BlockSpec((1, N), lambda b: (0, 0))],
            out_specs=pl.BlockSpec((1, H, W, N), lambda b: (b, 0, 0, 0)),
        ),
        compiler_params=pltpu.CompilerParams(
            dimension_semantics=("parallel",),
            vmem_limit_bytes=_vmem_limit()),
    )(*xflats, w_all, scale, bias)


def lang_linear(x, w, b):
    """sent_emb @ W + b for the three lang_proj layers folded along N."""
    B, D = x.shape
    M = w.shape[1]
    return pl.pallas_call(
        linear_kernel,
        out_shape=jax.ShapeDtypeStruct((B, M), jnp.float32),
        grid=(1,),
        in_specs=[pl.BlockSpec((B, D), lambda i: (0, 0)),
                  pl.BlockSpec((D, M), lambda i: (0, 0)),
                  pl.BlockSpec((1, M), lambda i: (0, 0))],
        out_specs=pl.BlockSpec((B, M), lambda i: (0, 0)),
    )(x.astype(jnp.bfloat16), w.astype(jnp.bfloat16),
      b.reshape(1, M).astype(jnp.float32))


def avg_pool2x2(x):
    B, H, W, C = x.shape
    Ho, Wo = H // 2, W // 2
    xr = x.reshape(B, Ho, 2, Wo, 2 * C)                       # free reshape
    return pl.pallas_call(
        avgpool_kernel,
        out_shape=jax.ShapeDtypeStruct((B, Ho, Wo, C), x.dtype),
        grid=(B,),
        in_specs=[pl.BlockSpec((1, Ho, 2, Wo, 2 * C), lambda b: (b, 0, 0, 0, 0))],
        out_specs=pl.BlockSpec((1, Ho, Wo, C), lambda b: (b, 0, 0, 0)),
        compiler_params=pltpu.CompilerParams(dimension_semantics=("parallel",)),
    )(xr)


# ------------------------------ shared JAX glue (data movement only) ----------

def upsample2x_bilinear(x):
    """F.interpolate(scale_factor=2, mode='bilinear', align_corners=False), NHWC, bf16."""
    # TODO(synk): fuse the 0.25/0.75 blends into the consuming kernel epilogue
    # (or a dedicated Pallas kernel) to avoid writing/re-reading the upsampled
    # intermediate; kept as bf16 XLA glue here.
    def up_axis(a, axis):
        n = a.shape[axis]
        first = jax.lax.slice_in_dim(a, 0, 1, axis=axis)
        last = jax.lax.slice_in_dim(a, n - 1, n, axis=axis)
        prev = jnp.concatenate([first, jax.lax.slice_in_dim(a, 0, n - 1, axis=axis)], axis=axis)
        nxt = jnp.concatenate([jax.lax.slice_in_dim(a, 1, n, axis=axis), last], axis=axis)
        even = 0.25 * prev + 0.75 * a            # out[2i]
        odd = 0.75 * a + 0.25 * nxt              # out[2i+1]
        stacked = jnp.stack([even, odd], axis=axis + 1)
        new_shape = list(a.shape)
        new_shape[axis] = 2 * n
        return stacked.reshape(new_shape)
    return up_axis(up_axis(x.astype(jnp.bfloat16), 1), 2)


# ------------------------------ pure-JAX reference (same bf16 boundaries) -----

def ref_level(x_flat, w, scale, bias, res=None, gate=None, out_dtype=jnp.bfloat16):
    N = w.shape[1]
    y = jnp.einsum("bmk,kn->bmn", x_flat.astype(jnp.bfloat16), w.astype(jnp.bfloat16),
                   preferred_element_type=jnp.float32)
    y = y * scale.reshape(1, 1, N) + bias.reshape(1, 1, N)
    y = jnp.maximum(y, 0.0)
    if res is not None:
        y = y + res.astype(jnp.bfloat16).astype(jnp.float32)
    if gate is not None:
        y = y * gate.astype(jnp.float32)[:, None, :]
    return y.astype(out_dtype)


def ref_conv3x3(xs, ws, scale, bias, out_dtype=jnp.bfloat16):
    B, H, W, _ = xs[0].shape
    N = ws[0].shape[-1]
    acc = jnp.zeros((B, H, W, N), jnp.float32)
    for x, w in zip(xs, ws):
        xp = jnp.pad(x.astype(jnp.bfloat16), ((0, 0), (1, 1), (1, 1), (0, 0)))
        wb = w.astype(jnp.bfloat16)
        for ky in range(3):
            for kx in range(3):
                tap = xp[:, ky:ky + H, kx:kx + W, :]
                acc = acc + jnp.einsum("bhwc,cn->bhwn", tap, wb[ky * 3 + kx],
                                       preferred_element_type=jnp.float32)
    y = acc * scale.reshape(1, 1, 1, N) + bias.reshape(1, 1, 1, N)
    y = jnp.maximum(y, 0.0)
    return y.astype(out_dtype)


def ref_linear(x, w, b):
    return (jnp.dot(x.astype(jnp.bfloat16), w.astype(jnp.bfloat16),
                    preferred_element_type=jnp.float32)
            + b.reshape(1, -1).astype(jnp.float32))


def ref_avgpool(x):
    B, H, W, C = x.shape
    s = x.reshape(B, H // 2, 2, W // 2, 2, C).astype(jnp.float32).sum(axis=(2, 4))
    return (s * 0.25).astype(x.dtype)


# ------------------------------ FPN forward ------------------------------

def fpn_forward(params, x2, x3, x4, sent_emb, *, use_pallas=True,
                tm_cap=512, tk_cap=512):
    if use_pallas:
        level = functools.partial(fused_level, tm_cap=tm_cap, tk_cap=tk_cap)
        conv3, lin, pool = conv3x3_level, lang_linear, avg_pool2x2
    else:
        level, conv3, lin, pool = ref_level, ref_conv3x3, ref_linear, ref_avgpool

    B, H2, W2, _ = x2.shape
    _, H3, W3, _ = x3.shape
    _, H4, W4, _ = x4.shape
    N = params["conv0_w"].shape[1]                     # out_channels[1]

    # language gates: all three lang_proj Linears in one matmul
    g = lin(sent_emb, params["proj_w"], params["proj_b"])          # (B, 3N) f32
    g0, g1, g2 = g[:, :N], g[:, N:2 * N], g[:, 2 * N:]

    # p4 = lang_fuser0(conv0(x4), sent_emb)
    p4 = level(x4.reshape(B, H4 * W4, -1), params["conv0_w"], *params["bn0"], gate=g0)
    p4_img = p4.reshape(B, H4, W4, N)
    p4_up = upsample2x_bilinear(p4_img)                             # (B, H3, W3, N)

    # p3 = lang_fuser1(conv1(x3) + up(p4), sent_emb)
    p3 = level(x3.reshape(B, H3 * W3, -1), params["conv1_w"], *params["bn1"],
               res=p4_up.reshape(B, H3 * W3, N), gate=g1)
    p3_img = p3.reshape(B, H3, W3, N)
    p3_up = upsample2x_bilinear(p3_img)                             # (B, H2, W2, N)

    # p2 = lang_fuser2(conv2(x2) + up(p3), sent_emb)
    p2 = level(x2.reshape(B, H2 * W2, -1), params["conv2_w"], *params["bn2"],
               res=p3_up.reshape(B, H2 * W2, N), gate=g2)
    p2_img = p2.reshape(B, H2, W2, N)

    # heads: 3x3 conv_layer blocks (in-kernel tap accumulation, in-kernel crop)
    f4 = conv3([p4_img], [params["convp4_w"]], *params["bnp4"])
    f4 = upsample2x_bilinear(f4)                                    # (B, H3, W3, N)
    f3 = conv3([p3_img], [params["convp3_w"]], *params["bnp3"])
    f2 = conv3([p2_img], [params["convp2_w"]], *params["bnp2"])
    f2 = pool(f2)                                                   # (B, H3, W3, N)

    # coordconv over cat([f4, f3, f2], channel): K-packed 3x3 conv (K = 3N)
    fv = conv3([f4, f3, f2],
               [params["coord_w0"], params["coord_w1"], params["coord_w2"]],
               *params["bnc"], out_dtype=jnp.float32)
    return fv                                                       # (B, H3, W3, N) f32


# ------------------------------ parameters ------------------------------

def make_params(key, in_channels, out_channels):
    N = out_channels[1]
    D = in_channels[-1]                                # proj_input_dim
    keys = iter(jax.random.split(key, 64))

    def nrm(shape, std=0.05):
        return (std * jax.random.normal(next(keys), shape)).astype(jnp.float32)

    def bn():
        # BatchNorm2d eval mode, folded: scale = g/sqrt(rv+eps), bias = b - rm*scale
        gamma = (1.0 + 0.1 * jax.random.normal(next(keys), (N,))).astype(jnp.float32)
        beta = (0.1 * jax.random.normal(next(keys), (N,))).astype(jnp.float32)
        rm = (0.05 * jax.random.normal(next(keys), (N,))).astype(jnp.float32)
        rv = jax.random.uniform(next(keys), (N,), minval=0.5, maxval=1.5).astype(jnp.float32)
        scale = gamma / jnp.sqrt(rv + 1e-5)
        return scale, beta - rm * scale

    p = {}
    # 1x1 convs: torch weight (N, Cin, 1, 1) stored pre-transposed as (Cin, N)
    p["conv0_w"] = nrm((in_channels[2], N)); p["bn0"] = bn()
    p["conv1_w"] = nrm((in_channels[1], N)); p["bn1"] = bn()
    p["conv2_w"] = nrm((in_channels[0], N)); p["bn2"] = bn()
    # lang_proj{0,1,2} Linear(D, N) folded into one (D, 3N) weight / (3N,) bias
    p["proj_w"] = nrm((D, 3 * N), std=0.02)
    p["proj_b"] = nrm((3 * N,), std=0.02)
    # 3x3 convs: torch weight (N, Cin, 3, 3) stored as (9, Cin, N),
    #            w[ky*3+kx, c, n] == W_torch[n, c, ky, kx]
    p["convp4_w"] = nrm((9, N, N)); p["bnp4"] = bn()
    p["convp3_w"] = nrm((9, N, N)); p["bnp3"] = bn()
    p["convp2_w"] = nrm((9, N, N)); p["bnp2"] = bn()
    # coordconv weight (N, 3N, 3, 3) split along the input concat [f4, f3, f2]
    p["coord_w0"] = nrm((9, N, N))
    p["coord_w1"] = nrm((9, N, N))
    p["coord_w2"] = nrm((9, N, N))
    p["bnc"] = bn()
    return p


# ------------------------------ main ------------------------------

if __name__ == "__main__":
    B = 2
    in_channels = [128, 256, 256]      # scaled-down analog of [512, 1024, 1024]
    out_channels = [64, 128, 256]      # N = out_channels[1] = 128 (lane-dense)
    H4 = W4 = 4                        # x3 = 2x, x2 = 4x spatial resolution

    key = jax.random.PRNGKey(0)
    kp, k2, k3, k4, ks = jax.random.split(key, 5)
    params = make_params(kp, in_channels, out_channels)

    # NHWC inputs (NCHW equivalents: x2 (2,128,16,16), x3 (2,256,8,8), x4 (2,256,4,4))
    x2 = jax.random.normal(k2, (B, 4 * H4, 4 * W4, in_channels[0]), jnp.float32)
    x3 = jax.random.normal(k3, (B, 2 * H4, 2 * W4, in_channels[1]), jnp.float32)
    x4 = jax.random.normal(k4, (B, H4, W4, in_channels[2]), jnp.float32)
    sent_emb = jax.random.normal(ks, (B, in_channels[-1]), jnp.float32)

    # Small tile caps so the test exercises both the M and the K accumulation grid.
    pallas_fwd = jax.jit(lambda p, a, b, c, s: fpn_forward(
        p, a, b, c, s, use_pallas=True, tm_cap=128, tk_cap=128))
    ref_fwd = jax.jit(lambda p, a, b, c, s: fpn_forward(
        p, a, b, c, s, use_pallas=False))

    out = jax.block_until_ready(pallas_fwd(params, x2, x3, x4, sent_emb))
    ref = jax.block_until_ready(ref_fwd(params, x2, x3, x4, sent_emb))

    assert out.shape == (B, 2 * H4, 2 * W4, out_channels[1]), out.shape
    err = float(jnp.max(jnp.abs(out - ref)))
    assert jnp.allclose(out, ref, atol=5e-2, rtol=5e-2), f"max abs err {err}"
    print("KERNEL_OK")
</pallas_src>

<mosaic_0001>
module attributes {stable_mosaic.version = 11 : i64} {
  func.func @linear_kernel(%arg0: i32, %arg1: memref<2x256xbf16, #tpu.memory_space<vmem>>, %arg2: memref<256x384xbf16, #tpu.memory_space<vmem>>, %arg3: memref<1x384xf32, #tpu.memory_space<vmem>>, %arg4: memref<2x384xf32, #tpu.memory_space<vmem>>) attributes {dimension_semantics = [#tpu.dimension_semantics<arbitrary>], iteration_bounds = array<i64: 1>, scalar_prefetch = 0 : i64, scratch_operands = 0 : i64, tpu.core_type = #tpu.core_type<tc>, window_params = [{pipeline_mode = #tpu.pipeline_mode<synchronous>, transform_indices = @transform_0, window_bounds = array<i64: 2, 256>}, {pipeline_mode = #tpu.pipeline_mode<synchronous>, transform_indices = @transform_1, window_bounds = array<i64: 256, 384>}, {pipeline_mode = #tpu.pipeline_mode<synchronous>, transform_indices = @transform_2, window_bounds = array<i64: 1, 384>}, {pipeline_mode = #tpu.pipeline_mode<synchronous>, transform_indices = @transform_3, window_bounds = array<i64: 2, 384>}]} {
    %c0 = arith.constant 0 : index
    %c0_0 = arith.constant 0 : index
    %0 = vector.load %arg1[%c0, %c0_0] : memref<2x256xbf16, #tpu.memory_space<vmem>>, vector<2x256xbf16>
    %c0_1 = arith.constant 0 : index
    %c0_2 = arith.constant 0 : index
    %1 = vector.load %arg2[%c0_1, %c0_2] : memref<256x384xbf16, #tpu.memory_space<vmem>>, vector<256x384xbf16>
    %cst = arith.constant dense<0.000000e+00> : vector<2x384xf32>
    %2 = tpu.matmul %0, %1, %cst {dimension_numbers = #tpu.dot_dimension_numbers<[1], [0], [0], [1], [0, 0, 1, 1], [], []>} : vector<2x256xbf16>, vector<256x384xbf16>, vector<2x384xf32> -> vector<2x384xf32>
    %c0_3 = arith.constant 0 : index
    %c0_4 = arith.constant 0 : index
    %3 = vector.load %arg3[%c0_3, %c0_4] : memref<1x384xf32, #tpu.memory_space<vmem>>, vector<1x384xf32>
    %4 = vector.broadcast %3 : vector<1x384xf32> to vector<2x384xf32>
    %5 = arith.addf %2, %4 : vector<2x384xf32>
    %c0_5 = arith.constant 0 : index
    %c0_6 = arith.constant 0 : index
    %6 = vector.load %arg4[%c0_5, %c0_6] : memref<2x384xf32, #tpu.memory_space<vmem>>, vector<2x384xf32>
    tpu.vector_store %arg4[%c0_5, %c0_6], %5 {strides = array<i32>} : memref<2x384xf32, #tpu.memory_space<vmem>>, vector<2x384xf32>,
    return
  }
  func.func @transform_0(%arg0: i32) -> (i32, i32) {
    %c0_i32 = arith.constant 0 : i32
    %c0_i32_0 = arith.constant 0 : i32
    %c0_i32_1 = arith.constant 0 : i32
    return %c0_i32, %c0_i32_0 : i32, i32
  }
  func.func @transform_1(%arg0: i32) -> (i32, i32) {
    %c0_i32 = arith.constant 0 : i32
    %c0_i32_0 = arith.constant 0 : i32
    %c0_i32_1 = arith.constant 0 : i32
    return %c0_i32, %c0_i32_0 : i32, i32
  }
  func.func @transform_2(%arg0: i32) -> (i32, i32) {
    %c0_i32 = arith.constant 0 : i32
    %c0_i32_0 = arith.constant 0 : i32
    %c0_i32_1 = arith.constant 0 : i32
    return %c0_i32, %c0_i32_0 : i32, i32
  }
  func.func @transform_3(%arg0: i32) -> (i32, i32) {
    %c0_i32 = arith.constant 0 : i32
    %c0_i32_0 = arith.constant 0 : i32
    %c0_i32_1 = arith.constant 0 : i32
    return %c0_i32, %c0_i32_0 : i32, i32
  }
}

module attributes {stable_mosaic.version = 11 : i64} {
  func.func @kernel(%arg0: i32, %arg1: i32, %arg2: i32, %arg3: memref<1x16x128xbf16, #tpu.memory_space<vmem>>, %arg4: memref<128x128xbf16, #tpu.memory_space<vmem>>, %arg5: memref<1x128xf32, #tpu.memory_space<vmem>>, %arg6: memref<1x128xf32, #tpu.memory_space<vmem>>, %arg7: memref<1x1x128xf32, #tpu.memory_space<vmem>>, %arg8: memref<1x16x128xbf16, #tpu.memory_space<vmem>>, %arg9: memref<16x128xf32, #tpu.memory_space<vmem>>) attributes {dimension_semantics = [#tpu.dimension_semantics<parallel>, #tpu.dimension_semantics<parallel>, #tpu.dimension_semantics<arbitrary>], iteration_bounds = array<i64: 2, 1, 2>, scalar_prefetch = 0 : i64, scratch_operands = 1 : i64, tpu.core_type = #tpu.core_type<tc>, window_params = [{transform_indices = @transform_0, window_bounds = array<i64: 1, 16, 128>}, {transform_indices = @transform_1, window_bounds = array<i64: 128, 128>}, {pipeline_mode = #tpu.pipeline_mode<synchronous>, transform_indices = @transform_2, window_bounds = array<i64: 1, 128>}, {pipeline_mode = #tpu.pipeline_mode<synchronous>, transform_indices = @transform_3, window_bounds = array<i64: 1, 128>}, {transform_indices = @transform_4, window_bounds = array<i64: 1, 1, 128>}, {transform_indices = @transform_5, window_bounds = array<i64: 1, 16, 128>}]} {
    %c0_i32 = arith.constant 0 : i32
    %0 = arith.cmpi eq, %arg2, %c0_i32 : i32
    %1 = arith.extui %0 : i1 to i32
    %c0_i32_0 = arith.constant 0 : i32
    %2 = arith.cmpi ne, %1, %c0_i32_0 : i32
    scf.if %2 {
      %cst_10 = arith.constant 0.000000e+00 : f32
      %13 = vector.broadcast %cst_10 : f32 to vector<16x128xf32>
      %c0_11 = arith.constant 0 : index
      %c0_12 = arith.constant 0 : index
      %14 = vector.load %arg9[%c0_11, %c0_12] : memref<16x128xf32, #tpu.memory_space<vmem>>, vector<16x128xf32>
      tpu.vector_store %arg9[%c0_11, %c0_12], %13 {strides = array<i32>} : memref<16x128xf32, #tpu.memory_space<vmem>>, vector<16x128xf32>,
    } else {
    }
    %c0 = arith.constant 0 : index
    %c0_1 = arith.constant 0 : index
    %3 = vector.load %arg9[%c0, %c0_1] : memref<16x128xf32, #tpu.memory_space<vmem>>, vector<16x128xf32>
    %c0_2 = arith.constant 0 : index
    %c0_3 = arith.constant 0 : index
    %c0_4 = arith.constant 0 : index
    %4 = vector.load %arg3[%c0_2, %c0_3, %c0_4] : memref<1x16x128xbf16, #tpu.memory_space<vmem>>, vector<1x16x128xbf16>
    %5 = vector.shape_cast %4 : vector<1x16x128xbf16> to vector<16x128xbf16>
    %c0_5 = arith.constant 0 : index
    %c0_6 = arith.constant 0 : index
    %6 = vector.load %arg4[%c0_5, %c0_6] : memref<128x128xbf16, #tpu.memory_space<vmem>>, vector<128x128xbf16>
    %cst = arith.constant dense<0.000000e+00> : vector<16x128xf32>
    %7 = tpu.matmul %5, %6, %cst {dimension_numbers = #tpu.dot_dimension_numbers<[1], [0], [0], [1], [0, 0, 1, 1], [], []>} : vector<16x128xbf16>, vector<128x128xbf16>, vector<16x128xf32> -> vector<16x128xf32>
    %8 = arith.addf %3, %7 : vector<16x128xf32>
    %c0_7 = arith.constant 0 : index
    %c0_8 = arith.constant 0 : index
    %9 = vector.load %arg9[%c0_7, %c0_8] : memref<16x128xf32, #tpu.memory_space<vmem>>, vector<16x128xf32>
    tpu.vector_store %arg9[%c0_7, %c0_8], %8 {strides = array<i32>} : memref<16x128xf32, #tpu.memory_space<vmem>>, vector<16x128xf32>,
    %c1_i32 = arith.constant 1 : i32
    %10 = arith.cmpi eq, %arg2, %c1_i32 : i32
    %11 = arith.extui %10 : i1 to i32
    %c0_i32_9 = arith.constant 0 : i32
    %12 = arith.cmpi ne, %11, %c0_i32_9 : i32
    scf.if %12 {
      %c0_10 = arith.constant 0 : index
      %c0_11 = arith.constant 0 : index
      %13 = vector.load %arg9[%c0_10, %c0_11] : memref<16x128xf32, #tpu.memory_space<vmem>>, vector<16x128xf32>
      %c0_12 = arith.constant 0 : index
      %c0_13 = arith.constant 0 : index
      %14 = vector.load %arg5[%c0_12, %c0_13] : memref<1x128xf32, #tpu.memory_space<vmem>>, vector<1x128xf32>
      %15 = vector.broadcast %14 : vector<1x128xf32> to vector<16x128xf32>
      %16 = arith.mulf %13, %15 : vector<16x128xf32>
      %c0_14 = arith.constant 0 : index
      %c0_15 = arith.constant 0 : index
      %17 = vector.load %arg6[%c0_14, %c0_15] : memref<1x128xf32, #tpu.memory_space<vmem>>, vector<1x128xf32>
      %18 = vector.broadcast %17 : vector<1x128xf32> to vector<16x128xf32>
      %19 = arith.addf %16, %18 : vector<16x128xf32>
      %cst_16 = arith.constant 0.000000e+00 : f32
      %20 = vector.broadcast %cst_16 : f32 to vector<16x128xf32>
      %21 = arith.maximumf %19, %20 : vector<16x128xf32>
      %c0_17 = arith.constant 0 : index
      %c0_18 = arith.constant 0 : index
      %c0_19 = arith.constant 0 : index
      %22 = vector.load %arg7[%c0_17, %c0_18, %c0_19] : memref<1x1x128xf32, #tpu.memory_space<vmem>>, vector<1x1x128xf32>
      %23 = vector.shape_cast %22 : vector<1x1x128xf32> to vector<1x128xf32>
      %24 = vector.broadcast %23 : vector<1x128xf32> to vector<16x128xf32>
      %25 = arith.mulf %21, %24 : vector<16x128xf32>
      %26 = arith.truncf %25 : vector<16x128xf32> to vector<16x128xbf16>
      %c0_20 = arith.constant 0 : index
      %c0_21 = arith.constant 0 : index
      %c0_22 = arith.constant 0 : index
      %27 = vector.load %arg8[%c0_20, %c0_21, %c0_22] : memref<1x16x128xbf16, #tpu.memory_space<vmem>>, vector<1x16x128xbf16>
      %28 = vector.shape_cast %27 : vector<1x16x128xbf16> to vector<16x128xbf16>
      %29 = vector.shape_cast %26 : vector<16x128xbf16> to vector<1x16x128xbf16>
      tpu.vector_store %arg8[%c0_20, %c0_21, %c0_22], %29 {strides = array<i32>} : memref<1x16x128xbf16, #tpu.memory_space<vmem>>, vector<1x16x128xbf16>,
    } else {
    }
    return
  }
  func.func @transform_0(%arg0: i32, %arg1: i32, %arg2: i32) -> (i32, i32, i32) {
    %c0_i32 = arith.constant 0 : i32
    return %arg0, %arg1, %arg2 : i32, i32, i32
  }
  func.func @transform_1(%arg0: i32, %arg1: i32, %arg2: i32) -> (i32, i32) {
    %c0_i32 = arith.constant 0 : i32
    %c0_i32_0 = arith.constant 0 : i32
    return %arg2, %c0_i32 : i32, i32
  }
  func.func @transform_2(%arg0: i32, %arg1: i32, %arg2: i32) -> (i32, i32) {
    %c0_i32 = arith.constant 0 : i32
    %c0_i32_0 = arith.constant 0 : i32
    %c0_i32_1 = arith.constant 0 : i32
    return %c0_i32, %c0_i32_0 : i32, i32
  }
  func.func @transform_3(%arg0: i32, %arg1: i32, %arg2: i32) -> (i32, i32) {
    %c0_i32 = arith.constant 0 : i32
    %c0_i32_0 = arith.constant 0 : i32
    %c0_i32_1 = arith.constant 0 : i32
    return %c0_i32, %c0_i32_0 : i32, i32
  }
  func.func @transform_4(%arg0: i32, %arg1: i32, %arg2: i32) -> (i32, i32, i32) {
    %c0_i32 = arith.constant 0 : i32
    %c0_i32_0 = arith.constant 0 : i32
    %c0_i32_1 = arith.constant 0 : i32
    return %arg0, %c0_i32, %c0_i32_0 : i32, i32, i32
  }
  func.func @transform_5(%arg0: i32, %arg1: i32, %arg2: i32) -> (i32, i32, i32) {
    %c0_i32 = arith.constant 0 : i32
    %c0_i32_0 = arith.constant 0 : i32
    return %arg0, %arg1, %c0_i32 : i32, i32, i32
  }
}

module attributes {stable_mosaic.version = 11 : i64} {
  func.func @kernel(%arg0: i32, %arg1: i32, %arg2: i32, %arg3: memref<1x64x128xbf16, #tpu.memory_space<vmem>>, %arg4: memref<128x128xbf16, #tpu.memory_space<vmem>>, %arg5: memref<1x128xf32, #tpu.memory_space<vmem>>, %arg6: memref<1x128xf32, #tpu.memory_space<vmem>>, %arg7: memref<1x64x128xbf16, #tpu.memory_space<vmem>>, %arg8: memref<1x1x128xf32, #tpu.memory_space<vmem>>, %arg9: memref<1x64x128xbf16, #tpu.memory_space<vmem>>, %arg10: memref<64x128xf32, #tpu.memory_space<vmem>>) attributes {dimension_semantics = [#tpu.dimension_semantics<parallel>, #tpu.dimension_semantics<parallel>, #tpu.dimension_semantics<arbitrary>], iteration_bounds = array<i64: 2, 1, 2>, scalar_prefetch = 0 : i64, scratch_operands = 1 : i64, tpu.core_type = #tpu.core_type<tc>, window_params = [{transform_indices = @transform_0, window_bounds = array<i64: 1, 64, 128>}, {transform_indices = @transform_1, window_bounds = array<i64: 128, 128>}, {pipeline_mode = #tpu.pipeline_mode<synchronous>, transform_indices = @transform_2, window_bounds = array<i64: 1, 128>}, {pipeline_mode = #tpu.pipeline_mode<synchronous>, transform_indices = @transform_3, window_bounds = array<i64: 1, 128>}, {transform_indices = @transform_4, window_bounds = array<i64: 1, 64, 128>}, {transform_indices = @transform_5, window_bounds = array<i64: 1, 1, 128>}, {transform_indices = @transform_6, window_bounds = array<i64: 1, 64, 128>}]} {
    %c0_i32 = arith.constant 0 : i32
    %0 = arith.cmpi eq, %arg2, %c0_i32 : i32
    %1 = arith.extui %0 : i1 to i32
    %c0_i32_0 = arith.constant 0 : i32
    %2 = arith.cmpi ne, %1, %c0_i32_0 : i32
    scf.if %2 {
      %cst_10 = arith.constant 0.000000e+00 : f32
      %13 = vector.broadcast %cst_10 : f32 to vector<64x128xf32>
      %c0_11 = arith.constant 0 : index
      %c0_12 = arith.constant 0 : index
      %14 = vector.load %arg10[%c0_11, %c0_12] : memref<64x128xf32, #tpu.memory_space<vmem>>, vector<64x128xf32>
      tpu.vector_store %arg10[%c0_11, %c0_12], %13 {strides = array<i32>} : memref<64x128xf32, #tpu.memory_space<vmem>>, vector<64x128xf32>,
    } else {
    }
    %c0 = arith.constant 0 : index
    %c0_1 = arith.constant 0 : index
    %3 = vector.load %arg10[%c0, %c0_1] : memref<64x128xf32, #tpu.memory_space<vmem>>, vector<64x128xf32>
    %c0_2 = arith.constant 0 : index
    %c0_3 = arith.constant 0 : index
    %c0_4 = arith.constant 0 : index
    %4 = vector.load %arg3[%c0_2, %c0_3, %c0_4] : memref<1x64x128xbf16, #tpu.memory_space<vmem>>, vector<1x64x128xbf16>
    %5 = vector.shape_cast %4 : vector<1x64x128xbf16> to vector<64x128xbf16>
    %c0_5 = arith.constant 0 : index
    %c0_6 = arith.constant 0 : index
    %6 = vector.load %arg4[%c0_5, %c0_6] : memref<128x128xbf16, #tpu.memory_space<vmem>>, vector<128x128xbf16>
    %cst = arith.constant dense<0.000000e+00> : vector<64x128xf32>
    %7 = tpu.matmul %5, %6, %cst {dimension_numbers = #tpu.dot_dimension_numbers<[1], [0], [0], [1], [0, 0, 1, 1], [], []>} : vector<64x128xbf16>, vector<128x128xbf16>, vector<64x128xf32> -> vector<64x128xf32>
    %8 = arith.addf %3, %7 : vector<64x128xf32>
    %c0_7 = arith.constant 0 : index
    %c0_8 = arith.constant 0 : index
    %9 = vector.load %arg10[%c0_7, %c0_8] : memref<64x128xf32, #tpu.memory_space<vmem>>, vector<64x128xf32>
    tpu.vector_store %arg10[%c0_7, %c0_8], %8 {strides = array<i32>} : memref<64x128xf32, #tpu.memory_space<vmem>>, vector<64x128xf32>,
    %c1_i32 = arith.constant 1 : i32
    %10 = arith.cmpi eq, %arg2, %c1_i32 : i32
    %11 = arith.extui %10 : i1 to i32
    %c0_i32_9 = arith.constant 0 : i32
    %12 = arith.cmpi ne, %11, %c0_i32_9 : i32
    scf.if %12 {
      %c0_10 = arith.constant 0 : index
      %c0_11 = arith.constant 0 : index
      %13 = vector.load %arg10[%c0_10, %c0_11] : memref<64x128xf32, #tpu.memory_space<vmem>>, vector<64x128xf32>
      %c0_12 = arith.constant 0 : index
      %c0_13 = arith.constant 0 : index
      %14 = vector.load %arg5[%c0_12, %c0_13] : memref<1x128xf32, #tpu.memory_space<vmem>>, vector<1x128xf32>
      %15 = vector.broadcast %14 : vector<1x128xf32> to vector<64x128xf32>
      %16 = arith.mulf %13, %15 : vector<64x128xf32>
      %c0_14 = arith.constant 0 : index
      %c0_15 = arith.constant 0 : index
      %17 = vector.load %arg6[%c0_14, %c0_15] : memref<1x128xf32, #tpu.memory_space<vmem>>, vector<1x128xf32>
      %18 = vector.broadcast %17 : vector<1x128xf32> to vector<64x128xf32>
      %19 = arith.addf %16, %18 : vector<64x128xf32>
      %cst_16 = arith.constant 0.000000e+00 : f32
      %20 = vector.broadcast %cst_16 : f32 to vector<64x128xf32>
      %21 = arith.maximumf %19, %20 : vector<64x128xf32>
      %c0_17 = arith.constant 0 : index
      %c0_18 = arith.constant 0 : index
      %c0_19 = arith.constant 0 : index
      %22 = vector.load %arg7[%c0_17, %c0_18, %c0_19] : memref<1x64x128xbf16, #tpu.memory_space<vmem>>, vector<1x64x128xbf16>
      %23 = vector.shape_cast %22 : vector<1x64x128xbf16> to vector<64x128xbf16>
      %24 = arith.extf %23 : vector<64x128xbf16> to vector<64x128xf32>
      %25 = arith.addf %21, %24 : vector<64x128xf32>
      %c0_20 = arith.constant 0 : index
      %c0_21 = arith.constant 0 : index
      %c0_22 = arith.constant 0 : index
      %26 = vector.load %arg8[%c0_20, %c0_21, %c0_22] : memref<1x1x128xf32, #tpu.memory_space<vmem>>, vector<1x1x128xf32>
      %27 = vector.shape_cast %26 : vector<1x1x128xf32> to vector<1x128xf32>
      %28 = vector.broadcast %27 : vector<1x128xf32> to vector<64x128xf32>
      %29 = arith.mulf %25, %28 : vector<64x128xf32>
      %30 = arith.truncf %29 : vector<64x128xf32> to vector<64x128xbf16>
      %c0_23 = arith.constant 0 : index
      %c0_24 = arith.constant 0 : index
      %c0_25 = arith.constant 0 : index
      %31 = vector.load %arg9[%c0_23, %c0_24, %c0_25] : memref<1x64x128xbf16, #tpu.memory_space<vmem>>, vector<1x64x128xbf16>
      %32 = vector.shape_cast %31 : vector<1x64x128xbf16> to vector<64x128xbf16>
      %33 = vector.shape_cast %30 : vector<64x128xbf16> to vector<1x64x128xbf16>
      tpu.vector_store %arg9[%c0_23, %c0_24, %c0_25], %33 {strides = array<i32>} : memref<1x64x128xbf16, #tpu.memory_space<vmem>>, vector<1x64x128xbf16>,
    } else {
    }
    return
  }
  func.func @transform_0(%arg0: i32, %arg1: i32, %arg2: i32) -> (i32, i32, i32) {
    %c0_i32 = arith.constant 0 : i32
    return %arg0, %arg1, %arg2 : i32, i32, i32
  }
  func.func @transform_1(%arg0: i32, %arg1: i32, %arg2: i32) -> (i32, i32) {
    %c0_i32 = arith.constant 0 : i32
    %c0_i32_0 = arith.constant 0 : i32
    return %arg2, %c0_i32 : i32, i32
  }
  func.func @transform_2(%arg0: i32, %arg1: i32, %arg2: i32) -> (i32, i32) {
    %c0_i32 = arith.constant 0 : i32
    %c0_i32_0 = arith.constant 0 : i32
    %c0_i32_1 = arith.constant 0 : i32
    return %c0_i32, %c0_i32_0 : i32, i32
  }
  func.func @transform_3(%arg0: i32, %arg1: i32, %arg2: i32) -> (i32, i32) {
    %c0_i32 = arith.constant 0 : i32
    %c0_i32_0 = arith.constant 0 : i32
    %c0_i32_1 = arith.constant 0 : i32
    return %c0_i32, %c0_i32_0 : i32, i32
  }
  func.func @transform_4(%arg0: i32, %arg1: i32, %arg2: i32) -> (i32, i32, i32) {
    %c0_i32 = arith.constant 0 : i32
    %c0_i32_0 = arith.constant 0 : i32
    return %arg0, %arg1, %c0_i32 : i32, i32, i32
  }
  func.func @transform_5(%arg0: i32, %arg1: i32, %arg2: i32) -> (i32, i32, i32) {
    %c0_i32 = arith.constant 0 : i32
    %c0_i32_0 = arith.constant 0 : i32
    %c0_i32_1 = arith.constant 0 : i32
    return %arg0, %c0_i32, %c0_i32_0 : i32, i32, i32
  }
  func.func @transform_6(%arg0: i32, %arg1: i32, %arg2: i32) -> (i32, i32, i32) {
    %c0_i32 = arith.constant 0 : i32
    %c0_i32_0 = arith.constant 0 : i32
    return %arg0, %arg1, %c0_i32 : i32, i32, i32
  }
}

module attributes {stable_mosaic.version = 11 : i64} {
  func.func @kernel(%arg0: i32, %arg1: i32, %arg2: i32, %arg3: memref<1x128x128xbf16, #tpu.memory_space<vmem>>, %arg4: memref<128x128xbf16, #tpu.memory_space<vmem>>, %arg5: memref<1x128xf32, #tpu.memory_space<vmem>>, %arg6: memref<1x128xf32, #tpu.memory_space<vmem>>, %arg7: memref<1x128x128xbf16, #tpu.memory_space<vmem>>, %arg8: memref<1x1x128xf32, #tpu.memory_space<vmem>>, %arg9: memref<1x128x128xbf16, #tpu.memory_space<vmem>>, %arg10: memref<128x128xf32, #tpu.memory_space<vmem>>) attributes {dimension_semantics = [#tpu.dimension_semantics<parallel>, #tpu.dimension_semantics<parallel>, #tpu.dimension_semantics<arbitrary>], iteration_bounds = array<i64: 2, 2, 1>, scalar_prefetch = 0 : i64, scratch_operands = 1 : i64, tpu.core_type = #tpu.core_type<tc>, window_params = [{transform_indices = @transform_0, window_bounds = array<i64: 1, 128, 128>}, {transform_indices = @transform_1, window_bounds = array<i64: 128, 128>}, {pipeline_mode = #tpu.pipeline_mode<synchronous>, transform_indices = @transform_2, window_bounds = array<i64: 1, 128>}, {pipeline_mode = #tpu.pipeline_mode<synchronous>, transform_indices = @transform_3, window_bounds = array<i64: 1, 128>}, {transform_indices = @transform_4, window_bounds = array<i64: 1, 128, 128>}, {transform_indices = @transform_5, window_bounds = array<i64: 1, 1, 128>}, {transform_indices = @transform_6, window_bounds = array<i64: 1, 128, 128>}]} {
    %c0_i32 = arith.constant 0 : i32
    %0 = arith.cmpi eq, %arg2, %c0_i32 : i32
    %1 = arith.extui %0 : i1 to i32
    %c0_i32_0 = arith.constant 0 : i32
    %2 = arith.cmpi ne, %1, %c0_i32_0 : i32
    scf.if %2 {
      %cst_11 = arith.constant 0.000000e+00 : f32
      %13 = vector.broadcast %cst_11 : f32 to vector<128x128xf32>
      %c0_12 = arith.constant 0 : index
      %c0_13 = arith.constant 0 : index
      %14 = vector.load %arg10[%c0_12, %c0_13] : memref<128x128xf32, #tpu.memory_space<vmem>>, vector<128x128xf32>
      tpu.vector_store %arg10[%c0_12, %c0_13], %13 {strides = array<i32>} : memref<128x128xf32, #tpu.memory_space<vmem>>, vector<128x128xf32>,
    } else {
    }
    %c0 = arith.constant 0 : index
    %c0_1 = arith.constant 0 : index
    %3 = vector.load %arg10[%c0, %c0_1] : memref<128x128xf32, #tpu.memory_space<vmem>>, vector<128x128xf32>
    %c0_2 = arith.constant 0 : index
    %c0_3 = arith.constant 0 : index
    %c0_4 = arith.constant 0 : index
    %4 = vector.load %arg3[%c0_2, %c0_3, %c0_4] : memref<1x128x128xbf16, #tpu.memory_space<vmem>>, vector<1x128x128xbf16>
    %5 = vector.shape_cast %4 : vector<1x128x128xbf16> to vector<128x128xbf16>
    %c0_5 = arith.constant 0 : index
    %c0_6 = arith.constant 0 : index
    %6 = vector.load %arg4[%c0_5, %c0_6] : memref<128x128xbf16, #tpu.memory_space<vmem>>, vector<128x128xbf16>
    %cst = arith.constant dense<0.000000e+00> : vector<128x128xf32>
    %7 = tpu.matmul %5, %6, %cst {dimension_numbers = #tpu.dot_dimension_numbers<[1], [0], [0], [1], [0, 0, 1, 1], [], []>} : vector<128x128xbf16>, vector<128x128xbf16>, vector<128x128xf32> -> vector<128x128xf32>
    %8 = arith.addf %3, %7 : vector<128x128xf32>
    %c0_7 = arith.constant 0 : index
    %c0_8 = arith.constant 0 : index
    %9 = vector.load %arg10[%c0_7, %c0_8] : memref<128x128xf32, #tpu.memory_space<vmem>>, vector<128x128xf32>
    tpu.vector_store %arg10[%c0_7, %c0_8], %8 {strides = array<i32>} : memref<128x128xf32, #tpu.memory_space<vmem>>, vector<128x128xf32>,
    %c0_i32_9 = arith.constant 0 : i32
    %10 = arith.cmpi eq, %arg2, %c0_i32_9 : i32
    %11 = arith.extui %10 : i1 to i32
    %c0_i32_10 = arith.constant 0 : i32
    %12 = arith.cmpi ne, %11, %c0_i32_10 : i32
    scf.if %12 {
      %c0_11 = arith.constant 0 : index
      %c0_12 = arith.constant 0 : index
      %13 = vector.load %arg10[%c0_11, %c0_12] : memref<128x128xf32, #tpu.memory_space<vmem>>, vector<128x128xf32>
      %c0_13 = arith.constant 0 : index
      %c0_14 = arith.constant 0 : index
      %14 = vector.load %arg5[%c0_13, %c0_14] : memref<1x128xf32, #tpu.memory_space<vmem>>, vector<1x128xf32>
      %15 = vector.broadcast %14 : vector<1x128xf32> to vector<128x128xf32>
      %16 = arith.mulf %13, %15 : vector<128x128xf32>
      %c0_15 = arith.constant 0 : index
      %c0_16 = arith.constant 0 : index
      %17 = vector.load %arg6[%c0_15, %c0_16] : memref<1x128xf32, #tpu.memory_space<vmem>>, vector<1x128xf32>
      %18 = vector.broadcast %17 : vector<1x128xf32> to vector<128x128xf32>
      %19 = arith.addf %16, %18 : vector<128x128xf32>
      %cst_17 = arith.constant 0.000000e+00 : f32
      %20 = vector.broadcast %cst_17 : f32 to vector<128x128xf32>
      %21 = arith.maximumf %19, %20 : vector<128x128xf32>
      %c0_18 = arith.constant 0 : index
      %c0_19 = arith.constant 0 : index
      %c0_20 = arith.constant 0 : index
      %22 = vector.load %arg7[%c0_18, %c0_19, %c0_20] : memref<1x128x128xbf16, #tpu.memory_space<vmem>>, vector<1x128x128xbf16>
      %23 = vector.shape_cast %22 : vector<1x128x128xbf16> to vector<128x128xbf16>
      %24 = arith.extf %23 : vector<128x128xbf16> to vector<128x128xf32>
      %25 = arith.addf %21, %24 : vector<128x128xf32>
      %c0_21 = arith.constant 0 : index
      %c0_22 = arith.constant 0 : index
      %c0_23 = arith.constant 0 : index
      %26 = vector.load %arg8[%c0_21, %c0_22, %c0_23] : memref<1x1x128xf32, #tpu.memory_space<vmem>>, vector<1x1x128xf32>
      %27 = vector.shape_cast %26 : vector<1x1x128xf32> to vector<1x128xf32>
      %28 = vector.broadcast %27 : vector<1x128xf32> to vector<128x128xf32>
      %29 = arith.mulf %25, %28 : vector<128x128xf32>
      %30 = arith.truncf %29 : vector<128x128xf32> to vector<128x128xbf16>
      %c0_24 = arith.constant 0 : index
      %c0_25 = arith.constant 0 : index
      %c0_26 = arith.constant 0 : index
      %31 = vector.load %arg9[%c0_24, %c0_25, %c0_26] : memref<1x128x128xbf16, #tpu.memory_space<vmem>>, vector<1x128x128xbf16>
      %32 = vector.shape_cast %31 : vector<1x128x128xbf16> to vector<128x128xbf16>
      %33 = vector.shape_cast %30 : vector<128x128xbf16> to vector<1x128x128xbf16>
      tpu.vector_store %arg9[%c0_24, %c0_25, %c0_26], %33 {strides = array<i32>} : memref<1x128x128xbf16, #tpu.memory_space<vmem>>, vector<1x128x128xbf16>,
    } else {
    }
    return
  }
  func.func @transform_0(%arg0: i32, %arg1: i32, %arg2: i32) -> (i32, i32, i32) {
    %c0_i32 = arith.constant 0 : i32
    return %arg0, %arg1, %arg2 : i32, i32, i32
  }
  func.func @transform_1(%arg0: i32, %arg1: i32, %arg2: i32) -> (i32, i32) {
    %c0_i32 = arith.constant 0 : i32
    %c0_i32_0 = arith.constant 0 : i32
    return %arg2, %c0_i32 : i32, i32
  }
  func.func @transform_2(%arg0: i32, %arg1: i32, %arg2: i32) -> (i32, i32) {
    %c0_i32 = arith.constant 0 : i32
    %c0_i32_0 = arith.constant 0 : i32
    %c0_i32_1 = arith.constant 0 : i32
    return %c0_i32, %c0_i32_0 : i32, i32
  }
  func.func @transform_3(%arg0: i32, %arg1: i32, %arg2: i32) -> (i32, i32) {
    %c0_i32 = arith.constant 0 : i32
    %c0_i32_0 = arith.constant 0 : i32
    %c0_i32_1 = arith.constant 0 : i32
    return %c0_i32, %c0_i32_0 : i32, i32
  }
  func.func @transform_4(%arg0: i32, %arg1: i32, %arg2: i32) -> (i32, i32, i32) {
    %c0_i32 = arith.constant 0 : i32
    %c0_i32_0 = arith.constant 0 : i32
    return %arg0, %arg1, %c0_i32 : i32, i32, i32
  }
  func.func @transform_5(%arg0: i32, %arg1: i32, %arg2: i32) -> (i32, i32, i32) {
    %c0_i32 = arith.constant 0 : i32
    %c0_i32_0 = arith.constant 0 : i32
    %c0_i32_1 = arith.constant 0 : i32
    return %arg0, %c0_i32, %c0_i32_0 : i32, i32, i32
  }
  func.func @transform_6(%arg0: i32, %arg1: i32, %arg2: i32) -> (i32, i32, i32) {
    %c0_i32 = arith.constant 0 : i32
    %c0_i32_0 = arith.constant 0 : i32
    return %arg0, %arg1, %c0_i32 : i32, i32, i32
  }
}

module attributes {stable_mosaic.version = 11 : i64} {
  func.func @kernel(%arg0: i32, %arg1: memref<1x342x128xbf16, #tpu.memory_space<vmem>>, %arg2: memref<9x128x128xbf16, #tpu.memory_space<vmem>>, %arg3: memref<1x128xf32, #tpu.memory_space<vmem>>, %arg4: memref<1x128xf32, #tpu.memory_space<vmem>>, %arg5: memref<1x16x16x128xbf16, #tpu.memory_space<vmem>>) attributes {dimension_semantics = [#tpu.dimension_semantics<parallel>], iteration_bounds = array<i64: 2>, scalar_prefetch = 0 : i64, scratch_operands = 0 : i64, tpu.core_type = #tpu.core_type<tc>, window_params = [{transform_indices = @transform_0, window_bounds = array<i64: 1, 342, 128>}, {pipeline_mode = #tpu.pipeline_mode<synchronous>, transform_indices = @transform_1, window_bounds = array<i64: 9, 128, 128>}, {pipeline_mode = #tpu.pipeline_mode<synchronous>, transform_indices = @transform_2, window_bounds = array<i64: 1, 128>}, {pipeline_mode = #tpu.pipeline_mode<synchronous>, transform_indices = @transform_3, window_bounds = array<i64: 1, 128>}, {transform_indices = @transform_4, window_bounds = array<i64: 1, 16, 16, 128>}]} {
    %c0 = arith.constant 0 : index
    %c0_0 = arith.constant 0 : index
    %c0_1 = arith.constant 0 : index
    %0 = vector.load %arg1[%c0, %c0_0, %c0_1] : memref<1x342x128xbf16, #tpu.memory_space<vmem>>, vector<1x288x128xbf16>
    %1 = vector.shape_cast %0 : vector<1x288x128xbf16> to vector<288x128xbf16>
    %c0_2 = arith.constant 0 : index
    %c0_3 = arith.constant 0 : index
    %c0_4 = arith.constant 0 : index
    %2 = vector.load %arg2[%c0_2, %c0_3, %c0_4] : memref<9x128x128xbf16, #tpu.memory_space<vmem>>, vector<1x128x128xbf16>
    %3 = vector.shape_cast %2 : vector<1x128x128xbf16> to vector<128x128xbf16>
    %cst = arith.constant dense<0.000000e+00> : vector<288x128xf32>
    %4 = tpu.matmul %1, %3, %cst {dimension_numbers = #tpu.dot_dimension_numbers<[1], [0], [0], [1], [0, 0, 1, 1], [], []>} : vector<288x128xbf16>, vector<128x128xbf16>, vector<288x128xf32> -> vector<288x128xf32>
    %c0_5 = arith.constant 0 : index
    %c1 = arith.constant 1 : index
    %c0_6 = arith.constant 0 : index
    %5 = vector.load %arg1[%c0_5, %c1, %c0_6] : memref<1x342x128xbf16, #tpu.memory_space<vmem>>, vector<1x288x128xbf16>
    %6 = vector.shape_cast %5 : vector<1x288x128xbf16> to vector<288x128xbf16>
    %c1_7 = arith.constant 1 : index
    %c0_8 = arith.constant 0 : index
    %c0_9 = arith.constant 0 : index
    %7 = vector.load %arg2[%c1_7, %c0_8, %c0_9] : memref<9x128x128xbf16, #tpu.memory_space<vmem>>, vector<1x128x128xbf16>
    %8 = vector.shape_cast %7 : vector<1x128x128xbf16> to vector<128x128xbf16>
    %cst_10 = arith.constant dense<0.000000e+00> : vector<288x128xf32>
    %9 = tpu.matmul %6, %8, %cst_10 {dimension_numbers = #tpu.dot_dimension_numbers<[1], [0], [0], [1], [0, 0, 1, 1], [], []>} : vector<288x128xbf16>, vector<128x128xbf16>, vector<288x128xf32> -> vector<288x128xf32>
    %10 = arith.addf %4, %9 : vector<288x128xf32>
    %c0_11 = arith.constant 0 : index
    %c2 = arith.constant 2 : index
    %c0_12 = arith.constant 0 : index
    %11 = vector.load %arg1[%c0_11, %c2, %c0_12] : memref<1x342x128xbf16, #tpu.memory_space<vmem>>, vector<1x288x128xbf16>
    %12 = vector.shape_cast %11 : vector<1x288x128xbf16> to vector<288x128xbf16>
    %c2_13 = arith.constant 2 : index
    %c0_14 = arith.constant 0 : index
    %c0_15 = arith.constant 0 : index
    %13 = vector.load %arg2[%c2_13, %c0_14, %c0_15] : memref<9x128x128xbf16, #tpu.memory_space<vmem>>, vector<1x128x128xbf16>
    %14 = vector.shape_cast %13 : vector<1x128x128xbf16> to vector<128x128xbf16>
    %cst_16 = arith.constant dense<0.000000e+00> : vector<288x128xf32>
    %15 = tpu.matmul %12, %14, %cst_16 {dimension_numbers = #tpu.dot_dimension_numbers<[1], [0], [0], [1], [0, 0, 1, 1], [], []>} : vector<288x128xbf16>, vector<128x128xbf16>, vector<288x128xf32> -> vector<288x128xf32>
    %16 = arith.addf %10, %15 : vector<288x128xf32>
    %c0_17 = arith.constant 0 : index
    %c18 = arith.constant 18 : index
    %c0_18 = arith.constant 0 : index
    %17 = vector.load %arg1[%c0_17, %c18, %c0_18] : memref<1x342x128xbf16, #tpu.memory_space<vmem>>, vector<1x288x128xbf16>
    %18 = vector.shape_cast %17 : vector<1x288x128xbf16> to vector<288x128xbf16>
    %c3 = arith.constant 3 : index
    %c0_19 = arith.constant 0 : index
    %c0_20 = arith.constant 0 : index
    %19 = vector.load %arg2[%c3, %c0_19, %c0_20] : memref<9x128x128xbf16, #tpu.memory_space<vmem>>, vector<1x128x128xbf16>
    %20 = vector.shape_cast %19 : vector<1x128x128xbf16> to vector<128x128xbf16>
    %cst_21 = arith.constant dense<0.000000e+00> : vector<288x128xf32>
    %21 = tpu.matmul %18, %20, %cst_21 {dimension_numbers = #tpu.dot_dimension_numbers<[1], [0], [0], [1], [0, 0, 1, 1], [], []>} : vector<288x128xbf16>, vector<128x128xbf16>, vector<288x128xf32> -> vector<288x128xf32>
    %22 = arith.addf %16, %21 : vector<288x128xf32>
    %c0_22 = arith.constant 0 : index
    %c19 = arith.constant 19 : index
    %c0_23 = arith.constant 0 : index
    %23 = vector.load %arg1[%c0_22, %c19, %c0_23] : memref<1x342x128xbf16, #tpu.memory_space<vmem>>, vector<1x288x128xbf16>
    %24 = vector.shape_cast %23 : vector<1x288x128xbf16> to vector<288x128xbf16>
    %c4 = arith.constant 4 : index
    %c0_24 = arith.constant 0 : index
    %c0_25 = arith.constant 0 : index
    %25 = vector.load %arg2[%c4, %c0_24, %c0_25] : memref<9x128x128xbf16, #tpu.memory_space<vmem>>, vector<1x128x128xbf16>
    %26 = vector.shape_cast %25 : vector<1x128x128xbf16> to vector<128x128xbf16>
    %cst_26 = arith.constant dense<0.000000e+00> : vector<288x128xf32>
    %27 = tpu.matmul %24, %26, %cst_26 {dimension_numbers = #tpu.dot_dimension_numbers<[1], [0], [0], [1], [0, 0, 1, 1], [], []>} : vector<288x128xbf16>, vector<128x128xbf16>, vector<288x128xf32> -> vector<288x128xf32>
    %28 = arith.addf %22, %27 : vector<288x128xf32>
    %c0_27 = arith.constant 0 : index
    %c20 = arith.constant 20 : index
    %c0_28 = arith.constant 0 : index
    %29 = vector.load %arg1[%c0_27, %c20, %c0_28] : memref<1x342x128xbf16, #tpu.memory_space<vmem>>, vector<1x288x128xbf16>
    %30 = vector.shape_cast %29 : vector<1x288x128xbf16> to vector<288x128xbf16>
    %c5 = arith.constant 5 : index
    %c0_29 = arith.constant 0 : index
    %c0_30 = arith.constant 0 : index
    %31 = vector.load %arg2[%c5, %c0_29, %c0_30] : memref<9x128x128xbf16, #tpu.memory_space<vmem>>, vector<1x128x128xbf16>
    %32 = vector.shape_cast %31 : vector<1x128x128xbf16> to vector<128x128xbf16>
    %cst_31 = arith.constant dense<0.000000e+00> : vector<288x128xf32>
    %33 = tpu.matmul %30, %32, %cst_31 {dimension_numbers = #tpu.dot_dimension_numbers<[1], [0], [0], [1], [0, 0, 1, 1], [], []>} : vector<288x128xbf16>, vector<128x128xbf16>, vector<288x128xf32> -> vector<288x128xf32>
    %34 = arith.addf %28, %33 : vector<288x128xf32>
    %c0_32 = arith.constant 0 : index
    %c36 = arith.constant 36 : index
    %c0_33 = arith.constant 0 : index
    %35 = vector.load %arg1[%c0_32, %c36, %c0_33] : memref<1x342x128xbf16, #tpu.memory_space<vmem>>, vector<1x288x128xbf16>
    %36 = vector.shape_cast %35 : vector<1x288x128xbf16> to vector<288x128xbf16>
    %c6 = arith.constant 6 : index
    %c0_34 = arith.constant 0 : index
    %c0_35 = arith.constant 0 : index
    %37 = vector.load %arg2[%c6, %c0_34, %c0_35] : memref<9x128x128xbf16, #tpu.memory_space<vmem>>, vector<1x128x128xbf16>
    %38 = vector.shape_cast %37 : vector<1x128x128xbf16> to vector<128x128xbf16>
    %cst_36 = arith.constant dense<0.000000e+00> : vector<288x128xf32>
    %39 = tpu.matmul %36, %38, %cst_36 {dimension_numbers = #tpu.dot_dimension_numbers<[1], [0], [0], [1], [0, 0, 1, 1], [], []>} : vector<288x128xbf16>, vector<128x128xbf16>, vector<288x128xf32> -> vector<288x128xf32>
    %40 = arith.addf %34, %39 : vector<288x128xf32>
    %c0_37 = arith.constant 0 : index
    %c37 = arith.constant 37 : index
    %c0_38 = arith.constant 0 : index
    %41 = vector.load %arg1[%c0_37, %c37, %c0_38] : memref<1x342x128xbf16, #tpu.memory_space<vmem>>, vector<1x288x128xbf16>
    %42 = vector.shape_cast %41 : vector<1x288x128xbf16> to vector<288x128xbf16>
    %c7 = arith.constant 7 : index
    %c0_39 = arith.constant 0 : index
    %c0_40 = arith.constant 0 : index
    %43 = vector.load %arg2[%c7, %c0_39, %c0_40] : memref<9x128x128xbf16, #tpu.memory_space<vmem>>, vector<1x128x128xbf16>
    %44 = vector.shape_cast %43 : vector<1x128x128xbf16> to vector<128x128xbf16>
    %cst_41 = arith.constant dense<0.000000e+00> : vector<288x128xf32>
    %45 = tpu.matmul %42, %44, %cst_41 {dimension_numbers = #tpu.dot_dimension_numbers<[1], [0], [0], [1], [0, 0, 1, 1], [], []>} : vector<288x128xbf16>, vector<128x128xbf16>, vector<288x128xf32> -> vector<288x128xf32>
    %46 = arith.addf %40, %45 : vector<288x128xf32>
    %c0_42 = arith.constant 0 : index
    %c38 = arith.constant 38 : index
    %c0_43 = arith.constant 0 : index
    %47 = vector.load %arg1[%c0_42, %c38, %c0_43] : memref<1x342x128xbf16, #tpu.memory_space<vmem>>, vector<1x288x128xbf16>
    %48 = vector.shape_cast %47 : vector<1x288x128xbf16> to vector<288x128xbf16>
    %c8 = arith.constant 8 : index
    %c0_44 = arith.constant 0 : index
    %c0_45 = arith.constant 0 : index
    %49 = vector.load %arg2[%c8, %c0_44, %c0_45] : memref<9x128x128xbf16, #tpu.memory_space<vmem>>, vector<1x128x128xbf16>
    %50 = vector.shape_cast %49 : vector<1x128x128xbf16> to vector<128x128xbf16>
    %cst_46 = arith.constant dense<0.000000e+00> : vector<288x128xf32>
    %51 = tpu.matmul %48, %50, %cst_46 {dimension_numbers = #tpu.dot_dimension_numbers<[1], [0], [0], [1], [0, 0, 1, 1], [], []>} : vector<288x128xbf16>, vector<128x128xbf16>, vector<288x128xf32> -> vector<288x128xf32>
    %52 = arith.addf %46, %51 : vector<288x128xf32>
    %c0_47 = arith.constant 0 : index
    %c0_48 = arith.constant 0 : index
    %53 = vector.load %arg3[%c0_47, %c0_48] : memref<1x128xf32, #tpu.memory_space<vmem>>, vector<1x128xf32>
    %54 = vector.broadcast %53 : vector<1x128xf32> to vector<288x128xf32>
    %55 = arith.mulf %52, %54 : vector<288x128xf32>
    %c0_49 = arith.constant 0 : index
    %c0_50 = arith.constant 0 : index
    %56 = vector.load %arg4[%c0_49, %c0_50] : memref<1x128xf32, #tpu.memory_space<vmem>>, vector<1x128xf32>
    %57 = vector.broadcast %56 : vector<1x128xf32> to vector<288x128xf32>
    %58 = arith.addf %55, %57 : vector<288x128xf32>
    %cst_51 = arith.constant 0.000000e+00 : f32
    %59 = vector.broadcast %cst_51 : f32 to vector<288x128xf32>
    %60 = arith.maximumf %58, %59 : vector<288x128xf32>
    %61 = vector.extract_strided_slice %60 {offsets = [0, 0], sizes = [16, 128], strides = [1, 1]} : vector<288x128xf32> to vector<16x128xf32>
    %62 = arith.truncf %61 : vector<16x128xf32> to vector<16x128xbf16>
    %c0_52 = arith.constant 0 : index
    %c0_53 = arith.constant 0 : index
    %c0_54 = arith.constant 0 : index
    %c0_55 = arith.constant 0 : index
    %63 = vector.load %arg5[%c0_52, %c0_53, %c0_54, %c0_55] : memref<1x16x16x128xbf16, #tpu.memory_space<vmem>>, vector<1x1x16x128xbf16>
    %64 = vector.shape_cast %63 : vector<1x1x16x128xbf16> to vector<16x128xbf16>
    %65 = vector.shape_cast %62 : vector<16x128xbf16> to vector<1x1x16x128xbf16>
    tpu.vector_store %arg5[%c0_52, %c0_53, %c0_54, %c0_55], %65 {strides = array<i32>} : memref<1x16x16x128xbf16, #tpu.memory_space<vmem>>, vector<1x1x16x128xbf16>,
    %66 = vector.extract_strided_slice %60 {offsets = [18, 0], sizes = [16, 128], strides = [1, 1]} : vector<288x128xf32> to vector<16x128xf32>
    %67 = arith.truncf %66 : vector<16x128xf32> to vector<16x128xbf16>
    %c0_56 = arith.constant 0 : index
    %c1_57 = arith.constant 1 : index
    %c0_58 = arith.constant 0 : index
    %c0_59 = arith.constant 0 : index
    %68 = vector.load %arg5[%c0_56, %c1_57, %c0_58, %c0_59] : memref<1x16x16x128xbf16, #tpu.memory_space<vmem>>, vector<1x1x16x128xbf16>
    %69 = vector.shape_cast %68 : vector<1x1x16x128xbf16> to vector<16x128xbf16>
    %70 = vector.shape_cast %67 : vector<16x128xbf16> to vector<1x1x16x128xbf16>
    tpu.vector_store %arg5[%c0_56, %c1_57, %c0_58, %c0_59], %70 {strides = array<i32>} : memref<1x16x16x128xbf16, #tpu.memory_space<vmem>>, vector<1x1x16x128xbf16>,
    %71 = vector.extract_strided_slice %60 {offsets = [36, 0], sizes = [16, 128], strides = [1, 1]} : vector<288x128xf32> to vector<16x128xf32>
    %72 = arith.truncf %71 : vector<16x128xf32> to vector<16x128xbf16>
    %c0_60 = arith.constant 0 : index
    %c2_61 = arith.constant 2 : index
    %c0_62 = arith.constant 0 : index
    %c0_63 = arith.constant 0 : index
    %73 = vector.load %arg5[%c0_60, %c2_61, %c0_62, %c0_63] : memref<1x16x16x128xbf16, #tpu.memory_space<vmem>>, vector<1x1x16x128xbf16>
    %74 = vector.shape_cast %73 : vector<1x1x16x128xbf16> to vector<16x128xbf16>
    %75 = vector.shape_cast %72 : vector<16x128xbf16> to vector<1x1x16x128xbf16>
    tpu.vector_store %arg5[%c0_60, %c2_61, %c0_62, %c0_63], %75 {strides = array<i32>} : memref<1x16x16x128xbf16, #tpu.memory_space<vmem>>, vector<1x1x16x128xbf16>,
    %76 = vector.extract_strided_slice %60 {offsets = [54, 0], sizes = [16, 128], strides = [1, 1]} : vector<288x128xf32> to vector<16x128xf32>
    %77 = arith.truncf %76 : vector<16x128xf32> to vector<16x128xbf16>
    %c0_64 = arith.constant 0 : index
    %c3_65 = arith.constant 3 : index
    %c0_66 = arith.constant 0 : index
    %c0_67 = arith.constant 0 : index
    %78 = vector.load %arg5[%c0_64, %c3_65, %c0_66, %c0_67] : memref<1x16x16x128xbf16, #tpu.memory_space<vmem>>, vector<1x1x16x128xbf16>
    %79 = vector.shape_cast %78 : vector<1x1x16x128xbf16> to vector<16x128xbf16>
    %80 = vector.shape_cast %77 : vector<16x128xbf16> to vector<1x1x16x128xbf16>
    tpu.vector_store %arg5[%c0_64, %c3_65, %c0_66, %c0_67], %80 {strides = array<i32>} : memref<1x16x16x128xbf16, #tpu.memory_space<vmem>>, vector<1x1x16x128xbf16>,
    %81 = vector.extract_strided_slice %60 {offsets = [72, 0], sizes = [16, 128], strides = [1, 1]} : vector<288x128xf32> to vector<16x128xf32>
    %82 = arith.truncf %81 : vector<16x128xf32> to vector<16x128xbf16>
    %c0_68 = arith.constant 0 : index
    %c4_69 = arith.constant 4 : index
    %c0_70 = arith.constant 0 : index
    %c0_71 = arith.constant 0 : index
    %83 = vector.load %arg5[%c0_68, %c4_69, %c0_70, %c0_71] : memref<1x16x16x128xbf16, #tpu.memory_space<vmem>>, vector<1x1x16x128xbf16>
    %84 = vector.shape_cast %83 : vector<1x1x16x128xbf16> to vector<16x128xbf16>
    %85 = vector.shape_cast %82 : vector<16x128xbf16> to vector<1x1x16x128xbf16>
    tpu.vector_store %arg5[%c0_68, %c4_69, %c0_70, %c0_71], %85 {strides = array<i32>} : memref<1x16x16x128xbf16, #tpu.memory_space<vmem>>, vector<1x1x16x128xbf16>,
    %86 = vector.extract_strided_slice %60 {offsets = [90, 0], sizes = [16, 128], strides = [1, 1]} : vector<288x128xf32> to vector<16x128xf32>
    %87 = arith.truncf %86 : vector<16x128xf32> to vector<16x128xbf16>
    %c0_72 = arith.constant 0 : index
    %c5_73 = arith.constant 5 : index
    %c0_74 = arith.constant 0 : index
    %c0_75 = arith.constant 0 : index
    %88 = vector.load %arg5[%c0_72, %c5_73, %c0_74, %c0_75] : memref<1x16x16x128xbf16, #tpu.memory_space<vmem>>, vector<1x1x16x128xbf16>
    %89 = vector.shape_cast %88 : vector<1x1x16x128xbf16> to vector<16x128xbf16>
    %90 = vector.shape_cast %87 : vector<16x128xbf16> to vector<1x1x16x128xbf16>
    tpu.vector_store %arg5[%c0_72, %c5_73, %c0_74, %c0_75], %90 {strides = array<i32>} : memref<1x16x16x128xbf16, #tpu.memory_space<vmem>>, vector<1x1x16x128xbf16>,
    %91 = vector.extract_strided_slice %60 {offsets = [108, 0], sizes = [16, 128], strides = [1, 1]} : vector<288x128xf32> to vector<16x128xf32>
    %92 = arith.truncf %91 : vector<16x128xf32> to vector<16x128xbf16>
    %c0_76 = arith.constant 0 : index
    %c6_77 = arith.constant 6 : index
    %c0_78 = arith.constant 0 : index
    %c0_79 = arith.constant 0 : index
    %93 = vector.load %arg5[%c0_76, %c6_77, %c0_78, %c0_79] : memref<1x16x16x128xbf16, #tpu.memory_space<vmem>>, vector<1x1x16x128xbf16>
    %94 = vector.shape_cast %93 : vector<1x1x16x128xbf16> to vector<16x128xbf16>
    %95 = vector.shape_cast %92 : vector<16x128xbf16> to vector<1x1x16x128xbf16>
    tpu.vector_store %arg5[%c0_76, %c6_77, %c0_78, %c0_79], %95 {strides = array<i32>} : memref<1x16x16x128xbf16, #tpu.memory_space<vmem>>, vector<1x1x16x128xbf16>,
    %96 = vector.extract_strided_slice %60 {offsets = [126, 0], sizes = [16, 128], strides = [1, 1]} : vector<288x128xf32> to vector<16x128xf32>
    %97 = arith.truncf %96 : vector<16x128xf32> to vector<16x128xbf16>
    %c0_80 = arith.constant 0 : index
    %c7_81 = arith.constant 7 : index
    %c0_82 = arith.constant 0 : index
    %c0_83 = arith.constant 0 : index
    %98 = vector.load %arg5[%c0_80, %c7_81, %c0_82, %c0_83] : memref<1x16x16x128xbf16, #tpu.memory_space<vmem>>, vector<1x1x16x128xbf16>
    %99 = vector.shape_cast %98 : vector<1x1x16x128xbf16> to vector<16x128xbf16>
    %100 = vector.shape_cast %97 : vector<16x128xbf16> to vector<1x1x16x128xbf16>
    tpu.vector_store %arg5[%c0_80, %c7_81, %c0_82, %c0_83], %100 {strides = array<i32>} : memref<1x16x16x128xbf16, #tpu.memory_space<vmem>>, vector<1x1x16x128xbf16>,
    %101 = vector.extract_strided_slice %60 {offsets = [144, 0], sizes = [16, 128], strides = [1, 1]} : vector<288x128xf32> to vector<16x128xf32>
    %102 = arith.truncf %101 : vector<16x128xf32> to vector<16x128xbf16>
    %c0_84 = arith.constant 0 : index
    %c8_85 = arith.constant 8 : index
    %c0_86 = arith.constant 0 : index
    %c0_87 = arith.constant 0 : index
    %103 = vector.load %arg5[%c0_84, %c8_85, %c0_86, %c0_87] : memref<1x16x16x128xbf16, #tpu.memory_space<vmem>>, vector<1x1x16x128xbf16>
    %104 = vector.shape_cast %103 : vector<1x1x16x128xbf16> to vector<16x128xbf16>
    %105 = vector.shape_cast %102 : vector<16x128xbf16> to vector<1x1x16x128xbf16>
    tpu.vector_store %arg5[%c0_84, %c8_85, %c0_86, %c0_87], %105 {strides = array<i32>} : memref<1x16x16x128xbf16, #tpu.memory_space<vmem>>, vector<1x1x16x128xbf16>,
    %106 = vector.extract_strided_slice %60 {offsets = [162, 0], sizes = [16, 128], strides = [1, 1]} : vector<288x128xf32> to vector<16x128xf32>
    %107 = arith.truncf %106 : vector<16x128xf32> to vector<16x128xbf16>
    %c0_88 = arith.constant 0 : index
    %c9 = arith.constant 9 : index
    %c0_89 = arith.constant 0 : index
    %c0_90 = arith.constant 0 : index
    %108 = vector.load %arg5[%c0_88, %c9, %c0_89, %c0_90] : memref<1x16x16x128xbf16, #tpu.memory_space<vmem>>, vector<1x1x16x128xbf16>
    %109 = vector.shape_cast %108 : vector<1x1x16x128xbf16> to vector<16x128xbf16>
    %110 = vector.shape_cast %107 : vector<16x128xbf16> to vector<1x1x16x128xbf16>
    tpu.vector_store %arg5[%c0_88, %c9, %c0_89, %c0_90], %110 {strides = array<i32>} : memref<1x16x16x128xbf16, #tpu.memory_space<vmem>>, vector<1x1x16x128xbf16>,
    %111 = vector.extract_strided_slice %60 {offsets = [180, 0], sizes = [16, 128], strides = [1, 1]} : vector<288x128xf32> to vector<16x128xf32>
    %112 = arith.truncf %111 : vector<16x128xf32> to vector<16x128xbf16>
    %c0_91 = arith.constant 0 : index
    %c10 = arith.constant 10 : index
    %c0_92 = arith.constant 0 : index
    %c0_93 = arith.constant 0 : index
    %113 = vector.load %arg5[%c0_91, %c10, %c0_92, %c0_93] : memref<1x16x16x128xbf16, #tpu.memory_space<vmem>>, vector<1x1x16x128xbf16>
    %114 = vector.shape_cast %113 : vector<1x1x16x128xbf16> to vector<16x128xbf16>
    %115 = vector.shape_cast %112 : vector<16x128xbf16> to vector<1x1x16x128xbf16>
    tpu.vector_store %arg5[%c0_91, %c10, %c0_92, %c0_93], %115 {strides = array<i32>} : memref<1x16x16x128xbf16, #tpu.memory_space<vmem>>, vector<1x1x16x128xbf16>,
    %116 = vector.extract_strided_slice %60 {offsets = [198, 0], sizes = [16, 128], strides = [1, 1]} : vector<288x128xf32> to vector<16x128xf32>
    %117 = arith.truncf %116 : vector<16x128xf32> to vector<16x128xbf16>
    %c0_94 = arith.constant 0 : index
    %c11 = arith.constant 11 : index
    %c0_95 = arith.constant 0 : index
    %c0_96 = arith.constant 0 : index
    %118 = vector.load %arg5[%c0_94, %c11, %c0_95, %c0_96] : memref<1x16x16x128xbf16, #tpu.memory_space<vmem>>, vector<1x1x16x128xbf16>
    %119 = vector.shape_cast %118 : vector<1x1x16x128xbf16> to vector<16x128xbf16>
    %120 = vector.shape_cast %117 : vector<16x128xbf16> to vector<1x1x16x128xbf16>
    tpu.vector_store %arg5[%c0_94, %c11, %c0_95, %c0_96], %120 {strides = array<i32>} : memref<1x16x16x128xbf16, #tpu.memory_space<vmem>>, vector<1x1x16x128xbf16>,
    %121 = vector.extract_strided_slice %60 {offsets = [216, 0], sizes = [16, 128], strides = [1, 1]} : vector<288x128xf32> to vector<16x128xf32>
    %122 = arith.truncf %121 : vector<16x128xf32> to vector<16x128xbf16>
    %c0_97 = arith.constant 0 : index
    %c12 = arith.constant 12 : index
    %c0_98 = arith.constant 0 : index
    %c0_99 = arith.constant 0 : index
    %123 = vector.load %arg5[%c0_97, %c12, %c0_98, %c0_99] : memref<1x16x16x128xbf16, #tpu.memory_space<vmem>>, vector<1x1x16x128xbf16>
    %124 = vector.shape_cast %123 : vector<1x1x16x128xbf16> to vector<16x128xbf16>
    %125 = vector.shape_cast %122 : vector<16x128xbf16> to vector<1x1x16x128xbf16>
    tpu.vector_store %arg5[%c0_97, %c12, %c0_98, %c0_99], %125 {strides = array<i32>} : memref<1x16x16x128xbf16, #tpu.memory_space<vmem>>, vector<1x1x16x128xbf16>,
    %126 = vector.extract_strided_slice %60 {offsets = [234, 0], sizes = [16, 128], strides = [1, 1]} : vector<288x128xf32> to vector<16x128xf32>
    %127 = arith.truncf %126 : vector<16x128xf32> to vector<16x128xbf16>
    %c0_100 = arith.constant 0 : index
    %c13 = arith.constant 13 : index
    %c0_101 = arith.constant 0 : index
    %c0_102 = arith.constant 0 : index
    %128 = vector.load %arg5[%c0_100, %c13, %c0_101, %c0_102] : memref<1x16x16x128xbf16, #tpu.memory_space<vmem>>, vector<1x1x16x128xbf16>
    %129 = vector.shape_cast %128 : vector<1x1x16x128xbf16> to vector<16x128xbf16>
    %130 = vector.shape_cast %127 : vector<16x128xbf16> to vector<1x1x16x128xbf16>
    tpu.vector_store %arg5[%c0_100, %c13, %c0_101, %c0_102], %130 {strides = array<i32>} : memref<1x16x16x128xbf16, #tpu.memory_space<vmem>>, vector<1x1x16x128xbf16>,
    %131 = vector.extract_strided_slice %60 {offsets = [252, 0], sizes = [16, 128], strides = [1, 1]} : vector<288x128xf32> to vector<16x128xf32>
    %132 = arith.truncf %131 : vector<16x128xf32> to vector<16x128xbf16>
    %c0_103 = arith.constant 0 : index
    %c14 = arith.constant 14 : index
    %c0_104 = arith.constant 0 : index
    %c0_105 = arith.constant 0 : index
    %133 = vector.load %arg5[%c0_103, %c14, %c0_104, %c0_105] : memref<1x16x16x128xbf16, #tpu.memory_space<vmem>>, vector<1x1x16x128xbf16>
    %134 = vector.shape_cast %133 : vector<1x1x16x128xbf16> to vector<16x128xbf16>
    %135 = vector.shape_cast %132 : vector<16x128xbf16> to vector<1x1x16x128xbf16>
    tpu.vector_store %arg5[%c0_103, %c14, %c0_104, %c0_105], %135 {strides = array<i32>} : memref<1x16x16x128xbf16, #tpu.memory_space<vmem>>, vector<1x1x16x128xbf16>,
    %136 = vector.extract_strided_slice %60 {offsets = [270, 0], sizes = [16, 128], strides = [1, 1]} : vector<288x128xf32> to vector<16x128xf32>
    %137 = arith.truncf %136 : vector<16x128xf32> to vector<16x128xbf16>
    %c0_106 = arith.constant 0 : index
    %c15 = arith.constant 15 : index
    %c0_107 = arith.constant 0 : index
    %c0_108 = arith.constant 0 : index
    %138 = vector.load %arg5[%c0_106, %c15, %c0_107, %c0_108] : memref<1x16x16x128xbf16, #tpu.memory_space<vmem>>, vector<1x1x16x128xbf16>
    %139 = vector.shape_cast %138 : vector<1x1x16x128xbf16> to vector<16x128xbf16>
    %140 = vector.shape_cast %137 : vector<16x128xbf16> to vector<1x1x16x128xbf16>
    tpu.vector_store %arg5[%c0_106, %c15, %c0_107, %c0_108], %140 {strides = array<i32>} : memref<1x16x16x128xbf16, #tpu.memory_space<vmem>>, vector<1x1x16x128xbf16>,
    return
  }
  func.func @transform_0(%arg0: i32) -> (i32, i32, i32) {
    %c0_i32 = arith.constant 0 : i32
    %c0_i32_0 = arith.constant 0 : i32
    %c0_i32_1 = arith.constant 0 : i32
    return %arg0, %c0_i32, %c0_i32_0 : i32, i32, i32
  }
  func.func @transform_1(%arg0: i32) -> (i32, i32, i32) {
    %c0_i32 = arith.constant 0 : i32
    %c0_i32_0 = arith.constant 0 : i32
    %c0_i32_1 = arith.constant 0 : i32
    %c0_i32_2 = arith.constant 0 : i32
    return %c0_i32, %c0_i32_0, %c0_i32_1 : i32, i32, i32
  }
  func.func @transform_2(%arg0: i32) -> (i32, i32) {
    %c0_i32 = arith.constant 0 : i32
    %c0_i32_0 = arith.constant 0 : i32
    %c0_i32_1 = arith.constant 0 : i32
    return %c0_i32, %c0_i32_0 : i32, i32
  }
  func.func @transform_3(%arg0: i32) -> (i32, i32) {
    %c0_i32 = arith.constant 0 : i32
    %c0_i32_0 = arith.constant 0 : i32
    %c0_i32_1 = arith.constant 0 : i32
    return %c0_i32, %c0_i32_0 : i32, i32
  }
  func.func @transform_4(%arg0: i32) -> (i32, i32, i32, i32) {
    %c0_i32 = arith.constant 0 : i32
    %c0_i32_0 = arith.constant 0 : i32
    %c0_i32_1 = arith.constant 0 : i32
    %c0_i32_2 = arith.constant 0 : i32
    return %arg0, %c0_i32, %c0_i32_0, %c0_i32_1 : i32, i32, i32, i32
  }
}

module attributes {stable_mosaic.version = 11 : i64} {
  func.func @avgpool_kernel(%arg0: i32, %arg1: memref<1x8x2x8x256xbf16, #tpu.memory_space<vmem>>, %arg2: memref<1x8x8x128xbf16, #tpu.memory_space<vmem>>) attributes {dimension_semantics = [#tpu.dimension_semantics<parallel>], iteration_bounds = array<i64: 2>, scalar_prefetch = 0 : i64, scratch_operands = 0 : i64, tpu.core_type = #tpu.core_type<tc>, window_params = [{transform_indices = @transform_0, window_bounds = array<i64: 1, 8, 2, 8, 256>}, {transform_indices = @transform_1, window_bounds = array<i64: 1, 8, 8, 128>}]} {
    %c0 = arith.constant 0 : index
    %c0_0 = arith.constant 0 : index
    %c0_1 = arith.constant 0 : index
    %c0_2 = arith.constant 0 : index
    %c0_3 = arith.constant 0 : index
    %0 = vector.load %arg1[%c0, %c0_0, %c0_1, %c0_2, %c0_3] : memref<1x8x2x8x256xbf16, #tpu.memory_space<vmem>>, vector<1x8x2x8x256xbf16>
    %1 = vector.extract_strided_slice %0 {offsets = [0, 0, 0, 0, 0], sizes = [1, 8, 1, 8, 256], strides = [1, 1, 1, 1, 1]} : vector<1x8x2x8x256xbf16> to vector<1x8x1x8x256xbf16>
    %2 = vector.shape_cast %1 : vector<1x8x1x8x256xbf16> to vector<8x8x256xbf16>
    %3 = arith.extf %2 : vector<8x8x256xbf16> to vector<8x8x256xf32>
    %4 = vector.extract_strided_slice %0 {offsets = [0, 0, 1, 0, 0], sizes = [1, 8, 1, 8, 256], strides = [1, 1, 1, 1, 1]} : vector<1x8x2x8x256xbf16> to vector<1x8x1x8x256xbf16>
    %5 = vector.shape_cast %4 : vector<1x8x1x8x256xbf16> to vector<8x8x256xbf16>
    %6 = arith.extf %5 : vector<8x8x256xbf16> to vector<8x8x256xf32>
    %7 = arith.addf %3, %6 : vector<8x8x256xf32>
    %8 = vector.extract_strided_slice %7 {offsets = [0, 0, 0], sizes = [8, 8, 128], strides = [1, 1, 1]} : vector<8x8x256xf32> to vector<8x8x128xf32>
    %9 = vector.extract_strided_slice %7 {offsets = [0, 0, 128], sizes = [8, 8, 128], strides = [1, 1, 1]} : vector<8x8x256xf32> to vector<8x8x128xf32>
    %10 = arith.addf %8, %9 : vector<8x8x128xf32>
    %cst = arith.constant 2.500000e-01 : f32
    %11 = vector.broadcast %cst : f32 to vector<8x8x128xf32>
    %12 = arith.mulf %10, %11 : vector<8x8x128xf32>
    %13 = arith.truncf %12 : vector<8x8x128xf32> to vector<8x8x128xbf16>
    %c0_4 = arith.constant 0 : index
    %c0_5 = arith.constant 0 : index
    %c0_6 = arith.constant 0 : index
    %c0_7 = arith.constant 0 : index
    %14 = vector.load %arg2[%c0_4, %c0_5, %c0_6, %c0_7] : memref<1x8x8x128xbf16, #tpu.memory_space<vmem>>, vector<1x8x8x128xbf16>
    %15 = vector.shape_cast %14 : vector<1x8x8x128xbf16> to vector<8x8x128xbf16>
    %16 = vector.shape_cast %13 : vector<8x8x128xbf16> to vector<1x8x8x128xbf16>
    tpu.vector_store %arg2[%c0_4, %c0_5, %c0_6, %c0_7], %16 {strides = array<i32>} : memref<1x8x8x128xbf16, #tpu.memory_space<vmem>>, vector<1x8x8x128xbf16>,
    return
  }
  func.func @transform_0(%arg0: i32) -> (i32, i32, i32, i32, i32) {
    %c0_i32 = arith.constant 0 : i32
    %c0_i32_0 = arith.constant 0 : i32
    %c0_i32_1 = arith.constant 0 : i32
    %c0_i32_2 = arith.constant 0 : i32
    %c0_i32_3 = arith.constant 0 : i32
    return %arg0, %c0_i32, %c0_i32_0, %c0_i32_1, %c0_i32_2 : i32, i32, i32, i32, i32
  }
  func.func @transform_1(%arg0: i32) -> (i32, i32, i32, i32) {
    %c0_i32 = arith.constant 0 : i32
    %c0_i32_0 = arith.constant 0 : i32
    %c0_i32_1 = arith.constant 0 : i32
    %c0_i32_2 = arith.constant 0 : i32
    return %arg0, %c0_i32, %c0_i32_0, %c0_i32_1 : i32, i32, i32, i32
  }
}

module attributes {stable_mosaic.version = 11 : i64} {
  func.func @kernel(%arg0: i32, %arg1: memref<1x110x128xbf16, #tpu.memory_space<vmem>>, %arg2: memref<9x128x128xbf16, #tpu.memory_space<vmem>>, %arg3: memref<1x128xf32, #tpu.memory_space<vmem>>, %arg4: memref<1x128xf32, #tpu.memory_space<vmem>>, %arg5: memref<1x8x8x128xbf16, #tpu.memory_space<vmem>>) attributes {dimension_semantics = [#tpu.dimension_semantics<parallel>], iteration_bounds = array<i64: 2>, scalar_prefetch = 0 : i64, scratch_operands = 0 : i64, tpu.core_type = #tpu.core_type<tc>, window_params = [{transform_indices = @transform_0, window_bounds = array<i64: 1, 110, 128>}, {pipeline_mode = #tpu.pipeline_mode<synchronous>, transform_indices = @transform_1, window_bounds = array<i64: 9, 128, 128>}, {pipeline_mode = #tpu.pipeline_mode<synchronous>, transform_indices = @transform_2, window_bounds = array<i64: 1, 128>}, {pipeline_mode = #tpu.pipeline_mode<synchronous>, transform_indices = @transform_3, window_bounds = array<i64: 1, 128>}, {transform_indices = @transform_4, window_bounds = array<i64: 1, 8, 8, 128>}]} {
    %c0 = arith.constant 0 : index
    %c0_0 = arith.constant 0 : index
    %c0_1 = arith.constant 0 : index
    %0 = vector.load %arg1[%c0, %c0_0, %c0_1] : memref<1x110x128xbf16, #tpu.memory_space<vmem>>, vector<1x80x128xbf16>
    %1 = vector.shape_cast %0 : vector<1x80x128xbf16> to vector<80x128xbf16>
    %c0_2 = arith.constant 0 : index
    %c0_3 = arith.constant 0 : index
    %c0_4 = arith.constant 0 : index
    %2 = vector.load %arg2[%c0_2, %c0_3, %c0_4] : memref<9x128x128xbf16, #tpu.memory_space<vmem>>, vector<1x128x128xbf16>
    %3 = vector.shape_cast %2 : vector<1x128x128xbf16> to vector<128x128xbf16>
    %cst = arith.constant dense<0.000000e+00> : vector<80x128xf32>
    %4 = tpu.matmul %1, %3, %cst {dimension_numbers = #tpu.dot_dimension_numbers<[1], [0], [0], [1], [0, 0, 1, 1], [], []>} : vector<80x128xbf16>, vector<128x128xbf16>, vector<80x128xf32> -> vector<80x128xf32>
    %c0_5 = arith.constant 0 : index
    %c1 = arith.constant 1 : index
    %c0_6 = arith.constant 0 : index
    %5 = vector.load %arg1[%c0_5, %c1, %c0_6] : memref<1x110x128xbf16, #tpu.memory_space<vmem>>, vector<1x80x128xbf16>
    %6 = vector.shape_cast %5 : vector<1x80x128xbf16> to vector<80x128xbf16>
    %c1_7 = arith.constant 1 : index
    %c0_8 = arith.constant 0 : index
    %c0_9 = arith.constant 0 : index
    %7 = vector.load %arg2[%c1_7, %c0_8, %c0_9] : memref<9x128x128xbf16, #tpu.memory_space<vmem>>, vector<1x128x128xbf16>
    %8 = vector.shape_cast %7 : vector<1x128x128xbf16> to vector<128x128xbf16>
    %cst_10 = arith.constant dense<0.000000e+00> : vector<80x128xf32>
    %9 = tpu.matmul %6, %8, %cst_10 {dimension_numbers = #tpu.dot_dimension_numbers<[1], [0], [0], [1], [0, 0, 1, 1], [], []>} : vector<80x128xbf16>, vector<128x128xbf16>, vector<80x128xf32> -> vector<80x128xf32>
    %10 = arith.addf %4, %9 : vector<80x128xf32>
    %c0_11 = arith.constant 0 : index
    %c2 = arith.constant 2 : index
    %c0_12 = arith.constant 0 : index
    %11 = vector.load %arg1[%c0_11, %c2, %c0_12] : memref<1x110x128xbf16, #tpu.memory_space<vmem>>, vector<1x80x128xbf16>
    %12 = vector.shape_cast %11 : vector<1x80x128xbf16> to vector<80x128xbf16>
    %c2_13 = arith.constant 2 : index
    %c0_14 = arith.constant 0 : index
    %c0_15 = arith.constant 0 : index
    %13 = vector.load %arg2[%c2_13, %c0_14, %c0_15] : memref<9x128x128xbf16, #tpu.memory_space<vmem>>, vector<1x128x128xbf16>
    %14 = vector.shape_cast %13 : vector<1x128x128xbf16> to vector<128x128xbf16>
    %cst_16 = arith.constant dense<0.000000e+00> : vector<80x128xf32>
    %15 = tpu.matmul %12, %14, %cst_16 {dimension_numbers = #tpu.dot_dimension_numbers<[1], [0], [0], [1], [0, 0, 1, 1], [], []>} : vector<80x128xbf16>, vector<128x128xbf16>, vector<80x128xf32> -> vector<80x128xf32>
    %16 = arith.addf %10, %15 : vector<80x128xf32>
    %c0_17 = arith.constant 0 : index
    %c10 = arith.constant 10 : index
    %c0_18 = arith.constant 0 : index
    %17 = vector.load %arg1[%c0_17, %c10, %c0_18] : memref<1x110x128xbf16, #tpu.memory_space<vmem>>, vector<1x80x128xbf16>
    %18 = vector.shape_cast %17 : vector<1x80x128xbf16> to vector<80x128xbf16>
    %c3 = arith.constant 3 : index
    %c0_19 = arith.constant 0 : index
    %c0_20 = arith.constant 0 : index
    %19 = vector.load %arg2[%c3, %c0_19, %c0_20] : memref<9x128x128xbf16, #tpu.memory_space<vmem>>, vector<1x128x128xbf16>
    %20 = vector.shape_cast %19 : vector<1x128x128xbf16> to vector<128x128xbf16>
    %cst_21 = arith.constant dense<0.000000e+00> : vector<80x128xf32>
    %21 = tpu.matmul %18, %20, %cst_21 {dimension_numbers = #tpu.dot_dimension_numbers<[1], [0], [0], [1], [0, 0, 1, 1], [], []>} : vector<80x128xbf16>, vector<128x128xbf16>, vector<80x128xf32> -> vector<80x128xf32>
    %22 = arith.addf %16, %21 : vector<80x128xf32>
    %c0_22 = arith.constant 0 : index
    %c11 = arith.constant 11 : index
    %c0_23 = arith.constant 0 : index
    %23 = vector.load %arg1[%c0_22, %c11, %c0_23] : memref<1x110x128xbf16, #tpu.memory_space<vmem>>, vector<1x80x128xbf16>
    %24 = vector.shape_cast %23 : vector<1x80x128xbf16> to vector<80x128xbf16>
    %c4 = arith.constant 4 : index
    %c0_24 = arith.constant 0 : index
    %c0_25 = arith.constant 0 : index
    %25 = vector.load %arg2[%c4, %c0_24, %c0_25] : memref<9x128x128xbf16, #tpu.memory_space<vmem>>, vector<1x128x128xbf16>
    %26 = vector.shape_cast %25 : vector<1x128x128xbf16> to vector<128x128xbf16>
    %cst_26 = arith.constant dense<0.000000e+00> : vector<80x128xf32>
    %27 = tpu.matmul %24, %26, %cst_26 {dimension_numbers = #tpu.dot_dimension_numbers<[1], [0], [0], [1], [0, 0, 1, 1], [], []>} : vector<80x128xbf16>, vector<128x128xbf16>, vector<80x128xf32> -> vector<80x128xf32>
    %28 = arith.addf %22, %27 : vector<80x128xf32>
    %c0_27 = arith.constant 0 : index
    %c12 = arith.constant 12 : index
    %c0_28 = arith.constant 0 : index
    %29 = vector.load %arg1[%c0_27, %c12, %c0_28] : memref<1x110x128xbf16, #tpu.memory_space<vmem>>, vector<1x80x128xbf16>
    %30 = vector.shape_cast %29 : vector<1x80x128xbf16> to vector<80x128xbf16>
    %c5 = arith.constant 5 : index
    %c0_29 = arith.constant 0 : index
    %c0_30 = arith.constant 0 : index
    %31 = vector.load %arg2[%c5, %c0_29, %c0_30] : memref<9x128x128xbf16, #tpu.memory_space<vmem>>, vector<1x128x128xbf16>
    %32 = vector.shape_cast %31 : vector<1x128x128xbf16> to vector<128x128xbf16>
    %cst_31 = arith.constant dense<0.000000e+00> : vector<80x128xf32>
    %33 = tpu.matmul %30, %32, %cst_31 {dimension_numbers = #tpu.dot_dimension_numbers<[1], [0], [0], [1], [0, 0, 1, 1], [], []>} : vector<80x128xbf16>, vector<128x128xbf16>, vector<80x128xf32> -> vector<80x128xf32>
    %34 = arith.addf %28, %33 : vector<80x128xf32>
    %c0_32 = arith.constant 0 : index
    %c20 = arith.constant 20 : index
    %c0_33 = arith.constant 0 : index
    %35 = vector.load %arg1[%c0_32, %c20, %c0_33] : memref<1x110x128xbf16, #tpu.memory_space<vmem>>, vector<1x80x128xbf16>
    %36 = vector.shape_cast %35 : vector<1x80x128xbf16> to vector<80x128xbf16>
    %c6 = arith.constant 6 : index
    %c0_34 = arith.constant 0 : index
    %c0_35 = arith.constant 0 : index
    %37 = vector.load %arg2[%c6, %c0_34, %c0_35] : memref<9x128x128xbf16, #tpu.memory_space<vmem>>, vector<1x128x128xbf16>
    %38 = vector.shape_cast %37 : vector<1x128x128xbf16> to vector<128x128xbf16>
    %cst_36 = arith.constant dense<0.000000e+00> : vector<80x128xf32>
    %39 = tpu.matmul %36, %38, %cst_36 {dimension_numbers = #tpu.dot_dimension_numbers<[1], [0], [0], [1], [0, 0, 1, 1], [], []>} : vector<80x128xbf16>, vector<128x128xbf16>, vector<80x128xf32> -> vector<80x128xf32>
    %40 = arith.addf %34, %39 : vector<80x128xf32>
    %c0_37 = arith.constant 0 : index
    %c21 = arith.constant 21 : index
    %c0_38 = arith.constant 0 : index
    %41 = vector.load %arg1[%c0_37, %c21, %c0_38] : memref<1x110x128xbf16, #tpu.memory_space<vmem>>, vector<1x80x128xbf16>
    %42 = vector.shape_cast %41 : vector<1x80x128xbf16> to vector<80x128xbf16>
    %c7 = arith.constant 7 : index
    %c0_39 = arith.constant 0 : index
    %c0_40 = arith.constant 0 : index
    %43 = vector.load %arg2[%c7, %c0_39, %c0_40] : memref<9x128x128xbf16, #tpu.memory_space<vmem>>, vector<1x128x128xbf16>
    %44 = vector.shape_cast %43 : vector<1x128x128xbf16> to vector<128x128xbf16>
    %cst_41 = arith.constant dense<0.000000e+00> : vector<80x128xf32>
    %45 = tpu.matmul %42, %44, %cst_41 {dimension_numbers = #tpu.dot_dimension_numbers<[1], [0], [0], [1], [0, 0, 1, 1], [], []>} : vector<80x128xbf16>, vector<128x128xbf16>, vector<80x128xf32> -> vector<80x128xf32>
    %46 = arith.addf %40, %45 : vector<80x128xf32>
    %c0_42 = arith.constant 0 : index
    %c22 = arith.constant 22 : index
    %c0_43 = arith.constant 0 : index
    %47 = vector.load %arg1[%c0_42, %c22, %c0_43] : memref<1x110x128xbf16, #tpu.memory_space<vmem>>, vector<1x80x128xbf16>
    %48 = vector.shape_cast %47 : vector<1x80x128xbf16> to vector<80x128xbf16>
    %c8 = arith.constant 8 : index
    %c0_44 = arith.constant 0 : index
    %c0_45 = arith.constant 0 : index
    %49 = vector.load %arg2[%c8, %c0_44, %c0_45] : memref<9x128x128xbf16, #tpu.memory_space<vmem>>, vector<1x128x128xbf16>
    %50 = vector.shape_cast %49 : vector<1x128x128xbf16> to vector<128x128xbf16>
    %cst_46 = arith.constant dense<0.000000e+00> : vector<80x128xf32>
    %51 = tpu.matmul %48, %50, %cst_46 {dimension_numbers = #tpu.dot_dimension_numbers<[1], [0], [0], [1], [0, 0, 1, 1], [], []>} : vector<80x128xbf16>, vector<128x128xbf16>, vector<80x128xf32> -> vector<80x128xf32>
    %52 = arith.addf %46, %51 : vector<80x128xf32>
    %c0_47 = arith.constant 0 : index
    %c0_48 = arith.constant 0 : index
    %53 = vector.load %arg3[%c0_47, %c0_48] : memref<1x128xf32, #tpu.memory_space<vmem>>, vector<1x128xf32>
    %54 = vector.broadcast %53 : vector<1x128xf32> to vector<80x128xf32>
    %55 = arith.mulf %52, %54 : vector<80x128xf32>
    %c0_49 = arith.constant 0 : index
    %c0_50 = arith.constant 0 : index
    %56 = vector.load %arg4[%c0_49, %c0_50] : memref<1x128xf32, #tpu.memory_space<vmem>>, vector<1x128xf32>
    %57 = vector.broadcast %56 : vector<1x128xf32> to vector<80x128xf32>
    %58 = arith.addf %55, %57 : vector<80x128xf32>
    %cst_51 = arith.constant 0.000000e+00 : f32
    %59 = vector.broadcast %cst_51 : f32 to vector<80x128xf32>
    %60 = arith.maximumf %58, %59 : vector<80x128xf32>
    %61 = vector.extract_strided_slice %60 {offsets = [0, 0], sizes = [8, 128], strides = [1, 1]} : vector<80x128xf32> to vector<8x128xf32>
    %62 = arith.truncf %61 : vector<8x128xf32> to vector<8x128xbf16>
    %c0_52 = arith.constant 0 : index
    %c0_53 = arith.constant 0 : index
    %c0_54 = arith.constant 0 : index
    %c0_55 = arith.constant 0 : index
    %63 = vector.load %arg5[%c0_52, %c0_53, %c0_54, %c0_55] : memref<1x8x8x128xbf16, #tpu.memory_space<vmem>>, vector<1x1x8x128xbf16>
    %64 = vector.shape_cast %63 : vector<1x1x8x128xbf16> to vector<8x128xbf16>
    %65 = vector.shape_cast %62 : vector<8x128xbf16> to vector<1x1x8x128xbf16>
    tpu.vector_store %arg5[%c0_52, %c0_53, %c0_54, %c0_55], %65 {strides = array<i32>} : memref<1x8x8x128xbf16, #tpu.memory_space<vmem>>, vector<1x1x8x128xbf16>,
    %66 = vector.extract_strided_slice %60 {offsets = [10, 0], sizes = [8, 128], strides = [1, 1]} : vector<80x128xf32> to vector<8x128xf32>
    %67 = arith.truncf %66 : vector<8x128xf32> to vector<8x128xbf16>
    %c0_56 = arith.constant 0 : index
    %c1_57 = arith.constant 1 : index
    %c0_58 = arith.constant 0 : index
    %c0_59 = arith.constant 0 : index
    %68 = vector.load %arg5[%c0_56, %c1_57, %c0_58, %c0_59] : memref<1x8x8x128xbf16, #tpu.memory_space<vmem>>, vector<1x1x8x128xbf16>
    %69 = vector.shape_cast %68 : vector<1x1x8x128xbf16> to vector<8x128xbf16>
    %70 = vector.shape_cast %67 : vector<8x128xbf16> to vector<1x1x8x128xbf16>
    tpu.vector_store %arg5[%c0_56, %c1_57, %c0_58, %c0_59], %70 {strides = array<i32>} : memref<1x8x8x128xbf16, #tpu.memory_space<vmem>>, vector<1x1x8x128xbf16>,
    %71 = vector.extract_strided_slice %60 {offsets = [20, 0], sizes = [8, 128], strides = [1, 1]} : vector<80x128xf32> to vector<8x128xf32>
    %72 = arith.truncf %71 : vector<8x128xf32> to vector<8x128xbf16>
    %c0_60 = arith.constant 0 : index
    %c2_61 = arith.constant 2 : index
    %c0_62 = arith.constant 0 : index
    %c0_63 = arith.constant 0 : index
    %73 = vector.load %arg5[%c0_60, %c2_61, %c0_62, %c0_63] : memref<1x8x8x128xbf16, #tpu.memory_space<vmem>>, vector<1x1x8x128xbf16>
    %74 = vector.shape_cast %73 : vector<1x1x8x128xbf16> to vector<8x128xbf16>
    %75 = vector.shape_cast %72 : vector<8x128xbf16> to vector<1x1x8x128xbf16>
    tpu.vector_store %arg5[%c0_60, %c2_61, %c0_62, %c0_63], %75 {strides = array<i32>} : memref<1x8x8x128xbf16, #tpu.memory_space<vmem>>, vector<1x1x8x128xbf16>,
    %76 = vector.extract_strided_slice %60 {offsets = [30, 0], sizes = [8, 128], strides = [1, 1]} : vector<80x128xf32> to vector<8x128xf32>
    %77 = arith.truncf %76 : vector<8x128xf32> to vector<8x128xbf16>
    %c0_64 = arith.constant 0 : index
    %c3_65 = arith.constant 3 : index
    %c0_66 = arith.constant 0 : index
    %c0_67 = arith.constant 0 : index
    %78 = vector.load %arg5[%c0_64, %c3_65, %c0_66, %c0_67] : memref<1x8x8x128xbf16, #tpu.memory_space<vmem>>, vector<1x1x8x128xbf16>
    %79 = vector.shape_cast %78 : vector<1x1x8x128xbf16> to vector<8x128xbf16>
    %80 = vector.shape_cast %77 : vector<8x128xbf16> to vector<1x1x8x128xbf16>
    tpu.vector_store %arg5[%c0_64, %c3_65, %c0_66, %c0_67], %80 {strides = array<i32>} : memref<1x8x8x128xbf16, #tpu.memory_space<vmem>>, vector<1x1x8x128xbf16>,
    %81 = vector.extract_strided_slice %60 {offsets = [40, 0], sizes = [8, 128], strides = [1, 1]} : vector<80x128xf32> to vector<8x128xf32>
    %82 = arith.truncf %81 : vector<8x128xf32> to vector<8x128xbf16>
    %c0_68 = arith.constant 0 : index
    %c4_69 = arith.constant 4 : index
    %c0_70 = arith.constant 0 : index
    %c0_71 = arith.constant 0 : index
    %83 = vector.load %arg5[%c0_68, %c4_69, %c0_70, %c0_71] : memref<1x8x8x128xbf16, #tpu.memory_space<vmem>>, vector<1x1x8x128xbf16>
    %84 = vector.shape_cast %83 : vector<1x1x8x128xbf16> to vector<8x128xbf16>
    %85 = vector.shape_cast %82 : vector<8x128xbf16> to vector<1x1x8x128xbf16>
    tpu.vector_store %arg5[%c0_68, %c4_69, %c0_70, %c0_71], %85 {strides = array<i32>} : memref<1x8x8x128xbf16, #tpu.memory_space<vmem>>, vector<1x1x8x128xbf16>,
    %86 = vector.extract_strided_slice %60 {offsets = [50, 0], sizes = [8, 128], strides = [1, 1]} : vector<80x128xf32> to vector<8x128xf32>
    %87 = arith.truncf %86 : vector<8x128xf32> to vector<8x128xbf16>
    %c0_72 = arith.constant 0 : index
    %c5_73 = arith.constant 5 : index
    %c0_74 = arith.constant 0 : index
    %c0_75 = arith.constant 0 : index
    %88 = vector.load %arg5[%c0_72, %c5_73, %c0_74, %c0_75] : memref<1x8x8x128xbf16, #tpu.memory_space<vmem>>, vector<1x1x8x128xbf16>
    %89 = vector.shape_cast %88 : vector<1x1x8x128xbf16> to vector<8x128xbf16>
    %90 = vector.shape_cast %87 : vector<8x128xbf16> to vector<1x1x8x128xbf16>
    tpu.vector_store %arg5[%c0_72, %c5_73, %c0_74, %c0_75], %90 {strides = array<i32>} : memref<1x8x8x128xbf16, #tpu.memory_space<vmem>>, vector<1x1x8x128xbf16>,
    %91 = vector.extract_strided_slice %60 {offsets = [60, 0], sizes = [8, 128], strides = [1, 1]} : vector<80x128xf32> to vector<8x128xf32>
    %92 = arith.truncf %91 : vector<8x128xf32> to vector<8x128xbf16>
    %c0_76 = arith.constant 0 : index
    %c6_77 = arith.constant 6 : index
    %c0_78 = arith.constant 0 : index
    %c0_79 = arith.constant 0 : index
    %93 = vector.load %arg5[%c0_76, %c6_77, %c0_78, %c0_79] : memref<1x8x8x128xbf16, #tpu.memory_space<vmem>>, vector<1x1x8x128xbf16>
    %94 = vector.shape_cast %93 : vector<1x1x8x128xbf16> to vector<8x128xbf16>
    %95 = vector.shape_cast %92 : vector<8x128xbf16> to vector<1x1x8x128xbf16>
    tpu.vector_store %arg5[%c0_76, %c6_77, %c0_78, %c0_79], %95 {strides = array<i32>} : memref<1x8x8x128xbf16, #tpu.memory_space<vmem>>, vector<1x1x8x128xbf16>,
    %96 = vector.extract_strided_slice %60 {offsets = [70, 0], sizes = [8, 128], strides = [1, 1]} : vector<80x128xf32> to vector<8x128xf32>
    %97 = arith.truncf %96 : vector<8x128xf32> to vector<8x128xbf16>
    %c0_80 = arith.constant 0 : index
    %c7_81 = arith.constant 7 : index
    %c0_82 = arith.constant 0 : index
    %c0_83 = arith.constant 0 : index
    %98 = vector.load %arg5[%c0_80, %c7_81, %c0_82, %c0_83] : memref<1x8x8x128xbf16, #tpu.memory_space<vmem>>, vector<1x1x8x128xbf16>
    %99 = vector.shape_cast %98 : vector<1x1x8x128xbf16> to vector<8x128xbf16>
    %100 = vector.shape_cast %97 : vector<8x128xbf16> to vector<1x1x8x128xbf16>
    tpu.vector_store %arg5[%c0_80, %c7_81, %c0_82, %c0_83], %100 {strides = array<i32>} : memref<1x8x8x128xbf16, #tpu.memory_space<vmem>>, vector<1x1x8x128xbf16>,
    return
  }
  func.func @transform_0(%arg0: i32) -> (i32, i32, i32) {
    %c0_i32 = arith.constant 0 : i32
    %c0_i32_0 = arith.constant 0 : i32
    %c0_i32_1 = arith.constant 0 : i32
    return %arg0, %c0_i32, %c0_i32_0 : i32, i32, i32
  }
  func.func @transform_1(%arg0: i32) -> (i32, i32, i32) {
    %c0_i32 = arith.constant 0 : i32
    %c0_i32_0 = arith.constant 0 : i32
    %c0_i32_1 = arith.constant 0 : i32
    %c0_i32_2 = arith.constant 0 : i32
    return %c0_i32, %c0_i32_0, %c0_i32_1 : i32, i32, i32
  }
  func.func @transform_2(%arg0: i32) -> (i32, i32) {
    %c0_i32 = arith.constant 0 : i32
    %c0_i32_0 = arith.constant 0 : i32
    %c0_i32_1 = arith.constant 0 : i32
    return %c0_i32, %c0_i32_0 : i32, i32
  }
  func.func @transform_3(%arg0: i32) -> (i32, i32) {
    %c0_i32 = arith.constant 0 : i32
    %c0_i32_0 = arith.constant 0 : i32
    %c0_i32_1 = arith.constant 0 : i32
    return %c0_i32, %c0_i32_0 : i32, i32
  }
  func.func @transform_4(%arg0: i32) -> (i32, i32, i32, i32) {
    %c0_i32 = arith.constant 0 : i32
    %c0_i32_0 = arith.constant 0 : i32
    %c0_i32_1 = arith.constant 0 : i32
    %c0_i32_2 = arith.constant 0 : i32
    return %arg0, %c0_i32, %c0_i32_0, %c0_i32_1 : i32, i32, i32, i32
  }
}

module attributes {stable_mosaic.version = 11 : i64} {
  func.func @kernel(%arg0: i32, %arg1: memref<1x42x128xbf16, #tpu.memory_space<vmem>>, %arg2: memref<9x128x128xbf16, #tpu.memory_space<vmem>>, %arg3: memref<1x128xf32, #tpu.memory_space<vmem>>, %arg4: memref<1x128xf32, #tpu.memory_space<vmem>>, %arg5: memref<1x4x4x128xbf16, #tpu.memory_space<vmem>>) attributes {dimension_semantics = [#tpu.dimension_semantics<parallel>], iteration_bounds = array<i64: 2>, scalar_prefetch = 0 : i64, scratch_operands = 0 : i64, tpu.core_type = #tpu.core_type<tc>, window_params = [{transform_indices = @transform_0, window_bounds = array<i64: 1, 42, 128>}, {pipeline_mode = #tpu.pipeline_mode<synchronous>, transform_indices = @transform_1, window_bounds = array<i64: 9, 128, 128>}, {pipeline_mode = #tpu.pipeline_mode<synchronous>, transform_indices = @transform_2, window_bounds = array<i64: 1, 128>}, {pipeline_mode = #tpu.pipeline_mode<synchronous>, transform_indices = @transform_3, window_bounds = array<i64: 1, 128>}, {transform_indices = @transform_4, window_bounds = array<i64: 1, 4, 4, 128>}]} {
    %c0 = arith.constant 0 : index
    %c0_0 = arith.constant 0 : index
    %c0_1 = arith.constant 0 : index
    %0 = vector.load %arg1[%c0, %c0_0, %c0_1] : memref<1x42x128xbf16, #tpu.memory_space<vmem>>, vector<1x24x128xbf16>
    %1 = vector.shape_cast %0 : vector<1x24x128xbf16> to vector<24x128xbf16>
    %c0_2 = arith.constant 0 : index
    %c0_3 = arith.constant 0 : index
    %c0_4 = arith.constant 0 : index
    %2 = vector.load %arg2[%c0_2, %c0_3, %c0_4] : memref<9x128x128xbf16, #tpu.memory_space<vmem>>, vector<1x128x128xbf16>
    %3 = vector.shape_cast %2 : vector<1x128x128xbf16> to vector<128x128xbf16>
    %cst = arith.constant dense<0.000000e+00> : vector<24x128xf32>
    %4 = tpu.matmul %1, %3, %cst {dimension_numbers = #tpu.dot_dimension_numbers<[1], [0], [0], [1], [0, 0, 1, 1], [], []>} : vector<24x128xbf16>, vector<128x128xbf16>, vector<24x128xf32> -> vector<24x128xf32>
    %c0_5 = arith.constant 0 : index
    %c1 = arith.constant 1 : index
    %c0_6 = arith.constant 0 : index
    %5 = vector.load %arg1[%c0_5, %c1, %c0_6] : memref<1x42x128xbf16, #tpu.memory_space<vmem>>, vector<1x24x128xbf16>
    %6 = vector.shape_cast %5 : vector<1x24x128xbf16> to vector<24x128xbf16>
    %c1_7 = arith.constant 1 : index
    %c0_8 = arith.constant 0 : index
    %c0_9 = arith.constant 0 : index
    %7 = vector.load %arg2[%c1_7, %c0_8, %c0_9] : memref<9x128x128xbf16, #tpu.memory_space<vmem>>, vector<1x128x128xbf16>
    %8 = vector.shape_cast %7 : vector<1x128x128xbf16> to vector<128x128xbf16>
    %cst_10 = arith.constant dense<0.000000e+00> : vector<24x128xf32>
    %9 = tpu.matmul %6, %8, %cst_10 {dimension_numbers = #tpu.dot_dimension_numbers<[1], [0], [0], [1], [0, 0, 1, 1], [], []>} : vector<24x128xbf16>, vector<128x128xbf16>, vector<24x128xf32> -> vector<24x128xf32>
    %10 = arith.addf %4, %9 : vector<24x128xf32>
    %c0_11 = arith.constant 0 : index
    %c2 = arith.constant 2 : index
    %c0_12 = arith.constant 0 : index
    %11 = vector.load %arg1[%c0_11, %c2, %c0_12] : memref<1x42x128xbf16, #tpu.memory_space<vmem>>, vector<1x24x128xbf16>
    %12 = vector.shape_cast %11 : vector<1x24x128xbf16> to vector<24x128xbf16>
    %c2_13 = arith.constant 2 : index
    %c0_14 = arith.constant 0 : index
    %c0_15 = arith.constant 0 : index
    %13 = vector.load %arg2[%c2_13, %c0_14, %c0_15] : memref<9x128x128xbf16, #tpu.memory_space<vmem>>, vector<1x128x128xbf16>
    %14 = vector.shape_cast %13 : vector<1x128x128xbf16> to vector<128x128xbf16>
    %cst_16 = arith.constant dense<0.000000e+00> : vector<24x128xf32>
    %15 = tpu.matmul %12, %14, %cst_16 {dimension_numbers = #tpu.dot_dimension_numbers<[1], [0], [0], [1], [0, 0, 1, 1], [], []>} : vector<24x128xbf16>, vector<128x128xbf16>, vector<24x128xf32> -> vector<24x128xf32>
    %16 = arith.addf %10, %15 : vector<24x128xf32>
    %c0_17 = arith.constant 0 : index
    %c6 = arith.constant 6 : index
    %c0_18 = arith.constant 0 : index
    %17 = vector.load %arg1[%c0_17, %c6, %c0_18] : memref<1x42x128xbf16, #tpu.memory_space<vmem>>, vector<1x24x128xbf16>
    %18 = vector.shape_cast %17 : vector<1x24x128xbf16> to vector<24x128xbf16>
    %c3 = arith.constant 3 : index
    %c0_19 = arith.constant 0 : index
    %c0_20 = arith.constant 0 : index
    %19 = vector.load %arg2[%c3, %c0_19, %c0_20] : memref<9x128x128xbf16, #tpu.memory_space<vmem>>, vector<1x128x128xbf16>
    %20 = vector.shape_cast %19 : vector<1x128x128xbf16> to vector<128x128xbf16>
    %cst_21 = arith.constant dense<0.000000e+00> : vector<24x128xf32>
    %21 = tpu.matmul %18, %20, %cst_21 {dimension_numbers = #tpu.dot_dimension_numbers<[1], [0], [0], [1], [0, 0, 1, 1], [], []>} : vector<24x128xbf16>, vector<128x128xbf16>, vector<24x128xf32> -> vector<24x128xf32>
    %22 = arith.addf %16, %21 : vector<24x128xf32>
    %c0_22 = arith.constant 0 : index
    %c7 = arith.constant 7 : index
    %c0_23 = arith.constant 0 : index
    %23 = vector.load %arg1[%c0_22, %c7, %c0_23] : memref<1x42x128xbf16, #tpu.memory_space<vmem>>, vector<1x24x128xbf16>
    %24 = vector.shape_cast %23 : vector<1x24x128xbf16> to vector<24x128xbf16>
    %c4 = arith.constant 4 : index
    %c0_24 = arith.constant 0 : index
    %c0_25 = arith.constant 0 : index
    %25 = vector.load %arg2[%c4, %c0_24, %c0_25] : memref<9x128x128xbf16, #tpu.memory_space<vmem>>, vector<1x128x128xbf16>
    %26 = vector.shape_cast %25 : vector<1x128x128xbf16> to vector<128x128xbf16>
    %cst_26 = arith.constant dense<0.000000e+00> : vector<24x128xf32>
    %27 = tpu.matmul %24, %26, %cst_26 {dimension_numbers = #tpu.dot_dimension_numbers<[1], [0], [0], [1], [0, 0, 1, 1], [], []>} : vector<24x128xbf16>, vector<128x128xbf16>, vector<24x128xf32> -> vector<24x128xf32>
    %28 = arith.addf %22, %27 : vector<24x128xf32>
    %c0_27 = arith.constant 0 : index
    %c8 = arith.constant 8 : index
    %c0_28 = arith.constant 0 : index
    %29 = vector.load %arg1[%c0_27, %c8, %c0_28] : memref<1x42x128xbf16, #tpu.memory_space<vmem>>, vector<1x24x128xbf16>
    %30 = vector.shape_cast %29 : vector<1x24x128xbf16> to vector<24x128xbf16>
    %c5 = arith.constant 5 : index
    %c0_29 = arith.constant 0 : index
    %c0_30 = arith.constant 0 : index
    %31 = vector.load %arg2[%c5, %c0_29, %c0_30] : memref<9x128x128xbf16, #tpu.memory_space<vmem>>, vector<1x128x128xbf16>
    %32 = vector.shape_cast %31 : vector<1x128x128xbf16> to vector<128x128xbf16>
    %cst_31 = arith.constant dense<0.000000e+00> : vector<24x128xf32>
    %33 = tpu.matmul %30, %32, %cst_31 {dimension_numbers = #tpu.dot_dimension_numbers<[1], [0], [0], [1], [0, 0, 1, 1], [], []>} : vector<24x128xbf16>, vector<128x128xbf16>, vector<24x128xf32> -> vector<24x128xf32>
    %34 = arith.addf %28, %33 : vector<24x128xf32>
    %c0_32 = arith.constant 0 : index
    %c12 = arith.constant 12 : index
    %c0_33 = arith.constant 0 : index
    %35 = vector.load %arg1[%c0_32, %c12, %c0_33] : memref<1x42x128xbf16, #tpu.memory_space<vmem>>, vector<1x24x128xbf16>
    %36 = vector.shape_cast %35 : vector<1x24x128xbf16> to vector<24x128xbf16>
    %c6_34 = arith.constant 6 : index
    %c0_35 = arith.constant 0 : index
    %c0_36 = arith.constant 0 : index
    %37 = vector.load %arg2[%c6_34, %c0_35, %c0_36] : memref<9x128x128xbf16, #tpu.memory_space<vmem>>, vector<1x128x128xbf16>
    %38 = vector.shape_cast %37 : vector<1x128x128xbf16> to vector<128x128xbf16>
    %cst_37 = arith.constant dense<0.000000e+00> : vector<24x128xf32>
    %39 = tpu.matmul %36, %38, %cst_37 {dimension_numbers = #tpu.dot_dimension_numbers<[1], [0], [0], [1], [0, 0, 1, 1], [], []>} : vector<24x128xbf16>, vector<128x128xbf16>, vector<24x128xf32> -> vector<24x128xf32>
    %40 = arith.addf %34, %39 : vector<24x128xf32>
    %c0_38 = arith.constant 0 : index
    %c13 = arith.constant 13 : index
    %c0_39 = arith.constant 0 : index
    %41 = vector.load %arg1[%c0_38, %c13, %c0_39] : memref<1x42x128xbf16, #tpu.memory_space<vmem>>, vector<1x24x128xbf16>
    %42 = vector.shape_cast %41 : vector<1x24x128xbf16> to vector<24x128xbf16>
    %c7_40 = arith.constant 7 : index
    %c0_41 = arith.constant 0 : index
    %c0_42 = arith.constant 0 : index
    %43 = vector.load %arg2[%c7_40, %c0_41, %c0_42] : memref<9x128x128xbf16, #tpu.memory_space<vmem>>, vector<1x128x128xbf16>
    %44 = vector.shape_cast %43 : vector<1x128x128xbf16> to vector<128x128xbf16>
    %cst_43 = arith.constant dense<0.000000e+00> : vector<24x128xf32>
    %45 = tpu.matmul %42, %44, %cst_43 {dimension_numbers = #tpu.dot_dimension_numbers<[1], [0], [0], [1], [0, 0, 1, 1], [], []>} : vector<24x128xbf16>, vector<128x128xbf16>, vector<24x128xf32> -> vector<24x128xf32>
    %46 = arith.addf %40, %45 : vector<24x128xf32>
    %c0_44 = arith.constant 0 : index
    %c14 = arith.constant 14 : index
    %c0_45 = arith.constant 0 : index
    %47 = vector.load %arg1[%c0_44, %c14, %c0_45] : memref<1x42x128xbf16, #tpu.memory_space<vmem>>, vector<1x24x128xbf16>
    %48 = vector.shape_cast %47 : vector<1x24x128xbf16> to vector<24x128xbf16>
    %c8_46 = arith.constant 8 : index
    %c0_47 = arith.constant 0 : index
    %c0_48 = arith.constant 0 : index
    %49 = vector.load %arg2[%c8_46, %c0_47, %c0_48] : memref<9x128x128xbf16, #tpu.memory_space<vmem>>, vector<1x128x128xbf16>
    %50 = vector.shape_cast %49 : vector<1x128x128xbf16> to vector<128x128xbf16>
    %cst_49 = arith.constant dense<0.000000e+00> : vector<24x128xf32>
    %51 = tpu.matmul %48, %50, %cst_49 {dimension_numbers = #tpu.dot_dimension_numbers<[1], [0], [0], [1], [0, 0, 1, 1], [], []>} : vector<24x128xbf16>, vector<128x128xbf16>, vector<24x128xf32> -> vector<24x128xf32>
    %52 = arith.addf %46, %51 : vector<24x128xf32>
    %c0_50 = arith.constant 0 : index
    %c0_51 = arith.constant 0 : index
    %53 = vector.load %arg3[%c0_50, %c0_51] : memref<1x128xf32, #tpu.memory_space<vmem>>, vector<1x128xf32>
    %54 = vector.broadcast %53 : vector<1x128xf32> to vector<24x128xf32>
    %55 = arith.mulf %52, %54 : vector<24x128xf32>
    %c0_52 = arith.constant 0 : index
    %c0_53 = arith.constant 0 : index
    %56 = vector.load %arg4[%c0_52, %c0_53] : memref<1x128xf32, #tpu.memory_space<vmem>>, vector<1x128xf32>
    %57 = vector.broadcast %56 : vector<1x128xf32> to vector<24x128xf32>
    %58 = arith.addf %55, %57 : vector<24x128xf32>
    %cst_54 = arith.constant 0.000000e+00 : f32
    %59 = vector.broadcast %cst_54 : f32 to vector<24x128xf32>
    %60 = arith.maximumf %58, %59 : vector<24x128xf32>
    %61 = vector.extract_strided_slice %60 {offsets = [0, 0], sizes = [4, 128], strides = [1, 1]} : vector<24x128xf32> to vector<4x128xf32>
    %62 = arith.truncf %61 : vector<4x128xf32> to vector<4x128xbf16>
    %c0_55 = arith.constant 0 : index
    %c0_56 = arith.constant 0 : index
    %c0_57 = arith.constant 0 : index
    %c0_58 = arith.constant 0 : index
    %63 = vector.load %arg5[%c0_55, %c0_56, %c0_57, %c0_58] : memref<1x4x4x128xbf16, #tpu.memory_space<vmem>>, vector<1x1x4x128xbf16>
    %64 = vector.shape_cast %63 : vector<1x1x4x128xbf16> to vector<4x128xbf16>
    %65 = vector.shape_cast %62 : vector<4x128xbf16> to vector<1x1x4x128xbf16>
    tpu.vector_store %arg5[%c0_55, %c0_56, %c0_57, %c0_58], %65 {strides = array<i32>} : memref<1x4x4x128xbf16, #tpu.memory_space<vmem>>, vector<1x1x4x128xbf16>,
    %66 = vector.extract_strided_slice %60 {offsets = [6, 0], sizes = [4, 128], strides = [1, 1]} : vector<24x128xf32> to vector<4x128xf32>
    %67 = arith.truncf %66 : vector<4x128xf32> to vector<4x128xbf16>
    %c0_59 = arith.constant 0 : index
    %c1_60 = arith.constant 1 : index
    %c0_61 = arith.constant 0 : index
    %c0_62 = arith.constant 0 : index
    %68 = vector.load %arg5[%c0_59, %c1_60, %c0_61, %c0_62] : memref<1x4x4x128xbf16, #tpu.memory_space<vmem>>, vector<1x1x4x128xbf16>
    %69 = vector.shape_cast %68 : vector<1x1x4x128xbf16> to vector<4x128xbf16>
    %70 = vector.shape_cast %67 : vector<4x128xbf16> to vector<1x1x4x128xbf16>
    tpu.vector_store %arg5[%c0_59, %c1_60, %c0_61, %c0_62], %70 {strides = array<i32>} : memref<1x4x4x128xbf16, #tpu.memory_space<vmem>>, vector<1x1x4x128xbf16>,
    %71 = vector.extract_strided_slice %60 {offsets = [12, 0], sizes = [4, 128], strides = [1, 1]} : vector<24x128xf32> to vector<4x128xf32>
    %72 = arith.truncf %71 : vector<4x128xf32> to vector<4x128xbf16>
    %c0_63 = arith.constant 0 : index
    %c2_64 = arith.constant 2 : index
    %c0_65 = arith.constant 0 : index
    %c0_66 = arith.constant 0 : index
    %73 = vector.load %arg5[%c0_63, %c2_64, %c0_65, %c0_66] : memref<1x4x4x128xbf16, #tpu.memory_space<vmem>>, vector<1x1x4x128xbf16>
    %74 = vector.shape_cast %73 : vector<1x1x4x128xbf16> to vector<4x128xbf16>
    %75 = vector.shape_cast %72 : vector<4x128xbf16> to vector<1x1x4x128xbf16>
    tpu.vector_store %arg5[%c0_63, %c2_64, %c0_65, %c0_66], %75 {strides = array<i32>} : memref<1x4x4x128xbf16, #tpu.memory_space<vmem>>, vector<1x1x4x128xbf16>,
    %76 = vector.extract_strided_slice %60 {offsets = [18, 0], sizes = [4, 128], strides = [1, 1]} : vector<24x128xf32> to vector<4x128xf32>
    %77 = arith.truncf %76 : vector<4x128xf32> to vector<4x128xbf16>
    %c0_67 = arith.constant 0 : index
    %c3_68 = arith.constant 3 : index
    %c0_69 = arith.constant 0 : index
    %c0_70 = arith.constant 0 : index
    %78 = vector.load %arg5[%c0_67, %c3_68, %c0_69, %c0_70] : memref<1x4x4x128xbf16, #tpu.memory_space<vmem>>, vector<1x1x4x128xbf16>
    %79 = vector.shape_cast %78 : vector<1x1x4x128xbf16> to vector<4x128xbf16>
    %80 = vector.shape_cast %77 : vector<4x128xbf16> to vector<1x1x4x128xbf16>
    tpu.vector_store %arg5[%c0_67, %c3_68, %c0_69, %c0_70], %80 {strides = array<i32>} : memref<1x4x4x128xbf16, #tpu.memory_space<vmem>>, vector<1x1x4x128xbf16>,
    return
  }
  func.func @transform_0(%arg0: i32) -> (i32, i32, i32) {
    %c0_i32 = arith.constant 0 : i32
    %c0_i32_0 = arith.constant 0 : i32
    %c0_i32_1 = arith.constant 0 : i32
    return %arg0, %c0_i32, %c0_i32_0 : i32, i32, i32
  }
  func.func @transform_1(%arg0: i32) -> (i32, i32, i32) {
    %c0_i32 = arith.constant 0 : i32
    %c0_i32_0 = arith.constant 0 : i32
    %c0_i32_1 = arith.constant 0 : i32
    %c0_i32_2 = arith.constant 0 : i32
    return %c0_i32, %c0_i32_0, %c0_i32_1 : i32, i32, i32
  }
  func.func @transform_2(%arg0: i32) -> (i32, i32) {
    %c0_i32 = arith.constant 0 : i32
    %c0_i32_0 = arith.constant 0 : i32
    %c0_i32_1 = arith.constant 0 : i32
    return %c0_i32, %c0_i32_0 : i32, i32
  }
  func.func @transform_3(%arg0: i32) -> (i32, i32) {
    %c0_i32 = arith.constant 0 : i32
    %c0_i32_0 = arith.constant 0 : i32
    %c0_i32_1 = arith.constant 0 : i32
    return %c0_i32, %c0_i32_0 : i32, i32
  }
  func.func @transform_4(%arg0: i32) -> (i32, i32, i32, i32) {
    %c0_i32 = arith.constant 0 : i32
    %c0_i32_0 = arith.constant 0 : i32
    %c0_i32_1 = arith.constant 0 : i32
    %c0_i32_2 = arith.constant 0 : i32
    return %arg0, %c0_i32, %c0_i32_0, %c0_i32_1 : i32, i32, i32, i32
  }
}

module attributes {stable_mosaic.version = 11 : i64} {
  func.func @kernel(%arg0: i32, %arg1: memref<1x110x128xbf16, #tpu.memory_space<vmem>>, %arg2: memref<1x110x128xbf16, #tpu.memory_space<vmem>>, %arg3: memref<1x110x128xbf16, #tpu.memory_space<vmem>>, %arg4: memref<9x384x128xbf16, #tpu.memory_space<vmem>>, %arg5: memref<1x128xf32, #tpu.memory_space<vmem>>, %arg6: memref<1x128xf32, #tpu.memory_space<vmem>>, %arg7: memref<1x8x8x128xf32, #tpu.memory_space<vmem>>) attributes {dimension_semantics = [#tpu.dimension_semantics<parallel>], iteration_bounds = array<i64: 2>, scalar_prefetch = 0 : i64, scratch_operands = 0 : i64, tpu.core_type = #tpu.core_type<tc>, window_params = [{transform_indices = @transform_0, window_bounds = array<i64: 1, 110, 128>}, {transform_indices = @transform_1, window_bounds = array<i64: 1, 110, 128>}, {transform_indices = @transform_2, window_bounds = array<i64: 1, 110, 128>}, {pipeline_mode = #tpu.pipeline_mode<synchronous>, transform_indices = @transform_3, window_bounds = array<i64: 9, 384, 128>}, {pipeline_mode = #tpu.pipeline_mode<synchronous>, transform_indices = @transform_4, window_bounds = array<i64: 1, 128>}, {pipeline_mode = #tpu.pipeline_mode<synchronous>, transform_indices = @transform_5, window_bounds = array<i64: 1, 128>}, {transform_indices = @transform_6, window_bounds = array<i64: 1, 8, 8, 128>}]} {
    %c0 = arith.constant 0 : index
    %c0_0 = arith.constant 0 : index
    %c0_1 = arith.constant 0 : index
    %0 = vector.load %arg1[%c0, %c0_0, %c0_1] : memref<1x110x128xbf16, #tpu.memory_space<vmem>>, vector<1x80x128xbf16>
    %1 = vector.shape_cast %0 : vector<1x80x128xbf16> to vector<80x128xbf16>
    %c0_2 = arith.constant 0 : index
    %c0_3 = arith.constant 0 : index
    %c0_4 = arith.constant 0 : index
    %2 = vector.load %arg2[%c0_2, %c0_3, %c0_4] : memref<1x110x128xbf16, #tpu.memory_space<vmem>>, vector<1x80x128xbf16>
    %3 = vector.shape_cast %2 : vector<1x80x128xbf16> to vector<80x128xbf16>
    %c0_5 = arith.constant 0 : index
    %c0_6 = arith.constant 0 : index
    %c0_7 = arith.constant 0 : index
    %4 = vector.load %arg3[%c0_5, %c0_6, %c0_7] : memref<1x110x128xbf16, #tpu.memory_space<vmem>>, vector<1x80x128xbf16>
    %5 = vector.shape_cast %4 : vector<1x80x128xbf16> to vector<80x128xbf16>
    %6 = tpu.concatenate %1, %3, %5 in 1 : vector<80x128xbf16>, vector<80x128xbf16>, vector<80x128xbf16> -> vector<80x384xbf16>
    %c0_8 = arith.constant 0 : index
    %c0_9 = arith.constant 0 : index
    %c0_10 = arith.constant 0 : index
    %7 = vector.load %arg4[%c0_8, %c0_9, %c0_10] : memref<9x384x128xbf16, #tpu.memory_space<vmem>>, vector<1x384x128xbf16>
    %8 = vector.shape_cast %7 : vector<1x384x128xbf16> to vector<384x128xbf16>
    %cst = arith.constant dense<0.000000e+00> : vector<80x128xf32>
    %9 = tpu.matmul %6, %8, %cst {dimension_numbers = #tpu.dot_dimension_numbers<[1], [0], [0], [1], [0, 0, 1, 1], [], []>} : vector<80x384xbf16>, vector<384x128xbf16>, vector<80x128xf32> -> vector<80x128xf32>
    %c0_11 = arith.constant 0 : index
    %c1 = arith.constant 1 : index
    %c0_12 = arith.constant 0 : index
    %10 = vector.load %arg1[%c0_11, %c1, %c0_12] : memref<1x110x128xbf16, #tpu.memory_space<vmem>>, vector<1x80x128xbf16>
    %11 = vector.shape_cast %10 : vector<1x80x128xbf16> to vector<80x128xbf16>
    %c0_13 = arith.constant 0 : index
    %c1_14 = arith.constant 1 : index
    %c0_15 = arith.constant 0 : index
    %12 = vector.load %arg2[%c0_13, %c1_14, %c0_15] : memref<1x110x128xbf16, #tpu.memory_space<vmem>>, vector<1x80x128xbf16>
    %13 = vector.shape_cast %12 : vector<1x80x128xbf16> to vector<80x128xbf16>
    %c0_16 = arith.constant 0 : index
    %c1_17 = arith.constant 1 : index
    %c0_18 = arith.constant 0 : index
    %14 = vector.load %arg3[%c0_16, %c1_17, %c0_18] : memref<1x110x128xbf16, #tpu.memory_space<vmem>>, vector<1x80x128xbf16>
    %15 = vector.shape_cast %14 : vector<1x80x128xbf16> to vector<80x128xbf16>
    %16 = tpu.concatenate %11, %13, %15 in 1 : vector<80x128xbf16>, vector<80x128xbf16>, vector<80x128xbf16> -> vector<80x384xbf16>
    %c1_19 = arith.constant 1 : index
    %c0_20 = arith.constant 0 : index
    %c0_21 = arith.constant 0 : index
    %17 = vector.load %arg4[%c1_19, %c0_20, %c0_21] : memref<9x384x128xbf16, #tpu.memory_space<vmem>>, vector<1x384x128xbf16>
    %18 = vector.shape_cast %17 : vector<1x384x128xbf16> to vector<384x128xbf16>
    %cst_22 = arith.constant dense<0.000000e+00> : vector<80x128xf32>
    %19 = tpu.matmul %16, %18, %cst_22 {dimension_numbers = #tpu.dot_dimension_numbers<[1], [0], [0], [1], [0, 0, 1, 1], [], []>} : vector<80x384xbf16>, vector<384x128xbf16>, vector<80x128xf32> -> vector<80x128xf32>
    %20 = arith.addf %9, %19 : vector<80x128xf32>
    %c0_23 = arith.constant 0 : index
    %c2 = arith.constant 2 : index
    %c0_24 = arith.constant 0 : index
    %21 = vector.load %arg1[%c0_23, %c2, %c0_24] : memref<1x110x128xbf16, #tpu.memory_space<vmem>>, vector<1x80x128xbf16>
    %22 = vector.shape_cast %21 : vector<1x80x128xbf16> to vector<80x128xbf16>
    %c0_25 = arith.constant 0 : index
    %c2_26 = arith.constant 2 : index
    %c0_27 = arith.constant 0 : index
    %23 = vector.load %arg2[%c0_25, %c2_26, %c0_27] : memref<1x110x128xbf16, #tpu.memory_space<vmem>>, vector<1x80x128xbf16>
    %24 = vector.shape_cast %23 : vector<1x80x128xbf16> to vector<80x128xbf16>
    %c0_28 = arith.constant 0 : index
    %c2_29 = arith.constant 2 : index
    %c0_30 = arith.constant 0 : index
    %25 = vector.load %arg3[%c0_28, %c2_29, %c0_30] : memref<1x110x128xbf16, #tpu.memory_space<vmem>>, vector<1x80x128xbf16>
    %26 = vector.shape_cast %25 : vector<1x80x128xbf16> to vector<80x128xbf16>
    %27 = tpu.concatenate %22, %24, %26 in 1 : vector<80x128xbf16>, vector<80x128xbf16>, vector<80x128xbf16> -> vector<80x384xbf16>
    %c2_31 = arith.constant 2 : index
    %c0_32 = arith.constant 0 : index
    %c0_33 = arith.constant 0 : index
    %28 = vector.load %arg4[%c2_31, %c0_32, %c0_33] : memref<9x384x128xbf16, #tpu.memory_space<vmem>>, vector<1x384x128xbf16>
    %29 = vector.shape_cast %28 : vector<1x384x128xbf16> to vector<384x128xbf16>
    %cst_34 = arith.constant dense<0.000000e+00> : vector<80x128xf32>
    %30 = tpu.matmul %27, %29, %cst_34 {dimension_numbers = #tpu.dot_dimension_numbers<[1], [0], [0], [1], [0, 0, 1, 1], [], []>} : vector<80x384xbf16>, vector<384x128xbf16>, vector<80x128xf32> -> vector<80x128xf32>
    %31 = arith.addf %20, %30 : vector<80x128xf32>
    %c0_35 = arith.constant 0 : index
    %c10 = arith.constant 10 : index
    %c0_36 = arith.constant 0 : index
    %32 = vector.load %arg1[%c0_35, %c10, %c0_36] : memref<1x110x128xbf16, #tpu.memory_space<vmem>>, vector<1x80x128xbf16>
    %33 = vector.shape_cast %32 : vector<1x80x128xbf16> to vector<80x128xbf16>
    %c0_37 = arith.constant 0 : index
    %c10_38 = arith.constant 10 : index
    %c0_39 = arith.constant 0 : index
    %34 = vector.load %arg2[%c0_37, %c10_38, %c0_39] : memref<1x110x128xbf16, #tpu.memory_space<vmem>>, vector<1x80x128xbf16>
    %35 = vector.shape_cast %34 : vector<1x80x128xbf16> to vector<80x128xbf16>
    %c0_40 = arith.constant 0 : index
    %c10_41 = arith.constant 10 : index
    %c0_42 = arith.constant 0 : index
    %36 = vector.load %arg3[%c0_40, %c10_41, %c0_42] : memref<1x110x128xbf16, #tpu.memory_space<vmem>>, vector<1x80x128xbf16>
    %37 = vector.shape_cast %36 : vector<1x80x128xbf16> to vector<80x128xbf16>
    %38 = tpu.concatenate %33, %35, %37 in 1 : vector<80x128xbf16>, vector<80x128xbf16>, vector<80x128xbf16> -> vector<80x384xbf16>
    %c3 = arith.constant 3 : index
    %c0_43 = arith.constant 0 : index
    %c0_44 = arith.constant 0 : index
    %39 = vector.load %arg4[%c3, %c0_43, %c0_44] : memref<9x384x128xbf16, #tpu.memory_space<vmem>>, vector<1x384x128xbf16>
    %40 = vector.shape_cast %39 : vector<1x384x128xbf16> to vector<384x128xbf16>
    %cst_45 = arith.constant dense<0.000000e+00> : vector<80x128xf32>
    %41 = tpu.matmul %38, %40, %cst_45 {dimension_numbers = #tpu.dot_dimension_numbers<[1], [0], [0], [1], [0, 0, 1, 1], [], []>} : vector<80x384xbf16>, vector<384x128xbf16>, vector<80x128xf32> -> vector<80x128xf32>
    %42 = arith.addf %31, %41 : vector<80x128xf32>
    %c0_46 = arith.constant 0 : index
    %c11 = arith.constant 11 : index
    %c0_47 = arith.constant 0 : index
    %43 = vector.load %arg1[%c0_46, %c11, %c0_47] : memref<1x110x128xbf16, #tpu.memory_space<vmem>>, vector<1x80x128xbf16>
    %44 = vector.shape_cast %43 : vector<1x80x128xbf16> to vector<80x128xbf16>
    %c0_48 = arith.constant 0 : index
    %c11_49 = arith.constant 11 : index
    %c0_50 = arith.constant 0 : index
    %45 = vector.load %arg2[%c0_48, %c11_49, %c0_50] : memref<1x110x128xbf16, #tpu.memory_space<vmem>>, vector<1x80x128xbf16>
    %46 = vector.shape_cast %45 : vector<1x80x128xbf16> to vector<80x128xbf16>
    %c0_51 = arith.constant 0 : index
    %c11_52 = arith.constant 11 : index
    %c0_53 = arith.constant 0 : index
    %47 = vector.load %arg3[%c0_51, %c11_52, %c0_53] : memref<1x110x128xbf16, #tpu.memory_space<vmem>>, vector<1x80x128xbf16>
    %48 = vector.shape_cast %47 : vector<1x80x128xbf16> to vector<80x128xbf16>
    %49 = tpu.concatenate %44, %46, %48 in 1 : vector<80x128xbf16>, vector<80x128xbf16>, vector<80x128xbf16> -> vector<80x384xbf16>
    %c4 = arith.constant 4 : index
    %c0_54 = arith.constant 0 : index
    %c0_55 = arith.constant 0 : index
    %50 = vector.load %arg4[%c4, %c0_54, %c0_55] : memref<9x384x128xbf16, #tpu.memory_space<vmem>>, vector<1x384x128xbf16>
    %51 = vector.shape_cast %50 : vector<1x384x128xbf16> to vector<384x128xbf16>
    %cst_56 = arith.constant dense<0.000000e+00> : vector<80x128xf32>
    %52 = tpu.matmul %49, %51, %cst_56 {dimension_numbers = #tpu.dot_dimension_numbers<[1], [0], [0], [1], [0, 0, 1, 1], [], []>} : vector<80x384xbf16>, vector<384x128xbf16>, vector<80x128xf32> -> vector<80x128xf32>
    %53 = arith.addf %42, %52 : vector<80x128xf32>
    %c0_57 = arith.constant 0 : index
    %c12 = arith.constant 12 : index
    %c0_58 = arith.constant 0 : index
    %54 = vector.load %arg1[%c0_57, %c12, %c0_58] : memref<1x110x128xbf16, #tpu.memory_space<vmem>>, vector<1x80x128xbf16>
    %55 = vector.shape_cast %54 : vector<1x80x128xbf16> to vector<80x128xbf16>
    %c0_59 = arith.constant 0 : index
    %c12_60 = arith.constant 12 : index
    %c0_61 = arith.constant 0 : index
    %56 = vector.load %arg2[%c0_59, %c12_60, %c0_61] : memref<1x110x128xbf16, #tpu.memory_space<vmem>>, vector<1x80x128xbf16>
    %57 = vector.shape_cast %56 : vector<1x80x128xbf16> to vector<80x128xbf16>
    %c0_62 = arith.constant 0 : index
    %c12_63 = arith.constant 12 : index
    %c0_64 = arith.constant 0 : index
    %58 = vector.load %arg3[%c0_62, %c12_63, %c0_64] : memref<1x110x128xbf16, #tpu.memory_space<vmem>>, vector<1x80x128xbf16>
    %59 = vector.shape_cast %58 : vector<1x80x128xbf16> to vector<80x128xbf16>
    %60 = tpu.concatenate %55, %57, %59 in 1 : vector<80x128xbf16>, vector<80x128xbf16>, vector<80x128xbf16> -> vector<80x384xbf16>
    %c5 = arith.constant 5 : index
    %c0_65 = arith.constant 0 : index
    %c0_66 = arith.constant 0 : index
    %61 = vector.load %arg4[%c5, %c0_65, %c0_66] : memref<9x384x128xbf16, #tpu.memory_space<vmem>>, vector<1x384x128xbf16>
    %62 = vector.shape_cast %61 : vector<1x384x128xbf16> to vector<384x128xbf16>
    %cst_67 = arith.constant dense<0.000000e+00> : vector<80x128xf32>
    %63 = tpu.matmul %60, %62, %cst_67 {dimension_numbers = #tpu.dot_dimension_numbers<[1], [0], [0], [1], [0, 0, 1, 1], [], []>} : vector<80x384xbf16>, vector<384x128xbf16>, vector<80x128xf32> -> vector<80x128xf32>
    %64 = arith.addf %53, %63 : vector<80x128xf32>
    %c0_68 = arith.constant 0 : index
    %c20 = arith.constant 20 : index
    %c0_69 = arith.constant 0 : index
    %65 = vector.load %arg1[%c0_68, %c20, %c0_69] : memref<1x110x128xbf16, #tpu.memory_space<vmem>>, vector<1x80x128xbf16>
    %66 = vector.shape_cast %65 : vector<1x80x128xbf16> to vector<80x128xbf16>
    %c0_70 = arith.constant 0 : index
    %c20_71 = arith.constant 20 : index
    %c0_72 = arith.constant 0 : index
    %67 = vector.load %arg2[%c0_70, %c20_71, %c0_72] : memref<1x110x128xbf16, #tpu.memory_space<vmem>>, vector<1x80x128xbf16>
    %68 = vector.shape_cast %67 : vector<1x80x128xbf16> to vector<80x128xbf16>
    %c0_73 = arith.constant 0 : index
    %c20_74 = arith.constant 20 : index
    %c0_75 = arith.constant 0 : index
    %69 = vector.load %arg3[%c0_73, %c20_74, %c0_75] : memref<1x110x128xbf16, #tpu.memory_space<vmem>>, vector<1x80x128xbf16>
    %70 = vector.shape_cast %69 : vector<1x80x128xbf16> to vector<80x128xbf16>
    %71 = tpu.concatenate %66, %68, %70 in 1 : vector<80x128xbf16>, vector<80x128xbf16>, vector<80x128xbf16> -> vector<80x384xbf16>
    %c6 = arith.constant 6 : index
    %c0_76 = arith.constant 0 : index
    %c0_77 = arith.constant 0 : index
    %72 = vector.load %arg4[%c6, %c0_76, %c0_77] : memref<9x384x128xbf16, #tpu.memory_space<vmem>>, vector<1x384x128xbf16>
    %73 = vector.shape_cast %72 : vector<1x384x128xbf16> to vector<384x128xbf16>
    %cst_78 = arith.constant dense<0.000000e+00> : vector<80x128xf32>
    %74 = tpu.matmul %71, %73, %cst_78 {dimension_numbers = #tpu.dot_dimension_numbers<[1], [0], [0], [1], [0, 0, 1, 1], [], []>} : vector<80x384xbf16>, vector<384x128xbf16>, vector<80x128xf32> -> vector<80x128xf32>
    %75 = arith.addf %64, %74 : vector<80x128xf32>
    %c0_79 = arith.constant 0 : index
    %c21 = arith.constant 21 : index
    %c0_80 = arith.constant 0 : index
    %76 = vector.load %arg1[%c0_79, %c21, %c0_80] : memref<1x110x128xbf16, #tpu.memory_space<vmem>>, vector<1x80x128xbf16>
    %77 = vector.shape_cast %76 : vector<1x80x128xbf16> to vector<80x128xbf16>
    %c0_81 = arith.constant 0 : index
    %c21_82 = arith.constant 21 : index
    %c0_83 = arith.constant 0 : index
    %78 = vector.load %arg2[%c0_81, %c21_82, %c0_83] : memref<1x110x128xbf16, #tpu.memory_space<vmem>>, vector<1x80x128xbf16>
    %79 = vector.shape_cast %78 : vector<1x80x128xbf16> to vector<80x128xbf16>
    %c0_84 = arith.constant 0 : index
    %c21_85 = arith.constant 21 : index
    %c0_86 = arith.constant 0 : index
    %80 = vector.load %arg3[%c0_84, %c21_85, %c0_86] : memref<1x110x128xbf16, #tpu.memory_space<vmem>>, vector<1x80x128xbf16>
    %81 = vector.shape_cast %80 : vector<1x80x128xbf16> to vector<80x128xbf16>
    %82 = tpu.concatenate %77, %79, %81 in 1 : vector<80x128xbf16>, vector<80x128xbf16>, vector<80x128xbf16> -> vector<80x384xbf16>
    %c7 = arith.constant 7 : index
    %c0_87 = arith.constant 0 : index
    %c0_88 = arith.constant 0 : index
    %83 = vector.load %arg4[%c7, %c0_87, %c0_88] : memref<9x384x128xbf16, #tpu.memory_space<vmem>>, vector<1x384x128xbf16>
    %84 = vector.shape_cast %83 : vector<1x384x128xbf16> to vector<384x128xbf16>
    %cst_89 = arith.constant dense<0.000000e+00> : vector<80x128xf32>
    %85 = tpu.matmul %82, %84, %cst_89 {dimension_numbers = #tpu.dot_dimension_numbers<[1], [0], [0], [1], [0, 0, 1, 1], [], []>} : vector<80x384xbf16>, vector<384x128xbf16>, vector<80x128xf32> -> vector<80x128xf32>
    %86 = arith.addf %75, %85 : vector<80x128xf32>
    %c0_90 = arith.constant 0 : index
    %c22 = arith.constant 22 : index
    %c0_91 = arith.constant 0 : index
    %87 = vector.load %arg1[%c0_90, %c22, %c0_91] : memref<1x110x128xbf16, #tpu.memory_space<vmem>>, vector<1x80x128xbf16>
    %88 = vector.shape_cast %87 : vector<1x80x128xbf16> to vector<80x128xbf16>
    %c0_92 = arith.constant 0 : index
    %c22_93 = arith.constant 22 : index
    %c0_94 = arith.constant 0 : index
    %89 = vector.load %arg2[%c0_92, %c22_93, %c0_94] : memref<1x110x128xbf16, #tpu.memory_space<vmem>>, vector<1x80x128xbf16>
    %90 = vector.shape_cast %89 : vector<1x80x128xbf16> to vector<80x128xbf16>
    %c0_95 = arith.constant 0 : index
    %c22_96 = arith.constant 22 : index
    %c0_97 = arith.constant 0 : index
    %91 = vector.load %arg3[%c0_95, %c22_96, %c0_97] : memref<1x110x128xbf16, #tpu.memory_space<vmem>>, vector<1x80x128xbf16>
    %92 = vector.shape_cast %91 : vector<1x80x128xbf16> to vector<80x128xbf16>
    %93 = tpu.concatenate %88, %90, %92 in 1 : vector<80x128xbf16>, vector<80x128xbf16>, vector<80x128xbf16> -> vector<80x384xbf16>
    %c8 = arith.constant 8 : index
    %c0_98 = arith.constant 0 : index
    %c0_99 = arith.constant 0 : index
    %94 = vector.load %arg4[%c8, %c0_98, %c0_99] : memref<9x384x128xbf16, #tpu.memory_space<vmem>>, vector<1x384x128xbf16>
    %95 = vector.shape_cast %94 : vector<1x384x128xbf16> to vector<384x128xbf16>
    %cst_100 = arith.constant dense<0.000000e+00> : vector<80x128xf32>
    %96 = tpu.matmul %93, %95, %cst_100 {dimension_numbers = #tpu.dot_dimension_numbers<[1], [0], [0], [1], [0, 0, 1, 1], [], []>} : vector<80x384xbf16>, vector<384x128xbf16>, vector<80x128xf32> -> vector<80x128xf32>
    %97 = arith.addf %86, %96 : vector<80x128xf32>
    %c0_101 = arith.constant 0 : index
    %c0_102 = arith.constant 0 : index
    %98 = vector.load %arg5[%c0_101, %c0_102] : memref<1x128xf32, #tpu.memory_space<vmem>>, vector<1x128xf32>
    %99 = vector.broadcast %98 : vector<1x128xf32> to vector<80x128xf32>
    %100 = arith.mulf %97, %99 : vector<80x128xf32>
    %c0_103 = arith.constant 0 : index
    %c0_104 = arith.constant 0 : index
    %101 = vector.load %arg6[%c0_103, %c0_104] : memref<1x128xf32, #tpu.memory_space<vmem>>, vector<1x128xf32>
    %102 = vector.broadcast %101 : vector<1x128xf32> to vector<80x128xf32>
    %103 = arith.addf %100, %102 : vector<80x128xf32>
    %cst_105 = arith.constant 0.000000e+00 : f32
    %104 = vector.broadcast %cst_105 : f32 to vector<80x128xf32>
    %105 = arith.maximumf %103, %104 : vector<80x128xf32>
    %106 = vector.extract_strided_slice %105 {offsets = [0, 0], sizes = [8, 128], strides = [1, 1]} : vector<80x128xf32> to vector<8x128xf32>
    %c0_106 = arith.constant 0 : index
    %c0_107 = arith.constant 0 : index
    %c0_108 = arith.constant 0 : index
    %c0_109 = arith.constant 0 : index
    %107 = vector.load %arg7[%c0_106, %c0_107, %c0_108, %c0_109] : memref<1x8x8x128xf32, #tpu.memory_space<vmem>>, vector<1x1x8x128xf32>
    %108 = vector.shape_cast %107 : vector<1x1x8x128xf32> to vector<8x128xf32>
    %109 = vector.shape_cast %106 : vector<8x128xf32> to vector<1x1x8x128xf32>
    tpu.vector_store %arg7[%c0_106, %c0_107, %c0_108, %c0_109], %109 {strides = array<i32>} : memref<1x8x8x128xf32, #tpu.memory_space<vmem>>, vector<1x1x8x128xf32>,
    %110 = vector.extract_strided_slice %105 {offsets = [10, 0], sizes = [8, 128], strides = [1, 1]} : vector<80x128xf32> to vector<8x128xf32>
    %c0_110 = arith.constant 0 : index
    %c1_111 = arith.constant 1 : index
    %c0_112 = arith.constant 0 : index
    %c0_113 = arith.constant 0 : index
    %111 = vector.load %arg7[%c0_110, %c1_111, %c0_112, %c0_113] : memref<1x8x8x128xf32, #tpu.memory_space<vmem>>, vector<1x1x8x128xf32>
    %112 = vector.shape_cast %111 : vector<1x1x8x128xf32> to vector<8x128xf32>
    %113 = vector.shape_cast %110 : vector<8x128xf32> to vector<1x1x8x128xf32>
    tpu.vector_store %arg7[%c0_110, %c1_111, %c0_112, %c0_113], %113 {strides = array<i32>} : memref<1x8x8x128xf32, #tpu.memory_space<vmem>>, vector<1x1x8x128xf32>,
    %114 = vector.extract_strided_slice %105 {offsets = [20, 0], sizes = [8, 128], strides = [1, 1]} : vector<80x128xf32> to vector<8x128xf32>
    %c0_114 = arith.constant 0 : index
    %c2_115 = arith.constant 2 : index
    %c0_116 = arith.constant 0 : index
    %c0_117 = arith.constant 0 : index
    %115 = vector.load %arg7[%c0_114, %c2_115, %c0_116, %c0_117] : memref<1x8x8x128xf32, #tpu.memory_space<vmem>>, vector<1x1x8x128xf32>
    %116 = vector.shape_cast %115 : vector<1x1x8x128xf32> to vector<8x128xf32>
    %117 = vector.shape_cast %114 : vector<8x128xf32> to vector<1x1x8x128xf32>
    tpu.vector_store %arg7[%c0_114, %c2_115, %c0_116, %c0_117], %117 {strides = array<i32>} : memref<1x8x8x128xf32, #tpu.memory_space<vmem>>, vector<1x1x8x128xf32>,
    %118 = vector.extract_strided_slice %105 {offsets = [30, 0], sizes = [8, 128], strides = [1, 1]} : vector<80x128xf32> to vector<8x128xf32>
    %c0_118 = arith.constant 0 : index
    %c3_119 = arith.constant 3 : index
    %c0_120 = arith.constant 0 : index
    %c0_121 = arith.constant 0 : index
    %119 = vector.load %arg7[%c0_118, %c3_119, %c0_120, %c0_121] : memref<1x8x8x128xf32, #tpu.memory_space<vmem>>, vector<1x1x8x128xf32>
    %120 = vector.shape_cast %119 : vector<1x1x8x128xf32> to vector<8x128xf32>
    %121 = vector.shape_cast %118 : vector<8x128xf32> to vector<1x1x8x128xf32>
    tpu.vector_store %arg7[%c0_118, %c3_119, %c0_120, %c0_121], %121 {strides = array<i32>} : memref<1x8x8x128xf32, #tpu.memory_space<vmem>>, vector<1x1x8x128xf32>,
    %122 = vector.extract_strided_slice %105 {offsets = [40, 0], sizes = [8, 128], strides = [1, 1]} : vector<80x128xf32> to vector<8x128xf32>
    %c0_122 = arith.constant 0 : index
    %c4_123 = arith.constant 4 : index
    %c0_124 = arith.constant 0 : index
    %c0_125 = arith.constant 0 : index
    %123 = vector.load %arg7[%c0_122, %c4_123, %c0_124, %c0_125] : memref<1x8x8x128xf32, #tpu.memory_space<vmem>>, vector<1x1x8x128xf32>
    %124 = vector.shape_cast %123 : vector<1x1x8x128xf32> to vector<8x128xf32>
    %125 = vector.shape_cast %122 : vector<8x128xf32> to vector<1x1x8x128xf32>
    tpu.vector_store %arg7[%c0_122, %c4_123, %c0_124, %c0_125], %125 {strides = array<i32>} : memref<1x8x8x128xf32, #tpu.memory_space<vmem>>, vector<1x1x8x128xf32>,
    %126 = vector.extract_strided_slice %105 {offsets = [50, 0], sizes = [8, 128], strides = [1, 1]} : vector<80x128xf32> to vector<8x128xf32>
    %c0_126 = arith.constant 0 : index
    %c5_127 = arith.constant 5 : index
    %c0_128 = arith.constant 0 : index
    %c0_129 = arith.constant 0 : index
    %127 = vector.load %arg7[%c0_126, %c5_127, %c0_128, %c0_129] : memref<1x8x8x128xf32, #tpu.memory_space<vmem>>, vector<1x1x8x128xf32>
    %128 = vector.shape_cast %127 : vector<1x1x8x128xf32> to vector<8x128xf32>
    %129 = vector.shape_cast %126 : vector<8x128xf32> to vector<1x1x8x128xf32>
    tpu.vector_store %arg7[%c0_126, %c5_127, %c0_128, %c0_129], %129 {strides = array<i32>} : memref<1x8x8x128xf32, #tpu.memory_space<vmem>>, vector<1x1x8x128xf32>,
    %130 = vector.extract_strided_slice %105 {offsets = [60, 0], sizes = [8, 128], strides = [1, 1]} : vector<80x128xf32> to vector<8x128xf32>
    %c0_130 = arith.constant 0 : index
    %c6_131 = arith.constant 6 : index
    %c0_132 = arith.constant 0 : index
    %c0_133 = arith.constant 0 : index
    %131 = vector.load %arg7[%c0_130, %c6_131, %c0_132, %c0_133] : memref<1x8x8x128xf32, #tpu.memory_space<vmem>>, vector<1x1x8x128xf32>
    %132 = vector.shape_cast %131 : vector<1x1x8x128xf32> to vector<8x128xf32>
    %133 = vector.shape_cast %130 : vector<8x128xf32> to vector<1x1x8x128xf32>
    tpu.vector_store %arg7[%c0_130, %c6_131, %c0_132, %c0_133], %133 {strides = array<i32>} : memref<1x8x8x128xf32, #tpu.memory_space<vmem>>, vector<1x1x8x128xf32>,
    %134 = vector.extract_strided_slice %105 {offsets = [70, 0], sizes = [8, 128], strides = [1, 1]} : vector<80x128xf32> to vector<8x128xf32>
    %c0_134 = arith.constant 0 : index
    %c7_135 = arith.constant 7 : index
    %c0_136 = arith.constant 0 : index
    %c0_137 = arith.constant 0 : index
    %135 = vector.load %arg7[%c0_134, %c7_135, %c0_136, %c0_137] : memref<1x8x8x128xf32, #tpu.memory_space<vmem>>, vector<1x1x8x128xf32>
    %136 = vector.shape_cast %135 : vector<1x1x8x128xf32> to vector<8x128xf32>
    %137 = vector.shape_cast %134 : vector<8x128xf32> to vector<1x1x8x128xf32>
    tpu.vector_store %arg7[%c0_134, %c7_135, %c0_136, %c0_137], %137 {strides = array<i32>} : memref<1x8x8x128xf32, #tpu.memory_space<vmem>>, vector<1x1x8x128xf32>,
    return
  }
  func.func @transform_0(%arg0: i32) -> (i32, i32, i32) {
    %c0_i32 = arith.constant 0 : i32
    %c0_i32_0 = arith.constant 0 : i32
    %c0_i32_1 = arith.constant 0 : i32
    return %arg0, %c0_i32, %c0_i32_0 : i32, i32, i32
  }
  func.func @transform_1(%arg0: i32) -> (i32, i32, i32) {
    %c0_i32 = arith.constant 0 : i32
    %c0_i32_0 = arith.constant 0 : i32
    %c0_i32_1 = arith.constant 0 : i32
    return %arg0, %c0_i32, %c0_i32_0 : i32, i32, i32
  }
  func.func @transform_2(%arg0: i32) -> (i32, i32, i32) {
    %c0_i32 = arith.constant 0 : i32
    %c0_i32_0 = arith.constant 0 : i32
    %c0_i32_1 = arith.constant 0 : i32
    return %arg0, %c0_i32, %c0_i32_0 : i32, i32, i32
  }
  func.func @transform_3(%arg0: i32) -> (i32, i32, i32) {
    %c0_i32 = arith.constant 0 : i32
    %c0_i32_0 = arith.constant 0 : i32
    %c0_i32_1 = arith.constant 0 : i32
    %c0_i32_2 = arith.constant 0 : i32
    return %c0_i32, %c0_i32_0, %c0_i32_1 : i32, i32, i32
  }
  func.func @transform_4(%arg0: i32) -> (i32, i32) {
    %c0_i32 = arith.constant 0 : i32
    %c0_i32_0 = arith.constant 0 : i32
    %c0_i32_1 = arith.constant 0 : i32
    return %c0_i32, %c0_i32_0 : i32, i32
  }
  func.func @transform_5(%arg0: i32) -> (i32, i32) {
    %c0_i32 = arith.constant 0 : i32
    %c0_i32_0 = arith.constant 0 : i32
    %c0_i32_1 = arith.constant 0 : i32
    return %c0_i32, %c0_i32_0 : i32, i32
  }
  func.func @transform_6(%arg0: i32) -> (i32, i32, i32, i32) {
    %c0_i32 = arith.constant 0 : i32
    %c0_i32_0 = arith.constant 0 : i32
    %c0_i32_1 = arith.constant 0 : i32
    %c0_i32_2 = arith.constant 0 : i32
    return %arg0, %c0_i32, %c0_i32_0, %c0_i32_1 : i32, i32, i32, i32
  }
}

</mosaic_0001>

<bundles_post_ra>
// kernel: _lambda_.10
= control target key start
LH: loop header
LB: loop body
LE: loop exit
PB: predicated region body
PF: predicated region fallthrough
CT: control target
= control target key end

     0   :  { %s860_s18 = smov 0   ;;  %s862_s19 = smov 0   ;;  %s991_s0 = inlined_call_operand.vmem [shape: bf16[2,16,256], index: 0, kind: input, shape index: {}]   ;;  %s992_s1 = inlined_call_operand.vmem [shape: bf16[256,128], index: 1, kind: input, shape index: {}]   ;;  %s993_s2 = inlined_call_operand.vmem [shape: f32[1,128], index: 2, kind: input, shape index: {}]   ;;  %s994_s3 = inlined_call_operand.vmem [shape: f32[1,128], index: 3, kind: input, shape index: {}]   ;;  %s995_s4 = inlined_call_operand.vmem [shape: f32[2,1,128], index: 4, kind: input, shape index: {}]   ;;  %s996_s5 = inlined_call_operand.vmem [shape: bf16[2,16,128], index: 5, kind: output, shape index: {}]  }
   0x1   :  { %s864_s20 = smov 0   ;;  %s866_s21 = smov 0  }
   0x2   :  { %s868_s22 = smov 0   ;;  %s870_s23 = smov 0  }
   0x3   :  { %s872_s24 = smov 0  }
   0x4 LB: > { %s27_s25 = sadd.s32 1, %s817_s22  ;;  %s34_s26 = sadd.s32 1, %s821_s23  ;;  %s825_s24 = sphi %s872_s24, %s15_s24   ;;  %s821_s23 = sphi %s870_s23, %s1002_s23   ;;  %s817_s22 = sphi %s868_s22, %s1001_s22   ;;  %s813_s21 = sphi %s866_s21, %s1000_s21   ;;  %s809_s20 = sphi %s864_s20, %s999_s20   ;;  %s805_s19 = sphi %s862_s19, %s998_s19   ;;  %s801_s18 = sphi %s860_s18, %s997_s18  }
   0x5   : > { %p28_p0 = scmp.ge.s32.totalorder %s27_s25, 2  ;;  %p52_p1 = scmp.ne.s32.totalorder %s805_s19, %s801_s18 }
   0x6   : > { %p53_p2 = scmp.eq.s32.totalorder %s825_s24, 0  ;;  %s45_s30 = sadd.s32 1, %s805_s19 }
   0x7   : > { %s1004_s25 = smov (%p28_p0, %s27_s25), 0  ;;  %s1006_s26 = smov (!%p28_p0, %s34_s26), %s821_s23 }
   0x8   : > { %p54_p3 = por %p53_p2, %p52_p1  ;;  %p36_p4 = scmp.ge.s32.totalorder %s1006_s26, 2 }
   0x9   : > { %s41_s27 = ssub.s32 %s817_s22, %s1004_s25  ;;  %p638_p6 = scmp.ge.s32.totalorder %s825_s24, 4 }
   0xa   : > { %s1008_s26 = smov (%p36_p4, %s1006_s26), 0 }
   0xb   : > { %s38_s28 = ssub.s32 %s821_s23, %s1008_s26  ;;  %206 = sbr.rel (%p638_p6) target bundleno = 25 (0x19), region = 24 }
   0xc   : > { %s42_s29 = sor.u32 %s41_s27, %s38_s28 }
   0xd   : > { %p43_p5 = scmp.eq.s32.totalorder %s42_s29, 0 }
   0xf   : > { %s911_s6 = scalar_select %p43_p5, %s805_s19, %s45_s30  }
  0x12   : > { %209 = sbr.rel (!%p54_p3) target bundleno = 25 (0x19), region = 28  ;;  %s211_s7 = sand.u32 (%p54_p3), 1, %s805_s19  }
  0x13   : > { %s640_s8 = sshll.u32 (%p54_p3), %s821_s23, 2  ;;  %s639_s9 = sshll.u32 (%p54_p3), %s211_s7, 3 }
  0x14   : > { %s218_s10 = sadd.s32 (%p54_p3), %s817_s22, %s640_s8  ;;  %s213_s15 = scalar_lea.vmem (%p54_p3), [#allocation3], %s639_s9 }
  0x15   : > { %s641_s11 = sshll.u32 (%p54_p3), %s218_s10, 2 }
  0x16   : > { %s220_s14 = scalar_lea.vmem (%p54_p3), %s991_s0, %s641_s11 }
  0x17   : > { %v236_v0 = vld [vmem:[%s220_s14] sm:$0xf] (%p54_p3)  ;;  %v238_v1 = vld [vmem:[%s220_s14 + $0x8] sm:$0xf] (%p54_p3) }
  0x18   : > { %237 = vst [vmem:[%s213_s15] sm:$0xf] (%p54_p3), %v236_v0  ;;  %239 = vst [vmem:[%s213_s15 + $0x4] sm:$0xf] (%p54_p3), %v238_v1 }
  0x19 PF: > { %p642_p7 = scmp.ge.s32.totalorder %s825_s24, 1  ;;  %p280_p8 = scmp.lt.s32.totalorder %s825_s24, 5 }
  0x1b   : > { %p281_p9 = pnand %p642_p7, %p280_p8 }
  0x1c   : > { %s287_s16 = sand.u32 (!%p281_p9), 1, %s801_s18   ;;  %s644_s17 = sshll.u32 (!%p281_p9), %s809_s20, 4 }
  0x1d   : > { %284 = sbr.rel (%p281_p9) target bundleno = 314 (0x13a), region = 77  ;;  %s924_s27 = sshll.u32 (!%p281_p9), %s287_s16, 3 }
  0x1e   : > { %p328_p10 = scmp.lt.s32.totalorder (!%p281_p9), %s644_s17, 31  ;;  %p333_p11 = scmp.lt.s32.totalorder (!%p281_p9), %s813_s21, 1 }
  0x1f   : > { %s289_s14 = scalar_lea.vmem (!%p281_p9), [#allocation3], %s924_s27  ;;  %p648_p12 = scmp.ne.s32.totalorder (!%p281_p9), %s809_s20, 0 }
  0x24   : > { %s1010_s17 = smov (!%p328_p10, %s644_s17), 31  ;;  %s1012_s21 = smov (!%p333_p11, %s813_s21), 1 }
  0x25   : > { %s645_s28 = sshll.u32 %s1010_s17, 2  ;;  %s335_s18 = scalar_lea.vmem %s995_s4, %s1012_s21  ;;  %v827_v2 = vmov (!%p648_p12), 0.0  }
  0x26   : > { %s933_s7 = scalar_lea.vmem %s992_s1, %s645_s28  ;;  %s666_s10 = sshll.u32 %s1012_s21, 3  ;;  %351 = vst [vmem:[#allocation2] sm:$0xff] (!%p648_p12), %v827_v2  ;;  %352 = vst [vmem:[#allocation2 + $0x8] sm:$0xff] (!%p648_p12), %v827_v2 }
  0x27   : > { %s943_s13 = scalar_lea.vmem %s996_s5, %s666_s10  ;;  %350 = sbr.rel (%p648_p12) target bundleno = 46 (0x2e), region = 85 }
  0x2e PF: > { %v762_v3 = vld [vmem:[%s933_s7] sm:$0xff]   ;;  %v828_v4 = vmov 0.0   ;;  %v763_v5 = vld [vmem:[%s933_s7 + $0x8] sm:$0xff]   ;;  %vm829_vm0 = vmmov 0   ;;  %v764_v6 = vld [vmem:[%s933_s7 + $0x10] sm:$0xff]   ;;  %p658_p13 = scmp.ne.s32.totalorder %s809_s20, 1 }
  0x2f   : > { %683 = vmatprep.subr.bf16.mxu0 %v828_v4  ;;  %699 = vmatprep.mubr.msk.bf16.mxu0 %vm829_vm0, %v828_v4  ;;  %v765_v7 = vld [vmem:[%s933_s7 + $0x18] sm:$0xff]   ;;  %v766_v8 = vld [vmem:[%s933_s7 + $0x20] sm:$0xff]   ;;  %v767_v9 = vld [vmem:[%s933_s7 + $0x28] sm:$0xff]  }
  0x30   : > { %684 = vmatpush3.bf16.msra.mxu0 %v762_v3  ;;  %v768_v10 = vld [vmem:[%s933_s7 + $0x30] sm:$0xff]   ;;  %v769_v11 = vld [vmem:[%s933_s7 + $0x38] sm:$0xff]   ;;  %v353_v13 = vld [vmem:[#allocation2] sm:$0xff] }
  0x31   : > { %685 = vmatprep.subr.bf16.mxu0 %v828_v4  ;;  %v770_v12 = vld [vmem:[%s289_s14] sm:$0xff]   ;;  %v354_v15 = vld [vmem:[#allocation2 + $0x8] sm:$0xff]  ;;  %v659_v23 = vld [vmem:[%s993_s2] ss:$0 sm:$0xff] (!%p658_p13) }
  0x32   : > { %v660_v26 = vld [vmem:[%s994_s3] ss:$0 sm:$0xff] (!%p658_p13) }
  0x33   : > { %v661_v29 = vld [vmem:[%s335_s18] ss:$0 sm:$0xff] (!%p658_p13) }
  0x34   : > { %686 = vmatpush3.bf16.msra.mxu0 %v763_v5 }
  0x35   : > { %687 = vmatprep.subr.bf16.mxu0 %v828_v4 }
  0x38   : > { %688 = vmatpush3.bf16.msra.mxu0 %v764_v6 }
  0x39   : > { %689 = vmatprep.subr.bf16.mxu0 %v828_v4 }
  0x3c   : > { %690 = vmatpush3.bf16.msra.mxu0 %v765_v7 }
  0x3d   : > { %691 = vmatprep.subr.bf16.mxu0 %v828_v4 }
  0x40   : > { %692 = vmatpush3.bf16.msra.mxu0 %v766_v8 }
  0x41   : > { %693 = vmatprep.subr.bf16.mxu0 %v828_v4 }
  0x44   : > { %694 = vmatpush3.bf16.msra.mxu0 %v767_v9 }
  0x45   : > { %695 = vmatprep.subr.bf16.mxu0 %v828_v4 }
  0x48   : > { %696 = vmatpush3.bf16.msra.mxu0 %v768_v10 }
  0x49   : > { %697 = vmatprep.subr.bf16.mxu0 %v828_v4 }
  0x4c   : > { %698 = vmatpush3.bf16.msra.mxu0 %v769_v11 }
  0x4f   : > { %700 = vmatmul.mubr.bf16.vlgmr.msra.gmra.mrb[0].mxu0 %v770_v12 }
 0x121   : > { %475 = sbr.rel (%p658_p13) target bundleno = 314 (0x13a), region = 89 }
 0x122   : > { %v461_v14 = vpop.f32.mrb[0].mxu0 }
 0x123   : > { %v468_v16 = vadd.f32 %v461_v14, %v353_v13  ;;  %v701_v17 = vpop.f32.mrb[1].mxu0 }
 0x124   : > { %v464_v18 = vpop.f32.mrb[2].mxu0 }
 0x125   : > { %470 = vst [vmem:[#allocation2] sm:$0xff] %v468_v16  ;;  %v469_v19 = vadd.f32 %v464_v18, %v354_v15  ;;  %v702_v20 = vpop.f32.mrb[3].mxu0 }
 0x127   : > { %471 = vst [vmem:[#allocation2 + $0x8] sm:$0xff] %v469_v19 }
 0x12c   : > { %v476_v21 = vld [vmem:[#allocation2] sm:$0xff] }
 0x12d   : > { %v485_v24 = vmul.f32 %v659_v23, %v476_v21 }
 0x12e   : > { %v477_v22 = vld [vmem:[#allocation2 + $0x8] sm:$0xff] }
 0x12f   : > { %v486_v25 = vmul.f32 %v659_v23, %v477_v22  ;;  %v494_v27 = vadd.f32 %v660_v26, %v485_v24 }
 0x131   : > { %v495_v28 = vadd.f32 %v660_v26, %v486_v25  ;;  %v496_v30 = vmax.f32 %v494_v27, 0.0 }
 0x133   : > { %v497_v31 = vmax.f32 %v495_v28, 0.0  ;;  %v505_v32 = vmul.f32 %v661_v29, %v496_v30 }
 0x135   : > { %v506_v33 = vmul.f32 %v661_v29, %v497_v31 }
 0x137   : > { %v672_v34 = vpack.c.bf16 %v506_v33, %v505_v32 }
 0x139   : > { %673 = vst [vmem:[%s943_s13] sm:$0xff] %v672_v34  }
 0x13a PF: > { %s15_s24 = sadd.s32 1, %s825_s24   ;;  %s997_s18 = smov %s805_s19 }
 0x13b   : > { %p12_p0 = scmp.ge.s32.totalorder %s15_s24, 6   ;;  %s998_s19 = smov %s911_s6 }
 0x13c   : > { %s999_s20 = smov %s817_s22  ;;  %s1000_s21 = smov %s821_s23 }
 0x13d   : > { %s1001_s22 = smov %s1004_s25  ;;  %s1002_s23 = smov %s1008_s26 }
 0x13e   :  { %14 = sbr.rel (!%p12_p0) target bundleno = 4 (0x4), region = 130 }

// kernel: _lambda_.9
= control target key start
LH: loop header
LB: loop body
LE: loop exit
PB: predicated region body
PF: predicated region fallthrough
CT: control target
= control target key end

     0   :  { %v82_v28 = vlaneseq  ;;  %v621_v29 = vmov 1966171168   ;;  %s803_s1 = inlined_call_operand.vmem [shape: bf16[256,384], index: 1, kind: input, shape index: {}]   ;;  %s804_s0 = inlined_call_operand.vmem [shape: bf16[2,256], index: 0, kind: input, shape index: {}]   ;;  %s805_s2 = inlined_call_operand.vmem [shape: f32[1,384], index: 2, kind: input, shape index: {}]   ;;  %s806_s3 = inlined_call_operand.vmem [shape: f32[2,384], index: 3, kind: output, shape index: {}]  }
   0x1   :  { %v557_v0 = vld [vmem:[%s803_s1 + $0x4] ss:$12 sps:$4 sm:$0xff]   ;;  %v559_v1 = vld [vmem:[%s803_s1] ss:$12 sps:$4 sm:$0xff]   ;;  %v560_v2 = vld [vmem:[%s803_s1 + $0x1c] ss:$12 sps:$4 sm:$0xff]   ;;  %v107_v30 = vunpack.c.l.s4 %v621_v29 }
   0x2   :  { %378 = vmatprep.subr.bf16.mxu0 %v557_v0  ;;  %v562_v3 = vld [vmem:[%s803_s1 + $0x18] ss:$12 sps:$4 sm:$0xff]   ;;  %v563_v4 = vld [vmem:[%s803_s1 + $0x34] ss:$12 sps:$4 sm:$0xff]   ;;  %v565_v5 = vld [vmem:[%s803_s1 + $0x30] ss:$12 sps:$4 sm:$0xff]  }
   0x3   :  { %379 = vmatpush1.bf16.msra.mxu0 %v559_v1  ;;  %v566_v6 = vld [vmem:[%s803_s1 + $0x4c] ss:$12 sps:$4 sm:$0xff]   ;;  %v568_v7 = vld [vmem:[%s803_s1 + $0x48] ss:$12 sps:$4 sm:$0xff]   ;;  %v569_v8 = vld [vmem:[%s803_s1 + $0x64] ss:$12 sps:$4 sm:$0xff]   ;;  %v108_v36 = vunpack.c.0.s8 %v107_v30 }
   0x4   :  { %380 = vmatprep.subr.bf16.mxu0 %v560_v2  ;;  %v581_v9 = vld [vmem:[%s803_s1 + $0xc8] ss:$12 sps:$4 sm:$0xff]   ;;  %v571_v11 = vld [vmem:[%s803_s1 + $0x60] ss:$12 sps:$4 sm:$0xff]   ;;  %v574_v15 = vld [vmem:[%s803_s1 + $0x78] ss:$12 sps:$4 sm:$0xff]  }
   0x5   :  { %v582_v10 = vld [vmem:[%s803_s1 + $0x8] ss:$12 sps:$4 sm:$0xff]   ;;  %533 = vmatprep.subr.bf16.mxu1 %v581_v9  ;;  %v586_v12 = vld [vmem:[%s803_s1 + $0xe0] ss:$12 sps:$4 sm:$0xff]   ;;  %v591_v16 = vld [vmem:[%s803_s1 + $0xf8] ss:$12 sps:$4 sm:$0xff]  }
   0x6   :  { %534 = vmatpush3.bf16.msra.mxu1 %v582_v10  ;;  %v587_v13 = vld [vmem:[%s803_s1 + $0x20] ss:$12 sps:$4 sm:$0xff]   ;;  %v572_v14 = vld [vmem:[%s803_s1 + $0x7c] ss:$12 sps:$4 sm:$0xff]   ;;  %v592_v17 = vld [vmem:[%s803_s1 + $0x38] ss:$12 sps:$4 sm:$0xff]  }
   0x7   :  { %381 = vmatpush1.bf16.msra.mxu0 %v562_v3  ;;  %535 = vmatprep.subr.bf16.mxu1 %v586_v12  ;;  %v575_v18 = vld [vmem:[%s803_s1 + $0x94] ss:$12 sps:$4 sm:$0xff]   ;;  %v596_v19 = vld [vmem:[%s803_s1 + $0x110] ss:$12 sps:$4 sm:$0xff]   ;;  %v578_v22 = vld [vmem:[%s803_s1 + $0xac] ss:$12 sps:$4 sm:$0xff]  }
   0x8   :  { %382 = vmatprep.subr.bf16.mxu0 %v563_v4  ;;  %v597_v20 = vld [vmem:[%s803_s1 + $0x50] ss:$12 sps:$4 sm:$0xff]   ;;  %v601_v23 = vld [vmem:[%s803_s1 + $0x128] ss:$12 sps:$4 sm:$0xff]   ;;  %v606_v27 = vld [vmem:[%s803_s1 + $0x140] ss:$12 sps:$4 sm:$0xff]  }
   0x9   :  { %v577_v21 = vld [vmem:[%s803_s1 + $0x90] ss:$12 sps:$4 sm:$0xff]   ;;  %v580_v24 = vld [vmem:[%s803_s1 + $0xa8] ss:$12 sps:$4 sm:$0xff]   ;;  %v585_v31 = vld [vmem:[%s803_s1 + $0xc0] ss:$12 sps:$4 sm:$0xff]  }
   0xa   :  { %536 = vmatpush3.bf16.msra.mxu1 %v587_v13  ;;  %v602_v25 = vld [vmem:[%s803_s1 + $0x68] ss:$12 sps:$4 sm:$0xff]   ;;  %v583_v26 = vld [vmem:[%s803_s1 + $0xc4] ss:$12 sps:$4 sm:$0xff]   ;;  %v607_v32 = vld [vmem:[%s803_s1 + $0x80] ss:$12 sps:$4 sm:$0xff]  }
   0xb   :  { %383 = vmatpush1.bf16.msra.mxu0 %v565_v5  ;;  %537 = vmatprep.subr.bf16.mxu1 %v591_v16  ;;  %v611_v33 = vld [vmem:[%s803_s1 + $0x158] ss:$12 sps:$4 sm:$0xff]   ;;  %v588_v34 = vld [vmem:[%s803_s1 + $0xdc] ss:$12 sps:$4 sm:$0xff]   ;;  %v739_v35 = vshrl.u32 %v82_v28, 7 }
   0xc   :  { %384 = vmatprep.subr.bf16.mxu0 %v566_v6  ;;  %v590_v37 = vld [vmem:[%s803_s1 + $0xd8] ss:$12 sps:$4 sm:$0xff]   ;;  %v616_v39 = vld [vmem:[%s803_s1 + $0x170] ss:$12 sps:$4 sm:$0xff]   ;;  %v593_v40 = vld [vmem:[%s803_s1 + $0xf4] ss:$12 sps:$4 sm:$0xff]  }
   0xd   :  { %v612_v38 = vld [vmem:[%s803_s1 + $0x98] ss:$12 sps:$4 sm:$0xff]   ;;  %v111_v41 = vsub.s32 %v108_v36, %v739_v35  ;;  %v484_v42 = vld.sshfl [vmem:[%s804_s0] sm:$0x11 pattern:$0x75316420] }
   0xe   :  { %538 = vmatpush3.bf16.msra.mxu1 %v592_v17  ;;  %v617_v43 = vld [vmem:[%s803_s1 + $0xb0] ss:$12 sps:$4 sm:$0xff]   ;;  %v105_v44 = vcombine.high %v484_v42, %v484_v42  ;;  %v598_v46 = vld [vmem:[%s803_s1 + $0x10c] ss:$12 sps:$4 sm:$0xff]   ;;  %v600_v49 = vld [vmem:[%s803_s1 + $0x108] ss:$12 sps:$4 sm:$0xff]  }
   0xf   :  { %385 = vmatpush1.bf16.msra.mxu0 %v568_v7  ;;  %539 = vmatprep.subr.bf16.mxu1 %v596_v19  ;;  %v595_v45 = vld [vmem:[%s803_s1 + $0xf0] ss:$12 sps:$4 sm:$0xff]   ;;  %v112_v48 = vrot.slane %v484_v42, %v111_v41  ;;  %v605_v51 = vld [vmem:[%s803_s1 + $0x120] ss:$12 sps:$4 sm:$0xff]   ;;  %v610_v53 = vld [vmem:[%s803_s1 + $0x138] ss:$12 sps:$4 sm:$0xff]  }
  0x10   :  { %386 = vmatprep.subr.bf16.mxu0 %v569_v8  ;;  %v119_v47 = vrot.slane %v105_v44, %v111_v41  ;;  %v603_v50 = vld [vmem:[%s803_s1 + $0x124] ss:$12 sps:$4 sm:$0xff]   ;;  %v608_v52 = vld [vmem:[%s803_s1 + $0x13c] ss:$12 sps:$4 sm:$0xff]   ;;  %v613_v54 = vld [vmem:[%s803_s1 + $0x154] ss:$12 sps:$4 sm:$0xff]  }
  0x11   :  { %v615_v55 = vld [vmem:[%s803_s1 + $0x150] ss:$12 sps:$4 sm:$0xff]   ;;  %v618_v56 = vld [vmem:[%s803_s1 + $0x16c] ss:$12 sps:$4 sm:$0xff]   ;;  %v620_v57 = vld [vmem:[%s803_s1 + $0x168] ss:$12 sps:$4 sm:$0xff]  }
  0x12   :  { %540 = vmatpush3.bf16.msra.mxu1 %v597_v20  ;;  %451 = vmatprep.mubr.bf16.mxu1 %v119_v47  ;;  %v92_v63 = vsub.s32 2, %v739_v35  ;;  %v622_v0 = vmov 1983009808   ;;  %v84_v2 = vsub.s32 0, %v739_v35  ;;  %v80_v3 = vld [vmem:[%s805_s2] sm:$0x7] }
  0x13   :  { %387 = vmatpush1.bf16.msra.mxu0 %v571_v11  ;;  %541 = vmatprep.subr.bf16.mxu1 %v601_v23  ;;  %v464_v1 = vunpack.c.l.s4 %v622_v0  ;;  %v88_v4 = vsub.s32 1, %v739_v35 }
  0x14   :  { %388 = vmatprep.subr.bf16.mxu0 %v572_v14  ;;  %410 = vmatprep.mubr.bf16.mxu0 %v119_v47  ;;  %v93_v5 = vrot.slane %v80_v3, %v92_v63  ;;  %v85_v7 = vrot.slane %v80_v3, %v84_v2 }
  0x15   :  { %v465_v6 = vunpack.c.0.s8 %v464_v1  ;;  %v89_v8 = vrot.slane %v80_v3, %v88_v4 }
  0x16   :  { %542 = vmatpush3.bf16.msra.mxu1 %v602_v25 }
  0x17   :  { %389 = vmatpush1.bf16.msra.mxu0 %v574_v15  ;;  %543 = vmatprep.subr.bf16.mxu1 %v606_v27  ;;  %v468_v10 = vsub.s32 %v465_v6, %v739_v35 }
  0x18   :  { %390 = vmatprep.subr.bf16.mxu0 %v575_v18 }
  0x1a   :  { %544 = vmatpush3.bf16.msra.mxu1 %v607_v32 }
  0x1b   :  { %391 = vmatpush1.bf16.msra.mxu0 %v577_v21  ;;  %545 = vmatprep.subr.bf16.mxu1 %v611_v33 }
  0x1c   :  { %392 = vmatprep.subr.bf16.mxu0 %v578_v22 }
  0x1e   :  { %546 = vmatpush3.bf16.msra.mxu1 %v612_v38 }
  0x1f   :  { %393 = vmatpush1.bf16.msra.mxu0 %v580_v24  ;;  %547 = vmatprep.subr.bf16.mxu1 %v616_v39 }
  0x20   :  { %394 = vmatprep.subr.bf16.mxu0 %v583_v26 }
  0x22   :  { %548 = vmatpush3.bf16.msra.mxu1 %v617_v43 }
  0x23   :  { %395 = vmatpush1.bf16.msra.mxu0 %v585_v31 }
  0x24   :  { %396 = vmatprep.subr.bf16.mxu0 %v588_v34 }
  0x25   :  { %452 = vmatmul.mubr.bf16.vlgmr.msra.gmra.mrb[0].mxu1 %v112_v48 }
  0x27   :  { %397 = vmatpush1.bf16.msra.mxu0 %v590_v37 }
  0x28   :  { %398 = vmatprep.subr.bf16.mxu0 %v593_v40 }
  0x2b   :  { %399 = vmatpush1.bf16.msra.mxu0 %v595_v45 }
  0x2c   :  { %400 = vmatprep.subr.bf16.mxu0 %v598_v46 }
  0x2f   :  { %401 = vmatpush1.bf16.msra.mxu0 %v600_v49 }
  0x30   :  { %402 = vmatprep.subr.bf16.mxu0 %v603_v50 }
  0x33   :  { %403 = vmatpush1.bf16.msra.mxu0 %v605_v51 }
  0x34   :  { %404 = vmatprep.subr.bf16.mxu0 %v608_v52 }
  0x37   :  { %405 = vmatpush1.bf16.msra.mxu0 %v610_v53 }
  0x38   :  { %406 = vmatprep.subr.bf16.mxu0 %v613_v54 }
  0x3b   :  { %407 = vmatpush1.bf16.msra.mxu0 %v615_v55 }
  0x3c   :  { %408 = vmatprep.subr.bf16.mxu0 %v618_v56 }
  0x3f   :  { %409 = vmatpush1.bf16.msra.mxu0 %v620_v57 }
  0x42   :  { %411 = vmatmul.mubr.bf16.vlgmr.msra.gmra.mrb[0].mxu0 %v112_v48 }
  0xf8   :  { %v549_v58 = vpop.f32.mrb[0].mxu1 }
  0xf9   :  { %v550_v59 = vpop.f32.mrb[1].mxu1 }
  0xfa   :  { %v551_v60 = vadd.f32 %v550_v59, %v549_v58  ;;  %v552_v61 = vpop.f32.mrb[2].mxu1 }
  0xfb   :  { %v553_v62 = vpop.f32.mrb[3].mxu1 }
  0xfc   :  { %v454_v9 = vadd.f32 %v551_v60, %v93_v5 }
  0xfe   :  { %v476_v17 = vrot.slane %v454_v9, %v468_v10 }
 0x115   :  { %v412_v11 = vpop.f32.mrb[0].mxu0 }
 0x116   :  { %v413_v12 = vadd.f32 %v412_v11, %v85_v7  ;;  %v414_v13 = vpop.f32.mrb[1].mxu0 }
 0x117   :  { %v415_v14 = vadd.f32 %v414_v13, %v89_v8  ;;  %v416_v15 = vpop.f32.mrb[2].mxu0 }
 0x118   :  { %v417_v16 = vpop.f32.mrb[3].mxu0 }
 0x119   :  { %v462_v18 = vcombine.low %v413_v12, %v415_v14 }
 0x11b   :  { %v469_v19 = vrot.slane %v462_v18, %v468_v10 }
 0x11d   :  { %v477_v20 = vcombine.low %v469_v19, %v476_v17 }
 0x11f   :  { %479 = vst [vmem:[%s806_s3] sm:$0x3f] %v477_v20 }

// kernel: _lambda_.11
= control target key start
LH: loop header
LB: loop body
LE: loop exit
PB: predicated region body
PF: predicated region fallthrough
CT: control target
= control target key end

     0   :  { %s1347_s0 = inlined_call_operand.vmem [shape: bf16[2,64,256], index: 0, kind: input, shape index: {}]   ;;  %s1348_s1 = inlined_call_operand.vmem [shape: bf16[256,128], index: 1, kind: input, shape index: {}]   ;;  %s1349_s2 = inlined_call_operand.vmem [shape: f32[1,128], index: 2, kind: input, shape index: {}]   ;;  %s1350_s3 = inlined_call_operand.vmem [shape: f32[1,128], index: 3, kind: input, shape index: {}]   ;;  %s1351_s4 = inlined_call_operand.vmem [shape: bf16[2,64,128], index: 4, kind: input, shape index: {}]   ;;  %s1352_s5 = inlined_call_operand.vmem [shape: f32[2,1,128], index: 5, kind: input, shape index: {}]   ;;  %s1353_s6 = inlined_call_operand.vmem [shape: bf16[2,64,128], index: 6, kind: output, shape index: {}]  }
   0x1   :  { %1354 = sst [smem:[#allocation4_spill]] %s1347_s0 }
   0x2   :  { %s1203_s21 = smov 0   ;;  %s1205_s22 = smov 0  }
   0x3   :  { %s1207_s23 = smov 0   ;;  %s1209_s24 = smov 0  }
   0x4   :  { %s1211_s25 = smov 0   ;;  %s1213_s26 = smov 0  }
   0x5   :  { %s1215_s27 = smov 0  }
   0x6 LB: > { %s28_s28 = sadd.s32 1, %s1157_s25  ;;  %s35_s29 = sadd.s32 1, %s1161_s26  ;;  %s1165_s27 = sphi %s1215_s27, %s16_s27   ;;  %s1161_s26 = sphi %s1213_s26, %s1361_s26   ;;  %s1157_s25 = sphi %s1211_s25, %s1360_s25   ;;  %s1153_s24 = sphi %s1209_s24, %s1359_s24   ;;  %s1149_s23 = sphi %s1207_s23, %s1358_s23   ;;  %s1145_s22 = sphi %s1205_s22, %s1357_s22   ;;  %s1141_s21 = sphi %s1203_s21, %s1356_s21  }
   0x7   : > { %p29_p0 = scmp.ge.s32.totalorder %s28_s28, 2  ;;  %p53_p1 = scmp.ne.s32.totalorder %s1145_s22, %s1141_s21 }
   0x8   : > { %p54_p2 = scmp.eq.s32.totalorder %s1165_s27, 0  ;;  %s46_s9 = sadd.s32 1, %s1145_s22 }
   0x9   : > { %s1363_s28 = smov (%p29_p0, %s28_s28), 0  ;;  %s1365_s29 = smov (!%p29_p0, %s35_s29), %s1161_s26 }
   0xa   : > { %p55_p3 = por %p54_p2, %p53_p1  ;;  %p37_p4 = scmp.ge.s32.totalorder %s1365_s29, 2 }
   0xb   : > { %s42_s30 = ssub.s32 %s1157_s25, %s1363_s28  ;;  %p899_p6 = scmp.ge.s32.totalorder %s1165_s27, 4 }
   0xc   : > { %s1367_s29 = smov (%p37_p4, %s1365_s29), 0 }
   0xd   : > { %s39_s7 = ssub.s32 %s1161_s26, %s1367_s29  ;;  %235 = sbr.rel (%p899_p6) target bundleno = 35 (0x23), region = 24 }
   0xe   : > { %s43_s8 = sor.u32 %s42_s30, %s39_s7 }
   0xf   : > { %p44_p5 = scmp.eq.s32.totalorder %s43_s8, 0 }
  0x11   : > { %s1254_s10 = scalar_select %p44_p5, %s1145_s22, %s46_s9  }
  0x14   : > { %238 = sbr.rel (!%p55_p3) target bundleno = 35 (0x23), region = 28  ;;  %s240_s11 = sand.u32 (%p55_p3), 1, %s1145_s22  }
  0x15   : > { %s901_s12 = sshll.u32 (%p55_p3), %s1161_s26, 4  ;;  %s900_s13 = sshll.u32 (%p55_p3), %s240_s11, 5 }
  0x16   : > { %s247_s14 = sadd.s32 (%p55_p3), %s1157_s25, %s901_s12  ;;  %s1355_s0 = sld [smem:[#allocation4_spill]] (%p55_p3) }
  0x17   : > { %s902_s15 = sshll.u32 (%p55_p3), %s247_s14, 2  ;;  %s242_s19 = scalar_lea.vmem (%p55_p3), [#allocation3], %s900_s13 }
  0x1c   : > { %s249_s18 = scalar_lea.vmem %s1355_s0, %s902_s15 }
  0x1d   : > { %v265_v0 = vld [vmem:[%s249_s18] sm:$0xf]  ;;  %v267_v1 = vld [vmem:[%s249_s18 + $0x8] sm:$0xf]  ;;  %v269_v2 = vld [vmem:[%s249_s18 + $0x10] sm:$0xf] }
  0x1e   : > { %266 = vst [vmem:[%s242_s19] sm:$0xf] %v265_v0  ;;  %268 = vst [vmem:[%s242_s19 + $0x4] sm:$0xf] %v267_v1  ;;  %v271_v3 = vld [vmem:[%s249_s18 + $0x18] sm:$0xf] }
  0x1f   : > { %270 = vst [vmem:[%s242_s19 + $0x8] sm:$0xf] %v269_v2  ;;  %v273_v4 = vld [vmem:[%s249_s18 + $0x20] sm:$0xf]  ;;  %v275_v5 = vld [vmem:[%s249_s18 + $0x28] sm:$0xf] }
  0x20   : > { %272 = vst [vmem:[%s242_s19 + $0xc] sm:$0xf] %v271_v3  ;;  %274 = vst [vmem:[%s242_s19 + $0x10] sm:$0xf] %v273_v4  ;;  %v277_v6 = vld [vmem:[%s249_s18 + $0x30] sm:$0xf] }
  0x21   : > { %276 = vst [vmem:[%s242_s19 + $0x14] sm:$0xf] %v275_v5  ;;  %v279_v7 = vld [vmem:[%s249_s18 + $0x38] sm:$0xf]  ;;  %278 = vst [vmem:[%s242_s19 + $0x18] sm:$0xf] %v277_v6 }
  0x22   : > { %280 = vst [vmem:[%s242_s19 + $0x1c] sm:$0xf] %v279_v7 }
  0x23 PF: > { %p903_p7 = scmp.ge.s32.totalorder %s1165_s27, 1  ;;  %p346_p8 = scmp.lt.s32.totalorder %s1165_s27, 5 }
  0x25   : > { %p347_p9 = pnand %p903_p7, %p346_p8 }
  0x26   : > { %s353_s20 = sand.u32 (!%p347_p9), 1, %s1141_s21   ;;  %s905_s30 = sshll.u32 (!%p347_p9), %s1149_s23, 4 }
  0x27   : > { %350 = sbr.rel (%p347_p9) target bundleno = 329 (0x149), region = 81  ;;  %s904_s7 = sshll.u32 (!%p347_p9), %s353_s20, 5 }
  0x28   : > { %p405_p10 = scmp.lt.s32.totalorder (!%p347_p9), %s905_s30, 31  ;;  %p411_p11 = scmp.lt.s32.totalorder (!%p347_p9), %s1153_s24, 1 }
  0x29   : > { %p911_p12 = scmp.ne.s32.totalorder (!%p347_p9), %s1149_s23, 0 }
  0x2e   : > { %s1369_s30 = smov (!%p405_p10, %s905_s30), 31  ;;  %s1371_s24 = smov (!%p411_p11, %s1153_s24), 1 }
  0x2f   : > { %s906_s8 = sshll.u32 %s1369_s30, 2  ;;  %s938_s13 = sshll.u32 %s1371_s24, 5  ;;  %v1167_v8 = vmov (!%p911_p12), 0.0  }
  0x30   : > { %s1274_s12 = scalar_lea.vmem %s1348_s1, %s906_s8  ;;  %s1280_s21 = scalar_lea.vmem %s1351_s4, %s938_s13  ;;  %438 = vst [vmem:[#allocation2] sm:$0xff] (!%p911_p12), %v1167_v8  ;;  %439 = vst [vmem:[#allocation2 + $0x8] sm:$0xff] (!%p911_p12), %v1167_v8 }
  0x31   : > { %s422_s18 = scalar_lea.vmem %s1352_s5, %s1371_s24  ;;  %s1289_s0 = scalar_lea.vmem %s1353_s6, %s938_s13  ;;  %440 = vst [vmem:[#allocation2 + $0x10] sm:$0xff] (!%p911_p12), %v1167_v8  ;;  %441 = vst [vmem:[#allocation2 + $0x18] sm:$0xff] (!%p911_p12), %v1167_v8 }
  0x32   : > { %s1291_s30 = scalar_lea.vmem [#allocation3], %s904_s7  ;;  %437 = sbr.rel (%p911_p12) target bundleno = 57 (0x39), region = 89  ;;  %442 = vst [vmem:[#allocation2 + $0x20] sm:$0xff] (!%p911_p12), %v1167_v8  ;;  %443 = vst [vmem:[#allocation2 + $0x28] sm:$0xff] (!%p911_p12), %v1167_v8 }
  0x33   : > { %444 = vst [vmem:[#allocation2 + $0x30] sm:$0xff] (!%p911_p12), %v1167_v8  ;;  %445 = vst [vmem:[#allocation2 + $0x38] sm:$0xff] (!%p911_p12), %v1167_v8 }
  0x39 PF: > { %v1099_v9 = vld [vmem:[%s1274_s12] sm:$0xff]   ;;  %v1100_v10 = vld [vmem:[%s1274_s12 + $0x8] sm:$0xff]   ;;  %v1101_v11 = vld [vmem:[%s1274_s12 + $0x10] sm:$0xff]   ;;  %p924_p13 = scmp.ne.s32.totalorder %s1149_s23, 1 }
  0x3a   : > { %1002 = vmatprep.subr.bf16.mxu0 %v1099_v9  ;;  %1026 = vmatprep.subr.bf16.mxu1 %v1099_v9  ;;  %v1102_v12 = vld [vmem:[%s1274_s12 + $0x18] sm:$0xff]   ;;  %v1107_v13 = vld [vmem:[%s1291_s30] sm:$0xff]   ;;  %v1108_v14 = vld [vmem:[%s1291_s30 + $0x10] sm:$0xff]  }
  0x3b   : > { %1003 = vmatpush3.bf16.msra.mxu0 %v1099_v9  ;;  %1034 = vmatpush3.bf16.msra.mxu1 %v1099_v9  ;;  %v1103_v15 = vld [vmem:[%s1274_s12 + $0x20] sm:$0xff]   ;;  %v1104_v16 = vld [vmem:[%s1274_s12 + $0x28] sm:$0xff]   ;;  %v1105_v17 = vld [vmem:[%s1274_s12 + $0x30] sm:$0xff]  }
  0x3c   : > { %1004 = vmatprep.subr.bf16.mxu0 %v1100_v10  ;;  %1027 = vmatprep.subr.bf16.mxu1 %v1100_v10  ;;  %v1106_v18 = vld [vmem:[%s1274_s12 + $0x38] sm:$0xff]   ;;  %v1109_v19 = vld [vmem:[%s1291_s30 + $0x8] sm:$0xff]   ;;  %v448_v21 = vld [vmem:[#allocation2 + $0x10] sm:$0xff] }
  0x3d   : > { %1018 = vmatprep.mubr.bf16.mxu0 %v1107_v13  ;;  %1022 = vmatprep.mubr.bf16.mxu1 %v1108_v14  ;;  %v1110_v20 = vld [vmem:[%s1291_s30 + $0x18] sm:$0xff]   ;;  %v452_v22 = vld [vmem:[#allocation2 + $0x30] sm:$0xff]  ;;  %v446_v23 = vld [vmem:[#allocation2] sm:$0xff] }
  0x3e   : > { %v450_v24 = vld [vmem:[#allocation2 + $0x20] sm:$0xff]  ;;  %v449_v27 = vld [vmem:[#allocation2 + $0x18] sm:$0xff]  ;;  %v447_v33 = vld [vmem:[#allocation2 + $0x8] sm:$0xff] }
  0x3f   : > { %1005 = vmatpush3.bf16.msra.mxu0 %v1100_v10  ;;  %1035 = vmatpush3.bf16.msra.mxu1 %v1100_v10  ;;  %v453_v28 = vld [vmem:[#allocation2 + $0x38] sm:$0xff]  ;;  %v451_v34 = vld [vmem:[#allocation2 + $0x28] sm:$0xff]  ;;  %v925_v47 = vld [vmem:[%s1349_s2] ss:$0 sm:$0xff] (!%p924_p13) }
  0x40   : > { %1006 = vmatprep.subr.bf16.mxu0 %v1101_v11  ;;  %1028 = vmatprep.subr.bf16.mxu1 %v1101_v11  ;;  %v926_v50 = vld [vmem:[%s1350_s3] ss:$0 sm:$0xff] (!%p924_p13)  ;;  %v984_v56 = vld [vmem:[%s1280_s21 + $0x8] sm:$0xff] (!%p924_p13)   ;;  %v985_v63 = vld [vmem:[%s1280_s21 + $0x10] sm:$0xff] (!%p924_p13)  }
  0x41   : > { %v949_v51 = vld [vmem:[%s1280_s21] sm:$0xff] (!%p924_p13)   ;;  %v954_v0 = vunpack.c.l.bf16 (!%p924_p13), %v984_v56  ;;  %v955_v1 = vunpack.c.h.bf16 (!%p924_p13), %v984_v56  ;;  %v958_v13 = vunpack.c.l.bf16 (!%p924_p13), %v985_v63  ;;  %v959_v14 = vunpack.c.h.bf16 (!%p924_p13), %v985_v63 }
  0x42   : > { %v950_v52 = vunpack.c.l.bf16 (!%p924_p13), %v949_v51  ;;  %v951_v53 = vunpack.c.h.bf16 (!%p924_p13), %v949_v51  ;;  %v927_v10 = vld [vmem:[%s422_s18] ss:$0 sm:$0xff] (!%p924_p13) }
  0x43   : > { %1007 = vmatpush3.bf16.msra.mxu0 %v1101_v11  ;;  %1036 = vmatpush3.bf16.msra.mxu1 %v1101_v11 }
  0x44   : > { %1008 = vmatprep.subr.bf16.mxu0 %v1102_v12  ;;  %1029 = vmatprep.subr.bf16.mxu1 %v1102_v12 }
  0x47   : > { %1009 = vmatpush3.bf16.msra.mxu0 %v1102_v12  ;;  %1037 = vmatpush3.bf16.msra.mxu1 %v1102_v12 }
  0x48   : > { %1010 = vmatprep.subr.bf16.mxu0 %v1103_v15  ;;  %1030 = vmatprep.subr.bf16.mxu1 %v1103_v15 }
  0x4b   : > { %1011 = vmatpush3.bf16.msra.mxu0 %v1103_v15  ;;  %1038 = vmatpush3.bf16.msra.mxu1 %v1103_v15 }
  0x4c   : > { %1012 = vmatprep.subr.bf16.mxu0 %v1104_v16  ;;  %1031 = vmatprep.subr.bf16.mxu1 %v1104_v16 }
  0x4f   : > { %1013 = vmatpush3.bf16.msra.mxu0 %v1104_v16  ;;  %1039 = vmatpush3.bf16.msra.mxu1 %v1104_v16 }
  0x50   : > { %1014 = vmatprep.subr.bf16.mxu0 %v1105_v17  ;;  %1032 = vmatprep.subr.bf16.mxu1 %v1105_v17 }
  0x53   : > { %1015 = vmatpush3.bf16.msra.mxu0 %v1105_v17  ;;  %1040 = vmatpush3.bf16.msra.mxu1 %v1105_v17 }
  0x54   : > { %1016 = vmatprep.subr.bf16.mxu0 %v1106_v18  ;;  %1033 = vmatprep.subr.bf16.mxu1 %v1106_v18 }
  0x57   : > { %1017 = vmatpush3.bf16.msra.mxu0 %v1106_v18  ;;  %1041 = vmatpush3.bf16.msra.mxu1 %v1106_v18 }
  0x5a   : > { %1019 = vmatmul.mubr.bf16.vlgmr.msra.gmra.mrb[0].mxu0 %v1109_v19  ;;  %1023 = vmatmul.mubr.bf16.vlgmr.msra.gmra.mrb[0].mxu1 %v1110_v20 }
 0x12d   : > { %v1020_v25 = vpop.f32.mrb[0].mxu0  ;;  %v1024_v26 = vpop.f32.mrb[0].mxu1  ;;  %634 = sbr.rel (%p924_p13) target bundleno = 329 (0x149), region = 93 }
 0x12e   : > { %v617_v29 = vadd.f32 %v1020_v25, %v448_v21  ;;  %v621_v30 = vadd.f32 %v1024_v26, %v452_v22  ;;  %v584_v31 = vpop.f32.mrb[1].mxu0  ;;  %v600_v32 = vpop.f32.mrb[1].mxu1 }
 0x12f   : > { %v615_v35 = vadd.f32 %v584_v31, %v446_v23  ;;  %v619_v36 = vadd.f32 %v600_v32, %v450_v24  ;;  %v1021_v37 = vpop.f32.mrb[2].mxu0  ;;  %v1025_v38 = vpop.f32.mrb[2].mxu1  ;;  %v986_v23 = vld [vmem:[%s1280_s21 + $0x18] sm:$0xff] (!%p924_p13)  }
 0x130   : > { %625 = vst [vmem:[#allocation2 + $0x10] sm:$0xff] %v617_v29  ;;  %629 = vst [vmem:[#allocation2 + $0x30] sm:$0xff] %v621_v30  ;;  %v618_v39 = vadd.f32 %v1021_v37, %v449_v27  ;;  %v622_v40 = vadd.f32 %v1025_v38, %v453_v28  ;;  %v587_v41 = vpop.f32.mrb[3].mxu0  ;;  %v603_v42 = vpop.f32.mrb[3].mxu1 }
 0x131   : > { %623 = vst [vmem:[#allocation2] sm:$0xff] %v615_v35  ;;  %627 = vst [vmem:[#allocation2 + $0x20] sm:$0xff] %v619_v36  ;;  %v616_v43 = vadd.f32 %v587_v41, %v447_v33  ;;  %v620_v44 = vadd.f32 %v603_v42, %v451_v34  ;;  %v962_v35 = vunpack.c.l.bf16 (!%p924_p13), %v986_v23  ;;  %v963_v41 = vunpack.c.h.bf16 (!%p924_p13), %v986_v23 }
 0x132   : > { %626 = vst [vmem:[#allocation2 + $0x18] sm:$0xff] %v618_v39  ;;  %630 = vst [vmem:[#allocation2 + $0x38] sm:$0xff] %v622_v40 }
 0x133   : > { %624 = vst [vmem:[#allocation2 + $0x8] sm:$0xff] %v616_v43  ;;  %628 = vst [vmem:[#allocation2 + $0x28] sm:$0xff] %v620_v44 }
 0x137   : > { %v637_v54 = vld [vmem:[#allocation2 + $0x10] sm:$0xff] }
 0x138   : > { %v635_v45 = vld [vmem:[#allocation2] sm:$0xff]  ;;  %v652_v59 = vmul.f32 %v925_v47, %v637_v54  ;;  %v641_v8 = vld [vmem:[#allocation2 + $0x30] sm:$0xff] }
 0x139   : > { %v650_v48 = vmul.f32 %v925_v47, %v635_v45  ;;  %v638_v55 = vld [vmem:[#allocation2 + $0x18] sm:$0xff]  ;;  %v639_v61 = vld [vmem:[#allocation2 + $0x20] sm:$0xff]  ;;  %v656_v21 = vmul.f32 %v925_v47, %v641_v8 }
 0x13a   : > { %v636_v46 = vld [vmem:[#allocation2 + $0x8] sm:$0xff]  ;;  %v653_v60 = vmul.f32 %v925_v47, %v638_v55  ;;  %v654_v2 = vmul.f32 %v925_v47, %v639_v61  ;;  %v667_v6 = vadd.f32 %v926_v50, %v652_v59  ;;  %v642_v9 = vld [vmem:[#allocation2 + $0x38] sm:$0xff] }
 0x13b   : > { %v651_v49 = vmul.f32 %v925_v47, %v636_v46  ;;  %v665_v57 = vadd.f32 %v926_v50, %v650_v48  ;;  %v640_v62 = vld [vmem:[#allocation2 + $0x28] sm:$0xff]  ;;  %v657_v22 = vmul.f32 %v925_v47, %v642_v9  ;;  %v671_v30 = vadd.f32 %v926_v50, %v656_v21 }
 0x13c   : > { %v655_v3 = vmul.f32 %v925_v47, %v640_v62  ;;  %v668_v7 = vadd.f32 %v926_v50, %v653_v60  ;;  %v669_v11 = vadd.f32 %v926_v50, %v654_v2  ;;  %v675_v17 = vmax.f32 %v667_v6, 0.0 }
 0x13d   : > { %v666_v58 = vadd.f32 %v926_v50, %v651_v49  ;;  %v673_v4 = vmax.f32 %v665_v57, 0.0  ;;  %v672_v31 = vadd.f32 %v926_v50, %v657_v22  ;;  %v679_v38 = vmax.f32 %v671_v30, 0.0 }
 0x13e   : > { %v670_v12 = vadd.f32 %v926_v50, %v655_v3  ;;  %v676_v18 = vmax.f32 %v668_v7, 0.0  ;;  %v677_v19 = vmax.f32 %v669_v11, 0.0  ;;  %v699_v26 = vadd.f32 %v954_v0, %v675_v17 }
 0x13f   : > { %v674_v5 = vmax.f32 %v666_v58, 0.0  ;;  %v697_v15 = vadd.f32 %v950_v52, %v673_v4  ;;  %v680_v39 = vmax.f32 %v672_v31, 0.0  ;;  %v703_v43 = vadd.f32 %v962_v35, %v679_v38 }
 0x140   : > { %v678_v20 = vmax.f32 %v670_v12, 0.0  ;;  %v700_v27 = vadd.f32 %v955_v1, %v676_v18  ;;  %v701_v28 = vadd.f32 %v958_v13, %v677_v19  ;;  %v714_v33 = vmul.f32 %v927_v10, %v699_v26 }
 0x141   : > { %v698_v16 = vadd.f32 %v951_v53, %v674_v5  ;;  %v712_v24 = vmul.f32 %v927_v10, %v697_v15  ;;  %v704_v44 = vadd.f32 %v963_v41, %v680_v39  ;;  %v718_v45 = vmul.f32 %v927_v10, %v703_v43 }
 0x142   : > { %v702_v29 = vadd.f32 %v959_v14, %v678_v20  ;;  %v715_v34 = vmul.f32 %v927_v10, %v700_v27  ;;  %v716_v36 = vmul.f32 %v927_v10, %v701_v28 }
 0x143   : > { %v713_v25 = vmul.f32 %v927_v10, %v698_v16  ;;  %v719_v46 = vmul.f32 %v927_v10, %v704_v44 }
 0x144   : > { %v717_v37 = vmul.f32 %v927_v10, %v702_v29  ;;  %v972_v40 = vpack.c.bf16 %v715_v34, %v714_v33 }
 0x145   : > { %v967_v32 = vpack.c.bf16 %v713_v25, %v712_v24  ;;  %v982_v47 = vpack.c.bf16 %v719_v46, %v718_v45 }
 0x146   : > { %v977_v42 = vpack.c.bf16 %v717_v37, %v716_v36  ;;  %987 = vst [vmem:[%s1289_s0 + $0x8] sm:$0xff] %v972_v40  }
 0x147   : > { %968 = vst [vmem:[%s1289_s0] sm:$0xff] %v967_v32   ;;  %989 = vst [vmem:[%s1289_s0 + $0x18] sm:$0xff] %v982_v47  }
 0x148   : > { %988 = vst [vmem:[%s1289_s0 + $0x10] sm:$0xff] %v977_v42  }
 0x149 PF: > { %s16_s27 = sadd.s32 1, %s1165_s27   ;;  %s1356_s21 = smov %s1145_s22 }
 0x14a   : > { %p13_p0 = scmp.ge.s32.totalorder %s16_s27, 6   ;;  %s1357_s22 = smov %s1254_s10 }
 0x14b   : > { %s1358_s23 = smov %s1157_s25  ;;  %s1359_s24 = smov %s1161_s26 }
 0x14c   : > { %s1360_s25 = smov %s1363_s28  ;;  %s1361_s26 = smov %s1367_s29 }
 0x14d   :  { %15 = sbr.rel (!%p13_p0) target bundleno = 6 (0x6), region = 137 }

// kernel: _lambda_.12
= control target key start
LH: loop header
LB: loop body
LE: loop exit
PB: predicated region body
PF: predicated region fallthrough
CT: control target
= control target key end

     0   :  { %s1394_s21 = smov 0   ;;  %s1396_s22 = smov 0   ;;  %s1615_s0 = inlined_call_operand.vmem [shape: bf16[2,256,128], index: 0, kind: input, shape index: {}]   ;;  %s1616_s1 = inlined_call_operand.vmem [shape: bf16[128,128], index: 1, kind: input, shape index: {}]   ;;  %s1617_s2 = inlined_call_operand.vmem [shape: f32[1,128], index: 2, kind: input, shape index: {}]   ;;  %s1618_s3 = inlined_call_operand.vmem [shape: f32[1,128], index: 3, kind: input, shape index: {}]   ;;  %s1619_s4 = inlined_call_operand.vmem [shape: bf16[2,256,128], index: 4, kind: input, shape index: {}]   ;;  %s1620_s5 = inlined_call_operand.vmem [shape: f32[2,1,128], index: 5, kind: input, shape index: {}]   ;;  %s1621_s6 = inlined_call_operand.vmem [shape: bf16[2,256,128], index: 6, kind: output, shape index: {}]  }
   0x1   :  { %s1398_s23 = smov 0   ;;  %s1400_s24 = smov 0  }
   0x2   :  { %s1402_s25 = smov 0  }
   0x3 LB: > { %s31_s26 = sadd.s32 1, %s1349_s23  ;;  %s35_s27 = sadd.s32 1, %s1353_s24  ;;  %s1357_s25 = sphi %s1402_s25, %s16_s25   ;;  %s1353_s24 = sphi %s1400_s24, %s1625_s24   ;;  %s1349_s23 = sphi %s1398_s23, %s1624_s23   ;;  %s1345_s22 = sphi %s1396_s22, %s1623_s22   ;;  %s1341_s21 = sphi %s1394_s21, %s1622_s21  }
   0x4   : > { %p33_p0 = scmp.ge.s32.totalorder %s31_s26, 2  ;;  %p1050_p1 = scmp.ge.s32.totalorder %s1357_s25, 1 }
   0x5   : > { %p281_p2 = scmp.lt.s32.totalorder %s1357_s25, 5 }
   0x6   : > { %s1627_s26 = smov (%p33_p0, %s31_s26), 0  ;;  %s1629_s27 = smov (!%p33_p0, %s35_s27), %s1353_s24 }
   0x7   : > { %p282_p3 = pnand %p1050_p1, %p281_p2  ;;  %p37_p4 = scmp.ge.s32.totalorder %s1629_s27, 2 }
   0x8   : > { %v1303_v0 = vld [vmem:[%s1616_s1] sm:$0xff] (!%p282_p3)   ;;  %s1051_s30 = sshll.u32 (!%p282_p3), %s1341_s21, 4  ;;  %v1304_v1 = vld [vmem:[%s1616_s1 + $0x8] sm:$0xff] (!%p282_p3)   ;;  %p340_p5 = scmp.lt.s32.totalorder (!%p282_p3), %s1345_s22, 1  ;;  %v1305_v2 = vld [vmem:[%s1616_s1 + $0x10] sm:$0xff] (!%p282_p3)  }
   0x9   : > { %s1631_s27 = smov (%p37_p4, %s1629_s27), 0  ;;  %285 = sbr.rel (%p282_p3) target bundleno = 283 (0x11b), region = 44 }
   0xa   : > { %1215 = vmatprep.subr.bf16.mxu0 (!%p282_p3), %v1303_v0  ;;  %1247 = vmatprep.subr.bf16.mxu1 (!%p282_p3), %v1303_v0  ;;  %p342_p6 = scmp.lt.s32.totalorder (!%p282_p3), %s1051_s30, 31  ;;  %v1306_v3 = vld [vmem:[%s1616_s1 + $0x18] sm:$0xff] (!%p282_p3)   ;;  %v1307_v6 = vld [vmem:[%s1616_s1 + $0x20] sm:$0xff] (!%p282_p3)   ;;  %v1308_v7 = vld [vmem:[%s1616_s1 + $0x28] sm:$0xff] (!%p282_p3)  }
   0xb   : > { %1216 = vmatpush3.bf16.msra.mxu0 (!%p282_p3), %v1303_v0  ;;  %1255 = vmatpush3.bf16.msra.mxu1 (!%p282_p3), %v1303_v0  ;;  %v1309_v8 = vld [vmem:[%s1616_s1 + $0x30] sm:$0xff] (!%p282_p3)   ;;  %v1310_v9 = vld [vmem:[%s1616_s1 + $0x38] sm:$0xff] (!%p282_p3)   ;;  %v1493_v24 = vld [vmem:[%s1617_s2] ss:$0 sm:$0xff] (!%p282_p3) }
   0xc   : > { %1217 = vmatprep.subr.bf16.mxu0 (!%p282_p3), %v1304_v1  ;;  %1248 = vmatprep.subr.bf16.mxu1 (!%p282_p3), %v1304_v1  ;;  %v1506_v34 = vld [vmem:[%s1618_s3] ss:$0 sm:$0xff] (!%p282_p3) }
   0xf   : > { %1218 = vmatpush3.bf16.msra.mxu0 (!%p282_p3), %v1304_v1  ;;  %1256 = vmatpush3.bf16.msra.mxu1 (!%p282_p3), %v1304_v1 }
  0x10   : > { %s1633_s22 = smov (!%p340_p5, %s1345_s22), 1  ;;  %s1635_s30 = smov (!%p342_p6, %s1051_s30), 31  ;;  %1219 = vmatprep.subr.bf16.mxu0 %v1305_v2  ;;  %1249 = vmatprep.subr.bf16.mxu1 %v1305_v2 }
  0x11   : > { %s1052_s11 = sshll.u32 %s1633_s22, 5  ;;  %s370_s19 = scalar_lea.vmem %s1620_s5, %s1633_s22 }
  0x12   : > { %s348_s12 = sadd.s32 %s1052_s11, %s1635_s30 }
  0x13   : > { %s1439_s13 = sshll.u32 %s348_s12, 2  ;;  %1220 = vmatpush3.bf16.msra.mxu0 %v1305_v2  ;;  %1257 = vmatpush3.bf16.msra.mxu1 %v1305_v2  ;;  %v1534_v2 = vld [vmem:[%s370_s19] ss:$0 sm:$0xff] }
  0x14   : > { %s1448_s18 = scalar_lea.vmem %s1615_s0, %s1439_s13  ;;  %1221 = vmatprep.subr.bf16.mxu0 %v1306_v3  ;;  %1250 = vmatprep.subr.bf16.mxu1 %v1306_v3  ;;  %s366_s11 = scalar_lea.vmem %s1619_s4, %s1439_s13 }
  0x15   : > { %v1311_v4 = vld [vmem:[%s1448_s18] sm:$0xff]   ;;  %v1313_v10 = vld [vmem:[%s1448_s18 + $0x8] sm:$0xff]   ;;  %v1315_v12 = vld [vmem:[%s1448_s18 + $0x10] sm:$0xff]   ;;  %s1550_s21 = scalar_lea.vmem %s1621_s6, %s1439_s13 }
  0x16   : > { %v1312_v5 = vld [vmem:[%s1448_s18 + $0x20] sm:$0xff]   ;;  %1231 = vmatprep.mubr.bf16.mxu0 %v1311_v4  ;;  %v1314_v11 = vld [vmem:[%s1448_s18 + $0x28] sm:$0xff]   ;;  %v1316_v13 = vld [vmem:[%s1448_s18 + $0x30] sm:$0xff]  }
  0x17   : > { %1239 = vmatprep.mubr.bf16.mxu1 %v1312_v5  ;;  %1222 = vmatpush3.bf16.msra.mxu0 %v1306_v3  ;;  %v1317_v14 = vld [vmem:[%s1448_s18 + $0x18] sm:$0xff]   ;;  %v1474_v16 = vld [vmem:[%s366_s11 + $0x8] sm:$0xff]   ;;  %v1478_v18 = vld [vmem:[%s366_s11] sm:$0xff]  }
  0x18   : > { %1258 = vmatpush3.bf16.msra.mxu1 %v1306_v3  ;;  %1223 = vmatprep.subr.bf16.mxu0 %v1307_v6  ;;  %v1318_v15 = vld [vmem:[%s1448_s18 + $0x38] sm:$0xff]   ;;  %v1476_v17 = vld [vmem:[%s366_s11 + $0x28] sm:$0xff]   ;;  %v1480_v19 = vld [vmem:[%s366_s11 + $0x20] sm:$0xff]   ;;  %v1119_v25 = vunpack.c.l.bf16 %v1474_v16  ;;  %v1115_v27 = vunpack.c.l.bf16 %v1478_v18  ;;  %v1120_v29 = vunpack.c.h.bf16 %v1474_v16  ;;  %v1116_v31 = vunpack.c.h.bf16 %v1478_v18 }
  0x19   : > { %1251 = vmatprep.subr.bf16.mxu1 %v1307_v6  ;;  %v1482_v20 = vld [vmem:[%s366_s11 + $0x18] sm:$0xff]   ;;  %v1486_v22 = vld [vmem:[%s366_s11 + $0x10] sm:$0xff]   ;;  %v1135_v26 = vunpack.c.l.bf16 %v1476_v17  ;;  %v1131_v28 = vunpack.c.l.bf16 %v1480_v19  ;;  %v1136_v30 = vunpack.c.h.bf16 %v1476_v17  ;;  %v1132_v32 = vunpack.c.h.bf16 %v1480_v19 }
  0x1a   : > { %v1484_v21 = vld [vmem:[%s366_s11 + $0x38] sm:$0xff]   ;;  %v1488_v23 = vld [vmem:[%s366_s11 + $0x30] sm:$0xff]   ;;  %v1127_v36 = vunpack.c.l.bf16 %v1482_v20  ;;  %v1123_v38 = vunpack.c.l.bf16 %v1486_v22  ;;  %v1128_v44 = vunpack.c.h.bf16 %v1482_v20  ;;  %v1124_v50 = vunpack.c.h.bf16 %v1486_v22 }
  0x1b   : > { %1224 = vmatpush3.bf16.msra.mxu0 %v1307_v6  ;;  %v1143_v37 = vunpack.c.l.bf16 %v1484_v21  ;;  %v1139_v39 = vunpack.c.l.bf16 %v1488_v23  ;;  %v1144_v45 = vunpack.c.h.bf16 %v1484_v21  ;;  %v1140_v51 = vunpack.c.h.bf16 %v1488_v23 }
  0x1c   : > { %1259 = vmatpush3.bf16.msra.mxu1 %v1307_v6  ;;  %1225 = vmatprep.subr.bf16.mxu0 %v1308_v7 }
  0x1d   : > { %1252 = vmatprep.subr.bf16.mxu1 %v1308_v7 }
  0x1f   : > { %1226 = vmatpush3.bf16.msra.mxu0 %v1308_v7 }
  0x20   : > { %1260 = vmatpush3.bf16.msra.mxu1 %v1308_v7  ;;  %1227 = vmatprep.subr.bf16.mxu0 %v1309_v8 }
  0x21   : > { %1253 = vmatprep.subr.bf16.mxu1 %v1309_v8 }
  0x23   : > { %1228 = vmatpush3.bf16.msra.mxu0 %v1309_v8 }
  0x24   : > { %1261 = vmatpush3.bf16.msra.mxu1 %v1309_v8  ;;  %1229 = vmatprep.subr.bf16.mxu0 %v1310_v9 }
  0x25   : > { %1254 = vmatprep.subr.bf16.mxu1 %v1310_v9 }
  0x27   : > { %1230 = vmatpush3.bf16.msra.mxu0 %v1310_v9 }
  0x28   : > { %1262 = vmatpush3.bf16.msra.mxu1 %v1310_v9 }
  0x2a   : > { %1232 = vmatmul.mubr.bf16.vlgmr.msra.gmra.mrb[0].mxu0 %v1313_v10 }
  0x2b   : > { %1240 = vmatmul.mubr.bf16.vlgmr.msra.gmra.mrb[0].mxu1 %v1314_v11  ;;  %1235 = vmatprep.mubr.bf16.mxu0 %v1315_v12 }
  0x2c   : > { %1243 = vmatprep.mubr.bf16.mxu1 %v1316_v13 }
  0x32   : > { %1236 = vmatmul.mubr.bf16.gmra.mrb[4].mxu0 %v1317_v14 }
  0x33   : > { %1244 = vmatmul.mubr.bf16.gmra.mrb[4].mxu1 %v1318_v15 }
  0xfd   : > { %v1233_v33 = vpop.f32.mrb[0].mxu0 }
  0xfe   : > { %v1241_v35 = vpop.f32.mrb[0].mxu1  ;;  %v703_v40 = vmul.f32 %v1233_v33, %v1493_v24  ;;  %v580_v42 = vpop.f32.mrb[1].mxu0 }
  0xff   : > { %v711_v41 = vmul.f32 %v1241_v35, %v1493_v24  ;;  %v612_v43 = vpop.f32.mrb[1].mxu1  ;;  %v701_v46 = vmul.f32 %v1493_v24, %v580_v42  ;;  %v1234_v48 = vpop.f32.mrb[2].mxu0 }
 0x100   : > { %v709_v47 = vmul.f32 %v1493_v24, %v612_v43  ;;  %v1242_v49 = vpop.f32.mrb[2].mxu1  ;;  %v726_v52 = vadd.f32 %v1506_v34, %v703_v40  ;;  %v704_v54 = vmul.f32 %v1234_v48, %v1493_v24  ;;  %v583_v56 = vpop.f32.mrb[3].mxu0 }
 0x101   : > { %v734_v53 = vadd.f32 %v1506_v34, %v711_v41  ;;  %v712_v55 = vmul.f32 %v1242_v49, %v1493_v24  ;;  %v615_v57 = vpop.f32.mrb[3].mxu1  ;;  %v724_v58 = vadd.f32 %v1506_v34, %v701_v46  ;;  %v702_v60 = vmul.f32 %v1493_v24, %v583_v56 }
 0x102   : > { %v732_v59 = vadd.f32 %v1506_v34, %v709_v47  ;;  %v710_v61 = vmul.f32 %v1493_v24, %v615_v57  ;;  %v742_v62 = vmax.f32 %v726_v52, 0.0  ;;  %v727_v0 = vadd.f32 %v1506_v34, %v704_v54 }
 0x103   : > { %v750_v63 = vmax.f32 %v734_v53, 0.0  ;;  %v735_v1 = vadd.f32 %v1506_v34, %v712_v55  ;;  %v740_v3 = vmax.f32 %v724_v58, 0.0  ;;  %v725_v5 = vadd.f32 %v1506_v34, %v702_v60 }
 0x104   : > { %v748_v4 = vmax.f32 %v732_v59, 0.0  ;;  %v733_v6 = vadd.f32 %v1506_v34, %v710_v61  ;;  %v790_v7 = vadd.f32 %v1119_v25, %v742_v62  ;;  %v743_v9 = vmax.f32 %v727_v0, 0.0 }
 0x105   : > { %v798_v8 = vadd.f32 %v1135_v26, %v750_v63  ;;  %v751_v10 = vmax.f32 %v735_v1, 0.0  ;;  %v788_v11 = vadd.f32 %v1115_v27, %v740_v3  ;;  %v741_v13 = vmax.f32 %v725_v5, 0.0  ;;  %v1237_v15 = vpop.f32.mrb[4].mxu0 }
 0x106   : > { %v796_v12 = vadd.f32 %v1131_v28, %v748_v4  ;;  %v749_v14 = vmax.f32 %v733_v6, 0.0  ;;  %v1245_v16 = vpop.f32.mrb[4].mxu1  ;;  %v813_v17 = vmul.f32 %v1534_v2, %v790_v7  ;;  %v791_v19 = vadd.f32 %v1120_v29, %v743_v9  ;;  %v596_v35 = vpop.f32.mrb[5].mxu0 }
 0x107   : > { %v821_v18 = vmul.f32 %v1534_v2, %v798_v8  ;;  %v799_v33 = vadd.f32 %v1136_v30, %v751_v10  ;;  %v628_v40 = vpop.f32.mrb[5].mxu1  ;;  %v811_v25 = vmul.f32 %v1534_v2, %v788_v11  ;;  %v789_v41 = vadd.f32 %v1116_v31, %v741_v13  ;;  %v1238_v28 = vpop.f32.mrb[6].mxu0 }
 0x108   : > { %v819_v26 = vmul.f32 %v1534_v2, %v796_v12  ;;  %v797_v27 = vadd.f32 %v1132_v32, %v749_v14  ;;  %v1246_v42 = vpop.f32.mrb[6].mxu1  ;;  %v814_v43 = vmul.f32 %v1534_v2, %v791_v19  ;;  %v707_v47 = vmul.f32 %v1237_v15, %v1493_v24  ;;  %v599_v48 = vpop.f32.mrb[7].mxu0 }
 0x109   : > { %v822_v46 = vmul.f32 %v1534_v2, %v799_v33  ;;  %v715_v29 = vmul.f32 %v1245_v16, %v1493_v24  ;;  %v631_v30 = vpop.f32.mrb[7].mxu1  ;;  %v812_v31 = vmul.f32 %v1534_v2, %v789_v41  ;;  %v705_v49 = vmul.f32 %v1493_v24, %v596_v35 }
 0x10a   : > { %v820_v32 = vmul.f32 %v1534_v2, %v797_v27  ;;  %v713_v52 = vmul.f32 %v1493_v24, %v628_v40  ;;  %v1153_v53 = vpack.c.bf16 %v814_v43, %v813_v17  ;;  %v730_v55 = vadd.f32 %v1506_v34, %v707_v47 }
 0x10b   : > { %v1173_v54 = vpack.c.bf16 %v822_v46, %v821_v18  ;;  %v738_v56 = vadd.f32 %v1506_v34, %v715_v29  ;;  %v1148_v57 = vpack.c.bf16 %v812_v31, %v811_v25  ;;  %v728_v59 = vadd.f32 %v1506_v34, %v705_v49 }
 0x10c   : > { %v1168_v58 = vpack.c.bf16 %v820_v32, %v819_v26  ;;  %v736_v60 = vadd.f32 %v1506_v34, %v713_v52  ;;  %1192 = vst [vmem:[%s1550_s21 + $0x8] sm:$0xff] %v1153_v53   ;;  %v746_v61 = vmax.f32 %v730_v55, 0.0  ;;  %v708_v63 = vmul.f32 %v1238_v28, %v1493_v24 }
 0x10d   : > { %1196 = vst [vmem:[%s1550_s21 + $0x28] sm:$0xff] %v1173_v54   ;;  %v754_v62 = vmax.f32 %v738_v56, 0.0  ;;  %v716_v0 = vmul.f32 %v1246_v42, %v1493_v24  ;;  %1149 = vst [vmem:[%s1550_s21] sm:$0xff] %v1148_v57   ;;  %v744_v1 = vmax.f32 %v728_v59, 0.0  ;;  %v706_v4 = vmul.f32 %v1493_v24, %v599_v48 }
 0x10e   : > { %1195 = vst [vmem:[%s1550_s21 + $0x20] sm:$0xff] %v1168_v58   ;;  %v752_v3 = vmax.f32 %v736_v60, 0.0  ;;  %v714_v5 = vmul.f32 %v1493_v24, %v631_v30  ;;  %v794_v6 = vadd.f32 %v1127_v36, %v746_v61  ;;  %v731_v8 = vadd.f32 %v1506_v34, %v708_v63 }
 0x10f   : > { %v802_v7 = vadd.f32 %v1143_v37, %v754_v62  ;;  %v739_v9 = vadd.f32 %v1506_v34, %v716_v0  ;;  %v792_v10 = vadd.f32 %v1123_v38, %v744_v1  ;;  %v729_v12 = vadd.f32 %v1506_v34, %v706_v4 }
 0x110   : > { %v800_v11 = vadd.f32 %v1139_v39, %v752_v3  ;;  %v737_v24 = vadd.f32 %v1506_v34, %v714_v5  ;;  %v817_v13 = vmul.f32 %v1534_v2, %v794_v6  ;;  %v747_v14 = vmax.f32 %v731_v8, 0.0 }
 0x111   : > { %v825_v36 = vmul.f32 %v1534_v2, %v802_v7  ;;  %v755_v37 = vmax.f32 %v739_v9, 0.0  ;;  %v815_v15 = vmul.f32 %v1534_v2, %v792_v10  ;;  %v745_v38 = vmax.f32 %v729_v12, 0.0 }
 0x112   : > { %v823_v16 = vmul.f32 %v1534_v2, %v800_v11  ;;  %v753_v17 = vmax.f32 %v737_v24, 0.0  ;;  %v795_v39 = vadd.f32 %v1128_v44, %v747_v14 }
 0x113   : > { %v803_v34 = vadd.f32 %v1144_v45, %v755_v37  ;;  %v793_v18 = vadd.f32 %v1124_v50, %v745_v38 }
 0x114   : > { %v801_v19 = vadd.f32 %v1140_v51, %v753_v17  ;;  %v818_v33 = vmul.f32 %v1534_v2, %v795_v39 }
 0x115   : > { %v826_v35 = vmul.f32 %v1534_v2, %v803_v34  ;;  %v816_v40 = vmul.f32 %v1534_v2, %v793_v18 }
 0x116   : > { %v824_v25 = vmul.f32 %v1534_v2, %v801_v19  ;;  %v1163_v20 = vpack.c.bf16 %v818_v33, %v817_v13 }
 0x117   : > { %v1183_v26 = vpack.c.bf16 %v826_v35, %v825_v36  ;;  %v1158_v44 = vpack.c.bf16 %v816_v40, %v815_v15 }
 0x118   : > { %v1178_v41 = vpack.c.bf16 %v824_v25, %v823_v16  ;;  %1194 = vst [vmem:[%s1550_s21 + $0x18] sm:$0xff] %v1163_v20  }
 0x119   : > { %1198 = vst [vmem:[%s1550_s21 + $0x38] sm:$0xff] %v1183_v26   ;;  %1193 = vst [vmem:[%s1550_s21 + $0x10] sm:$0xff] %v1158_v44  }
 0x11a   : > { %1197 = vst [vmem:[%s1550_s21 + $0x30] sm:$0xff] %v1178_v41  }
 0x11b PF: > { %s16_s25 = sadd.s32 1, %s1357_s25   ;;  %s1622_s21 = smov %s1349_s23 }
 0x11c   : > { %p13_p7 = scmp.ge.s32.totalorder %s16_s25, 6   ;;  %s1623_s22 = smov %s1353_s24 }
 0x11d   : > { %s1624_s23 = smov %s1627_s26  ;;  %s1625_s24 = smov %s1631_s27 }
 0x11e   :  { %15 = sbr.rel (!%p13_p7) target bundleno = 3 (0x3), region = 91 }

// kernel: _lambda_.16
= control target key start
LH: loop header
LB: loop body
LE: loop exit
PB: predicated region body
PF: predicated region fallthrough
CT: control target
= control target key end

     0   :  { %s330_s6 = smov 0   ;;  %s375_s0 = inlined_call_operand.vmem [shape: bf16[2,8,2,8,256], index: 0, kind: input, shape index: {}]   ;;  %s376_s1 = inlined_call_operand.vmem [shape: bf16[2,8,8,128], index: 1, kind: output, shape index: {}]  }
   0x1 LB: > { %s268_s7 = sadd.s32 4294967295, %s318_s6   ;;  %p272_p0 = scmp.ge.s32.totalorder %s318_s6, 1  ;;  %s318_s6 = sphi %s330_s6, %s11_s6  }
   0x2   : > { %p87_p1 = scmp.lt.s32.totalorder %s318_s6, 3 }
   0x4   : > { %p88_p2 = pnand %p272_p0, %p87_p1 }
   0x5   : > { %p107_p3 = scmp.lt.s32.totalorder (!%p88_p2), %s268_s7, 1 }
   0x6   : > { %91 = sbr.rel (%p88_p2) target bundleno = 41 (0x29), region = 24 }
   0xd   : > { %s378_s7 = smov (!%p107_p3, %s268_s7), 1 }
   0xe   : > { %s279_s8 = sshll.u32 %s378_s7, 7  ;;  %s280_s12 = sshll.u32 %s378_s7, 5 }
   0xf   : > { %s344_s11 = scalar_lea.vmem %s375_s0, %s279_s8  ;;  %s363_s15 = scalar_lea.vmem %s376_s1, %s280_s12 }
  0x10   : > { %v117_v0 = vld [vmem:[%s344_s11] sm:$0xff]  ;;  %v118_v1 = vld [vmem:[%s344_s11 + $0x8] sm:$0xff]  ;;  %v119_v2 = vld [vmem:[%s344_s11 + $0x10] sm:$0xff] }
  0x11   : > { %v120_v3 = vld [vmem:[%s344_s11 + $0x18] sm:$0xff]  ;;  %v133_v4 = vunpack.c.l.bf16 %v117_v0  ;;  %v134_v5 = vunpack.c.h.bf16 %v117_v0  ;;  %v135_v6 = vunpack.c.l.bf16 %v119_v2  ;;  %v136_v7 = vunpack.c.h.bf16 %v119_v2  ;;  %v121_v8 = vld [vmem:[%s344_s11 + $0x20] sm:$0xff]  ;;  %v122_v13 = vld [vmem:[%s344_s11 + $0x28] sm:$0xff] }
  0x12   : > { %v149_v9 = vunpack.c.l.bf16 %v118_v1  ;;  %v150_v10 = vunpack.c.h.bf16 %v118_v1  ;;  %v151_v11 = vunpack.c.l.bf16 %v120_v3  ;;  %v152_v12 = vunpack.c.h.bf16 %v120_v3  ;;  %v123_v14 = vld [vmem:[%s344_s11 + $0x30] sm:$0xff]  ;;  %v124_v15 = vld [vmem:[%s344_s11 + $0x38] sm:$0xff]  ;;  %v125_v20 = vld [vmem:[%s344_s11 + $0x40] sm:$0xff] }
  0x13   : > { %v137_v16 = vunpack.c.l.bf16 %v121_v8  ;;  %v138_v17 = vunpack.c.h.bf16 %v121_v8  ;;  %v139_v18 = vunpack.c.l.bf16 %v123_v14  ;;  %v140_v19 = vunpack.c.h.bf16 %v123_v14  ;;  %v127_v29 = vld [vmem:[%s344_s11 + $0x50] sm:$0xff]  ;;  %v126_v32 = vld [vmem:[%s344_s11 + $0x48] sm:$0xff]  ;;  %v128_v39 = vld [vmem:[%s344_s11 + $0x58] sm:$0xff] }
  0x14   : > { %v165_v21 = vadd.f32 %v149_v9, %v133_v4  ;;  %v166_v22 = vadd.f32 %v150_v10, %v134_v5  ;;  %v167_v23 = vadd.f32 %v151_v11, %v135_v6  ;;  %v168_v24 = vadd.f32 %v152_v12, %v136_v7  ;;  %v129_v40 = vld [vmem:[%s344_s11 + $0x60] sm:$0xff]  ;;  %v131_v49 = vld [vmem:[%s344_s11 + $0x70] sm:$0xff]  ;;  %v130_v53 = vld [vmem:[%s344_s11 + $0x68] sm:$0xff] }
  0x15   : > { %v153_v25 = vunpack.c.l.bf16 %v122_v13  ;;  %v154_v26 = vunpack.c.h.bf16 %v122_v13  ;;  %v155_v27 = vunpack.c.l.bf16 %v124_v15  ;;  %v156_v28 = vunpack.c.h.bf16 %v124_v15  ;;  %v132_v59 = vld [vmem:[%s344_s11 + $0x78] sm:$0xff] }
  0x16   : > { %v181_v30 = vadd.f32 %v166_v22, %v165_v21  ;;  %v182_v31 = vadd.f32 %v168_v24, %v167_v23  ;;  %v141_v33 = vunpack.c.l.bf16 %v125_v20  ;;  %v142_v34 = vunpack.c.h.bf16 %v125_v20 }
  0x17   : > { %v169_v35 = vadd.f32 %v153_v25, %v137_v16  ;;  %v170_v36 = vadd.f32 %v154_v26, %v138_v17  ;;  %v171_v37 = vadd.f32 %v155_v27, %v139_v18  ;;  %v172_v38 = vadd.f32 %v156_v28, %v140_v19 }
  0x18   : > { %v189_v41 = vmul.f32 0.25, %v181_v30  ;;  %v190_v42 = vmul.f32 0.25, %v182_v31  ;;  %v143_v43 = vunpack.c.l.bf16 %v127_v29  ;;  %v144_v44 = vunpack.c.h.bf16 %v127_v29 }
  0x19   : > { %v183_v45 = vadd.f32 %v170_v36, %v169_v35  ;;  %v184_v46 = vadd.f32 %v172_v38, %v171_v37  ;;  %v157_v47 = vunpack.c.l.bf16 %v126_v32  ;;  %v158_v48 = vunpack.c.h.bf16 %v126_v32 }
  0x1a   : > { %v284_v50 = vpack.c.bf16 %v190_v42, %v189_v41  ;;  %v159_v51 = vunpack.c.l.bf16 %v128_v39  ;;  %v160_v52 = vunpack.c.h.bf16 %v128_v39  ;;  %v145_v54 = vunpack.c.l.bf16 %v129_v40 }
  0x1b   : > { %v191_v55 = vmul.f32 0.25, %v183_v45  ;;  %v192_v56 = vmul.f32 0.25, %v184_v46  ;;  %v173_v57 = vadd.f32 %v157_v47, %v141_v33  ;;  %v174_v58 = vadd.f32 %v158_v48, %v142_v34 }
  0x1c   : > { %285 = vst [vmem:[%s363_s15] sm:$0xff] %v284_v50   ;;  %v175_v60 = vadd.f32 %v159_v51, %v143_v43  ;;  %v176_v61 = vadd.f32 %v160_v52, %v144_v44  ;;  %v146_v62 = vunpack.c.h.bf16 %v129_v40  ;;  %v147_v63 = vunpack.c.l.bf16 %v131_v49 }
  0x1d   : > { %v289_v0 = vpack.c.bf16 %v192_v56, %v191_v55  ;;  %v185_v1 = vadd.f32 %v174_v58, %v173_v57  ;;  %v148_v2 = vunpack.c.h.bf16 %v131_v49  ;;  %v161_v3 = vunpack.c.l.bf16 %v130_v53 }
  0x1e   : > { %v186_v4 = vadd.f32 %v176_v61, %v175_v60  ;;  %v162_v5 = vunpack.c.h.bf16 %v130_v53  ;;  %v163_v6 = vunpack.c.l.bf16 %v132_v59  ;;  %v164_v7 = vunpack.c.h.bf16 %v132_v59 }
  0x1f   : > { %301 = vst [vmem:[%s363_s15 + $0x8] sm:$0xff] %v289_v0   ;;  %v193_v8 = vmul.f32 0.25, %v185_v1  ;;  %v177_v9 = vadd.f32 %v161_v3, %v145_v54 }
  0x20   : > { %v194_v10 = vmul.f32 0.25, %v186_v4  ;;  %v178_v11 = vadd.f32 %v162_v5, %v146_v62  ;;  %v179_v12 = vadd.f32 %v163_v6, %v147_v63  ;;  %v180_v13 = vadd.f32 %v164_v7, %v148_v2 }
  0x22   : > { %v294_v14 = vpack.c.bf16 %v194_v10, %v193_v8  ;;  %v187_v15 = vadd.f32 %v178_v11, %v177_v9  ;;  %v188_v16 = vadd.f32 %v180_v13, %v179_v12 }
  0x24   : > { %302 = vst [vmem:[%s363_s15 + $0x10] sm:$0xff] %v294_v14   ;;  %v195_v17 = vmul.f32 0.25, %v187_v15  ;;  %v196_v18 = vmul.f32 0.25, %v188_v16 }
  0x26   : > { %v299_v19 = vpack.c.bf16 %v196_v18, %v195_v17 }
  0x28   : > { %303 = vst [vmem:[%s363_s15 + $0x18] sm:$0xff] %v299_v19  }
  0x29 PF: > { %s11_s6 = sadd.s32 1, %s318_s6  }
  0x2a   : > { %p8_p4 = scmp.ge.s32.totalorder %s11_s6, 4  }
  0x2c   :  { %10 = sbr.rel (!%p8_p4) target bundleno = 1 (0x1), region = 54 }

// kernel: _lambda_.13
= control target key start
LH: loop header
LB: loop body
LE: loop exit
PB: predicated region body
PF: predicated region fallthrough
CT: control target
= control target key end

     0   :  { %s2180_s15 = smov 0   ;;  %s2505_s0 = inlined_call_operand.vmem [shape: bf16[2,42,128], index: 0, kind: input, shape index: {}]   ;;  %s2506_s1 = inlined_call_operand.vmem [shape: bf16[9,128,128], index: 1, kind: input, shape index: {}]   ;;  %s2507_s2 = inlined_call_operand.vmem [shape: f32[1,128], index: 2, kind: input, shape index: {}]   ;;  %s2508_s3 = inlined_call_operand.vmem [shape: f32[1,128], index: 3, kind: input, shape index: {}]   ;;  %s2509_s4 = inlined_call_operand.vmem [shape: bf16[2,4,4,128], index: 4, kind: output, shape index: {}]  }
   0x1 LB: > { %s1518_s16 = sadd.s32 4294967295, %s2152_s15   ;;  %p1522_p0 = scmp.ge.s32.totalorder %s2152_s15, 1  ;;  %s2152_s15 = sphi %s2180_s15, %s14_s15  }
   0x2   : > { %p162_p1 = scmp.lt.s32.totalorder %s2152_s15, 3 }
   0x4   : > { %p163_p2 = pnand %p1522_p0, %p162_p1 }
   0x5   : > { %v2061_v0 = vld [vmem:[%s2506_s1 + $0x40] sm:$0xff] (!%p163_p2)   ;;  %p188_p3 = scmp.lt.s32.totalorder (!%p163_p2), %s1518_s16, 1  ;;  %v2063_v2 = vld [vmem:[%s2506_s1 + $0x48] sm:$0xff] (!%p163_p2)   ;;  %v2065_v4 = vld [vmem:[%s2506_s1 + $0x50] sm:$0xff] (!%p163_p2)   ;;  %vm246_vm0 = vsmask.f32 (!%p163_p2), 7424 }
   0x6   : > { %166 = sbr.rel (%p163_p2) target bundleno = 400 (0x190), region = 36  ;;  %v2062_v1 = vld [vmem:[%s2506_s1 + $0x100] sm:$0xff] (!%p163_p2)   ;;  %1840 = vmatprep.subr.bf16.mxu1 (!%p163_p2), %v2061_v0  ;;  %v2064_v3 = vld [vmem:[%s2506_s1 + $0x108] sm:$0xff] (!%p163_p2)   ;;  %v2066_v5 = vld [vmem:[%s2506_s1 + $0x110] sm:$0xff] (!%p163_p2)   ;;  %vm736_vm1 = vsmask.f32 (!%p163_p2), 4352 }
   0x7   : > { %1920 = vmatprep.subr.bf16.mxu0 (!%p163_p2), %v2062_v1  ;;  %1841 = vmatpush3.bf16.msra.mxu1 (!%p163_p2), %v2061_v0  ;;  %v2067_v6 = vld [vmem:[%s2506_s1 + $0x58] sm:$0xff] (!%p163_p2)   ;;  %v2069_v8 = vld [vmem:[%s2506_s1 + $0x60] sm:$0xff] (!%p163_p2)   ;;  %v2071_v10 = vld [vmem:[%s2506_s1 + $0x68] sm:$0xff] (!%p163_p2)   ;;  %vm480_vm2 = vcmask (!%p163_p2), 1046528   ;;  %vm1006_vm3 = vcmask (!%p163_p2), 1045504   ;;  %vm610_vm4 = vcmask (!%p163_p2), 1044480  }
   0x8   : > { %1921 = vmatpush3.bf16.msra.mxu0 (!%p163_p2), %v2062_v1  ;;  %1842 = vmatprep.subr.bf16.mxu1 (!%p163_p2), %v2063_v2  ;;  %v2068_v7 = vld [vmem:[%s2506_s1 + $0x118] sm:$0xff] (!%p163_p2)   ;;  %v2070_v9 = vld [vmem:[%s2506_s1 + $0x120] sm:$0xff] (!%p163_p2)   ;;  %v2072_v11 = vld [vmem:[%s2506_s1 + $0x128] sm:$0xff] (!%p163_p2)   ;;  %vm1132_vm5 = vsmask.f32 (!%p163_p2), 5376  ;;  %vm1419_vm6 = vcmask (!%p163_p2), 1040384  }
   0x9   : > { %1922 = vmatprep.subr.bf16.mxu0 (!%p163_p2), %v2064_v3  ;;  %v2073_v23 = vld [vmem:[%s2506_s1 + $0x70] sm:$0xff] (!%p163_p2)   ;;  %v2075_v30 = vld [vmem:[%s2506_s1 + $0x78] sm:$0xff] (!%p163_p2)   ;;  %v2079_v44 = vld [vmem:[%s2506_s1] sm:$0xff] (!%p163_p2)   ;;  %vm1420_vm7 = vcmask (!%p163_p2), 1042434   ;;  %vm1422_vm9 = vcmask (!%p163_p2), 1044484   ;;  %vm1424_vm11 = vcmask (!%p163_p2), 1046534  }
   0xa   : > { %v2074_v26 = vld [vmem:[%s2506_s1 + $0x130] sm:$0xff] (!%p163_p2)   ;;  %v2076_v34 = vld [vmem:[%s2506_s1 + $0x138] sm:$0xff] (!%p163_p2)   ;;  %v2082_v46 = vld [vmem:[%s2506_s1 + $0x140] sm:$0xff] (!%p163_p2)  }
   0xb   : > { %1843 = vmatpush3.bf16.msra.mxu1 (!%p163_p2), %v2063_v2  ;;  %v2083_v48 = vld [vmem:[%s2506_s1 + $0x8] sm:$0xff] (!%p163_p2)   ;;  %v2085_v51 = vld [vmem:[%s2506_s1 + $0x10] sm:$0xff] (!%p163_p2)   ;;  %v2087_v53 = vld [vmem:[%s2506_s1 + $0x18] sm:$0xff] (!%p163_p2)  }
   0xc   : > { %1923 = vmatpush3.bf16.msra.mxu0 (!%p163_p2), %v2064_v3  ;;  %1844 = vmatprep.subr.bf16.mxu1 (!%p163_p2), %v2065_v4  ;;  %v2084_v49 = vld [vmem:[%s2506_s1 + $0x148] sm:$0xff] (!%p163_p2)   ;;  %v2086_v52 = vld [vmem:[%s2506_s1 + $0x150] sm:$0xff] (!%p163_p2)   ;;  %v2088_v54 = vld [vmem:[%s2506_s1 + $0x158] sm:$0xff] (!%p163_p2)  }
   0xd   : > { %s2511_s16 = smov (!%p188_p3, %s1518_s16), 1  ;;  %1924 = vmatprep.subr.bf16.mxu0 %v2066_v5  ;;  %v2089_v55 = vld [vmem:[%s2506_s1 + $0x20] sm:$0xff]   ;;  %v2091_v57 = vld [vmem:[%s2506_s1 + $0x28] sm:$0xff]   ;;  %v2093_v59 = vld [vmem:[%s2506_s1 + $0x30] sm:$0xff]  }
   0xe   : > { %s2051_s7 = smul.u32 24, %s2511_s16  ;;  %v2090_v56 = vld [vmem:[%s2506_s1 + $0x160] sm:$0xff]   ;;  %v2092_v58 = vld [vmem:[%s2506_s1 + $0x168] sm:$0xff]   ;;  %v2094_v60 = vld [vmem:[%s2506_s1 + $0x170] sm:$0xff]   ;;  %s1749_s29 = sshll.u32 %s2511_s16, 3 }
   0xf   : > { %1845 = vmatpush3.bf16.msra.mxu1 %v2065_v4  ;;  %v2095_v61 = vld [vmem:[%s2506_s1 + $0x38] sm:$0xff]   ;;  %vm1421_vm8 = vmor %vm1419_vm6, %vm1420_vm7  ;;  %s197_s6 = scalar_lea.vmem %s2509_s4, %s1749_s29 }
  0x10   : > { %1925 = vmatpush3.bf16.msra.mxu0 %v2066_v5  ;;  %1846 = vmatprep.subr.bf16.mxu1 %v2067_v6  ;;  %s2224_s14 = scalar_lea.vmem %s2505_s0, %s2051_s7  ;;  %v2096_v3 = vld [vmem:[%s2506_s1 + $0x178] sm:$0xff]   ;;  %vm1423_vm10 = vmor %vm1421_vm8, %vm1422_vm9 }
  0x11   : > { %1926 = vmatprep.subr.bf16.mxu0 %v2068_v7  ;;  %v199_v12 = vld [vmem:[%s2224_s14] sm:$0xf]  ;;  %v2234_v13 = vld [vmem:[%s2224_s14 + $0x4] sm:$0xf]  ;;  %v2237_v14 = vld [vmem:[%s2224_s14 + $0x8] sm:$0xf] }
  0x12   : > { %v218_v15 = vld [vmem:[%s2224_s14 + $0xc] sm:$0x1]  ;;  %v1542_v16 = vcombine.low %v199_v12, %v2234_v13  ;;  %v585_v18 = vld [vmem:[%s2224_s14] sm:$0x8]  ;;  %v1653_v50 = vcombine.low %v2234_v13, %v2237_v14  ;;  %v975_v63 = vld [vmem:[%s2224_s14 + $0x4] sm:$0xc] }
  0x13   : > { %1847 = vmatpush3.bf16.msra.mxu1 %v2067_v6  ;;  %v2242_v17 = vcombine.low %v2237_v14, %v218_v15  ;;  %v2246_v21 = vcombine.low %v585_v18, %v2234_v13  ;;  %v2249_v22 = vld [vmem:[%s2224_s14 + $0xc] sm:$0xf]  ;;  %v459_v62 = vld [vmem:[%s2224_s14] sm:$0xe]  ;;  %v2320_v0 = vld [vmem:[%s2224_s14 + $0x8] sm:$0xf] }
  0x14   : > { %1927 = vmatpush3.bf16.msra.mxu0 %v2068_v7  ;;  %1848 = vmatprep.subr.bf16.mxu1 %v2069_v8  ;;  %v248_v19 = vshrl.u32 %v1542_v16, 16  ;;  %v250_v20 = vshll.u32 %v1542_v16, 16  ;;  %v1628_v25 = vcombine.low %v2237_v14, %v2249_v22  ;;  %v2323_v1 = vld [vmem:[%s2224_s14 + $0xc] sm:$0xf]  ;;  %v978_v2 = vld [vmem:[%s2224_s14 + $0x10] sm:$0x3]  ;;  %v1577_v4 = vcombine.low %v459_v62, %v2234_v13  ;;  %vm1425_vm12 = vmor %vm1423_vm10, %vm1424_vm11 }
  0x15   : > { %1928 = vmatprep.subr.bf16.mxu0 %v2070_v9  ;;  %v255_v24 = vshll.u32 %v2242_v17, 16  ;;  %v738_v28 = vshrl.u32 %v2246_v21, 16  ;;  %v741_v29 = vshll.u32 %v2246_v21, 16  ;;  %v259_v43 = vshrl.u32 %v2242_v17, 16  ;;  %v2097_v7 = vld [vmem:[%s2506_s1 + $0x80] sm:$0xff]   ;;  %v2103_v18 = vld [vmem:[%s2506_s1 + $0x188] sm:$0xff]  }
  0x16   : > { %v252_v27 = vrot.slane %v250_v20, 1  ;;  %v746_v32 = vshrl.u32 %v1628_v25, 16  ;;  %v749_v33 = vshll.u32 %v1628_v25, 16  ;;  %v2331_v5 = vcombine.low %v975_v63, %v2320_v0  ;;  %v2133_v62 = vld [vmem:[%s2506_s1 + $0x1f0] sm:$0xff]   ;;  %v1251_v63 = vld [vmem:[%s2224_s14 + $0x4] sm:$0x8] }
  0x17   : > { %1849 = vmatpush3.bf16.msra.mxu1 %v2069_v8  ;;  %v257_v31 = vrot.slane %v255_v24, 1  ;;  %v740_v36 = vrot.slane %v738_v28, 3  ;;  %v743_v37 = vrot.slane %v741_v29, 4  ;;  %v1680_v6 = vcombine.low %v2323_v1, %v978_v2  ;;  %v2099_v8 = vld [vmem:[%s2506_s1 + $0x180] sm:$0xff]   ;;  %v586_v24 = vld [vmem:[%s2224_s14 + $0xc] sm:$0x7] }
  0x18   : > { %1929 = vmatpush3.bf16.msra.mxu0 %v2070_v9  ;;  %1850 = vmatprep.subr.bf16.mxu1 %v2071_v10  ;;  %v253_v35 = vor.u32 %v252_v27, %v248_v19  ;;  %v748_v38 = vrot.slane %v746_v32, 3  ;;  %v751_v39 = vrot.slane %v749_v33, 4  ;;  %v1552_v9 = vcombine.low %v2237_v14, %v2237_v14  ;;  %v2106_v27 = vld [vmem:[%s2506_s1 + $0x98] sm:$0xff]   ;;  %v1111_v32 = vld [vmem:[%s2224_s14 + $0x10] sm:$0x7]  ;;  %v2111_v33 = vld [vmem:[%s2506_s1 + $0x1a8] sm:$0xff]  }
  0x19   : > { %1930 = vmatprep.subr.bf16.mxu0 %v2072_v11  ;;  %v744_v41 = vor.u32 %v743_v37, %v740_v36  ;;  %v261_v47 = vor.u32 %v259_v43, %v257_v31  ;;  %v1654_v12 = vcombine.low %v2249_v22, %v2249_v22  ;;  %v1007_v13 = vrot.slane %v2331_v5, 2  ;;  %v2104_v22 = vld [vmem:[%s2506_s1 + $0x90] sm:$0xff]   ;;  %v2107_v28 = vld [vmem:[%s2506_s1 + $0x198] sm:$0xff]  }
  0x1a   : > { %v258_v40 = vsel %vm246_vm0, %v253_v35, %v257_v31  ;;  %v752_v42 = vor.u32 %v751_v39, %v748_v38  ;;  %v2346_v15 = vrot.slane %v1680_v6, 2  ;;  %v611_v25 = vrot.slane %v2246_v21, 3  ;;  %v2110_v31 = vld [vmem:[%s2506_s1 + $0xa8] sm:$0xff]   ;;  %v2112_v35 = vld [vmem:[%s2506_s1 + $0xb0] sm:$0xff]   ;;  %v2135_v2 = vld [vmem:[%s2506_s1 + $0x1f8] sm:$0xff]  }
  0x1b   : > { %1851 = vmatpush3.bf16.msra.mxu1 %v2071_v10  ;;  %1856 = vmatprep.mubr.bf16.mxu1 %v258_v40  ;;  %v481_v10 = vrot.slane %v1577_v4, 1  ;;  %v2113_v36 = vld [vmem:[%s2506_s1 + $0x1b0] sm:$0xff]   ;;  %v1134_v37 = vshrl.u32 %v2331_v5, 16  ;;  %v1137_v38 = vshll.u32 %v2331_v5, 16  ;;  %v2137_v4 = vld [vmem:[%s2506_s1 + $0x200] sm:$0xff]  }
  0x1c   : > { %1931 = vmatpush3.bf16.msra.mxu0 %v2072_v11  ;;  %1852 = vmatprep.subr.bf16.mxu1 %v2073_v23  ;;  %v753_v45 = vsel %vm736_vm1, %v744_v41, %v752_v42  ;;  %v482_v11 = vrot.slane %v2242_v17, 1  ;;  %v1009_v20 = vsel %vm1006_vm3, %v1007_v13, %v2346_v15  ;;  %v2114_v41 = vld [vmem:[%s2506_s1 + $0xb8] sm:$0xff]  }
  0x1d   : > { %1932 = vmatprep.subr.bf16.mxu0 %v2074_v26  ;;  %1936 = vmatprep.mubr.bf16.mxu0 %v753_v45  ;;  %v1136_v43 = vrot.slane %v1134_v37, 2  ;;  %v2126_v17 = vld [vmem:[%s2506_s1 + $0xd8] sm:$0xff]  }
  0x1e   : > { %v483_v19 = vsel %vm480_vm2, %v481_v10, %v482_v11  ;;  %v2141_v10 = vld [vmem:[%s2506_s1 + $0x220] sm:$0xff]   ;;  %v2144_v13 = vld [vmem:[%s2506_s1 + $0x238] sm:$0xff]  }
  0x1f   : > { %1853 = vmatpush3.bf16.msra.mxu1 %v2073_v23  ;;  %v2105_v23 = vld [vmem:[%s2506_s1 + $0x190] sm:$0xff]  }
  0x20   : > { %1933 = vmatpush3.bf16.msra.mxu0 %v2074_v26  ;;  %1854 = vmatprep.subr.bf16.mxu1 %v2075_v30  ;;  %v1603_v26 = vcombine.low %v2237_v14, %v586_v24  ;;  %v2108_v14 = vld [vmem:[%s2506_s1 + $0xa0] sm:$0xff]  }
  0x21   : > { %1934 = vmatprep.subr.bf16.mxu0 %v2076_v34 }
  0x22   : > { %v2372_v29 = vrot.slane %v1603_v26, 3 }
  0x23   : > { %1855 = vmatpush3.bf16.msra.mxu1 %v2075_v30  ;;  %v2109_v30 = vld [vmem:[%s2506_s1 + $0x1a0] sm:$0xff]  }
  0x24   : > { %1935 = vmatpush3.bf16.msra.mxu0 %v2076_v34  ;;  %1860 = vmatprep.subr.bf16.mxu1 %v2079_v44  ;;  %v613_v21 = vsel %vm610_vm4, %v611_v25, %v2372_v29  ;;  %v2390_v34 = vcombine.low %v2323_v1, %v1111_v32  ;;  %v2134_v1 = vld [vmem:[%s2506_s1 + $0xf8] sm:$0xff]   ;;  %v1739_v25 = vld [vmem:[%s2507_s2] ss:$0 sm:$0xff] }
  0x25   : > { %1940 = vmatprep.subr.bf16.mxu0 %v2082_v46 }
  0x26   : > { %1857 = vmatmul.mubr.bf16.vlgmr.msra.gmra.mrb[0].mxu1 %v261_v47  ;;  %v1142_v39 = vshrl.u32 %v2390_v34, 16  ;;  %v1145_v40 = vshll.u32 %v2390_v34, 16  ;;  %v2117_v47 = vld [vmem:[%s2506_s1 + $0xc0] sm:$0xff]   ;;  %v1273_v6 = vrot.slane %v2390_v34, 3 }
  0x27   : > { %1861 = vmatpush3.bf16.msra.mxu1 %v2079_v44  ;;  %1937 = vmatmul.mubr.bf16.vlgmr.msra.gmra.mrb[0].mxu0 %v752_v42  ;;  %v2115_v42 = vld [vmem:[%s2506_s1 + $0x1b8] sm:$0xff]   ;;  %v1139_v44 = vrot.slane %v1137_v38, 3 }
  0x28   : > { %1941 = vmatpush3.bf16.msra.mxu0 %v2082_v46  ;;  %1862 = vmatprep.subr.bf16.mxu1 %v2083_v48  ;;  %v1144_v45 = vrot.slane %v1142_v39, 2  ;;  %v1147_v46 = vrot.slane %v1145_v40, 3 }
  0x29   : > { %1942 = vmatprep.subr.bf16.mxu0 %v2084_v49  ;;  %1876 = vmatprep.mubr.bf16.mxu1 %v1542_v16  ;;  %v2102_v16 = vld [vmem:[%s2506_s1 + $0x88] sm:$0xff]  }
  0x2a   : > { %1956 = vmatprep.mubr.bf16.mxu0 %v1653_v50  ;;  %v2414_v50 = vor.u32 %v1147_v46, %v1144_v45 }
  0x2b   : > { %1863 = vmatpush3.bf16.msra.mxu1 %v2083_v48  ;;  %v2121_v48 = vld [vmem:[%s2506_s1 + $0x1c0] sm:$0xff]  }
  0x2c   : > { %1943 = vmatpush3.bf16.msra.mxu0 %v2084_v49  ;;  %1864 = vmatprep.subr.bf16.mxu1 %v2085_v51  ;;  %v1140_v49 = vor.u32 %v1139_v44, %v1136_v43 }
  0x2d   : > { %1944 = vmatprep.subr.bf16.mxu0 %v2086_v52 }
  0x2f   : > { %1865 = vmatpush3.bf16.msra.mxu1 %v2085_v51  ;;  %v2122_v51 = vld [vmem:[%s2506_s1 + $0xc8] sm:$0xff]  }
  0x30   : > { %1945 = vmatpush3.bf16.msra.mxu0 %v2086_v52  ;;  %1866 = vmatprep.subr.bf16.mxu1 %v2087_v53  ;;  %v2123_v52 = vld [vmem:[%s2506_s1 + $0x1c8] sm:$0xff]  }
  0x31   : > { %1946 = vmatprep.subr.bf16.mxu0 %v2088_v54 }
  0x33   : > { %1867 = vmatpush3.bf16.msra.mxu1 %v2087_v53  ;;  %v1149_v53 = vsel %vm1132_vm5, %v1140_v49, %v2414_v50 }
  0x34   : > { %1947 = vmatpush3.bf16.msra.mxu0 %v2088_v54  ;;  %1868 = vmatprep.subr.bf16.mxu1 %v2089_v55  ;;  %v2124_v54 = vld [vmem:[%s2506_s1 + $0xd0] sm:$0xff]  }
  0x35   : > { %1948 = vmatprep.subr.bf16.mxu0 %v2090_v56 }
  0x37   : > { %1869 = vmatpush3.bf16.msra.mxu1 %v2089_v55  ;;  %v2125_v55 = vld [vmem:[%s2506_s1 + $0x1d0] sm:$0xff]  }
  0x38   : > { %1949 = vmatpush3.bf16.msra.mxu0 %v2090_v56  ;;  %1870 = vmatprep.subr.bf16.mxu1 %v2091_v57  ;;  %v2127_v56 = vld [vmem:[%s2506_s1 + $0x1d8] sm:$0xff]  }
  0x39   : > { %1950 = vmatprep.subr.bf16.mxu0 %v2092_v58 }
  0x3b   : > { %1871 = vmatpush3.bf16.msra.mxu1 %v2091_v57  ;;  %v2128_v57 = vld [vmem:[%s2506_s1 + $0xe0] sm:$0xff]  }
  0x3c   : > { %1951 = vmatpush3.bf16.msra.mxu0 %v2092_v58  ;;  %1872 = vmatprep.subr.bf16.mxu1 %v2093_v59  ;;  %v2129_v58 = vld [vmem:[%s2506_s1 + $0x1e0] sm:$0xff]  }
  0x3d   : > { %1952 = vmatprep.subr.bf16.mxu0 %v2094_v60 }
  0x3f   : > { %1873 = vmatpush3.bf16.msra.mxu1 %v2093_v59  ;;  %v2130_v59 = vld [vmem:[%s2506_s1 + $0xe8] sm:$0xff]  }
  0x40   : > { %1953 = vmatpush3.bf16.msra.mxu0 %v2094_v60  ;;  %1874 = vmatprep.subr.bf16.mxu1 %v2095_v61  ;;  %v2131_v60 = vld [vmem:[%s2506_s1 + $0x1e8] sm:$0xff]  }
  0x41   : > { %1954 = vmatprep.subr.bf16.mxu0 %v2096_v3 }
  0x43   : > { %1875 = vmatpush3.bf16.msra.mxu1 %v2095_v61  ;;  %v2132_v61 = vld [vmem:[%s2506_s1 + $0xf0] sm:$0xff]  }
  0x44   : > { %1955 = vmatpush3.bf16.msra.mxu0 %v2096_v3  ;;  %1880 = vmatprep.subr.bf16.mxu1 %v2097_v7  ;;  %v1730_v3 = vcombine.low %v1251_v63, %v2320_v0 }
  0x45   : > { %1960 = vmatprep.subr.bf16.mxu0 %v2099_v8 }
  0x46   : > { %1877 = vmatmul.mubr.bf16.vlgmr.msra.gmra.mrb[0].mxu1 %v1552_v9  ;;  %v1272_v5 = vrot.slane %v1730_v3, 3  ;;  %v2140_v9 = vld [vmem:[%s2506_s1 + $0x218] sm:$0xff]  }
  0x47   : > { %1881 = vmatpush3.bf16.msra.mxu1 %v2097_v7  ;;  %1957 = vmatmul.mubr.bf16.vlgmr.msra.gmra.mrb[0].mxu0 %v1654_v12  ;;  %v2138_v7 = vld [vmem:[%s2506_s1 + $0x208] sm:$0xff]   ;;  %v2143_v12 = vld [vmem:[%s2506_s1 + $0x230] sm:$0xff]  }
  0x48   : > { %1961 = vmatpush3.bf16.msra.mxu0 %v2099_v8  ;;  %1882 = vmatprep.subr.bf16.mxu1 %v2102_v16  ;;  %v1274_v0 = vsel %vm610_vm4, %v1272_v5, %v1273_v6  ;;  %v2139_v8 = vld [vmem:[%s2506_s1 + $0x210] sm:$0xff]  }
  0x49   : > { %1962 = vmatprep.subr.bf16.mxu0 %v2103_v18  ;;  %1896 = vmatprep.mubr.bf16.mxu1 %v483_v19 }
  0x4a   : > { %1976 = vmatprep.mubr.bf16.mxu0 %v1009_v20  ;;  %v2154_v20 = vmov 1983009808  }
  0x4b   : > { %1883 = vmatpush3.bf16.msra.mxu1 %v2102_v16 }
  0x4c   : > { %1963 = vmatpush3.bf16.msra.mxu0 %v2103_v18  ;;  %1884 = vmatprep.subr.bf16.mxu1 %v2104_v22 }
  0x4d   : > { %1964 = vmatprep.subr.bf16.mxu0 %v2105_v23 }
  0x4f   : > { %1885 = vmatpush3.bf16.msra.mxu1 %v2104_v22  ;;  %v1405_v22 = vunpack.c.l.s4 %v2154_v20 }
  0x50   : > { %1965 = vmatpush3.bf16.msra.mxu0 %v2105_v23  ;;  %1886 = vmatprep.subr.bf16.mxu1 %v2106_v27  ;;  %v1407_v23 = vlaneseq }
  0x51   : > { %1966 = vmatprep.subr.bf16.mxu0 %v2107_v28 }
  0x53   : > { %1887 = vmatpush3.bf16.msra.mxu1 %v2106_v27 }
  0x54   : > { %1967 = vmatpush3.bf16.msra.mxu0 %v2107_v28  ;;  %1888 = vmatprep.subr.bf16.mxu1 %v2108_v14  ;;  %v1740_v28 = vld [vmem:[%s2508_s3] ss:$0 sm:$0xff] }
  0x55   : > { %1968 = vmatprep.subr.bf16.mxu0 %v2109_v30 }
  0x57   : > { %1889 = vmatpush3.bf16.msra.mxu1 %v2108_v14 }
  0x58   : > { %1969 = vmatpush3.bf16.msra.mxu0 %v2109_v30  ;;  %1890 = vmatprep.subr.bf16.mxu1 %v2110_v31  ;;  %v1406_v30 = vunpack.c.0.s8 %v1405_v22 }
  0x59   : > { %1970 = vmatprep.subr.bf16.mxu0 %v2111_v33 }
  0x5b   : > { %1891 = vmatpush3.bf16.msra.mxu1 %v2110_v31  ;;  %v1408_v31 = vshrl.u32 %v1407_v23, 7 }
  0x5c   : > { %1971 = vmatpush3.bf16.msra.mxu0 %v2111_v33  ;;  %1892 = vmatprep.subr.bf16.mxu1 %v2112_v35 }
  0x5d   : > { %1972 = vmatprep.subr.bf16.mxu0 %v2113_v36  ;;  %v1409_v39 = vsub.s32 %v1406_v30, %v1408_v31 }
  0x5f   : > { %1893 = vmatpush3.bf16.msra.mxu1 %v2112_v35 }
  0x60   : > { %1973 = vmatpush3.bf16.msra.mxu0 %v2113_v36  ;;  %1894 = vmatprep.subr.bf16.mxu1 %v2114_v41 }
  0x61   : > { %1974 = vmatprep.subr.bf16.mxu0 %v2115_v42 }
  0x63   : > { %1895 = vmatpush3.bf16.msra.mxu1 %v2114_v41 }
  0x64   : > { %1975 = vmatpush3.bf16.msra.mxu0 %v2115_v42  ;;  %1900 = vmatprep.subr.bf16.mxu1 %v2117_v47 }
  0x65   : > { %1980 = vmatprep.subr.bf16.mxu0 %v2121_v48 }
  0x66   : > { %1897 = vmatmul.mubr.bf16.vlgmr.msra.gmra.mrb[0].mxu1 %v482_v11  ;;  %v2142_v11 = vld [vmem:[%s2506_s1 + $0x228] sm:$0xff]  }
  0x67   : > { %1901 = vmatpush3.bf16.msra.mxu1 %v2117_v47  ;;  %1977 = vmatmul.mubr.bf16.vlgmr.msra.gmra.mrb[0].mxu0 %v2346_v15 }
  0x68   : > { %1981 = vmatpush3.bf16.msra.mxu0 %v2121_v48  ;;  %1902 = vmatprep.subr.bf16.mxu1 %v2122_v51 }
  0x69   : > { %1982 = vmatprep.subr.bf16.mxu0 %v2123_v52  ;;  %1916 = vmatprep.mubr.bf16.mxu1 %v613_v21 }
  0x6a   : > { %1996 = vmatprep.mubr.bf16.mxu0 %v1149_v53 }
  0x6b   : > { %1903 = vmatpush3.bf16.msra.mxu1 %v2122_v51 }
  0x6c   : > { %1983 = vmatpush3.bf16.msra.mxu0 %v2123_v52  ;;  %1904 = vmatprep.subr.bf16.mxu1 %v2124_v54 }
  0x6d   : > { %1984 = vmatprep.subr.bf16.mxu0 %v2125_v55 }
  0x6f   : > { %1905 = vmatpush3.bf16.msra.mxu1 %v2124_v54 }
  0x70   : > { %1985 = vmatpush3.bf16.msra.mxu0 %v2125_v55  ;;  %1906 = vmatprep.subr.bf16.mxu1 %v2126_v17 }
  0x71   : > { %1986 = vmatprep.subr.bf16.mxu0 %v2127_v56 }
  0x73   : > { %1907 = vmatpush3.bf16.msra.mxu1 %v2126_v17 }
  0x74   : > { %1987 = vmatpush3.bf16.msra.mxu0 %v2127_v56  ;;  %1908 = vmatprep.subr.bf16.mxu1 %v2128_v57 }
  0x75   : > { %1988 = vmatprep.subr.bf16.mxu0 %v2129_v58 }
  0x77   : > { %1909 = vmatpush3.bf16.msra.mxu1 %v2128_v57 }
  0x78   : > { %1989 = vmatpush3.bf16.msra.mxu0 %v2129_v58  ;;  %1910 = vmatprep.subr.bf16.mxu1 %v2130_v59 }
  0x79   : > { %1990 = vmatprep.subr.bf16.mxu0 %v2131_v60 }
  0x7b   : > { %1911 = vmatpush3.bf16.msra.mxu1 %v2130_v59 }
  0x7c   : > { %1991 = vmatpush3.bf16.msra.mxu0 %v2131_v60  ;;  %1912 = vmatprep.subr.bf16.mxu1 %v2132_v61 }
  0x7d   : > { %1992 = vmatprep.subr.bf16.mxu0 %v2133_v62 }
  0x7f   : > { %1913 = vmatpush3.bf16.msra.mxu1 %v2132_v61 }
  0x80   : > { %1993 = vmatpush3.bf16.msra.mxu0 %v2133_v62  ;;  %1914 = vmatprep.subr.bf16.mxu1 %v2134_v1 }
  0x81   : > { %1994 = vmatprep.subr.bf16.mxu0 %v2135_v2 }
  0x83   : > { %1915 = vmatpush3.bf16.msra.mxu1 %v2134_v1 }
  0x84   : > { %1995 = vmatpush3.bf16.msra.mxu0 %v2135_v2 }
  0x85   : > { %2000 = vmatprep.subr.bf16.mxu0 %v2137_v4 }
  0x86   : > { %1917 = vmatmul.mubr.bf16.vlgmr.msra.gmra.mrb[0].mxu1 %v2372_v29 }
  0x87   : > { %1997 = vmatmul.mubr.bf16.vlgmr.msra.gmra.mrb[0].mxu0 %v2414_v50 }
  0x88   : > { %2001 = vmatpush3.bf16.msra.mxu0 %v2137_v4  ;;  %2016 = vmatprep.mubr.bf16.mxu0 %v1274_v0 }
  0x89   : > { %2002 = vmatprep.subr.bf16.mxu0 %v2138_v7 }
  0x8c   : > { %2003 = vmatpush3.bf16.msra.mxu0 %v2138_v7 }
  0x8d   : > { %2004 = vmatprep.subr.bf16.mxu0 %v2139_v8 }
  0x90   : > { %2005 = vmatpush3.bf16.msra.mxu0 %v2139_v8 }
  0x91   : > { %2006 = vmatprep.subr.bf16.mxu0 %v2140_v9 }
  0x94   : > { %2007 = vmatpush3.bf16.msra.mxu0 %v2140_v9 }
  0x95   : > { %2008 = vmatprep.subr.bf16.mxu0 %v2141_v10 }
  0x98   : > { %2009 = vmatpush3.bf16.msra.mxu0 %v2141_v10 }
  0x99   : > { %2010 = vmatprep.subr.bf16.mxu0 %v2142_v11 }
  0x9c   : > { %2011 = vmatpush3.bf16.msra.mxu0 %v2142_v11 }
  0x9d   : > { %2012 = vmatprep.subr.bf16.mxu0 %v2143_v12 }
  0xa0   : > { %2013 = vmatpush3.bf16.msra.mxu0 %v2143_v12 }
  0xa1   : > { %2014 = vmatprep.subr.bf16.mxu0 %v2144_v13 }
  0xa4   : > { %2015 = vmatpush3.bf16.msra.mxu0 %v2144_v13 }
  0xa7   : > { %2017 = vmatmul.mubr.bf16.vlgmr.msra.gmra.mrb[0].mxu0 %v1273_v6 }
 0x159   : > { %v1918_v15 = vpop.f32.mrb[0].mxu1 }
 0x15a   : > { %v698_v16 = vpop.f32.mrb[1].mxu1 }
 0x15b   : > { %v1919_v18 = vpop.f32.mrb[2].mxu1 }
 0x15c   : > { %v701_v19 = vpop.f32.mrb[3].mxu1 }
 0x17a   : > { %v2018_v24 = vpop.f32.mrb[0].mxu0 }
 0x17b   : > { %v2020_v26 = vadd.f32 %v2018_v24, %v1918_v15  ;;  %v1359_v27 = vpop.f32.mrb[1].mxu0 }
 0x17c   : > { %v2021_v29 = vadd.f32 %v1359_v27, %v698_v16  ;;  %v2019_v21 = vpop.f32.mrb[2].mxu0 }
 0x17d   : > { %v1385_v14 = vmul.f32 %v2020_v26, %v1739_v25  ;;  %v1362_v32 = vpop.f32.mrb[3].mxu0 }
 0x17e   : > { %v1383_v33 = vmul.f32 %v2021_v29, %v1739_v25  ;;  %v2022_v34 = vadd.f32 %v1362_v32, %v701_v19 }
 0x17f   : > { %v1395_v35 = vadd.f32 %v1740_v28, %v1385_v14 }
 0x180   : > { %v1393_v36 = vadd.f32 %v1740_v28, %v1383_v33  ;;  %v1384_v37 = vmul.f32 %v2022_v34, %v1739_v25 }
 0x181   : > { %v1398_v38 = vmax.f32 %v1395_v35, 0.0 }
 0x182   : > { %v1396_v40 = vmax.f32 %v1393_v36, 0.0  ;;  %v1394_v41 = vadd.f32 %v1740_v28, %v1384_v37 }
 0x183   : > { %v1446_v42 = vpack.c.bf16 %v1398_v38, %v1398_v38 }
 0x184   : > { %v1399_v43 = vpack.c.bf16 %v1396_v40, %v1396_v40  ;;  %v1397_v44 = vmax.f32 %v1394_v41, 0.0 }
 0x185   : > { %v1454_v45 = vrot.slane %v1446_v42, %v1409_v39 }
 0x186   : > { %1400 = vst [vmem:[%s197_s6] sm:$0x3] %v1399_v43  ;;  %v1401_v46 = vpack.c.bf16 %v1397_v44, %v1396_v40  ;;  %v1741_v47 = vpack.c.bf16 %v1397_v44, %v1397_v44 }
 0x187   : > { %v1455_v48 = vcombine.high %v1454_v45, %v1454_v45  ;;  %v1745_v51 = vrot.slane %v1454_v45, 9 }
 0x188   : > { %v1410_v49 = vrot.slane %v1401_v46, %v1409_v39  ;;  %v1417_v50 = vrot.slane %v1741_v47, %v1409_v39 }
 0x189   : > { %v1458_v52 = vrot.slane %v1455_v48, 7 }
 0x18a   : > { %v1418_v53 = vcombine.high %v1410_v49, %v1410_v49  ;;  %v1442_v54 = vcombine.high %v1417_v50, %v1417_v50  ;;  %v1428_v56 = vrot.slane %v1417_v50, 7 }
 0x18b   : > { %v1459_v55 = vsel %vm1425_vm12, %v1745_v51, %v1458_v52 }
 0x18c   : > { %1746 = vst [vmem:[%s197_s6 + $0x6] sm:$0x3] %v1459_v55  ;;  %v1742_v17 = vrot.slane %v1418_v53, 9  ;;  %1744 = vst [vmem:[%s197_s6 + $0x4] sm:$0x3] %v1442_v54 }
 0x18e   : > { %v1429_v57 = vsel %vm1425_vm12, %v1742_v17, %v1428_v56 }
 0x18f   : > { %1743 = vst [vmem:[%s197_s6 + $0x2] sm:$0x3] %v1429_v57 }
 0x190 PF: > { %s14_s15 = sadd.s32 1, %s2152_s15  }
 0x191   : > { %p11_p4 = scmp.ge.s32.totalorder %s14_s15, 4  }
 0x193   :  { %13 = sbr.rel (!%p11_p4) target bundleno = 1 (0x1), region = 77 }

// kernel: _lambda_.14
= control target key start
LH: loop header
LB: loop body
LE: loop exit
PB: predicated region body
PF: predicated region fallthrough
CT: control target
= control target key end

     0   :  { %s3111_s15 = smov 0   ;;  %s3812_s0 = inlined_call_operand.vmem [shape: bf16[2,110,128], index: 0, kind: input, shape index: {}]   ;;  %s3813_s1 = inlined_call_operand.vmem [shape: bf16[9,128,128], index: 1, kind: input, shape index: {}]   ;;  %s3814_s2 = inlined_call_operand.vmem [shape: f32[1,128], index: 2, kind: input, shape index: {}]   ;;  %s3815_s3 = inlined_call_operand.vmem [shape: f32[1,128], index: 3, kind: input, shape index: {}]   ;;  %s3816_s4 = inlined_call_operand.vmem [shape: bf16[2,8,8,128], index: 4, kind: output, shape index: {}]  }
   0x1 LB: > { %s2094_s16 = sadd.s32 4294967295, %s3082_s15   ;;  %p2098_p0 = scmp.ge.s32.totalorder %s3082_s15, 1  ;;  %s3082_s15 = sphi %s3111_s15, %s14_s15  }
   0x2   : > { %p162_p1 = scmp.lt.s32.totalorder %s3082_s15, 3 }
   0x4   : > { %p163_p2 = pnand %p2098_p0, %p162_p1 }
   0x5   : > { %v2981_v0 = vld [vmem:[%s3813_s1 + $0x40] sm:$0xff] (!%p163_p2)   ;;  %v3084_v1 = vmov (!%p163_p2), 0.0   ;;  %v2983_v3 = vld [vmem:[%s3813_s1 + $0x48] sm:$0xff] (!%p163_p2)   ;;  %vm3085_vm0 = vmmov (!%p163_p2), 0   ;;  %p188_p3 = scmp.lt.s32.totalorder (!%p163_p2), %s2094_s16, 1  ;;  %v2985_v5 = vld [vmem:[%s3813_s1 + $0x50] sm:$0xff] (!%p163_p2)  }
   0x6   : > { %166 = sbr.rel (%p163_p2) target bundleno = 441 (0x1b9), region = 36  ;;  %2484 = vmatprep.subr.bf16.mxu1 (!%p163_p2), %v3084_v1  ;;  %2628 = vmatprep.subr.bf16.mxu0 (!%p163_p2), %v3084_v1  ;;  %v2982_v2 = vld [vmem:[%s3813_s1 + $0x100] sm:$0xff] (!%p163_p2)   ;;  %v2984_v4 = vld [vmem:[%s3813_s1 + $0x108] sm:$0xff] (!%p163_p2)   ;;  %v2986_v6 = vld [vmem:[%s3813_s1 + $0x110] sm:$0xff] (!%p163_p2)   ;;  %vm271_vm1 = vsmask.f32 (!%p163_p2), 7424 }
   0x7   : > { %2485 = vmatpush3.bf16.msra.mxu1 (!%p163_p2), %v2981_v0  ;;  %2500 = vmatprep.mubr.msk.bf16.mxu1 (!%p163_p2), %vm3085_vm0, %v3084_v1  ;;  %v2987_v7 = vld [vmem:[%s3813_s1 + $0x58] sm:$0xff] (!%p163_p2)   ;;  %v2989_v9 = vld [vmem:[%s3813_s1 + $0x60] sm:$0xff] (!%p163_p2)   ;;  %v2991_v11 = vld [vmem:[%s3813_s1 + $0x68] sm:$0xff] (!%p163_p2)   ;;  %vm961_vm2 = vsmask.f32 (!%p163_p2), 6400  ;;  %vm589_vm3 = vcmask (!%p163_p2), 1046528  }
   0x8   : > { %2629 = vmatpush3.bf16.msra.mxu0 (!%p163_p2), %v2982_v2  ;;  %2486 = vmatprep.subr.bf16.mxu1 (!%p163_p2), %v3084_v1  ;;  %v2988_v8 = vld [vmem:[%s3813_s1 + $0x118] sm:$0xff] (!%p163_p2)   ;;  %v2990_v10 = vld [vmem:[%s3813_s1 + $0x120] sm:$0xff] (!%p163_p2)   ;;  %v2992_v19 = vld [vmem:[%s3813_s1 + $0x128] sm:$0xff] (!%p163_p2)   ;;  %vm1172_vm4 = vcmask (!%p163_p2), 1045504   ;;  %vm1755_vm5 = vcmask (!%p163_p2), 1044480   ;;  %vm1955_vm7 = vcmask (!%p163_p2), 1042432  }
   0x9   : > { %2630 = vmatprep.subr.bf16.mxu0 (!%p163_p2), %v3084_v1  ;;  %2644 = vmatprep.mubr.msk.bf16.mxu0 (!%p163_p2), %vm3085_vm0, %v3084_v1  ;;  %v2993_v22 = vld [vmem:[%s3813_s1 + $0x70] sm:$0xff] (!%p163_p2)   ;;  %v2995_v35 = vld [vmem:[%s3813_s1 + $0x78] sm:$0xff] (!%p163_p2)   ;;  %v3001_v45 = vld [vmem:[%s3813_s1 + $0x140] sm:$0xff] (!%p163_p2)   ;;  %vm1544_vm6 = vsmask.f32 (!%p163_p2), 5376  ;;  %vm1956_vm8 = vcmask (!%p163_p2), 1046532  }
   0xa   : > { %v2994_v25 = vld [vmem:[%s3813_s1 + $0x130] sm:$0xff] (!%p163_p2)   ;;  %v2996_v36 = vld [vmem:[%s3813_s1 + $0x138] sm:$0xff] (!%p163_p2)   ;;  %v3003_v47 = vld [vmem:[%s3813_s1] sm:$0xff] (!%p163_p2)   ;;  %vm1971_vm10 = vcmask (!%p163_p2), 1041408   ;;  %vm1972_vm11 = vcmask (!%p163_p2), 1045508   ;;  %vm1987_vm12 = vcmask (!%p163_p2), 1040384  }
   0xb   : > { %2487 = vmatpush3.bf16.msra.mxu1 (!%p163_p2), %v2983_v3  ;;  %v3002_v54 = vld [vmem:[%s3813_s1 + $0x148] sm:$0xff] (!%p163_p2)   ;;  %v3006_v3 = vld [vmem:[%s3813_s1 + $0x150] sm:$0xff] (!%p163_p2)   ;;  %vm3762_vm9 = vmor (!%p163_p2), %vm1955_vm7, %vm1956_vm8  ;;  %vm1988_vm13 = vcmask (!%p163_p2), 1044484  }
   0xc   : > { %2631 = vmatpush3.bf16.msra.mxu0 (!%p163_p2), %v2984_v4  ;;  %2488 = vmatprep.subr.bf16.mxu1 (!%p163_p2), %v3084_v1  ;;  %v3007_v55 = vld [vmem:[%s3813_s1 + $0x8] sm:$0xff] (!%p163_p2)   ;;  %vm3778_vm14 = vmor (!%p163_p2), %vm1971_vm10, %vm1972_vm11 }
   0xd   : > { %s3824_s16 = smov (!%p188_p3, %s2094_s16), 1  ;;  %2632 = vmatprep.subr.bf16.mxu0 %v3084_v1  ;;  %vm3784_vm15 = vmor %vm1987_vm12, %vm1988_vm13 }
   0xe   : > { %s2970_s29 = smul.u32 56, %s3824_s16 }
   0xf   : > { %2489 = vmatpush3.bf16.msra.mxu1 %v2985_v5 }
  0x10   : > { %2633 = vmatpush3.bf16.msra.mxu0 %v2986_v6  ;;  %2490 = vmatprep.subr.bf16.mxu1 %v3084_v1  ;;  %s3161_s10 = scalar_lea.vmem %s3812_s0, %s2970_s29  ;;  %s2354_s29 = sshll.u32 %s3824_s16, 5 }
  0x11   : > { %2634 = vmatprep.subr.bf16.mxu0 %v3084_v1  ;;  %v199_v12 = vld [vmem:[%s3161_s10] sm:$0xf]  ;;  %v3176_v13 = vld [vmem:[%s3161_s10 + $0x4] sm:$0xf]  ;;  %v3182_v15 = vld [vmem:[%s3161_s10 + $0x8] sm:$0xff]   ;;  %s3755_s6 = scalar_lea.vmem %s3816_s4, %s2354_s29 }
  0x12   : > { %v3179_v14 = vcombine.low %v199_v12, %v3176_v13  ;;  %v3185_v16 = vld [vmem:[%s3161_s10 + $0xc] sm:$0xff]   ;;  %v737_v17 = vld [vmem:[%s3161_s10 + $0x4] sm:$0xe]  ;;  %v3189_v18 = vld [vmem:[%s3161_s10 + $0x8] sm:$0xf]  ;;  %v280_v30 = vshll.u32 %v3182_v15, 16 }
  0x13   : > { %2491 = vmatpush3.bf16.msra.mxu1 %v2987_v7  ;;  %v3197_v21 = vcombine.low %v737_v17, %v3189_v18  ;;  %v971_v23 = vshrl.u32 %v3185_v16, 16  ;;  %v974_v24 = vshll.u32 %v3185_v16, 16  ;;  %v3221_v37 = vld [vmem:[%s3161_s10 + $0x10] sm:$0xff]   ;;  %v284_v48 = vshrl.u32 %v3182_v15, 16  ;;  %v3240_v50 = vld [vmem:[%s3161_s10 + $0x1c] sm:$0xff]   ;;  %v3270_v6 = vld [vmem:[%s3161_s10 + $0x24] sm:$0xff]  }
  0x14   : > { %2635 = vmatpush3.bf16.msra.mxu0 %v2988_v8  ;;  %2492 = vmatprep.subr.bf16.mxu1 %v3084_v1  ;;  %v275_v20 = vshll.u32 %v3179_v14, 16  ;;  %v273_v26 = vshrl.u32 %v3179_v14, 16  ;;  %v282_v39 = vrot.slane %v280_v30, 1  ;;  %v3224_v40 = vld [vmem:[%s3161_s10 + $0x14] sm:$0xff]   ;;  %v288_v49 = vshll.u32 %v3221_v37, 16  ;;  %v3016_v30 = vld [vmem:[%s3813_s1 + $0x20] sm:$0xff]  }
  0x15   : > { %2636 = vmatprep.subr.bf16.mxu0 %v3084_v1  ;;  %v963_v27 = vshrl.u32 %v3197_v21, 16  ;;  %v966_v28 = vshll.u32 %v3197_v21, 16  ;;  %v973_v33 = vrot.slane %v971_v23, 1  ;;  %v976_v34 = vrot.slane %v974_v24, 2  ;;  %v3254_v58 = vld [vmem:[%s3161_s10 + $0x18] sm:$0xff]   ;;  %v3011_v7 = vld [vmem:[%s3813_s1 + $0x10] sm:$0xff]  }
  0x16   : > { %v277_v29 = vrot.slane %v275_v20, 1  ;;  %v980_v43 = vshrl.u32 %v3224_v40, 16  ;;  %v983_v44 = vshll.u32 %v3224_v40, 16  ;;  %v286_v56 = vor.u32 %v284_v48, %v282_v39  ;;  %v3010_v12 = vld [vmem:[%s3813_s1 + $0x158] sm:$0xff]  }
  0x17   : > { %2493 = vmatpush3.bf16.msra.mxu1 %v2989_v9  ;;  %v965_v31 = vrot.slane %v963_v27, 1  ;;  %v968_v32 = vrot.slane %v966_v28, 2  ;;  %v977_v42 = vor.u32 %v976_v34, %v973_v33  ;;  %v290_v57 = vrot.slane %v288_v49, 1  ;;  %v3012_v20 = vld [vmem:[%s3813_s1 + $0x18] sm:$0xff]  }
  0x18   : > { %2637 = vmatpush3.bf16.msra.mxu0 %v2990_v10  ;;  %2494 = vmatprep.subr.bf16.mxu1 %v3084_v1  ;;  %v278_v38 = vor.u32 %v277_v29, %v273_v26  ;;  %v982_v52 = vrot.slane %v980_v43, 1  ;;  %v985_v53 = vrot.slane %v983_v44, 2  ;;  %v989_v59 = vshrl.u32 %v3240_v50, 16  ;;  %v3280_v10 = vld [vmem:[%s3161_s10 + $0x20] sm:$0xff]   ;;  %v3019_v43 = vld [vmem:[%s3813_s1 + $0x170] sm:$0xff]  }
  0x19   : > { %2638 = vmatprep.subr.bf16.mxu0 %v3084_v1  ;;  %v969_v41 = vor.u32 %v968_v32, %v965_v31  ;;  %v992_v60 = vshll.u32 %v3240_v50, 16  ;;  %v291_v62 = vsel %vm271_vm1, %v286_v56, %v290_v57  ;;  %v292_v63 = vshrl.u32 %v3221_v37, 16  ;;  %v3301_v26 = vld [vmem:[%s3161_s10 + $0x2c] ss:$0 sps:$4 sm:$0x33]  }
  0x1a   : > { %v283_v46 = vsel %vm271_vm1, %v278_v38, %v282_v39  ;;  %v986_v61 = vor.u32 %v985_v53, %v982_v52  ;;  %v296_v0 = vshll.u32 %v3254_v58, 16  ;;  %v991_v4 = vrot.slane %v989_v59, 1  ;;  %v3309_v31 = vld [vmem:[%s3161_s10 + $0x28] ss:$0 sps:$4 sm:$0x11]   ;;  %v3022_v52 = vld [vmem:[%s3813_s1 + $0x30] sm:$0xff]  }
  0x1b   : > { %2495 = vmatpush3.bf16.msra.mxu1 %v2991_v11  ;;  %v978_v51 = vsel %vm961_vm2, %v969_v41, %v977_v42  ;;  %v994_v5 = vrot.slane %v992_v60, 2  ;;  %v294_v8 = vor.u32 %v292_v63, %v290_v57  ;;  %v998_v17 = vshrl.u32 %v3270_v6, 16  ;;  %v3017_v32 = vld [vmem:[%s3813_s1 + $0x168] sm:$0xff]   ;;  %v1151_v57 = vld [vmem:[%s3161_s10 + $0x4] sm:$0xc]  ;;  %v3024_v63 = vld [vmem:[%s3813_s1 + $0x38] sm:$0xff]  }
  0x1c   : > { %2639 = vmatpush3.bf16.msra.mxu0 %v2992_v19  ;;  %2496 = vmatprep.subr.bf16.mxu1 %v3084_v1  ;;  %v987_v2 = vsel %vm961_vm2, %v977_v42, %v986_v61  ;;  %v298_v9 = vrot.slane %v296_v0, 1  ;;  %v1001_v19 = vshll.u32 %v3270_v6, 16  ;;  %v300_v23 = vshrl.u32 %v3254_v58, 16 }
  0x1d   : > { %2640 = vmatprep.subr.bf16.mxu0 %v3084_v1  ;;  %v995_v11 = vor.u32 %v994_v5, %v991_v4  ;;  %v1000_v28 = vrot.slane %v998_v17, 1  ;;  %v1007_v38 = vshrl.u32 %v3301_v26, 16  ;;  %v1010_v39 = vshll.u32 %v3301_v26, 16 }
  0x1e   : > { %v299_v24 = vsel %vm271_vm1, %v294_v8, %v298_v9  ;;  %v1003_v29 = vrot.slane %v1001_v19, 2  ;;  %v302_v33 = vor.u32 %v300_v23, %v298_v9  ;;  %v591_v41 = vrot.slane %v3182_v15, 1  ;;  %v568_v9 = vld [vmem:[%s3161_s10] sm:$0xe] }
  0x1f   : > { %2497 = vmatpush3.bf16.msra.mxu1 %v2993_v22  ;;  %v3013_v22 = vld [vmem:[%s3813_s1 + $0x160] sm:$0xff]   ;;  %v996_v27 = vsel %vm961_vm2, %v986_v61, %v995_v11  ;;  %v593_v42 = vrot.slane %v3221_v37, 1  ;;  %v1009_v49 = vrot.slane %v1007_v38, 1  ;;  %v793_v53 = vrot.slane %v3197_v21, 1  ;;  %v3023_v21 = vld [vmem:[%s3813_s1 + $0x178] sm:$0xff]  }
  0x20   : > { %2641 = vmatpush3.bf16.msra.mxu0 %v2994_v25  ;;  %2498 = vmatprep.subr.bf16.mxu1 %v3084_v1  ;;  %v304_v25 = vshll.u32 %v3280_v10, 16  ;;  %v796_v59 = vrot.slane %v3224_v40, 1  ;;  %v2236_v8 = vcombine.low %v1151_v57, %v3189_v18  ;;  %v1174_v18 = vrot.slane %v3185_v16, 2  ;;  %v3466_v38 = vld [vmem:[%s3161_s10 + $0x18] sm:$0xff]  }
  0x21   : > { %2642 = vmatprep.subr.bf16.mxu0 %v3084_v1  ;;  %v1176_v23 = vrot.slane %v3224_v40, 2  ;;  %v3032_v40 = vld [vmem:[%s3813_s1 + $0x90] sm:$0xff]   ;;  %v3040_v57 = vld [vmem:[%s3813_s1 + $0x1b8] sm:$0xff]  }
  0x22   : > { %v306_v34 = vrot.slane %v304_v25, 1  ;;  %v1173_v17 = vrot.slane %v2236_v8, 2  ;;  %v3029_v25 = vld [vmem:[%s3813_s1 + $0x190] sm:$0xff]   ;;  %v3045_v8 = vld [vmem:[%s3813_s1 + $0x1c0] sm:$0xff]  }
  0x23   : > { %2499 = vmatpush3.bf16.msra.mxu1 %v2995_v35  ;;  %v3018_v35 = vld [vmem:[%s3813_s1 + $0x28] sm:$0xff]  }
  0x24   : > { %2643 = vmatpush3.bf16.msra.mxu0 %v2996_v36  ;;  %2520 = vmatprep.subr.bf16.mxu1 %v3084_v1  ;;  %v1004_v36 = vor.u32 %v1003_v29, %v1000_v28  ;;  %v307_v44 = vsel %vm271_vm1, %v302_v33, %v306_v34  ;;  %v3031_v28 = vld [vmem:[%s3813_s1 + $0x198] sm:$0xff]   ;;  %v3036_v33 = vld [vmem:[%s3813_s1 + $0x1a8] sm:$0xff]  }
  0x25   : > { %2664 = vmatprep.subr.bf16.mxu0 %v3084_v1 }
  0x26   : > { %2501 = vmatmul.mubr.bf16.vlgmr.msra.gmra.mrb[0].mxu1 %v283_v46  ;;  %v312_v46 = vshll.u32 %v3309_v31, 16  ;;  %v1005_v48 = vsel %vm961_vm2, %v995_v11, %v1004_v36  ;;  %v2156_v11 = vcombine.low %v568_v9, %v3176_v13  ;;  %v3026_v13 = vld [vmem:[%s3813_s1 + $0x180] sm:$0xff]  }
  0x27   : > { %2645 = vmatmul.mubr.bf16.vlgmr.msra.gmra.mrb[0].mxu0 %v978_v51  ;;  %2504 = vmatprep.mubr.msk.bf16.mxu1 %vm3085_vm0, %v3084_v1  ;;  %v1012_v51 = vrot.slane %v1010_v39, 2  ;;  %v3072_v39 = vld [vmem:[%s3161_s10 + $0x2c] ss:$0 sps:$4 sm:$0x11]   ;;  %v3047_v9 = vld [vmem:[%s3813_s1 + $0xc0] sm:$0xff]  }
  0x28   : > { %2665 = vmatpush3.bf16.msra.mxu0 %v3001_v45  ;;  %2521 = vmatpush3.bf16.msra.mxu1 %v3003_v47  ;;  %v308_v45 = vshrl.u32 %v3280_v10, 16  ;;  %v3337_v47 = vsel %vm589_vm3, %v591_v41, %v593_v42  ;;  %v314_v56 = vrot.slane %v312_v46, 1  ;;  %v802_v46 = vrot.slane %v3072_v39, 1 }
  0x29   : > { %2666 = vmatprep.subr.bf16.mxu0 %v3084_v1  ;;  %2648 = vmatprep.mubr.msk.bf16.mxu0 %vm3085_vm0, %v3084_v1  ;;  %v1013_v60 = vor.u32 %v1012_v51, %v1009_v49  ;;  %v1321_v49 = vld [vmem:[%s3161_s10 + $0xc] sm:$0xf]  ;;  %v1734_v51 = vld [vmem:[%s3161_s10 + $0x8] sm:$0x8] }
  0x2a   : > { %2522 = vmatprep.subr.bf16.mxu1 %v3084_v1 }
  0x2c   : > { %2667 = vmatpush3.bf16.msra.mxu0 %v3002_v54  ;;  %2523 = vmatpush3.bf16.msra.mxu1 %v3007_v55  ;;  %v794_v54 = vrot.slane %v3185_v16, 1  ;;  %v310_v55 = vor.u32 %v308_v45, %v306_v34  ;;  %v3027_v16 = vld [vmem:[%s3813_s1 + $0x188] sm:$0xff]  }
  0x2d   : > { %2668 = vmatprep.subr.bf16.mxu0 %v3084_v1  ;;  %2524 = vmatprep.subr.bf16.mxu1 %v3084_v1  ;;  %v3037_v34 = vld [vmem:[%s3813_s1 + $0xa8] sm:$0xff]  }
  0x2e   : > { %2505 = vmatmul.mubr.bf16.gmra.mrb[4].mxu1 %v291_v62  ;;  %v3357_v61 = vsel %vm589_vm3, %v793_v53, %v794_v54  ;;  %v798_v62 = vrot.slane %v3240_v50, 1  ;;  %v3365_v0 = vsel %vm589_vm3, %v794_v54, %v796_v59  ;;  %v315_v4 = vsel %vm271_vm1, %v310_v55, %v314_v56 }
  0x2f   : > { %2649 = vmatmul.mubr.bf16.gmra.mrb[4].mxu0 %v987_v2  ;;  %2508 = vmatprep.mubr.msk.bf16.mxu1 %vm3085_vm0, %v3084_v1  ;;  %v800_v2 = vrot.slane %v3270_v6, 1  ;;  %v2316_v54 = vcombine.low %v1734_v51, %v1321_v49 }
  0x30   : > { %2669 = vmatpush3.bf16.msra.mxu0 %v3006_v3  ;;  %2652 = vmatprep.mubr.msk.bf16.mxu0 %vm3085_vm0, %v3084_v1  ;;  %v3370_v3 = vsel %vm589_vm3, %v796_v59, %v798_v62 }
  0x31   : > { %2670 = vmatprep.subr.bf16.mxu0 %v3084_v1  ;;  %2525 = vmatpush3.bf16.msra.mxu1 %v3011_v7  ;;  %v3376_v5 = vsel %vm589_vm3, %v798_v62, %v800_v2  ;;  %v1014_v7 = vsel %vm961_vm2, %v1004_v36, %v1013_v60  ;;  %v3038_v36 = vld [vmem:[%s3813_s1 + $0x1b0] sm:$0xff]   ;;  %v3487_v53 = vsel %vm589_vm3, %v800_v2, %v802_v46  ;;  %v1756_v59 = vrot.slane %v2316_v54, 3  ;;  %v3041_v60 = vld [vmem:[%s3813_s1 + $0xb8] sm:$0xff]  }
  0x32   : > { %2526 = vmatprep.subr.bf16.mxu1 %v3084_v1 }
  0x34   : > { %2671 = vmatpush3.bf16.msra.mxu0 %v3010_v12  ;;  %v590_v12 = vrot.slane %v2156_v11, 1  ;;  %v3046_v11 = vld [vmem:[%s3813_s1 + $0x1c8] sm:$0xff]  }
  0x35   : > { %2672 = vmatprep.subr.bf16.mxu0 %v3084_v1  ;;  %2527 = vmatpush3.bf16.msra.mxu1 %v3012_v20  ;;  %v1175_v20 = vsel %vm1172_vm4, %v1173_v17, %v1174_v18  ;;  %v3050_v17 = vld [vmem:[%s3813_s1 + $0xc8] sm:$0xff]  }
  0x36   : > { %2509 = vmatmul.mubr.bf16.gmra.mrb[8].mxu1 %v299_v24  ;;  %2528 = vmatprep.subr.bf16.mxu1 %v3084_v1  ;;  %v3390_v19 = vsel %vm589_vm3, %v590_v12, %v591_v41  ;;  %v3030_v24 = vld [vmem:[%s3813_s1 + $0x88] sm:$0xff]   ;;  %v3039_v41 = vld [vmem:[%s3813_s1 + $0xb0] sm:$0xff]   ;;  %v1379_v12 = vrot.slane %v3466_v38, 2 }
  0x37   : > { %2653 = vmatmul.mubr.bf16.gmra.mrb[8].mxu0 %v996_v27  ;;  %2512 = vmatprep.mubr.msk.bf16.mxu1 %vm3085_vm0, %v3084_v1  ;;  %v1178_v27 = vrot.slane %v3240_v50, 2  ;;  %v3034_v50 = vld [vmem:[%s3813_s1 + $0x1a0] sm:$0xff]  }
  0x38   : > { %2673 = vmatpush3.bf16.msra.mxu0 %v3013_v22  ;;  %2656 = vmatprep.mubr.msk.bf16.mxu0 %vm3085_vm0, %v3084_v1  ;;  %v3028_v22 = vld [vmem:[%s3813_s1 + $0x80] sm:$0xff]  }
  0x39   : > { %2529 = vmatpush3.bf16.msra.mxu1 %v3016_v30  ;;  %2674 = vmatprep.subr.bf16.mxu0 %v3084_v1  ;;  %v1179_v29 = vsel %vm1172_vm4, %v1176_v23, %v1178_v27  ;;  %v3035_v30 = vld [vmem:[%s3813_s1 + $0xa0] sm:$0xff]  }
  0x3a   : > { %2530 = vmatprep.subr.bf16.mxu1 %v3084_v1 }
  0x3c   : > { %2675 = vmatpush3.bf16.msra.mxu0 %v3017_v32  ;;  %v1180_v32 = vrot.slane %v3270_v6, 2  ;;  %v1182_v6 = vrot.slane %v3301_v26, 2 }
  0x3d   : > { %2531 = vmatpush3.bf16.msra.mxu1 %v3018_v35  ;;  %2676 = vmatprep.subr.bf16.mxu0 %v3084_v1  ;;  %v3459_v35 = vld [vmem:[%s3161_s10 + $0x10] sm:$0xff]  }
  0x3e   : > { %2513 = vmatmul.mubr.bf16.gmra.mrb[12].mxu1 %v307_v44  ;;  %2532 = vmatprep.subr.bf16.mxu1 %v3084_v1  ;;  %v1757_v44 = vrot.slane %v3459_v35, 3  ;;  %v1181_v45 = vsel %vm1172_vm4, %v1178_v27, %v1180_v32  ;;  %v1183_v26 = vsel %vm1172_vm4, %v1180_v32, %v1182_v6  ;;  %v3059_v27 = vld [vmem:[%s3813_s1 + $0xe8] sm:$0xff]   ;;  %v1554_v39 = vshrl.u32 %v3459_v35, 16 }
  0x3f   : > { %2657 = vmatmul.mubr.bf16.gmra.mrb[12].mxu0 %v1005_v48  ;;  %2516 = vmatprep.mubr.msk.bf16.mxu1 %vm3085_vm0, %v3084_v1  ;;  %v1759_v48 = vrot.slane %v3466_v38, 3  ;;  %v1563_v6 = vshrl.u32 %v3466_v38, 16 }
  0x40   : > { %2660 = vmatprep.mubr.msk.bf16.mxu0 %vm3085_vm0, %v3084_v1  ;;  %2677 = vmatpush3.bf16.msra.mxu0 %v3019_v43  ;;  %v3473_v43 = vld [vmem:[%s3161_s10 + $0x20] sm:$0xff]   ;;  %v3512_v62 = vsel %vm1755_vm5, %v1756_v59, %v1757_v44 }
  0x41   : > { %2533 = vmatpush3.bf16.msra.mxu1 %v3022_v52  ;;  %2678 = vmatprep.subr.bf16.mxu0 %v3084_v1  ;;  %v1761_v52 = vrot.slane %v3473_v43, 3  ;;  %v3490_v55 = vsel %vm1755_vm5, %v1757_v44, %v1759_v48 }
  0x42   : > { %2534 = vmatprep.subr.bf16.mxu1 %v3084_v1 }
  0x43   : > { %v3497_v56 = vsel %vm1755_vm5, %v1759_v48, %v1761_v52 }
  0x44   : > { %2679 = vmatpush3.bf16.msra.mxu0 %v3023_v21  ;;  %v1320_v21 = vld [vmem:[%s3161_s10 + $0x8] sm:$0xc] }
  0x45   : > { %2535 = vmatpush3.bf16.msra.mxu1 %v3024_v63  ;;  %2700 = vmatprep.subr.bf16.mxu0 %v3084_v1  ;;  %v3515_v63 = vcombine.low %v1320_v21, %v1321_v49  ;;  %v1556_v49 = vrot.slane %v1554_v39, 2  ;;  %v1565_v21 = vrot.slane %v1563_v6, 2 }
  0x46   : > { %2517 = vmatmul.mubr.bf16.gmra.mrb[16].mxu1 %v315_v4  ;;  %2556 = vmatprep.subr.bf16.mxu1 %v3084_v1  ;;  %v1377_v4 = vrot.slane %v3459_v35, 2 }
  0x47   : > { %2661 = vmatmul.mubr.bf16.gmra.mrb[16].mxu0 %v1014_v7  ;;  %2536 = vmatprep.mubr.msk.bf16.mxu1 %vm3085_vm0, %v3084_v1  ;;  %v1376_v2 = vrot.slane %v3515_v63, 2  ;;  %v1546_v32 = vshrl.u32 %v3515_v63, 16 }
  0x48   : > { %2680 = vmatprep.mubr.msk.bf16.mxu0 %vm3085_vm0, %v3084_v1 }
  0x49   : > { %v1378_v7 = vsel %vm1172_vm4, %v1376_v2, %v1377_v4  ;;  %v1572_v2 = vshrl.u32 %v3473_v43, 16 }
  0x4e   : > { %2537 = vmatmul.mubr.bf16.vlgmr.msra.gmra.mrb[0].mxu1 %v3179_v14  ;;  %v1177_v14 = vsel %vm1172_vm4, %v1174_v18, %v1176_v23  ;;  %v1380_v18 = vsel %vm1172_vm4, %v1377_v4, %v1379_v12  ;;  %v1575_v4 = vshll.u32 %v3473_v43, 16 }
  0x4f   : > { %2681 = vmatmul.mubr.bf16.vlgmr.msra.gmra.mrb[0].mxu0 %v1175_v20  ;;  %2540 = vmatprep.mubr.msk.bf16.mxu1 %vm3085_vm0, %v3084_v1  ;;  %v595_v20 = vrot.slane %v3254_v58, 1 }
  0x50   : > { %2701 = vmatpush3.bf16.msra.mxu0 %v3026_v13  ;;  %2557 = vmatpush3.bf16.msra.mxu1 %v3028_v22  ;;  %v3053_v13 = vld [vmem:[%s3813_s1 + $0xd0] sm:$0xff]   ;;  %v1381_v22 = vrot.slane %v3473_v43, 2 }
  0x51   : > { %2702 = vmatprep.subr.bf16.mxu0 %v3084_v1  ;;  %2684 = vmatprep.mubr.msk.bf16.mxu0 %vm3085_vm0, %v3084_v1 }
  0x52   : > { %2558 = vmatprep.subr.bf16.mxu1 %v3084_v1  ;;  %v1382_v23 = vsel %vm1172_vm4, %v1379_v12, %v1381_v22  ;;  %v3068_v12 = vld [vmem:[%s3813_s1 + $0x218] sm:$0xff]  }
  0x54   : > { %2703 = vmatpush3.bf16.msra.mxu0 %v3027_v16  ;;  %2559 = vmatpush3.bf16.msra.mxu1 %v3030_v24  ;;  %v3052_v16 = vld [vmem:[%s3813_s1 + $0x1d8] sm:$0xff]   ;;  %v3055_v24 = vld [vmem:[%s3813_s1 + $0x1e0] sm:$0xff]  }
  0x55   : > { %2704 = vmatprep.subr.bf16.mxu0 %v3084_v1  ;;  %2560 = vmatprep.subr.bf16.mxu1 %v3084_v1 }
  0x56   : > { %2541 = vmatmul.mubr.bf16.gmra.mrb[4].mxu1 %v3182_v15  ;;  %v3033_v15 = vld [vmem:[%s3813_s1 + $0x98] sm:$0xff]  }
  0x57   : > { %2685 = vmatmul.mubr.bf16.gmra.mrb[4].mxu0 %v1177_v14  ;;  %2544 = vmatprep.mubr.msk.bf16.mxu1 %vm3085_vm0, %v3084_v1  ;;  %v3579_v14 = vld [vmem:[%s3161_s10 + $0x28] sm:$0xff]  }
  0x58   : > { %2705 = vmatpush3.bf16.msra.mxu0 %v3029_v25  ;;  %2688 = vmatprep.mubr.msk.bf16.mxu0 %vm3085_vm0, %v3084_v1  ;;  %v3057_v25 = vld [vmem:[%s3813_s1 + $0xe0] sm:$0xff]  }
  0x59   : > { %2706 = vmatprep.subr.bf16.mxu0 %v3084_v1  ;;  %2561 = vmatpush3.bf16.msra.mxu1 %v3032_v40  ;;  %v3058_v40 = vld [vmem:[%s3813_s1 + $0x1e8] sm:$0xff]  }
  0x5a   : > { %2562 = vmatprep.subr.bf16.mxu1 %v3084_v1 }
  0x5c   : > { %2707 = vmatpush3.bf16.msra.mxu0 %v3031_v28 }
  0x5d   : > { %2708 = vmatprep.subr.bf16.mxu0 %v3084_v1  ;;  %2563 = vmatpush3.bf16.msra.mxu1 %v3033_v15  ;;  %v3060_v15 = vld [vmem:[%s3813_s1 + $0x1f0] sm:$0xff]  }
  0x5e   : > { %2545 = vmatmul.mubr.bf16.gmra.mrb[8].mxu1 %v3221_v37  ;;  %2564 = vmatprep.subr.bf16.mxu1 %v3084_v1  ;;  %v597_v37 = vrot.slane %v3280_v10, 1 }
  0x5f   : > { %2689 = vmatmul.mubr.bf16.gmra.mrb[8].mxu0 %v1179_v29  ;;  %2548 = vmatprep.mubr.msk.bf16.mxu1 %vm3085_vm0, %v3084_v1  ;;  %v3061_v29 = vld [vmem:[%s3161_s10 + $0x30] ss:$0 sps:$4 sm:$0x33]  }
  0x60   : > { %2709 = vmatpush3.bf16.msra.mxu0 %v3034_v50  ;;  %2692 = vmatprep.mubr.msk.bf16.mxu0 %vm3085_vm0, %v3084_v1  ;;  %v3062_v50 = vld [vmem:[%s3813_s1 + $0xf0] sm:$0xff]  }
  0x61   : > { %2565 = vmatpush3.bf16.msra.mxu1 %v3035_v30  ;;  %2710 = vmatprep.subr.bf16.mxu0 %v3084_v1  ;;  %v599_v30 = vrot.slane %v3309_v31, 1  ;;  %v3064_v31 = vld [vmem:[%s3813_s1 + $0xf8] sm:$0xff]  }
  0x62   : > { %2566 = vmatprep.subr.bf16.mxu1 %v3084_v1 }
  0x63   : > { %v600_v44 = vsel %vm589_vm3, %v597_v37, %v599_v30 }
  0x64   : > { %2711 = vmatpush3.bf16.msra.mxu0 %v3036_v33  ;;  %v1385_v33 = vrot.slane %v3061_v29, 2 }
  0x65   : > { %2567 = vmatpush3.bf16.msra.mxu1 %v3037_v34  ;;  %2712 = vmatprep.subr.bf16.mxu0 %v3084_v1  ;;  %v3063_v34 = vld [vmem:[%s3813_s1 + $0x1f8] sm:$0xff]  }
  0x66   : > { %2549 = vmatmul.mubr.bf16.gmra.mrb[12].mxu1 %v3254_v58  ;;  %2568 = vmatprep.subr.bf16.mxu1 %v3084_v1  ;;  %v596_v58 = vsel %vm589_vm3, %v593_v42, %v595_v20  ;;  %v1383_v42 = vrot.slane %v3579_v14, 2 }
  0x67   : > { %2693 = vmatmul.mubr.bf16.gmra.mrb[12].mxu0 %v1181_v45  ;;  %2552 = vmatprep.mubr.msk.bf16.mxu1 %vm3085_vm0, %v3084_v1  ;;  %v1548_v45 = vrot.slane %v1546_v32, 2 }
  0x68   : > { %2696 = vmatprep.mubr.msk.bf16.mxu0 %vm3085_vm0, %v3084_v1  ;;  %2713 = vmatpush3.bf16.msra.mxu0 %v3038_v36  ;;  %v1384_v28 = vsel %vm1172_vm4, %v1381_v22, %v1383_v42  ;;  %v1549_v36 = vshll.u32 %v3515_v63, 16  ;;  %v1386_v46 = vsel %vm1172_vm4, %v1383_v42, %v1385_v33  ;;  %v3073_v22 = vld [vmem:[%s3161_s10 + $0x30] ss:$0 sps:$4 sm:$0x77]  }
  0x69   : > { %2569 = vmatpush3.bf16.msra.mxu1 %v3039_v41  ;;  %2714 = vmatprep.subr.bf16.mxu0 %v3084_v1  ;;  %v1557_v41 = vshll.u32 %v3459_v35, 16 }
  0x6a   : > { %2570 = vmatprep.subr.bf16.mxu1 %v3084_v1  ;;  %v1551_v48 = vrot.slane %v1549_v36, 3 }
  0x6b   : > { %v1559_v51 = vrot.slane %v1557_v41, 3 }
  0x6c   : > { %2715 = vmatpush3.bf16.msra.mxu0 %v3040_v57  ;;  %v1552_v35 = vor.u32 %v1551_v48, %v1548_v45  ;;  %v1566_v57 = vshll.u32 %v3466_v38, 16  ;;  %v3066_v38 = vld [vmem:[%s3813_s1 + $0x208] sm:$0xff]  }
  0x6d   : > { %2571 = vmatpush3.bf16.msra.mxu1 %v3041_v60  ;;  %2736 = vmatprep.subr.bf16.mxu0 %v3084_v1  ;;  %v1560_v54 = vor.u32 %v1559_v51, %v1556_v49  ;;  %v3065_v60 = vld [vmem:[%s3813_s1 + $0x200] sm:$0xff]  }
  0x6e   : > { %2553 = vmatmul.mubr.bf16.gmra.mrb[16].mxu1 %v3280_v10  ;;  %2592 = vmatprep.subr.bf16.mxu1 %v3084_v1  ;;  %v598_v10 = vsel %vm589_vm3, %v595_v20, %v597_v37 }
  0x6f   : > { %2697 = vmatmul.mubr.bf16.gmra.mrb[16].mxu0 %v1183_v26  ;;  %2572 = vmatprep.mubr.msk.bf16.mxu1 %vm3085_vm0, %v3084_v1  ;;  %v1561_v59 = vsel %vm1544_vm6, %v1552_v35, %v1560_v54  ;;  %v1568_v26 = vrot.slane %v1566_v57, 3 }
  0x70   : > { %2716 = vmatprep.mubr.msk.bf16.mxu0 %vm3085_vm0, %v3084_v1 }
  0x71   : > { %v1569_v63 = vor.u32 %v1568_v26, %v1565_v21 }
  0x76   : > { %2573 = vmatmul.mubr.bf16.vlgmr.msra.gmra.mrb[0].mxu1 %v3390_v19  ;;  %v3049_v19 = vld [vmem:[%s3813_s1 + $0x1d0] sm:$0xff]  }
  0x77   : > { %2717 = vmatmul.mubr.bf16.vlgmr.msra.gmra.mrb[0].mxu0 %v1378_v7  ;;  %2576 = vmatprep.mubr.msk.bf16.mxu1 %vm3085_vm0, %v3084_v1  ;;  %v3067_v7 = vld [vmem:[%s3813_s1 + $0x210] sm:$0xff]  }
  0x78   : > { %2737 = vmatpush3.bf16.msra.mxu0 %v3045_v8  ;;  %2593 = vmatpush3.bf16.msra.mxu1 %v3047_v9  ;;  %v1574_v8 = vrot.slane %v1572_v2, 2  ;;  %v1577_v9 = vrot.slane %v1575_v4, 3 }
  0x79   : > { %2738 = vmatprep.subr.bf16.mxu0 %v3084_v1  ;;  %2720 = vmatprep.mubr.msk.bf16.mxu0 %vm3085_vm0, %v3084_v1 }
  0x7a   : > { %2594 = vmatprep.subr.bf16.mxu1 %v3084_v1 }
  0x7c   : > { %2739 = vmatpush3.bf16.msra.mxu0 %v3046_v11  ;;  %2595 = vmatpush3.bf16.msra.mxu1 %v3050_v17  ;;  %v1578_v11 = vor.u32 %v1577_v9, %v1574_v8  ;;  %v1581_v17 = vshrl.u32 %v3579_v14, 16  ;;  %v3741_v8 = vld [vmem:[%s3815_s3] ss:$0 sm:$0xff] }
  0x7d   : > { %2740 = vmatprep.subr.bf16.mxu0 %v3084_v1  ;;  %2596 = vmatprep.subr.bf16.mxu1 %v3084_v1 }
  0x7e   : > { %2577 = vmatmul.mubr.bf16.gmra.mrb[4].mxu1 %v3337_v47  ;;  %v3054_v47 = vld [vmem:[%s3813_s1 + $0xd8] sm:$0xff]  }
  0x7f   : > { %2721 = vmatmul.mubr.bf16.gmra.mrb[4].mxu0 %v1380_v18  ;;  %2580 = vmatprep.mubr.msk.bf16.mxu1 %vm3085_vm0, %v3084_v1  ;;  %v1579_v18 = vsel %vm1544_vm6, %v1569_v63, %v1578_v11 }
  0x80   : > { %2741 = vmatpush3.bf16.msra.mxu0 %v3049_v19  ;;  %2724 = vmatprep.mubr.msk.bf16.mxu0 %vm3085_vm0, %v3084_v1  ;;  %v3069_v19 = vld [vmem:[%s3813_s1 + $0x220] sm:$0xff]  }
  0x81   : > { %2742 = vmatprep.subr.bf16.mxu0 %v3084_v1  ;;  %2597 = vmatpush3.bf16.msra.mxu1 %v3053_v13  ;;  %v1583_v13 = vrot.slane %v1581_v17, 2 }
  0x82   : > { %2598 = vmatprep.subr.bf16.mxu1 %v3084_v1 }
  0x84   : > { %2743 = vmatpush3.bf16.msra.mxu0 %v3052_v16 }
  0x85   : > { %2744 = vmatprep.subr.bf16.mxu0 %v3084_v1  ;;  %2599 = vmatpush3.bf16.msra.mxu1 %v3054_v47  ;;  %v3070_v47 = vld [vmem:[%s3813_s1 + $0x228] sm:$0xff]  }
  0x86   : > { %2581 = vmatmul.mubr.bf16.gmra.mrb[8].mxu1 %v596_v58  ;;  %2600 = vmatprep.subr.bf16.mxu1 %v3084_v1  ;;  %v1590_v58 = vshrl.u32 %v3073_v22, 16 }
  0x87   : > { %2725 = vmatmul.mubr.bf16.gmra.mrb[8].mxu0 %v1382_v23  ;;  %2584 = vmatprep.mubr.msk.bf16.mxu1 %vm3085_vm0, %v3084_v1  ;;  %v1593_v23 = vshll.u32 %v3073_v22, 16 }
  0x88   : > { %2745 = vmatpush3.bf16.msra.mxu0 %v3055_v24  ;;  %2728 = vmatprep.mubr.msk.bf16.mxu0 %vm3085_vm0, %v3084_v1  ;;  %v3071_v24 = vld [vmem:[%s3813_s1 + $0x230] sm:$0xff]  }
  0x89   : > { %2601 = vmatpush3.bf16.msra.mxu1 %v3057_v25  ;;  %2746 = vmatprep.subr.bf16.mxu0 %v3084_v1  ;;  %v1592_v25 = vrot.slane %v1590_v58, 2  ;;  %v1595_v37 = vrot.slane %v1593_v23, 3 }
  0x8a   : > { %2602 = vmatprep.subr.bf16.mxu1 %v3084_v1 }
  0x8b   : > { %v1596_v42 = vor.u32 %v1595_v37, %v1592_v25 }
  0x8c   : > { %2747 = vmatpush3.bf16.msra.mxu0 %v3058_v40  ;;  %v3074_v40 = vld [vmem:[%s3813_s1 + $0x238] sm:$0xff]  }
  0x8d   : > { %2603 = vmatpush3.bf16.msra.mxu1 %v3059_v27  ;;  %2748 = vmatprep.subr.bf16.mxu0 %v3084_v1  ;;  %v1763_v27 = vrot.slane %v3579_v14, 3 }
  0x8e   : > { %2585 = vmatmul.mubr.bf16.gmra.mrb[12].mxu1 %v598_v10  ;;  %2604 = vmatprep.subr.bf16.mxu1 %v3084_v1 }
  0x8f   : > { %2729 = vmatmul.mubr.bf16.gmra.mrb[12].mxu0 %v1384_v28  ;;  %2588 = vmatprep.mubr.msk.bf16.mxu1 %vm3085_vm0, %v3084_v1  ;;  %v1764_v10 = vsel %vm1755_vm5, %v1761_v52, %v1763_v27 }
  0x90   : > { %2732 = vmatprep.mubr.msk.bf16.mxu0 %vm3085_vm0, %v3084_v1  ;;  %2749 = vmatpush3.bf16.msra.mxu0 %v3060_v15 }
  0x91   : > { %2605 = vmatpush3.bf16.msra.mxu1 %v3062_v50  ;;  %2750 = vmatprep.subr.bf16.mxu0 %v3084_v1 }
  0x92   : > { %2606 = vmatprep.subr.bf16.mxu1 %v3084_v1 }
  0x94   : > { %2751 = vmatpush3.bf16.msra.mxu0 %v3063_v34 }
  0x95   : > { %2607 = vmatpush3.bf16.msra.mxu1 %v3064_v31  ;;  %2772 = vmatprep.subr.bf16.mxu0 %v3084_v1 }
  0x96   : > { %2589 = vmatmul.mubr.bf16.gmra.mrb[16].mxu1 %v600_v44  ;;  %2808 = vmatprep.subr.bf16.mxu1 %v3084_v1 }
  0x97   : > { %2733 = vmatmul.mubr.bf16.gmra.mrb[16].mxu0 %v1386_v46  ;;  %2608 = vmatprep.mubr.msk.bf16.mxu1 %vm3085_vm0, %v3084_v1 }
  0x98   : > { %2752 = vmatprep.mubr.msk.bf16.mxu0 %vm3085_vm0, %v3084_v1 }
  0x9e   : > { %2609 = vmatmul.mubr.bf16.vlgmr.msra.gmra.mrb[0].mxu1 %v3357_v61  ;;  %v1570_v61 = vsel %vm1544_vm6, %v1560_v54, %v1569_v63 }
  0x9f   : > { %2753 = vmatmul.mubr.bf16.vlgmr.msra.gmra.mrb[0].mxu0 %v1561_v59  ;;  %2612 = vmatprep.mubr.msk.bf16.mxu1 %vm3085_vm0, %v3084_v1 }
  0xa0   : > { %2773 = vmatpush3.bf16.msra.mxu0 %v3065_v60  ;;  %2756 = vmatprep.mubr.msk.bf16.mxu0 %vm3085_vm0, %v3084_v1 }
  0xa1   : > { %2774 = vmatprep.subr.bf16.mxu0 %v3084_v1  ;;  %2816 = vmatpush3.bf16.msra.mxu1 %v3065_v60 }
  0xa2   : > { %2809 = vmatprep.subr.bf16.mxu1 %v3084_v1 }
  0xa4   : > { %2775 = vmatpush3.bf16.msra.mxu0 %v3066_v38 }
  0xa5   : > { %2776 = vmatprep.subr.bf16.mxu0 %v3084_v1  ;;  %2817 = vmatpush3.bf16.msra.mxu1 %v3066_v38  ;;  %v3736_v38 = vld [vmem:[%s3814_s2] ss:$0 sm:$0xff] }
  0xa6   : > { %2613 = vmatmul.mubr.bf16.gmra.mrb[4].mxu1 %v3365_v0  ;;  %2810 = vmatprep.subr.bf16.mxu1 %v3084_v1  ;;  %v1584_v0 = vshll.u32 %v3579_v14, 16 }
  0xa7   : > { %2757 = vmatmul.mubr.bf16.gmra.mrb[4].mxu0 %v1570_v61  ;;  %2616 = vmatprep.mubr.msk.bf16.mxu1 %vm3085_vm0, %v3084_v1 }
  0xa8   : > { %2777 = vmatpush3.bf16.msra.mxu0 %v3067_v7  ;;  %2760 = vmatprep.mubr.msk.bf16.mxu0 %vm3085_vm0, %v3084_v1  ;;  %v1586_v20 = vrot.slane %v1584_v0, 3 }
  0xa9   : > { %2778 = vmatprep.subr.bf16.mxu0 %v3084_v1  ;;  %2818 = vmatpush3.bf16.msra.mxu1 %v3067_v7 }
  0xaa   : > { %2811 = vmatprep.subr.bf16.mxu1 %v3084_v1  ;;  %v1587_v16 = vor.u32 %v1586_v20, %v1583_v13 }
  0xac   : > { %2779 = vmatpush3.bf16.msra.mxu0 %v3068_v12 }
  0xad   : > { %2780 = vmatprep.subr.bf16.mxu0 %v3084_v1  ;;  %2819 = vmatpush3.bf16.msra.mxu1 %v3068_v12 }
  0xae   : > { %2617 = vmatmul.mubr.bf16.gmra.mrb[8].mxu1 %v3370_v3  ;;  %2812 = vmatprep.subr.bf16.mxu1 %v3084_v1  ;;  %v1588_v3 = vsel %vm1544_vm6, %v1578_v11, %v1587_v16 }
  0xaf   : > { %2761 = vmatmul.mubr.bf16.gmra.mrb[8].mxu0 %v1579_v18  ;;  %2620 = vmatprep.mubr.msk.bf16.mxu1 %vm3085_vm0, %v3084_v1 }
  0xb0   : > { %2781 = vmatpush3.bf16.msra.mxu0 %v3069_v19  ;;  %2764 = vmatprep.mubr.msk.bf16.mxu0 %vm3085_vm0, %v3084_v1 }
  0xb1   : > { %2820 = vmatpush3.bf16.msra.mxu1 %v3069_v19  ;;  %2782 = vmatprep.subr.bf16.mxu0 %v3084_v1 }
  0xb2   : > { %2813 = vmatprep.subr.bf16.mxu1 %v3084_v1 }
  0xb4   : > { %2783 = vmatpush3.bf16.msra.mxu0 %v3070_v47 }
  0xb5   : > { %2821 = vmatpush3.bf16.msra.mxu1 %v3070_v47  ;;  %2784 = vmatprep.subr.bf16.mxu0 %v3084_v1 }
  0xb6   : > { %2621 = vmatmul.mubr.bf16.gmra.mrb[12].mxu1 %v3376_v5  ;;  %2814 = vmatprep.subr.bf16.mxu1 %v3084_v1  ;;  %v1597_v5 = vsel %vm1544_vm6, %v1587_v16, %v1596_v42 }
  0xb7   : > { %2765 = vmatmul.mubr.bf16.gmra.mrb[12].mxu0 %v1588_v3  ;;  %2624 = vmatprep.mubr.msk.bf16.mxu1 %vm3085_vm0, %v3084_v1 }
  0xb8   : > { %2768 = vmatprep.mubr.msk.bf16.mxu0 %vm3085_vm0, %v3084_v1  ;;  %2785 = vmatpush3.bf16.msra.mxu0 %v3071_v24 }
  0xb9   : > { %2822 = vmatpush3.bf16.msra.mxu1 %v3071_v24  ;;  %2786 = vmatprep.subr.bf16.mxu0 %v3084_v1 }
  0xba   : > { %2815 = vmatprep.subr.bf16.mxu1 %v3084_v1 }
  0xbc   : > { %2787 = vmatpush3.bf16.msra.mxu0 %v3074_v40 }
  0xbd   : > { %2823 = vmatpush3.bf16.msra.mxu1 %v3074_v40 }
  0xbe   : > { %2625 = vmatmul.mubr.bf16.gmra.mrb[16].mxu1 %v3487_v53  ;;  %v1765_v53 = vrot.slane %v3073_v22, 3 }
  0xbf   : > { %2769 = vmatmul.mubr.bf16.gmra.mrb[16].mxu0 %v1597_v5  ;;  %2800 = vmatprep.mubr.msk.bf16.mxu1 %vm3085_vm0, %v3084_v1 }
  0xc0   : > { %2788 = vmatprep.mubr.msk.bf16.mxu0 %vm3085_vm0, %v3084_v1  ;;  %v1766_v28 = vsel %vm1755_vm5, %v1763_v27, %v1765_v53 }
  0xc6   : > { %2801 = vmatmul.mubr.bf16.vlgmr.msra.gmra.mrb[20].mxu1 %v1764_v10 }
  0xc7   : > { %2789 = vmatmul.mubr.bf16.vlgmr.msra.gmra.mrb[0].mxu0 %v3512_v62  ;;  %2804 = vmatprep.mubr.msk.bf16.mxu1 %vm3085_vm0, %v3084_v1 }
  0xc8   : > { %2792 = vmatprep.mubr.msk.bf16.mxu0 %vm3085_vm0, %v3084_v1 }
  0xce   : > { %2805 = vmatmul.mubr.bf16.gmra.mrb[24].mxu1 %v1766_v28 }
  0xcf   : > { %2793 = vmatmul.mubr.bf16.gmra.mrb[4].mxu0 %v3490_v55 }
  0xd0   : > { %2796 = vmatprep.mubr.msk.bf16.mxu0 %vm3085_vm0, %v3084_v1 }
  0xd7   : > { %2797 = vmatmul.mubr.bf16.gmra.mrb[8].mxu0 %v3497_v56 }
 0x171   : > { %v891_v43 = vpop.f32.mrb[0].mxu1 }
 0x172   : > { %v2610_v52 = vpop.f32.mrb[1].mxu1 }
 0x173   : > { %v894_v62 = vpop.f32.mrb[2].mxu1 }
 0x174   : > { %v2611_v14 = vpop.f32.mrb[3].mxu1 }
 0x179   : > { %v3725_v15 = vpop.f32.mrb[4].mxu1 }
 0x17a   : > { %v2614_v29 = vpop.f32.mrb[5].mxu1 }
 0x17b   : > { %v3727_v50 = vpop.f32.mrb[6].mxu1 }
 0x17c   : > { %v2615_v30 = vpop.f32.mrb[7].mxu1 }
 0x181   : > { %v3729_v32 = vpop.f32.mrb[8].mxu1 }
 0x182   : > { %v2618_v33 = vpop.f32.mrb[9].mxu1 }
 0x183   : > { %v3731_v34 = vpop.f32.mrb[10].mxu1 }
 0x184   : > { %v2619_v55 = vpop.f32.mrb[11].mxu1 }
 0x189   : > { %v915_v36 = vpop.f32.mrb[12].mxu1 }
 0x18a   : > { %v1709_v1 = vpop.f32.mrb[12].mxu0  ;;  %v2622_v39 = vpop.f32.mrb[13].mxu1 }
 0x18b   : > { %v2830_v56 = vadd.f32 %v1709_v1, %v915_v36  ;;  %v2766_v41 = vpop.f32.mrb[13].mxu0  ;;  %v918_v31 = vpop.f32.mrb[14].mxu1 }
 0x18c   : > { %v1712_v44 = vpop.f32.mrb[14].mxu0  ;;  %v2623_v45 = vpop.f32.mrb[15].mxu1 }
 0x18d   : > { %v2832_v46 = vadd.f32 %v1712_v44, %v918_v31  ;;  %v2767_v48 = vpop.f32.mrb[15].mxu0 }
 0x191   : > { %v923_v49 = vpop.f32.mrb[16].mxu1 }
 0x192   : > { %v1717_v51 = vpop.f32.mrb[16].mxu0  ;;  %v2626_v35 = vpop.f32.mrb[17].mxu1 }
 0x193   : > { %v2834_v54 = vadd.f32 %v1717_v51, %v923_v49  ;;  %v2770_v6 = vpop.f32.mrb[17].mxu0  ;;  %v926_v57 = vpop.f32.mrb[18].mxu1 }
 0x194   : > { %v1720_v59 = vpop.f32.mrb[18].mxu0  ;;  %v2627_v60 = vpop.f32.mrb[19].mxu1 }
 0x195   : > { %v2836_v21 = vadd.f32 %v1720_v59, %v926_v57  ;;  %v2771_v26 = vpop.f32.mrb[19].mxu0 }
 0x199   : > { %v1878_v63 = vpop.f32.mrb[20].mxu1 }
 0x19a   : > { %v1854_v2 = vpop.f32.mrb[0].mxu0  ;;  %v2831_v4 = vadd.f32 %v2830_v56, %v1878_v63  ;;  %v2802_v61 = vpop.f32.mrb[21].mxu1 }
 0x19b   : > { %v2824_v7 = vadd.f32 %v1854_v2, %v891_v43  ;;  %v2790_v9 = vpop.f32.mrb[1].mxu0  ;;  %v1881_v11 = vpop.f32.mrb[22].mxu1 }
 0x19c   : > { %v1916_v12 = vmul.f32 %v2831_v4, %v3736_v38  ;;  %v1857_v17 = vpop.f32.mrb[2].mxu0  ;;  %v2833_v0 = vadd.f32 %v2832_v46, %v1881_v11  ;;  %v2803_v18 = vpop.f32.mrb[23].mxu1 }
 0x19d   : > { %v1910_v19 = vmul.f32 %v2824_v7, %v3736_v38  ;;  %v2825_v13 = vadd.f32 %v1857_v17, %v894_v62  ;;  %v2791_v20 = vpop.f32.mrb[3].mxu0 }
 0x19e   : > { %v1933_v22 = vadd.f32 %v3741_v8, %v1916_v12  ;;  %v1917_v16 = vmul.f32 %v2833_v0, %v3736_v38 }
 0x19f   : > { %v1927_v47 = vadd.f32 %v3741_v8, %v1910_v19  ;;  %v1911_v58 = vmul.f32 %v2825_v13, %v3736_v38 }
 0x1a0   : > { %v1943_v23 = vmax.f32 %v1933_v22, 0.0  ;;  %v1934_v3 = vadd.f32 %v3741_v8, %v1917_v16 }
 0x1a1   : > { %v1937_v24 = vmax.f32 %v1927_v47, 0.0  ;;  %v1928_v25 = vadd.f32 %v3741_v8, %v1911_v58  ;;  %v1886_v37 = vpop.f32.mrb[24].mxu1 }
 0x1a2   : > { %v2361_v42 = vpack.c.bf16 %v1943_v23, %v1943_v23  ;;  %v1944_v40 = vmax.f32 %v1934_v3, 0.0  ;;  %v1862_v5 = vpop.f32.mrb[4].mxu0  ;;  %v2835_v27 = vadd.f32 %v2834_v54, %v1886_v37  ;;  %v2806_v10 = vpop.f32.mrb[25].mxu1 }
 0x1a3   : > { %v1947_v53 = vpack.c.bf16 %v1937_v24, %v1937_v24  ;;  %v2826_v28 = vadd.f32 %v1862_v5, %v3725_v15  ;;  %v2794_v43 = vpop.f32.mrb[5].mxu0  ;;  %v1889_v52 = vpop.f32.mrb[26].mxu1  ;;  %v1938_v55 = vmax.f32 %v1928_v25, 0.0 }
 0x1a4   : > { %v2362_v62 = vpack.c.bf16 %v1944_v40, %v1944_v40  ;;  %v1918_v14 = vmul.f32 %v2835_v27, %v3736_v38  ;;  %v1865_v29 = vpop.f32.mrb[6].mxu0  ;;  %v2837_v30 = vadd.f32 %v2836_v21, %v1889_v52  ;;  %v2807_v33 = vpop.f32.mrb[27].mxu1  ;;  %v2342_v56 = vrot.slane %v2361_v42, 9 }
 0x1a5   : > { %1948 = vst [vmem:[%s3755_s6] sm:$0xf] %v1947_v53  ;;  %v1912_v1 = vmul.f32 %v2826_v28, %v3736_v38  ;;  %v2827_v15 = vadd.f32 %v1865_v29, %v3727_v50  ;;  %v2795_v39 = vpop.f32.mrb[7].mxu0  ;;  %v2355_v50 = vpack.c.bf16 %v1938_v55, %v1938_v55 }
 0x1a6   : > { %v2008_v41 = vrot.slane %v2362_v62, 5  ;;  %v1935_v31 = vadd.f32 %v3741_v8, %v1918_v14  ;;  %v1919_v44 = vmul.f32 %v2837_v30, %v3736_v38  ;;  %v2346_v4 = vrot.slane %v2362_v62, 10 }
 0x1a7   : > { %v1929_v45 = vadd.f32 %v3741_v8, %v1912_v1  ;;  %v1913_v46 = vmul.f32 %v2827_v15, %v3736_v38  ;;  %v2329_v11 = vrot.slane %v2355_v50, 9 }
 0x1a8   : > { %v2009_v48 = vsel %vm3762_vm9, %v2342_v56, %v2008_v41  ;;  %v1945_v49 = vmax.f32 %v1935_v31, 0.0  ;;  %v1936_v51 = vadd.f32 %v3741_v8, %v1919_v44 }
 0x1a9   : > { %2343 = vst [vmem:[%s3755_s6 + $0x14] sm:$0xf] %v2009_v48  ;;  %v1939_v35 = vmax.f32 %v1929_v45, 0.0  ;;  %v1930_v54 = vadd.f32 %v3741_v8, %v1913_v46 }
 0x1aa   : > { %v2364_v6 = vpack.c.bf16 %v1945_v49, %v1945_v49  ;;  %v1946_v57 = vmax.f32 %v1936_v51, 0.0  ;;  %v1870_v59 = vpop.f32.mrb[8].mxu0 }
 0x1ab   : > { %v2356_v60 = vpack.c.bf16 %v1939_v35, %v1939_v35  ;;  %v1940_v26 = vmax.f32 %v1930_v54, 0.0  ;;  %v2828_v63 = vadd.f32 %v1870_v59, %v3729_v32  ;;  %v2798_v2 = vpop.f32.mrb[9].mxu0 }
 0x1ac   : > { %v2021_v61 = vrot.slane %v2364_v6, 6  ;;  %v2366_v7 = vpack.c.bf16 %v1946_v57, %v1946_v57  ;;  %v1873_v9 = vpop.f32.mrb[10].mxu0  ;;  %v2350_v13 = vrot.slane %v2364_v6, 11 }
 0x1ad   : > { %v1960_v12 = vrot.slane %v2356_v60, 5  ;;  %v2358_v17 = vpack.c.bf16 %v1940_v26, %v1940_v26  ;;  %v1914_v18 = vmul.f32 %v2828_v63, %v3736_v38  ;;  %v2799_v19 = vpop.f32.mrb[11].mxu0  ;;  %v2829_v22 = vadd.f32 %v1873_v9, %v3731_v34 }
 0x1ae   : > { %v2022_v32 = vsel %vm3778_vm14, %v2346_v4, %v2021_v61  ;;  %v2034_v20 = vrot.slane %v2366_v7, 7  ;;  %v2333_v47 = vrot.slane %v2356_v60, 10 }
 0x1af   : > { %v1961_v16 = vsel %vm3762_vm9, %v2329_v11, %v1960_v12  ;;  %2347 = vst [vmem:[%s3755_s6 + $0x18] sm:$0xf] %v2022_v32  ;;  %v1976_v58 = vrot.slane %v2358_v17, 6  ;;  %v1931_v23 = vadd.f32 %v3741_v8, %v1914_v18  ;;  %v1915_v24 = vmul.f32 %v2829_v22, %v3736_v38 }
 0x1b0   : > { %2330 = vst [vmem:[%s3755_s6 + $0x4] sm:$0xf] %v1961_v16  ;;  %v2035_v3 = vsel %vm3784_vm15, %v2350_v13, %v2034_v20  ;;  %v2337_v5 = vrot.slane %v2358_v17, 11 }
 0x1b1   : > { %v1977_v25 = vsel %vm3778_vm14, %v2333_v47, %v1976_v58  ;;  %2351 = vst [vmem:[%s3755_s6 + $0x1c] sm:$0xf] %v2035_v3  ;;  %v1941_v34 = vmax.f32 %v1931_v23, 0.0  ;;  %v1932_v37 = vadd.f32 %v3741_v8, %v1915_v24 }
 0x1b2   : > { %2334 = vst [vmem:[%s3755_s6 + $0x8] sm:$0xf] %v1977_v25 }
 0x1b3   : > { %v2360_v42 = vpack.c.bf16 %v1941_v34, %v1941_v34  ;;  %v1942_v40 = vmax.f32 %v1932_v37, 0.0 }
 0x1b5   : > { %v1992_v27 = vrot.slane %v2360_v42, 7  ;;  %v1997_v10 = vpack.c.bf16 %v1942_v40, %v1942_v40 }
 0x1b7   : > { %v1993_v53 = vsel %vm3784_vm15, %v2337_v5, %v1992_v27  ;;  %2339 = vst [vmem:[%s3755_s6 + $0x10] sm:$0xf] %v1997_v10 }
 0x1b8   : > { %2338 = vst [vmem:[%s3755_s6 + $0xc] sm:$0xf] %v1993_v53 }
 0x1b9 PF: > { %s14_s15 = sadd.s32 1, %s3082_s15  }
 0x1ba   : > { %p11_p4 = scmp.ge.s32.totalorder %s14_s15, 4  }
 0x1bc   :  { %13 = sbr.rel (!%p11_p4) target bundleno = 1 (0x1), region = 81 }

// kernel: _lambda_.15
= control target key start
LH: loop header
LB: loop body
LE: loop exit
PB: predicated region body
PF: predicated region fallthrough
CT: control target
= control target key end

     0   :  { %s6025_s15 = smov 0   ;;  %s7072_s0 = inlined_call_operand.vmem [shape: bf16[2,342,128], index: 0, kind: input, shape index: {}]   ;;  %s7073_s1 = inlined_call_operand.vmem [shape: bf16[9,128,128], index: 1, kind: input, shape index: {}]   ;;  %s7074_s2 = inlined_call_operand.vmem [shape: f32[1,128], index: 2, kind: input, shape index: {}]   ;;  %s7075_s3 = inlined_call_operand.vmem [shape: f32[1,128], index: 3, kind: input, shape index: {}]   ;;  %s7076_s4 = inlined_call_operand.vmem [shape: bf16[2,16,16,128], index: 4, kind: output, shape index: {}]  }
   0x1 LB: > { %s4372_s16 = sadd.s32 4294967295, %s5998_s15   ;;  %p4376_p0 = scmp.ge.s32.totalorder %s5998_s15, 1  ;;  %s5998_s15 = sphi %s6025_s15, %s14_s15  }
   0x2   : > { %p162_p1 = scmp.lt.s32.totalorder %s5998_s15, 3 }
   0x4   : > { %p163_p2 = pnand %p4376_p0, %p162_p1 }
   0x5   : > { %v5815_v0 = vld [vmem:[%s7073_s1 + $0x40] sm:$0xff] (!%p163_p2)   ;;  %p188_p3 = scmp.lt.s32.totalorder (!%p163_p2), %s4372_s16, 1  ;;  %v5817_v2 = vld [vmem:[%s7073_s1 + $0x48] sm:$0xff] (!%p163_p2)   ;;  %v5819_v4 = vld [vmem:[%s7073_s1 + $0x50] sm:$0xff] (!%p163_p2)   ;;  %vm362_vm0 = vsmask.f32 (!%p163_p2), 7424 }
   0x6   : > { %166 = sbr.rel (%p163_p2) target bundleno = 587 (0x24b), region = 36  ;;  %v5816_v1 = vld [vmem:[%s7073_s1 + $0x100] sm:$0xff] (!%p163_p2)   ;;  %5034 = vmatprep.subr.bf16.mxu1 (!%p163_p2), %v5815_v0  ;;  %v5818_v3 = vld [vmem:[%s7073_s1 + $0x108] sm:$0xff] (!%p163_p2)   ;;  %v5820_v5 = vld [vmem:[%s7073_s1 + $0x110] sm:$0xff] (!%p163_p2)   ;;  %vm1819_vm1 = vsmask.f32 (!%p163_p2), 6400 }
   0x7   : > { %5242 = vmatprep.subr.bf16.mxu0 (!%p163_p2), %v5816_v1  ;;  %5035 = vmatpush3.bf16.msra.mxu1 (!%p163_p2), %v5815_v0  ;;  %v5821_v6 = vld [vmem:[%s7073_s1 + $0x58] sm:$0xff] (!%p163_p2)   ;;  %v5823_v8 = vld [vmem:[%s7073_s1 + $0x60] sm:$0xff] (!%p163_p2)   ;;  %v5825_v10 = vld [vmem:[%s7073_s1 + $0x68] sm:$0xff] (!%p163_p2)   ;;  %vm2290_vm2 = vcmask (!%p163_p2), 1045504   ;;  %vm1018_vm3 = vcmask (!%p163_p2), 1046528   ;;  %vm3562_vm5 = vcmask (!%p163_p2), 1044480  }
   0x8   : > { %5243 = vmatpush3.bf16.msra.mxu0 (!%p163_p2), %v5816_v1  ;;  %5036 = vmatprep.subr.bf16.mxu1 (!%p163_p2), %v5817_v2  ;;  %v5822_v7 = vld [vmem:[%s7073_s1 + $0x118] sm:$0xff] (!%p163_p2)   ;;  %v5824_v9 = vld [vmem:[%s7073_s1 + $0x120] sm:$0xff] (!%p163_p2)   ;;  %v5826_v11 = vld [vmem:[%s7073_s1 + $0x128] sm:$0xff] (!%p163_p2)   ;;  %vm3091_vm4 = vsmask.f32 (!%p163_p2), 5376  ;;  %vm4021_vm6 = vcmask (!%p163_p2), 1042432  }
   0x9   : > { %5244 = vmatprep.subr.bf16.mxu0 (!%p163_p2), %v5818_v3  ;;  %v5827_v17 = vld [vmem:[%s7073_s1 + $0x70] sm:$0xff] (!%p163_p2)   ;;  %v5829_v32 = vld [vmem:[%s7073_s1 + $0x78] sm:$0xff] (!%p163_p2)   ;;  %v5836_v48 = vld [vmem:[%s7073_s1] sm:$0xff] (!%p163_p2)   ;;  %vm4022_vm7 = vcmask (!%p163_p2), 1046532   ;;  %vm4071_vm9 = vcmask (!%p163_p2), 1040384   ;;  %vm4072_vm10 = vcmask (!%p163_p2), 1044484  }
   0xa   : > { %v5828_v20 = vld [vmem:[%s7073_s1 + $0x130] sm:$0xff] (!%p163_p2)   ;;  %v5830_v36 = vld [vmem:[%s7073_s1 + $0x138] sm:$0xff] (!%p163_p2)   ;;  %v5838_v54 = vld [vmem:[%s7073_s1 + $0x140] sm:$0xff] (!%p163_p2)   ;;  %vm4046_vm11 = vcmask (!%p163_p2), 1041408   ;;  %vm4047_vm12 = vcmask (!%p163_p2), 1045508  }
   0xb   : > { %5037 = vmatpush3.bf16.msra.mxu1 (!%p163_p2), %v5817_v2  ;;  %vm6903_vm8 = vmor (!%p163_p2), %vm4021_vm6, %vm4022_vm7 }
   0xc   : > { %5245 = vmatpush3.bf16.msra.mxu0 (!%p163_p2), %v5818_v3  ;;  %5038 = vmatprep.subr.bf16.mxu1 (!%p163_p2), %v5819_v4  ;;  %vm6923_vm13 = vmor (!%p163_p2), %vm4071_vm9, %vm4072_vm10 }
   0xd   : > { %s7084_s16 = smov (!%p188_p3, %s4372_s16), 1  ;;  %5246 = vmatprep.subr.bf16.mxu0 %v5820_v5  ;;  %vm6929_vm14 = vmor %vm4046_vm11, %vm4047_vm12 }
   0xe   : > { %s5806_s7 = smul.u32 172, %s7084_s16  ;;  %s4732_s22 = sshll.u32 %s7084_s16, 7 }
   0xf   : > { %5039 = vmatpush3.bf16.msra.mxu1 %v5819_v4  ;;  %s6899_s25 = scalar_lea.vmem %s7076_s4, %s4732_s22 }
  0x10   : > { %5247 = vmatpush3.bf16.msra.mxu0 %v5820_v5  ;;  %5040 = vmatprep.subr.bf16.mxu1 %v5821_v6  ;;  %s6069_s14 = scalar_lea.vmem %s7072_s0, %s5806_s7 }
  0x11   : > { %5248 = vmatprep.subr.bf16.mxu0 %v5822_v7  ;;  %v199_v12 = vld [vmem:[%s6069_s14] sm:$0xf]  ;;  %v200_v13 = vld [vmem:[%s6069_s14 + $0x4] sm:$0xf]  ;;  %v6082_v15 = vld [vmem:[%s6069_s14 + $0x8] sm:$0xff]  }
  0x12   : > { %v6079_v14 = vcombine.low %v199_v12, %v200_v13  ;;  %v6085_v16 = vld [vmem:[%s6069_s14 + $0x10] sm:$0xff]   ;;  %v1335_v18 = vld [vmem:[%s6069_s14 + $0x8] sm:$0xe]  ;;  %v6092_v19 = vld [vmem:[%s6069_s14 + $0xc] sm:$0xf]  ;;  %v371_v23 = vshll.u32 %v6082_v15, 16 }
  0x13   : > { %5041 = vmatpush3.bf16.msra.mxu1 %v5821_v6  ;;  %v6101_v24 = vcombine.low %v1335_v18, %v6092_v19  ;;  %v6104_v25 = vld [vmem:[%s6069_s14 + $0x10] sm:$0xff]   ;;  %v1829_v26 = vshrl.u32 %v6085_v16, 16  ;;  %v1832_v27 = vshll.u32 %v6085_v16, 16  ;;  %v375_v40 = vshrl.u32 %v6082_v15, 16  ;;  %v6119_v41 = vld [vmem:[%s6069_s14 + $0x18] sm:$0xff]   ;;  %v6136_v57 = vld [vmem:[%s6069_s14 + $0x20] sm:$0xff]  }
  0x14   : > { %5249 = vmatpush3.bf16.msra.mxu0 %v5822_v7  ;;  %5042 = vmatprep.subr.bf16.mxu1 %v5823_v8  ;;  %v364_v21 = vshrl.u32 %v6079_v14, 16  ;;  %v366_v22 = vshll.u32 %v6079_v14, 16  ;;  %v373_v29 = vrot.slane %v371_v23, 1  ;;  %v379_v35 = vshll.u32 %v6104_v25, 16  ;;  %v6133_v55 = vld [vmem:[%s6069_s14 + $0x18] sm:$0xff]   ;;  %v6140_v60 = vld [vmem:[%s6069_s14 + $0x20] sm:$0xff]  }
  0x15   : > { %5250 = vmatprep.subr.bf16.mxu0 %v5824_v9  ;;  %v1821_v30 = vshrl.u32 %v6101_v24, 16  ;;  %v1824_v31 = vshll.u32 %v6101_v24, 16  ;;  %v1831_v33 = vrot.slane %v1829_v26, 1  ;;  %v1834_v34 = vrot.slane %v1832_v27, 2  ;;  %v6144_v62 = vld [vmem:[%s6069_s14 + $0x28] sm:$0xff]  }
  0x16   : > { %v368_v28 = vrot.slane %v366_v22, 1  ;;  %v1838_v45 = vshrl.u32 %v6119_v41, 16  ;;  %v1841_v46 = vshll.u32 %v6119_v41, 16  ;;  %v381_v47 = vrot.slane %v379_v35, 1  ;;  %v5839_v7 = vld [vmem:[%s7073_s1 + $0x148] sm:$0xff]  }
  0x17   : > { %5043 = vmatpush3.bf16.msra.mxu1 %v5823_v8  ;;  %v1823_v38 = vrot.slane %v1821_v30, 1  ;;  %v1826_v39 = vrot.slane %v1824_v31, 2  ;;  %v1835_v42 = vor.u32 %v1834_v34, %v1831_v33  ;;  %v383_v49 = vshrl.u32 %v6104_v25, 16  ;;  %v6164_v22 = vld [vmem:[%s6069_s14 + $0x28] sm:$0xff]   ;;  %v6173_v31 = vld [vmem:[%s6069_s14 + $0x30] sm:$0xff]   ;;  %v6177_v33 = vld [vmem:[%s6069_s14 + $0x38] sm:$0xff]  }
  0x18   : > { %5251 = vmatpush3.bf16.msra.mxu0 %v5824_v9  ;;  %5044 = vmatprep.subr.bf16.mxu1 %v5825_v10  ;;  %v369_v37 = vor.u32 %v368_v28, %v364_v21  ;;  %v377_v51 = vor.u32 %v375_v40, %v373_v29  ;;  %v1840_v52 = vrot.slane %v1838_v45, 1  ;;  %v1843_v53 = vrot.slane %v1841_v46, 2  ;;  %v5844_v21 = vld [vmem:[%s7073_s1 + $0x150] sm:$0xff]  }
  0x19   : > { %5252 = vmatprep.subr.bf16.mxu0 %v5826_v11  ;;  %v1827_v44 = vor.u32 %v1826_v39, %v1823_v38  ;;  %v385_v58 = vor.u32 %v383_v49, %v381_v47  ;;  %v387_v59 = vshll.u32 %v6133_v55, 16  ;;  %v391_v61 = vshrl.u32 %v6133_v55, 16  ;;  %v6169_v28 = vld [vmem:[%s6069_s14 + $0x30] sm:$0xff]  }
  0x1a   : > { %v374_v43 = vsel %vm362_vm0, %v369_v37, %v373_v29  ;;  %v1844_v56 = vor.u32 %v1843_v53, %v1840_v52  ;;  %v382_v63 = vsel %vm362_vm0, %v377_v51, %v381_v47  ;;  %v1847_v1 = vshrl.u32 %v6136_v57, 16  ;;  %v5852_v46 = vld [vmem:[%s7073_s1 + $0x10] sm:$0xff]   ;;  %v5851_v53 = vld [vmem:[%s7073_s1 + $0x160] sm:$0xff]  }
  0x1b   : > { %5045 = vmatpush3.bf16.msra.mxu1 %v5825_v10  ;;  %5050 = vmatprep.mubr.bf16.mxu1 %v374_v43  ;;  %v1836_v50 = vsel %vm1819_vm1, %v1827_v44, %v1835_v42  ;;  %v1850_v2 = vshll.u32 %v6136_v57, 16  ;;  %v389_v3 = vrot.slane %v387_v59, 1  ;;  %v395_v4 = vshll.u32 %v6140_v60, 16  ;;  %v5845_v10 = vld [vmem:[%s7073_s1 + $0x8] sm:$0xff]   ;;  %v5846_v43 = vld [vmem:[%s7073_s1 + $0x158] sm:$0xff]  }
  0x1c   : > { %5253 = vmatpush3.bf16.msra.mxu0 %v5826_v11  ;;  %5046 = vmatprep.subr.bf16.mxu1 %v5827_v17  ;;  %v1845_v0 = vsel %vm1819_vm1, %v1835_v42, %v1844_v56  ;;  %v1856_v5 = vshrl.u32 %v6144_v62, 16  ;;  %v1859_v6 = vshll.u32 %v6144_v62, 16  ;;  %v1849_v8 = vrot.slane %v1847_v1, 1  ;;  %v6206_v1 = vld [vmem:[%s6069_s14 + $0x40] sm:$0xff]  }
  0x1d   : > { %5254 = vmatprep.subr.bf16.mxu0 %v5828_v20  ;;  %5258 = vmatprep.mubr.bf16.mxu0 %v1836_v50  ;;  %v1852_v9 = vrot.slane %v1850_v2, 2  ;;  %v390_v11 = vsel %vm362_vm0, %v385_v58, %v389_v3  ;;  %v397_v18 = vrot.slane %v395_v4, 1  ;;  %v399_v23 = vshrl.u32 %v6140_v60, 16 }
  0x1e   : > { %v1858_v12 = vrot.slane %v1856_v5, 1  ;;  %v403_v30 = vshll.u32 %v6164_v22, 16  ;;  %v1868_v37 = vshll.u32 %v6169_v28, 16  ;;  %v411_v39 = vshll.u32 %v6173_v31, 16 }
  0x1f   : > { %5047 = vmatpush3.bf16.msra.mxu1 %v5827_v17  ;;  %v1853_v13 = vor.u32 %v1852_v9, %v1849_v8  ;;  %v393_v17 = vor.u32 %v391_v61, %v389_v3  ;;  %v401_v29 = vor.u32 %v399_v23, %v397_v18  ;;  %v1874_v40 = vshrl.u32 %v6177_v33, 16  ;;  %v6202_v61 = vld [vmem:[%s6069_s14 + $0x40] sm:$0xff]   ;;  %v5853_v3 = vld [vmem:[%s7073_s1 + $0x168] sm:$0xff]  }
  0x20   : > { %5255 = vmatpush3.bf16.msra.mxu0 %v5828_v20  ;;  %5048 = vmatprep.subr.bf16.mxu1 %v5829_v32  ;;  %v1861_v20 = vrot.slane %v1859_v6, 2  ;;  %v405_v38 = vrot.slane %v403_v30, 1  ;;  %v1877_v42 = vshll.u32 %v6177_v33, 16  ;;  %v1870_v45 = vrot.slane %v1868_v37, 2  ;;  %v5859_v30 = vld [vmem:[%s7073_s1 + $0x18] sm:$0xff]  }
  0x21   : > { %5256 = vmatprep.subr.bf16.mxu0 %v5830_v36  ;;  %v1854_v26 = vsel %vm1819_vm1, %v1844_v56, %v1853_v13  ;;  %v398_v34 = vsel %vm362_vm0, %v393_v17, %v397_v18  ;;  %v413_v51 = vrot.slane %v411_v39, 1  ;;  %v415_v56 = vshrl.u32 %v6173_v31, 16  ;;  %v2269_v37 = vld [vmem:[%s6069_s14 + $0x8] sm:$0xc] }
  0x22   : > { %v1862_v27 = vor.u32 %v1861_v20, %v1858_v12  ;;  %v406_v47 = vsel %vm362_vm0, %v401_v29, %v405_v38  ;;  %v1879_v52 = vrot.slane %v1877_v42, 2  ;;  %v1883_v4 = vshrl.u32 %v6202_v61, 16  ;;  %v5858_v29 = vld [vmem:[%s7073_s1 + $0x170] sm:$0xff]  }
  0x23   : > { %5049 = vmatpush3.bf16.msra.mxu1 %v5829_v32  ;;  %v407_v32 = vshrl.u32 %v6164_v22, 16  ;;  %v1886_v5 = vshll.u32 %v6202_v61, 16  ;;  %v2292_v39 = vrot.slane %v6085_v16, 2 }
  0x24   : > { %5257 = vmatpush3.bf16.msra.mxu0 %v5830_v36  ;;  %5086 = vmatprep.subr.bf16.mxu1 %v5836_v48  ;;  %v1863_v35 = vsel %vm1819_vm1, %v1853_v13, %v1862_v27  ;;  %v1865_v36 = vshrl.u32 %v6169_v28, 16 }
  0x25   : > { %5294 = vmatprep.subr.bf16.mxu0 %v5838_v54  ;;  %v409_v50 = vor.u32 %v407_v32, %v405_v38  ;;  %v1888_v12 = vrot.slane %v1886_v5, 2  ;;  %v4540_v38 = vcombine.low %v2269_v37, %v6092_v19  ;;  %v2296_v5 = vrot.slane %v6136_v57, 2  ;;  %v5875_v37 = vld [vmem:[%s7073_s1 + $0x190] sm:$0xff]  }
  0x26   : > { %5051 = vmatmul.mubr.bf16.vlgmr.msra.gmra.mrb[0].mxu1 %v382_v63  ;;  %v1867_v44 = vrot.slane %v1865_v36, 1  ;;  %v417_v63 = vor.u32 %v415_v56, %v413_v51  ;;  %v431_v36 = vshrl.u32 %v6206_v1, 16 }
  0x27   : > { %5259 = vmatmul.mubr.bf16.vlgmr.msra.gmra.mrb[0].mxu0 %v1845_v0  ;;  %5087 = vmatpush3.bf16.msra.mxu1 %v5836_v48  ;;  %v1876_v48 = vrot.slane %v1874_v40, 1  ;;  %v414_v2 = vsel %vm362_vm0, %v409_v50, %v413_v51  ;;  %v6240_v40 = vld [vmem:[%s6069_s14 + $0x50] sm:$0xff]   ;;  %v2291_v19 = vrot.slane %v4540_v38, 2 }
  0x28   : > { %5295 = vmatpush3.bf16.msra.mxu0 %v5838_v54  ;;  %5054 = vmatprep.mubr.bf16.mxu1 %v390_v11  ;;  %v1871_v49 = vor.u32 %v1870_v45, %v1867_v44  ;;  %v6197_v54 = vld [vmem:[%s6069_s14 + $0x38] sm:$0xff]   ;;  %v1885_v11 = vrot.slane %v1883_v4, 1  ;;  %v447_v51 = vshrl.u32 %v6240_v40, 16 }
  0x29   : > { %5296 = vmatprep.subr.bf16.mxu0 %v5839_v7  ;;  %5088 = vmatprep.subr.bf16.mxu1 %v5845_v10  ;;  %v1880_v59 = vor.u32 %v1879_v52, %v1876_v48  ;;  %v419_v0 = vshll.u32 %v6197_v54, 16  ;;  %v423_v6 = vshrl.u32 %v6197_v54, 16  ;;  %v443_v48 = vshll.u32 %v6240_v40, 16 }
  0x2a   : > { %5262 = vmatprep.mubr.bf16.mxu0 %v1854_v26  ;;  %v1872_v58 = vsel %vm1819_vm1, %v1862_v27, %v1871_v49 }
  0x2b   : > { %5089 = vmatpush3.bf16.msra.mxu1 %v5845_v10  ;;  %v1881_v8 = vsel %vm1819_vm1, %v1871_v49, %v1880_v59  ;;  %v421_v9 = vrot.slane %v419_v0, 1  ;;  %v427_v10 = vshll.u32 %v6206_v1, 16  ;;  %v5860_v49 = vld [vmem:[%s7073_s1 + $0x178] sm:$0xff]   ;;  %v445_v56 = vrot.slane %v443_v48, 1 }
  0x2c   : > { %5297 = vmatpush3.bf16.msra.mxu0 %v5839_v7  ;;  %5090 = vmatprep.subr.bf16.mxu1 %v5852_v46  ;;  %v6216_v7 = vld [vmem:[%s6069_s14 + $0x48] sm:$0xff]   ;;  %v2294_v0 = vrot.slane %v6119_v41, 2  ;;  %v5881_v48 = vld [vmem:[%s7073_s1 + $0x198] sm:$0xff]  }
  0x2d   : > { %5298 = vmatprep.subr.bf16.mxu0 %v5844_v21  ;;  %v1892_v13 = vshrl.u32 %v6216_v7, 16  ;;  %v1895_v17 = vshll.u32 %v6216_v7, 16  ;;  %v422_v18 = vsel %vm362_vm0, %v417_v63, %v421_v9  ;;  %v429_v20 = vrot.slane %v427_v10, 1 }
  0x2e   : > { %5055 = vmatmul.mubr.bf16.gmra.mrb[4].mxu1 %v398_v34  ;;  %v425_v23 = vor.u32 %v423_v6, %v421_v9  ;;  %v449_v4 = vor.u32 %v447_v51, %v445_v56  ;;  %v5867_v6 = vld [vmem:[%s7073_s1 + $0x180] sm:$0xff]   ;;  %v2295_v57 = vsel %vm2290_vm2, %v2292_v39, %v2294_v0 }
  0x2f   : > { %5263 = vmatmul.mubr.bf16.gmra.mrb[4].mxu0 %v1863_v35  ;;  %5058 = vmatprep.mubr.bf16.mxu1 %v406_v47  ;;  %v1894_v26 = vrot.slane %v1892_v13, 1  ;;  %v1897_v27 = vrot.slane %v1895_v17, 2  ;;  %v6233_v35 = vld [vmem:[%s6069_s14 + $0x48] sm:$0xff]   ;;  %v6249_v47 = vld [vmem:[%s6069_s14 + $0x58] sm:$0xff]   ;;  %v5872_v17 = vld [vmem:[%s7073_s1 + $0x30] sm:$0xff]  }
  0x30   : > { %5299 = vmatpush3.bf16.msra.mxu0 %v5844_v21  ;;  %5091 = vmatpush3.bf16.msra.mxu1 %v5852_v46  ;;  %v1889_v21 = vor.u32 %v1888_v12, %v1885_v11  ;;  %v430_v42 = vsel %vm362_vm0, %v425_v23, %v429_v20  ;;  %v435_v44 = vshll.u32 %v6233_v35, 16  ;;  %v439_v45 = vshrl.u32 %v6233_v35, 16  ;;  %v5864_v46 = vld [vmem:[%s7073_s1 + $0x20] sm:$0xff]   ;;  %v6290_v23 = vld [vmem:[%s6069_s14 + $0x70] sm:$0xff]  }
  0x31   : > { %5300 = vmatprep.subr.bf16.mxu0 %v5846_v43  ;;  %5266 = vmatprep.mubr.bf16.mxu0 %v1872_v58  ;;  %v6230_v34 = vor.u32 %v1897_v27, %v1894_v26  ;;  %v451_v52 = vshll.u32 %v6249_v47, 16  ;;  %v6261_v58 = vld [vmem:[%s6069_s14 + $0x60] sm:$0xff]   ;;  %v455_v10 = vshrl.u32 %v6249_v47, 16  ;;  %v2298_v27 = vrot.slane %v6144_v62, 2 }
  0x32   : > { %v1890_v32 = vsel %vm1819_vm1, %v1880_v59, %v1889_v21  ;;  %5092 = vmatprep.subr.bf16.mxu1 %v5859_v30  ;;  %v437_v50 = vrot.slane %v435_v44, 1  ;;  %v459_v41 = vshll.u32 %v6261_v58, 16  ;;  %v463_v11 = vshrl.u32 %v6261_v58, 16 }
  0x33   : > { %v1899_v16 = vsel %vm1819_vm1, %v1889_v21, %v6230_v34  ;;  %v475_v38 = vshll.u32 %v6290_v23, 16  ;;  %v479_v44 = vshrl.u32 %v6290_v23, 16 }
  0x34   : > { %5301 = vmatpush3.bf16.msra.mxu0 %v5846_v43  ;;  %5093 = vmatpush3.bf16.msra.mxu1 %v5859_v30  ;;  %v433_v43 = vor.u32 %v431_v36, %v429_v20  ;;  %v441_v63 = vor.u32 %v439_v45, %v437_v50  ;;  %v5871_v20 = vld [vmem:[%s7073_s1 + $0x188] sm:$0xff]   ;;  %v461_v21 = vrot.slane %v459_v41, 1  ;;  %v2300_v36 = vrot.slane %v6169_v28, 2  ;;  %v5878_v41 = vld [vmem:[%s6069_s14 + $0x50] sm:$0xff]  }
  0x35   : > { %5302 = vmatprep.subr.bf16.mxu0 %v5851_v53  ;;  %5094 = vmatprep.subr.bf16.mxu1 %v5864_v46 }
  0x36   : > { %5059 = vmatmul.mubr.bf16.gmra.mrb[8].mxu1 %v414_v2  ;;  %v438_v59 = vsel %vm362_vm0, %v433_v43, %v437_v50  ;;  %v453_v2 = vrot.slane %v451_v52, 1  ;;  %v446_v9 = vsel %vm362_vm0, %v441_v63, %v445_v56  ;;  %v2299_v43 = vsel %vm2290_vm2, %v2296_v5, %v2298_v27 }
  0x37   : > { %5267 = vmatmul.mubr.bf16.gmra.mrb[8].mxu0 %v1881_v8  ;;  %5062 = vmatprep.mubr.bf16.mxu1 %v422_v18  ;;  %v6273_v8 = vld [vmem:[%s6069_s14 + $0x68] sm:$0xff]   ;;  %v2297_v18 = vsel %vm2290_vm2, %v2294_v0, %v2296_v5  ;;  %v2302_v50 = vrot.slane %v6177_v33, 2  ;;  %v2304_v56 = vrot.slane %v6202_v61, 2  ;;  %v5885_v61 = vld [vmem:[%s7073_s1 + $0x1a0] sm:$0xff]  }
  0x38   : > { %5303 = vmatpush3.bf16.msra.mxu0 %v5851_v53  ;;  %5270 = vmatprep.mubr.bf16.mxu0 %v1890_v32  ;;  %v2293_v53 = vsel %vm2290_vm2, %v2291_v19, %v2292_v39  ;;  %v454_v12 = vsel %vm362_vm0, %v449_v4, %v453_v2  ;;  %v467_v13 = vshll.u32 %v6273_v8, 16  ;;  %v457_v26 = vor.u32 %v455_v10, %v453_v2  ;;  %v6294_v32 = vld [vmem:[%s6069_s14 + $0x78] sm:$0xff]  }
  0x39   : > { %5304 = vmatprep.subr.bf16.mxu0 %v5853_v3  ;;  %5095 = vmatpush3.bf16.msra.mxu1 %v5864_v46  ;;  %v471_v62 = vshrl.u32 %v6273_v8, 16  ;;  %v483_v45 = vshll.u32 %v6294_v32, 16  ;;  %v2301_v46 = vsel %vm2290_vm2, %v2298_v27, %v2300_v36  ;;  %v477_v19 = vrot.slane %v475_v38, 1  ;;  %v5893_v27 = vld [vmem:[%s7073_s1 + $0x1b0] sm:$0xff]  }
  0x3a   : > { %v469_v30 = vrot.slane %v467_v13, 1  ;;  %v462_v39 = vsel %vm362_vm0, %v457_v26, %v461_v21  ;;  %v487_v0 = vshrl.u32 %v6294_v32, 16  ;;  %v2303_v2 = vsel %vm2290_vm2, %v2300_v36, %v2302_v50 }
  0x3b   : > { %v481_v51 = vor.u32 %v479_v44, %v477_v19  ;;  %v485_v52 = vrot.slane %v483_v45, 1  ;;  %v5884_v45 = vld [vmem:[%s6069_s14 + $0x68] sm:$0xff]  }
  0x3c   : > { %5305 = vmatpush3.bf16.msra.mxu0 %v5853_v3  ;;  %v5868_v3 = vld [vmem:[%s7073_s1 + $0x28] sm:$0xff]  }
  0x3d   : > { %5306 = vmatprep.subr.bf16.mxu0 %v5858_v29  ;;  %5096 = vmatprep.subr.bf16.mxu1 %v5868_v3 }
  0x3e   : > { %5063 = vmatmul.mubr.bf16.gmra.mrb[12].mxu1 %v430_v42  ;;  %v5877_v42 = vld [vmem:[%s7073_s1 + $0x38] sm:$0xff]  }
  0x3f   : > { %5271 = vmatmul.mubr.bf16.gmra.mrb[12].mxu0 %v1899_v16  ;;  %5066 = vmatprep.mubr.bf16.mxu1 %v438_v59  ;;  %v6312_v16 = vld [vmem:[%s6069_s14 + $0x80] sm:$0xff]  }
  0x40   : > { %5307 = vmatpush3.bf16.msra.mxu0 %v5858_v29  ;;  %5310 = vmatprep.mubr.bf16.mxu0 %v2293_v53  ;;  %v465_v29 = vor.u32 %v463_v11, %v461_v21  ;;  %v6319_v53 = vld [vmem:[%s6069_s14 + $0x88] sm:$0xff]   ;;  %v6325_v59 = vld [vmem:[%s7073_s1 + $0x80] sm:$0xff]   ;;  %v491_v63 = vshll.u32 %v6312_v16, 16  ;;  %v495_v4 = vshrl.u32 %v6312_v16, 16  ;;  %v489_v11 = vor.u32 %v487_v0, %v485_v52  ;;  %v5892_v0 = vld [vmem:[%s7073_s1 + $0x90] sm:$0xff]  }
  0x41   : > { %5308 = vmatprep.subr.bf16.mxu0 %v5860_v49  ;;  %5097 = vmatpush3.bf16.msra.mxu1 %v5868_v3  ;;  %v486_v3 = vsel %vm362_vm0, %v481_v51, %v485_v52  ;;  %v499_v5 = vshll.u32 %v6319_v53, 16  ;;  %v5887_v51 = vld [vmem:[%s6069_s14 + $0x78] sm:$0xff]  }
  0x42   : > { %5098 = vmatprep.subr.bf16.mxu1 %v5872_v17  ;;  %v470_v28 = vsel %vm362_vm0, %v465_v29, %v469_v30  ;;  %v493_v10 = vrot.slane %v491_v63, 1 }
  0x44   : > { %5309 = vmatpush3.bf16.msra.mxu0 %v5860_v49  ;;  %v473_v49 = vor.u32 %v471_v62, %v469_v30  ;;  %v497_v13 = vor.u32 %v495_v4, %v493_v10  ;;  %v494_v21 = vsel %vm362_vm0, %v489_v11, %v493_v10  ;;  %v5897_v62 = vld [vmem:[%s7073_s1 + $0x1b8] sm:$0xff]   ;;  %v5901_v10 = vld [vmem:[%s7073_s1 + $0xa0] sm:$0xff]  }
  0x45   : > { %5346 = vmatprep.subr.bf16.mxu0 %v5867_v6  ;;  %5099 = vmatpush3.bf16.msra.mxu1 %v5872_v17  ;;  %v501_v17 = vrot.slane %v499_v5, 1  ;;  %v5896_v4 = vld [vmem:[%s7073_s1 + $0x98] sm:$0xff]   ;;  %v2607_v5 = vld [vmem:[%s6069_s14 + $0x10] sm:$0xc] }
  0x46   : > { %5067 = vmatmul.mubr.bf16.gmra.mrb[16].mxu1 %v446_v9  ;;  %5100 = vmatprep.subr.bf16.mxu1 %v5877_v42  ;;  %v478_v33 = vsel %vm362_vm0, %v473_v49, %v477_v19  ;;  %v6341_v9 = vld [vmem:[%s6069_s14 + $0x90] ss:$0 sps:$4 sm:$0x11]   ;;  %v2314_v49 = vrot.slane %v5884_v45, 2  ;;  %v5916_v45 = vld [vmem:[%s7073_s1 + $0x1d8] sm:$0xff]  }
  0x47   : > { %5311 = vmatmul.mubr.bf16.vlgmr.msra.gmra.mrb[0].mxu0 %v2295_v57  ;;  %5070 = vmatprep.mubr.bf16.mxu1 %v454_v12  ;;  %v5889_v57 = vld [vmem:[%s7073_s1 + $0x1a8] sm:$0xff]   ;;  %v2306_v12 = vrot.slane %v6216_v7, 2  ;;  %v507_v26 = vshll.u32 %v6341_v9, 16  ;;  %v502_v30 = vsel %vm362_vm0, %v497_v13, %v501_v17  ;;  %v5880_v7 = vld [vmem:[%s6069_s14 + $0x58] sm:$0xff]   ;;  %v5886_v19 = vld [vmem:[%s6069_s14 + $0x70] sm:$0xff]  }
  0x48   : > { %5314 = vmatprep.mubr.bf16.mxu0 %v2297_v18  ;;  %5347 = vmatpush3.bf16.msra.mxu0 %v5867_v6  ;;  %v2305_v6 = vsel %vm2290_vm2, %v2302_v50, %v2304_v56  ;;  %v2308_v18 = vrot.slane %v5878_v41, 2  ;;  %v2316_v50 = vrot.slane %v5886_v19, 2  ;;  %v5895_v11 = vld [vmem:[%s6069_s14 + $0x98] ss:$0 sps:$4 sm:$0x33]   ;;  %v5905_v13 = vld [vmem:[%s7073_s1 + $0xa8] sm:$0xff]  }
  0x49   : > { %5348 = vmatprep.subr.bf16.mxu0 %v5871_v20  ;;  %5101 = vmatpush3.bf16.msra.mxu1 %v5877_v42  ;;  %v2307_v29 = vsel %vm2290_vm2, %v2304_v56, %v2306_v12  ;;  %v2310_v42 = vrot.slane %v5880_v7, 2  ;;  %v5888_v56 = vld [vmem:[%s7073_s1 + $0x88] sm:$0xff]  }
  0x4a   : > { %5138 = vmatprep.subr.bf16.mxu1 %v6325_v59  ;;  %v2309_v36 = vsel %vm2290_vm2, %v2306_v12, %v2308_v18  ;;  %v2317_v63 = vsel %vm2290_vm2, %v2314_v49, %v2316_v50 }
  0x4b   : > { %v2311_v44 = vsel %vm2290_vm2, %v2308_v18, %v2310_v42 }
  0x4c   : > { %5349 = vmatpush3.bf16.msra.mxu0 %v5871_v20  ;;  %v503_v20 = vshrl.u32 %v6319_v53, 16 }
  0x4d   : > { %5350 = vmatprep.subr.bf16.mxu0 %v5875_v37 }
  0x4e   : > { %5071 = vmatmul.mubr.bf16.gmra.mrb[20].mxu1 %v462_v39  ;;  %v505_v38 = vor.u32 %v503_v20, %v501_v17  ;;  %v509_v39 = vrot.slane %v507_v26, 1  ;;  %v2326_v17 = vrot.slane %v5895_v11, 2 }
  0x4f   : > { %5315 = vmatmul.mubr.bf16.gmra.mrb[4].mxu0 %v2299_v43  ;;  %5074 = vmatprep.mubr.bf16.mxu1 %v470_v28 }
  0x50   : > { %5318 = vmatprep.mubr.bf16.mxu0 %v2301_v46  ;;  %5351 = vmatpush3.bf16.msra.mxu0 %v5875_v37  ;;  %v5882_v37 = vld [vmem:[%s6069_s14 + $0x60] sm:$0xff]   ;;  %v510_v28 = vsel %vm362_vm0, %v505_v38, %v509_v39  ;;  %v6443_v38 = vld [vmem:[%s6069_s14 + $0x30] sm:$0xff]   ;;  %v5908_v39 = vld [vmem:[%s7073_s1 + $0x1c8] sm:$0xff]  }
  0x51   : > { %5352 = vmatprep.subr.bf16.mxu0 %v5881_v48  ;;  %v2312_v43 = vrot.slane %v5882_v37, 2 }
  0x53   : > { %v2313_v46 = vsel %vm2290_vm2, %v2310_v42, %v2312_v43  ;;  %v2315_v52 = vsel %vm2290_vm2, %v2312_v43, %v2314_v49  ;;  %v5912_v43 = vld [vmem:[%s7073_s1 + $0x1d0] sm:$0xff]  }
  0x54   : > { %5353 = vmatpush3.bf16.msra.mxu0 %v5881_v48  ;;  %v6369_v48 = vld [vmem:[%s7073_s1 + $0x1c0] sm:$0xff]  }
  0x55   : > { %5354 = vmatprep.subr.bf16.mxu0 %v5885_v61 }
  0x56   : > { %5075 = vmatmul.mubr.bf16.gmra.mrb[24].mxu1 %v478_v33  ;;  %v5890_v33 = vld [vmem:[%s6069_s14 + $0x80] sm:$0xff]  }
  0x57   : > { %5319 = vmatmul.mubr.bf16.gmra.mrb[8].mxu0 %v2303_v2  ;;  %5078 = vmatprep.mubr.bf16.mxu1 %v486_v3  ;;  %v5891_v2 = vld [vmem:[%s6069_s14 + $0x88] sm:$0xff]  }
  0x58   : > { %5322 = vmatprep.mubr.bf16.mxu0 %v2305_v6  ;;  %5355 = vmatpush3.bf16.msra.mxu0 %v5885_v61  ;;  %v2320_v61 = vrot.slane %v5890_v33, 2  ;;  %v6397_v6 = vld [vmem:[%s6069_s14 + $0x14] sm:$0xf] }
  0x59   : > { %5356 = vmatprep.subr.bf16.mxu0 %v5889_v57  ;;  %v5929_v33 = vld [vmem:[%s7073_s1 + $0x1f0] sm:$0xff]  }
  0x5c   : > { %5357 = vmatpush3.bf16.msra.mxu0 %v5889_v57 }
  0x5d   : > { %5358 = vmatprep.subr.bf16.mxu0 %v5893_v27 }
  0x5e   : > { %5079 = vmatmul.mubr.bf16.gmra.mrb[28].mxu1 %v494_v21  ;;  %v5909_v21 = vld [vmem:[%s7073_s1 + $0xb0] sm:$0xff]  }
  0x5f   : > { %5323 = vmatmul.mubr.bf16.gmra.mrb[12].mxu0 %v2307_v29  ;;  %5082 = vmatprep.mubr.bf16.mxu1 %v502_v30  ;;  %v5913_v29 = vld [vmem:[%s7073_s1 + $0xb8] sm:$0xff]  }
  0x60   : > { %5326 = vmatprep.mubr.bf16.mxu0 %v2309_v36  ;;  %5359 = vmatpush3.bf16.msra.mxu0 %v5893_v27  ;;  %v6423_v27 = vld [vmem:[%s6069_s14 + $0x20] sm:$0xff]  }
  0x61   : > { %5360 = vmatprep.subr.bf16.mxu0 %v5897_v62  ;;  %v2757_v30 = vrot.slane %v6423_v27, 2  ;;  %v6439_v36 = vld [vmem:[%s7073_s1 + $0xc0] sm:$0xff]  }
  0x64   : > { %5361 = vmatpush3.bf16.msra.mxu0 %v5897_v62  ;;  %v2761_v62 = vrot.slane %v6443_v38, 2 }
  0x65   : > { %5398 = vmatprep.subr.bf16.mxu0 %v6369_v48 }
  0x66   : > { %5083 = vmatmul.mubr.bf16.gmra.mrb[32].mxu1 %v510_v28 }
  0x67   : > { %5327 = vmatmul.mubr.bf16.gmra.mrb[16].mxu0 %v2311_v44  ;;  %5102 = vmatprep.mubr.bf16.mxu1 %v6079_v14  ;;  %v2318_v14 = vrot.slane %v5887_v51, 2  ;;  %v6463_v44 = vld [vmem:[%s6069_s14 + $0x40] sm:$0xff]   ;;  %v5925_v51 = vld [vmem:[%s7073_s1 + $0x1e8] sm:$0xff]  }
  0x68   : > { %5330 = vmatprep.mubr.bf16.mxu0 %v2313_v46  ;;  %v2765_v46 = vrot.slane %v6463_v44, 2 }
  0x69   : > { %v2319_v3 = vsel %vm2290_vm2, %v2316_v50, %v2318_v14  ;;  %v6481_v50 = vld [vmem:[%s6069_s14 + $0x50] sm:$0xff]  }
  0x6e   : > { %5103 = vmatmul.mubr.bf16.vlgmr.msra.gmra.mrb[0].mxu1 %v6082_v15  ;;  %v2321_v15 = vsel %vm2290_vm2, %v2318_v14, %v2320_v61 }
  0x6f   : > { %5331 = vmatmul.mubr.bf16.gmra.mrb[20].mxu0 %v2315_v52  ;;  %5139 = vmatpush3.bf16.msra.mxu1 %v6325_v59  ;;  %v2322_v59 = vrot.slane %v5891_v2, 2  ;;  %v2769_v52 = vrot.slane %v6481_v50, 2  ;;  %v6505_v2 = vld [vmem:[%s6069_s14 + $0x68] sm:$0xff]  }
  0x70   : > { %5106 = vmatprep.mubr.bf16.mxu1 %v6104_v25  ;;  %5334 = vmatprep.mubr.bf16.mxu0 %v2317_v63  ;;  %v5894_v25 = vld [vmem:[%s6069_s14 + $0x90] sm:$0xff]   ;;  %v997_v63 = vld [vmem:[%s6069_s14] sm:$0xe] }
  0x71   : > { %5140 = vmatprep.subr.bf16.mxu1 %v5888_v56  ;;  %v2324_v41 = vrot.slane %v5894_v25, 2  ;;  %v2323_v57 = vsel %vm2290_vm2, %v2320_v61, %v2322_v59  ;;  %v5950_v25 = vld [vmem:[%s6069_s14 + $0x8] sm:$0xff]  }
  0x73   : > { %5141 = vmatpush3.bf16.msra.mxu1 %v5888_v56  ;;  %v2325_v12 = vsel %vm2290_vm2, %v2322_v59, %v2324_v41  ;;  %v2327_v26 = vsel %vm2290_vm2, %v2324_v41, %v2326_v17 }
  0x74   : > { %5142 = vmatprep.subr.bf16.mxu1 %v5892_v0 }
  0x76   : > { %5107 = vmatmul.mubr.bf16.gmra.mrb[4].mxu1 %v6133_v55  ;;  %v6405_v55 = vcombine.low %v2607_v5, %v6397_v6  ;;  %v2775_v5 = vrot.slane %v6505_v2, 2 }
  0x77   : > { %5335 = vmatmul.mubr.bf16.gmra.mrb[24].mxu0 %v2319_v3  ;;  %5110 = vmatprep.mubr.bf16.mxu1 %v6140_v60  ;;  %v6408_v60 = vld [vmem:[%s6069_s14 + $0x18] sm:$0xff]  }
  0x78   : > { %5338 = vmatprep.mubr.bf16.mxu0 %v2321_v15  ;;  %5143 = vmatpush3.bf16.msra.mxu1 %v5892_v0  ;;  %v2754_v18 = vrot.slane %v6405_v55, 2  ;;  %v2755_v20 = vrot.slane %v6408_v60, 2  ;;  %v5949_v0 = vld [vmem:[%s6069_s14 + $0x4] sm:$0xf]  ;;  %v5933_v3 = vld [vmem:[%s7073_s1 + $0x1f8] sm:$0xff]  }
  0x79   : > { %5144 = vmatprep.subr.bf16.mxu1 %v5896_v4  ;;  %v4447_v61 = vcombine.low %v997_v63, %v5949_v0  ;;  %v3093_v0 = vshrl.u32 %v6405_v55, 16 }
  0x7a   : > { %v2758_v37 = vsel %vm2290_vm2, %v2755_v20, %v2757_v30 }
  0x7b   : > { %v1019_v59 = vrot.slane %v4447_v61, 1 }
  0x7c   : > { %5145 = vmatpush3.bf16.msra.mxu1 %v5896_v4  ;;  %v1020_v4 = vrot.slane %v5950_v25, 1 }
  0x7d   : > { %5146 = vmatprep.subr.bf16.mxu1 %v5901_v10 }
  0x7e   : > { %5111 = vmatmul.mubr.bf16.gmra.mrb[8].mxu1 %v6164_v22  ;;  %v2756_v22 = vsel %vm2290_vm2, %v2754_v18, %v2755_v20  ;;  %v1021_v41 = vsel %vm1018_vm3, %v1019_v59, %v1020_v4  ;;  %v5952_v18 = vld [vmem:[%s6069_s14 + $0x18] sm:$0xff]   ;;  %v5934_v59 = vld [vmem:[%s7073_s1 + $0xe0] sm:$0xff]  }
  0x7f   : > { %5339 = vmatmul.mubr.bf16.gmra.mrb[28].mxu0 %v2323_v57  ;;  %5114 = vmatprep.mubr.bf16.mxu1 %v6173_v31  ;;  %v6427_v31 = vld [vmem:[%s6069_s14 + $0x28] sm:$0xff]   ;;  %v6527_v57 = vld [vmem:[%s6069_s14 + $0x78] sm:$0xff]   ;;  %v1024_v20 = vrot.slane %v5952_v18, 1  ;;  %v5957_v18 = vld [vmem:[%s6069_s14 + $0x40] sm:$0xff]  }
  0x80   : > { %5342 = vmatprep.mubr.bf16.mxu0 %v2325_v12  ;;  %5147 = vmatpush3.bf16.msra.mxu1 %v5901_v10  ;;  %v2759_v7 = vrot.slane %v6427_v31, 2  ;;  %v6523_v10 = vld [vmem:[%s6069_s14 + $0x70] sm:$0xff]  }
  0x81   : > { %5148 = vmatprep.subr.bf16.mxu1 %v5905_v13  ;;  %v5951_v12 = vld [vmem:[%s6069_s14 + $0x10] sm:$0xff]   ;;  %v2777_v17 = vrot.slane %v6523_v10, 2 }
  0x82   : > { %v2762_v28 = vsel %vm2290_vm2, %v2759_v7, %v2761_v62 }
  0x84   : > { %5149 = vmatpush3.bf16.msra.mxu1 %v5905_v13  ;;  %v1022_v13 = vrot.slane %v5951_v12, 1 }
  0x85   : > { %5150 = vmatprep.subr.bf16.mxu1 %v5909_v21 }
  0x86   : > { %5115 = vmatmul.mubr.bf16.gmra.mrb[12].mxu1 %v6197_v54  ;;  %v2760_v54 = vsel %vm2290_vm2, %v2757_v30, %v2759_v7  ;;  %v1025_v30 = vsel %vm1018_vm3, %v1022_v13, %v1024_v20 }
  0x87   : > { %5343 = vmatmul.mubr.bf16.gmra.mrb[32].mxu0 %v2327_v26  ;;  %5118 = vmatprep.mubr.bf16.mxu1 %v6206_v1  ;;  %v6447_v1 = vld [vmem:[%s6069_s14 + $0x38] sm:$0xff]   ;;  %v1023_v26 = vsel %vm1018_vm3, %v1020_v4, %v1022_v13 }
  0x88   : > { %5362 = vmatprep.mubr.bf16.mxu0 %v2756_v22  ;;  %5151 = vmatpush3.bf16.msra.mxu1 %v5909_v21  ;;  %v2763_v42 = vrot.slane %v6447_v1, 2  ;;  %v2779_v21 = vrot.slane %v6527_v57, 2  ;;  %v2778_v22 = vsel %vm2290_vm2, %v2775_v5, %v2777_v17 }
  0x89   : > { %5152 = vmatprep.subr.bf16.mxu1 %v5913_v29 }
  0x8a   : > { %v2766_v49 = vsel %vm2290_vm2, %v2763_v42, %v2765_v46  ;;  %v2780_v7 = vsel %vm2290_vm2, %v2777_v17, %v2779_v21  ;;  %v5936_v17 = vld [vmem:[%s7073_s1 + $0xe8] sm:$0xff]  }
  0x8c   : > { %5153 = vmatpush3.bf16.msra.mxu1 %v5913_v29  ;;  %v6538_v29 = vld [vmem:[%s6069_s14 + $0x80] sm:$0xff]  }
  0x8d   : > { %5190 = vmatprep.subr.bf16.mxu1 %v6439_v36 }
  0x8e   : > { %5119 = vmatmul.mubr.bf16.gmra.mrb[16].mxu1 %v6233_v35  ;;  %v6466_v35 = vld [vmem:[%s6069_s14 + $0x48] sm:$0xff]  }
  0x8f   : > { %5363 = vmatmul.mubr.bf16.vlgmr.msra.gmra.mrb[0].mxu0 %v2758_v37  ;;  %5122 = vmatprep.mubr.bf16.mxu1 %v6240_v40  ;;  %v2764_v40 = vsel %vm2290_vm2, %v2761_v62, %v2763_v42  ;;  %v2767_v19 = vrot.slane %v6466_v35, 2  ;;  %v5924_v37 = vld [vmem:[%s7073_s1 + $0xc8] sm:$0xff]   ;;  %v2781_v42 = vrot.slane %v6538_v29, 2 }
  0x90   : > { %5366 = vmatprep.mubr.bf16.mxu0 %v2760_v54  ;;  %5399 = vmatpush3.bf16.msra.mxu0 %v6369_v48  ;;  %v5921_v48 = vld [vmem:[%s7073_s1 + $0x1e0] sm:$0xff]   ;;  %v6546_v54 = vld [vmem:[%s6069_s14 + $0x88] sm:$0xff]  }
  0x91   : > { %5400 = vmatprep.subr.bf16.mxu0 %v5908_v39  ;;  %v2770_v14 = vsel %vm2290_vm2, %v2767_v19, %v2769_v52 }
  0x94   : > { %5401 = vmatpush3.bf16.msra.mxu0 %v5908_v39  ;;  %v5953_v39 = vld [vmem:[%s6069_s14 + $0x20] sm:$0xff]  }
  0x95   : > { %5402 = vmatprep.subr.bf16.mxu0 %v5912_v43  ;;  %v1026_v62 = vrot.slane %v5953_v39, 1 }
  0x96   : > { %5123 = vmatmul.mubr.bf16.gmra.mrb[20].mxu1 %v6249_v47  ;;  %v2768_v47 = vsel %vm2290_vm2, %v2765_v46, %v2767_v19 }
  0x97   : > { %5367 = vmatmul.mubr.bf16.gmra.mrb[4].mxu0 %v2762_v28  ;;  %5126 = vmatprep.mubr.bf16.mxu1 %v6261_v58  ;;  %v6485_v58 = vld [vmem:[%s6069_s14 + $0x58] sm:$0xff]   ;;  %v1027_v46 = vsel %vm1018_vm3, %v1024_v20, %v1026_v62  ;;  %v1034_v20 = vrot.slane %v5957_v18, 1  ;;  %v5962_v18 = vld [vmem:[%s6069_s14 + $0x60] sm:$0xff]  }
  0x98   : > { %5370 = vmatprep.mubr.bf16.mxu0 %v2764_v40  ;;  %5403 = vmatpush3.bf16.msra.mxu0 %v5912_v43  ;;  %v2771_v56 = vrot.slane %v6485_v58, 2  ;;  %v5954_v43 = vld [vmem:[%s6069_s14 + $0x28] sm:$0xff]   ;;  %v5928_v40 = vld [vmem:[%s7073_s1 + $0xd0] sm:$0xff]  }
  0x99   : > { %5404 = vmatprep.subr.bf16.mxu0 %v5916_v45  ;;  %v1028_v28 = vrot.slane %v5954_v43, 1  ;;  %v5938_v43 = vld [vmem:[%s7073_s1 + $0xf0] sm:$0xff]  }
  0x9b   : > { %v1029_v19 = vsel %vm1018_vm3, %v1026_v62, %v1028_v28  ;;  %v3119_v62 = vshrl.u32 %v6427_v31, 16 }
  0x9c   : > { %5405 = vmatpush3.bf16.msra.mxu0 %v5916_v45  ;;  %v2783_v45 = vrot.slane %v6546_v54, 2 }
  0x9d   : > { %5406 = vmatprep.subr.bf16.mxu0 %v5921_v48 }
  0x9e   : > { %5127 = vmatmul.mubr.bf16.gmra.mrb[24].mxu1 %v6273_v8  ;;  %v6500_v8 = vld [vmem:[%s6069_s14 + $0x60] sm:$0xff]  }
  0x9f   : > { %5371 = vmatmul.mubr.bf16.gmra.mrb[8].mxu0 %v2766_v49  ;;  %5130 = vmatprep.mubr.bf16.mxu1 %v6290_v23  ;;  %v2772_v23 = vsel %vm2290_vm2, %v2769_v52, %v2771_v56  ;;  %v2773_v15 = vrot.slane %v6500_v8, 2  ;;  %v2784_v49 = vsel %vm2290_vm2, %v2781_v42, %v2783_v45  ;;  %v5955_v52 = vld [vmem:[%s6069_s14 + $0x30] sm:$0xff]  }
  0xa0   : > { %5374 = vmatprep.mubr.bf16.mxu0 %v2768_v47  ;;  %5407 = vmatpush3.bf16.msra.mxu0 %v5921_v48  ;;  %v6560_v48 = vld [vmem:[%s6069_s14 + $0x90] sm:$0xff]   ;;  %v6564_v47 = vld [vmem:[%s6069_s14 + $0x98] sm:$0xff]  }
  0xa1   : > { %5408 = vmatprep.subr.bf16.mxu0 %v5925_v51  ;;  %v2776_v11 = vsel %vm2290_vm2, %v2773_v15, %v2775_v5  ;;  %v2785_v63 = vrot.slane %v6560_v48, 2  ;;  %v2787_v61 = vrot.slane %v6564_v47, 2 }
  0xa3   : > { %v2786_v4 = vsel %vm2290_vm2, %v2783_v45, %v2785_v63 }
  0xa4   : > { %5409 = vmatpush3.bf16.msra.mxu0 %v5925_v51  ;;  %v5932_v51 = vld [vmem:[%s7073_s1 + $0xd8] sm:$0xff]  }
  0xa5   : > { %5410 = vmatprep.subr.bf16.mxu0 %v5929_v33 }
  0xa6   : > { %5131 = vmatmul.mubr.bf16.gmra.mrb[28].mxu1 %v6294_v32  ;;  %v6518_v32 = vld [vmem:[%s7073_s1 + $0x200] sm:$0xff]  }
  0xa7   : > { %5375 = vmatmul.mubr.bf16.gmra.mrb[12].mxu0 %v2770_v14  ;;  %5134 = vmatprep.mubr.bf16.mxu1 %v6312_v16  ;;  %v2774_v16 = vsel %vm2290_vm2, %v2771_v56, %v2773_v15  ;;  %v1030_v56 = vrot.slane %v5955_v52, 1  ;;  %v3104_v15 = vshll.u32 %v6408_v60, 16  ;;  %v5940_v52 = vld [vmem:[%s7073_s1 + $0xf8] sm:$0xff]  }
  0xa8   : > { %5378 = vmatprep.mubr.bf16.mxu0 %v2772_v23  ;;  %5411 = vmatpush3.bf16.msra.mxu0 %v5929_v33  ;;  %v5956_v33 = vld [vmem:[%s6069_s14 + $0x38] sm:$0xff]   ;;  %v3096_v23 = vshll.u32 %v6405_v55, 16  ;;  %v2788_v55 = vsel %vm2290_vm2, %v2785_v63, %v2787_v61 }
  0xa9   : > { %5412 = vmatprep.subr.bf16.mxu0 %v5933_v3  ;;  %v1032_v14 = vrot.slane %v5956_v33, 1  ;;  %v1031_v25 = vsel %vm1018_vm3, %v1028_v28, %v1030_v56  ;;  %v3106_v13 = vrot.slane %v3104_v15, 3  ;;  %v3137_v15 = vshrl.u32 %v6447_v1, 16 }
  0xab   : > { %v1033_v5 = vsel %vm1018_vm3, %v1030_v56, %v1032_v14  ;;  %v1035_v28 = vsel %vm1018_vm3, %v1032_v14, %v1034_v20  ;;  %v5959_v56 = vld [vmem:[%s6069_s14 + $0x50] sm:$0xff]   ;;  %v5960_v14 = vld [vmem:[%s6069_s14 + $0x58] sm:$0xff]  }
  0xac   : > { %5413 = vmatpush3.bf16.msra.mxu0 %v5933_v3  ;;  %v3101_v3 = vshrl.u32 %v6408_v60, 16  ;;  %v1038_v63 = vrot.slane %v5959_v56, 1  ;;  %v5941_v56 = vld [vmem:[%s7073_s1 + $0x218] sm:$0xff]  }
  0xad   : > { %5450 = vmatprep.subr.bf16.mxu0 %v6518_v32 }
  0xae   : > { %5135 = vmatmul.mubr.bf16.gmra.mrb[32].mxu1 %v6319_v53  ;;  %v3103_v12 = vrot.slane %v3101_v3, 2 }
  0xaf   : > { %5379 = vmatmul.mubr.bf16.gmra.mrb[16].mxu0 %v2774_v16  ;;  %5154 = vmatprep.mubr.bf16.mxu1 %v1021_v41  ;;  %v5931_v16 = vld [vmem:[%s6069_s14 + $0xa0] ss:$0 sps:$4 sm:$0x33]   ;;  %v3095_v41 = vrot.slane %v3093_v0, 2  ;;  %v1040_v0 = vrot.slane %v5960_v14, 1 }
  0xb0   : > { %5382 = vmatprep.mubr.bf16.mxu0 %v2776_v11  ;;  %v3098_v11 = vrot.slane %v3096_v23, 3  ;;  %v3107_v39 = vor.u32 %v3106_v13, %v3103_v12  ;;  %v3131_v23 = vshll.u32 %v6443_v38, 16  ;;  %v5937_v13 = vld [vmem:[%s7073_s1 + $0x208] sm:$0xff]  }
  0xb6   : > { %5155 = vmatmul.mubr.bf16.vlgmr.msra.gmra.mrb[0].mxu1 %v1023_v26  ;;  %v5958_v26 = vld [vmem:[%s6069_s14 + $0x48] sm:$0xff]  }
  0xb7   : > { %5383 = vmatmul.mubr.bf16.gmra.mrb[20].mxu0 %v2778_v22  ;;  %5191 = vmatpush3.bf16.msra.mxu1 %v6439_v36  ;;  %v2782_v36 = vsel %vm2290_vm2, %v2779_v21, %v2781_v42  ;;  %v2789_v21 = vrot.slane %v5931_v16, 2  ;;  %v1036_v22 = vrot.slane %v5958_v26, 1  ;;  %v3122_v42 = vshll.u32 %v6427_v31, 16 }
  0xb8   : > { %5158 = vmatprep.mubr.bf16.mxu1 %v1025_v30  ;;  %5386 = vmatprep.mubr.bf16.mxu0 %v2780_v7  ;;  %v3110_v30 = vshrl.u32 %v6423_v27, 16  ;;  %v3113_v7 = vshll.u32 %v6423_v27, 16 }
  0xb9   : > { %5192 = vmatprep.subr.bf16.mxu1 %v5924_v37  ;;  %v1037_v45 = vsel %vm1018_vm3, %v1034_v20, %v1036_v22  ;;  %v1042_v20 = vrot.slane %v5962_v18, 1 }
  0xbb   : > { %5193 = vmatpush3.bf16.msra.mxu1 %v5924_v37  ;;  %v3099_v37 = vor.u32 %v3098_v11, %v3095_v41  ;;  %v3133_v41 = vrot.slane %v3131_v23, 3  ;;  %v3139_v11 = vrot.slane %v3137_v15, 2  ;;  %v3167_v15 = vshll.u32 %v6481_v50, 16 }
  0xbc   : > { %5194 = vmatprep.subr.bf16.mxu1 %v5928_v40 }
  0xbe   : > { %5159 = vmatmul.mubr.bf16.gmra.mrb[4].mxu1 %v1027_v46  ;;  %v3112_v46 = vrot.slane %v3110_v30, 2  ;;  %v3146_v30 = vshrl.u32 %v6463_v44, 16 }
  0xbf   : > { %5387 = vmatmul.mubr.bf16.gmra.mrb[24].mxu0 %v2782_v36  ;;  %5162 = vmatprep.mubr.bf16.mxu1 %v1029_v19  ;;  %v3115_v36 = vrot.slane %v3113_v7, 3  ;;  %v3108_v19 = vsel %vm3091_vm4, %v3099_v37, %v3107_v39  ;;  %v3149_v7 = vshll.u32 %v6463_v44, 16 }
  0xc0   : > { %5390 = vmatprep.mubr.bf16.mxu0 %v2784_v49  ;;  %5195 = vmatpush3.bf16.msra.mxu1 %v5928_v40  ;;  %v2790_v40 = vsel %vm2290_vm2, %v2787_v61, %v2789_v21  ;;  %v3121_v49 = vrot.slane %v3119_v62, 2  ;;  %v3128_v61 = vshrl.u32 %v6443_v38, 16  ;;  %v5963_v21 = vld [vmem:[%s6069_s14 + $0x68] sm:$0xff]   ;;  %v3158_v62 = vshll.u32 %v6466_v35, 16 }
  0xc1   : > { %5196 = vmatprep.subr.bf16.mxu1 %v5932_v51  ;;  %v3116_v33 = vor.u32 %v3115_v36, %v3112_v46  ;;  %v1044_v26 = vrot.slane %v5963_v21, 1  ;;  %v3148_v46 = vrot.slane %v3146_v30, 2  ;;  %v3151_v36 = vrot.slane %v3149_v7, 3  ;;  %v5943_v21 = vld [vmem:[%s7073_s1 + $0x228] sm:$0xff]  }
  0xc2   : > { %v3130_v16 = vrot.slane %v3128_v61, 2  ;;  %v5965_v61 = vld [vmem:[%s6069_s14 + $0x78] sm:$0xff]   ;;  %v1052_v7 = vrot.slane %v6319_v53, 1 }
  0xc3   : > { %v1048_v23 = vrot.slane %v5965_v61, 1  ;;  %v5967_v61 = vld [vmem:[%s6069_s14 + $0x10] sm:$0xff]  }
  0xc4   : > { %5197 = vmatpush3.bf16.msra.mxu1 %v5932_v51  ;;  %v3124_v51 = vrot.slane %v3122_v42, 3  ;;  %v5939_v42 = vld [vmem:[%s7073_s1 + $0x210] sm:$0xff]  }
  0xc5   : > { %5198 = vmatprep.subr.bf16.mxu1 %v5934_v59 }
  0xc6   : > { %5163 = vmatmul.mubr.bf16.gmra.mrb[8].mxu1 %v1031_v25  ;;  %v3125_v3 = vor.u32 %v3124_v51, %v3121_v49  ;;  %v1039_v25 = vsel %vm1018_vm3, %v1036_v22, %v1038_v63  ;;  %v3134_v22 = vor.u32 %v3133_v41, %v3130_v16 }
  0xc7   : > { %5391 = vmatmul.mubr.bf16.gmra.mrb[28].mxu0 %v2786_v4  ;;  %5166 = vmatprep.mubr.bf16.mxu1 %v1033_v5  ;;  %v3117_v4 = vsel %vm3091_vm4, %v3107_v39, %v3116_v33  ;;  %v1041_v5 = vsel %vm1018_vm3, %v1038_v63, %v1040_v0  ;;  %v3155_v39 = vshrl.u32 %v6466_v35, 16 }
  0xc8   : > { %5394 = vmatprep.mubr.bf16.mxu0 %v2788_v55  ;;  %5199 = vmatpush3.bf16.msra.mxu1 %v5934_v59  ;;  %v3140_v59 = vshll.u32 %v6447_v1, 16  ;;  %v3126_v55 = vsel %vm3091_vm4, %v3116_v33, %v3125_v3  ;;  %v5964_v33 = vld [vmem:[%s6069_s14 + $0x70] sm:$0xff]  }
  0xc9   : > { %5200 = vmatprep.subr.bf16.mxu1 %v5936_v17  ;;  %v3157_v51 = vrot.slane %v3155_v39, 2  ;;  %v1046_v14 = vrot.slane %v5964_v33, 1  ;;  %v3185_v39 = vshll.u32 %v6500_v8, 16  ;;  %v1054_v33 = vrot.slane %v6341_v9, 1 }
  0xca   : > { %v3142_v12 = vrot.slane %v3140_v59, 3 }
  0xcb   : > { %v1047_v16 = vsel %vm1018_vm3, %v1044_v26, %v1046_v14  ;;  %v1055_v9 = vsel %vm1018_vm3, %v1052_v7, %v1054_v33  ;;  %v3236_v33 = vshrl.u32 %v6560_v48, 16 }
  0xcc   : > { %5201 = vmatpush3.bf16.msra.mxu1 %v5936_v17  ;;  %v6620_v17 = vld [vmem:[%s7073_s1 + $0x100] sm:$0xff]   ;;  %v3143_v37 = vor.u32 %v3142_v12, %v3139_v11  ;;  %v3169_v12 = vrot.slane %v3167_v15, 3  ;;  %v3203_v15 = vshll.u32 %v6523_v10, 16 }
  0xcd   : > { %5202 = vmatprep.subr.bf16.mxu1 %v5938_v43 }
  0xce   : > { %5167 = vmatmul.mubr.bf16.gmra.mrb[12].mxu1 %v1035_v28  ;;  %v3596_v28 = vrot.slane %v6564_v47, 3  ;;  %v3144_v49 = vsel %vm3091_vm4, %v3134_v22, %v3143_v37 }
  0xcf   : > { %5395 = vmatmul.mubr.bf16.gmra.mrb[32].mxu0 %v2790_v40  ;;  %5170 = vmatprep.mubr.bf16.mxu1 %v1037_v45  ;;  %v1045_v40 = vsel %vm1018_vm3, %v1042_v20, %v1044_v26  ;;  %v3135_v45 = vsel %vm3091_vm4, %v3125_v3, %v3134_v22  ;;  %v3164_v3 = vshrl.u32 %v6481_v50, 16  ;;  %v5966_v26 = vld [vmem:[%s6069_s14 + $0x80] sm:$0xff]  }
  0xd0   : > { %5414 = vmatprep.mubr.bf16.mxu0 %v3108_v19  ;;  %5203 = vmatpush3.bf16.msra.mxu1 %v5938_v43  ;;  %v6634_v43 = vld [vmem:[%s6069_s14 + $0xa0] ss:$0 sps:$4 sm:$0x77]   ;;  %v1050_v22 = vrot.slane %v5966_v26, 1  ;;  %v3221_v26 = vshll.u32 %v6538_v29, 16 }
  0xd1   : > { %5204 = vmatprep.subr.bf16.mxu1 %v5940_v52  ;;  %v3598_v19 = vrot.slane %v6634_v43, 3  ;;  %v3166_v11 = vrot.slane %v3164_v3, 2  ;;  %v3200_v3 = vshrl.u32 %v6523_v10, 16 }
  0xd2   : > { %v1053_v53 = vsel %vm1018_vm3, %v1050_v22, %v1052_v7 }
  0xd3   : > { %v6648_v63 = vsel %vm3562_vm5, %v3596_v28, %v3598_v19  ;;  %v3170_v30 = vor.u32 %v3169_v12, %v3166_v11  ;;  %v3187_v19 = vrot.slane %v3185_v39, 3  ;;  %v3230_v39 = vshll.u32 %v6546_v54, 16 }
  0xd4   : > { %5205 = vmatpush3.bf16.msra.mxu1 %v5940_v52  ;;  %v3160_v52 = vrot.slane %v3158_v62, 3 }
  0xd5   : > { %5502 = vmatprep.subr.bf16.mxu1 %v6620_v17 }
  0xd6   : > { %5171 = vmatmul.mubr.bf16.gmra.mrb[16].mxu1 %v1039_v25  ;;  %v3161_v59 = vor.u32 %v3160_v52, %v3157_v51  ;;  %v3173_v25 = vshrl.u32 %v6485_v58, 16 }
  0xd7   : > { %5415 = vmatmul.mubr.bf16.vlgmr.msra.gmra.mrb[0].mxu0 %v3117_v4  ;;  %5174 = vmatprep.mubr.bf16.mxu1 %v1041_v5  ;;  %v3176_v4 = vshll.u32 %v6485_v58, 16  ;;  %v5942_v5 = vld [vmem:[%s7073_s1 + $0x220] sm:$0xff]  }
  0xd8   : > { %5418 = vmatprep.mubr.bf16.mxu0 %v3126_v55  ;;  %5451 = vmatpush3.bf16.msra.mxu0 %v6518_v32  ;;  %v1043_v32 = vsel %vm1018_vm3, %v1040_v0, %v1042_v20  ;;  %v3152_v0 = vor.u32 %v3151_v36, %v3148_v46  ;;  %v1049_v55 = vsel %vm1018_vm3, %v1046_v14, %v1048_v23  ;;  %v3175_v18 = vrot.slane %v3173_v25, 2 }
  0xd9   : > { %5452 = vmatprep.subr.bf16.mxu0 %v5937_v13  ;;  %v3178_v20 = vrot.slane %v3176_v4, 3  ;;  %v3171_v46 = vsel %vm3091_vm4, %v3161_v59, %v3170_v30  ;;  %v1482_v14 = vrot.slane %v6101_v24, 1  ;;  %v3209_v25 = vshrl.u32 %v6527_v57, 16 }
  0xda   : > { %v3153_v41 = vsel %vm3091_vm4, %v3143_v37, %v3152_v0  ;;  %v3182_v37 = vshrl.u32 %v6500_v8, 16  ;;  %v3212_v4 = vshll.u32 %v6527_v57, 16 }
  0xdb   : > { %v3179_v62 = vor.u32 %v3178_v20, %v3175_v18  ;;  %v3211_v11 = vrot.slane %v3209_v25, 2  ;;  %v3238_v25 = vrot.slane %v3236_v33, 2 }
  0xdc   : > { %5453 = vmatpush3.bf16.msra.mxu0 %v5937_v13  ;;  %v3162_v13 = vsel %vm3091_vm4, %v3152_v0, %v3161_v59  ;;  %v3184_v36 = vrot.slane %v3182_v37, 2  ;;  %v3214_v12 = vrot.slane %v3212_v4, 3  ;;  %v3227_v37 = vshrl.u32 %v6546_v54, 16 }
  0xdd   : > { %5454 = vmatprep.subr.bf16.mxu0 %v5939_v42 }
  0xde   : > { %5175 = vmatmul.mubr.bf16.gmra.mrb[20].mxu1 %v1043_v32  ;;  %v3194_v32 = vshll.u32 %v6505_v2, 16  ;;  %v3188_v0 = vor.u32 %v3187_v19, %v3184_v36  ;;  %v3215_v7 = vor.u32 %v3214_v12, %v3211_v11  ;;  %v3232_v36 = vrot.slane %v3230_v39, 3  ;;  %v5970_v19 = vld [vmem:[%s6069_s14 + $0x28] sm:$0xff]   ;;  %v5975_v12 = vld [vmem:[%s6069_s14 + $0x40] sm:$0xff]  }
  0xdf   : > { %5419 = vmatmul.mubr.bf16.gmra.mrb[4].mxu0 %v3135_v45  ;;  %5178 = vmatprep.mubr.bf16.mxu1 %v1045_v40  ;;  %v5944_v40 = vld [vmem:[%s7073_s1 + $0x230] sm:$0xff]   ;;  %v1051_v45 = vsel %vm1018_vm3, %v1048_v23, %v1050_v22  ;;  %v1483_v23 = vrot.slane %v5967_v61, 1  ;;  %v5969_v22 = vld [vmem:[%s6069_s14 + $0x20] sm:$0xff]  }
  0xe0   : > { %5422 = vmatprep.mubr.bf16.mxu0 %v3144_v49  ;;  %5455 = vmatpush3.bf16.msra.mxu0 %v5939_v42  ;;  %v3191_v42 = vshrl.u32 %v6505_v2, 16  ;;  %v3180_v49 = vsel %vm3091_vm4, %v3170_v30, %v3179_v62  ;;  %v3196_v52 = vrot.slane %v3194_v32, 3  ;;  %v3189_v24 = vsel %vm3091_vm4, %v3179_v62, %v3188_v0 }
  0xe1   : > { %5456 = vmatprep.subr.bf16.mxu0 %v5941_v56  ;;  %v1487_v30 = vrot.slane %v5969_v22, 1  ;;  %v3541_v22 = vld [vmem:[%s6069_s14 + $0x10] sm:$0x8] }
  0xe2   : > { %v3193_v51 = vrot.slane %v3191_v42, 2 }
  0xe4   : > { %5457 = vmatpush3.bf16.msra.mxu0 %v5941_v56  ;;  %v5946_v56 = vld [vmem:[%s7073_s1 + $0x238] sm:$0xff]   ;;  %v3197_v59 = vor.u32 %v3196_v52, %v3193_v51  ;;  %v5971_v52 = vld [vmem:[%s6069_s14 + $0x30] sm:$0xff]  }
  0xe5   : > { %5458 = vmatprep.subr.bf16.mxu0 %v5942_v5 }
  0xe6   : > { %5179 = vmatmul.mubr.bf16.gmra.mrb[24].mxu1 %v1047_v16  ;;  %v3202_v16 = vrot.slane %v3200_v3, 2 }
  0xe7   : > { %5423 = vmatmul.mubr.bf16.gmra.mrb[8].mxu0 %v3153_v41  ;;  %5182 = vmatprep.mubr.bf16.mxu1 %v1049_v55  ;;  %v3205_v41 = vrot.slane %v3203_v15, 3  ;;  %v3198_v55 = vsel %vm3091_vm4, %v3188_v0, %v3197_v59  ;;  %v5972_v0 = vld [vmem:[%s7073_s1 + $0x108] sm:$0xff]  }
  0xe8   : > { %5426 = vmatprep.mubr.bf16.mxu0 %v3162_v13  ;;  %5459 = vmatpush3.bf16.msra.mxu0 %v5942_v5  ;;  %v1484_v5 = vsel %vm1018_vm3, %v1482_v14, %v1483_v23  ;;  %v5968_v13 = vld [vmem:[%s6069_s14 + $0x18] sm:$0xff]   ;;  %v3239_v14 = vshll.u32 %v6560_v48, 16 }
  0xe9   : > { %5460 = vmatprep.subr.bf16.mxu0 %v5943_v21  ;;  %v1485_v18 = vrot.slane %v5968_v13, 1  ;;  %v3206_v20 = vor.u32 %v3205_v41, %v3202_v16  ;;  %v5974_v41 = vld [vmem:[%s6069_s14 + $0x38] sm:$0xff]   ;;  %v1495_v13 = vrot.slane %v5975_v12, 1 }
  0xea   : > { %v3241_v4 = vrot.slane %v3239_v14, 3  ;;  %v5981_v14 = vld [vmem:[%s7073_s1 + $0x130] sm:$0xff]  }
  0xeb   : > { %v1486_v62 = vsel %vm1018_vm3, %v1483_v23, %v1485_v18  ;;  %v3207_v42 = vsel %vm3091_vm4, %v3197_v59, %v3206_v20  ;;  %v3245_v23 = vshrl.u32 %v6564_v47, 16 }
  0xec   : > { %5461 = vmatpush3.bf16.msra.mxu0 %v5943_v21  ;;  %v3218_v21 = vshrl.u32 %v6538_v29, 16  ;;  %v3242_v11 = vor.u32 %v3241_v4, %v3238_v25 }
  0xed   : > { %5462 = vmatprep.subr.bf16.mxu0 %v5944_v40 }
  0xee   : > { %5183 = vmatmul.mubr.bf16.gmra.mrb[28].mxu1 %v1051_v45  ;;  %v3220_v32 = vrot.slane %v3218_v21, 2  ;;  %v1488_v45 = vsel %vm1018_vm3, %v1485_v18, %v1487_v30  ;;  %v3254_v18 = vshrl.u32 %v6634_v43, 16 }
  0xef   : > { %5427 = vmatmul.mubr.bf16.gmra.mrb[12].mxu0 %v3171_v46  ;;  %5186 = vmatprep.mubr.bf16.mxu1 %v1053_v53  ;;  %v3216_v46 = vsel %vm3091_vm4, %v3206_v20, %v3215_v7  ;;  %v3229_v53 = vrot.slane %v3227_v37, 2  ;;  %v3257_v20 = vshll.u32 %v6634_v43, 16 }
  0xf0   : > { %5430 = vmatprep.mubr.bf16.mxu0 %v3180_v49  ;;  %5463 = vmatpush3.bf16.msra.mxu0 %v5944_v40  ;;  %v3223_v40 = vrot.slane %v3221_v26, 3  ;;  %v1489_v49 = vrot.slane %v5970_v19, 1  ;;  %v5976_v26 = vld [vmem:[%s7073_s1 + $0x118] sm:$0xff]   ;;  %v3256_v39 = vrot.slane %v3254_v18, 2 }
  0xf1   : > { %5464 = vmatprep.subr.bf16.mxu0 %v5946_v56  ;;  %v3233_v61 = vor.u32 %v3232_v36, %v3229_v53  ;;  %v6738_v53 = vld [vmem:[%s6069_s14 + $0x50] sm:$0xff]   ;;  %v6784_v18 = vld [vmem:[%s6069_s14 + $0x78] sm:$0xff]  }
  0xf2   : > { %v3224_v51 = vor.u32 %v3223_v40, %v3220_v32  ;;  %v1490_v3 = vsel %vm1018_vm3, %v1487_v30, %v1489_v49  ;;  %v5977_v32 = vld [vmem:[%s7073_s1 + $0x120] sm:$0xff]   ;;  %v5978_v40 = vld [vmem:[%s6069_s14 + $0x48] sm:$0xff]   ;;  %v1499_v36 = vrot.slane %v6738_v53, 1 }
  0xf4   : > { %5465 = vmatpush3.bf16.msra.mxu0 %v5946_v56  ;;  %v1491_v56 = vrot.slane %v5971_v52, 1  ;;  %v3225_v15 = vsel %vm3091_vm4, %v3215_v7, %v3224_v51  ;;  %v3243_v7 = vsel %vm3091_vm4, %v3233_v61, %v3242_v11 }
  0xf6   : > { %5187 = vmatmul.mubr.bf16.gmra.mrb[32].mxu1 %v1055_v9  ;;  %v1492_v59 = vsel %vm1018_vm3, %v1489_v49, %v1491_v56  ;;  %v5973_v9 = vld [vmem:[%s7073_s1 + $0x110] sm:$0xff]   ;;  %v5980_v49 = vld [vmem:[%s7073_s1 + $0x128] sm:$0xff]  }
  0xf7   : > { %5431 = vmatmul.mubr.bf16.gmra.mrb[16].mxu0 %v3189_v24  ;;  %5206 = vmatprep.mubr.bf16.mxu1 %v1484_v5  ;;  %v3234_v24 = vsel %vm3091_vm4, %v3224_v51, %v3233_v61  ;;  %v3247_v5 = vrot.slane %v3245_v23, 2  ;;  %v3566_v61 = vrot.slane %v6423_v27, 3  ;;  %v6758_v23 = vld [vmem:[%s6069_s14 + $0x60] sm:$0xff]  }
  0xf8   : > { %5434 = vmatprep.mubr.bf16.mxu0 %v3198_v55  ;;  %v1493_v55 = vrot.slane %v5974_v41, 1  ;;  %v3572_v41 = vrot.slane %v6447_v1, 3  ;;  %v3574_v1 = vrot.slane %v6463_v44, 3 }
  0xfa   : > { %v1494_v30 = vsel %vm1018_vm3, %v1491_v56, %v1493_v55  ;;  %v1496_v37 = vsel %vm1018_vm3, %v1493_v55, %v1495_v13 }
  0xfe   : > { %5207 = vmatmul.mubr.bf16.vlgmr.msra.gmra.mrb[0].mxu1 %v1486_v62  ;;  %v3259_v62 = vrot.slane %v3257_v20, 3  ;;  %v6789_v20 = vld [vmem:[%s6069_s14 + $0x80] sm:$0xff]  }
  0xff   : > { %5435 = vmatmul.mubr.bf16.gmra.mrb[20].mxu0 %v3207_v42  ;;  %5510 = vmatpush3.bf16.msra.mxu1 %v6620_v17  ;;  %v3248_v17 = vshll.u32 %v6564_v47, 16  ;;  %v4633_v42 = vcombine.low %v3541_v22, %v6397_v6  ;;  %v3564_v6 = vrot.slane %v6408_v60, 3  ;;  %v6753_v60 = vld [vmem:[%s6069_s14 + $0x58] sm:$0xff]  }
 0x100   : > { %5210 = vmatprep.mubr.bf16.mxu1 %v1488_v45  ;;  %5438 = vmatprep.mubr.bf16.mxu0 %v3216_v46  ;;  %v1497_v45 = vrot.slane %v5978_v40, 1  ;;  %v3260_v46 = vor.u32 %v3259_v62, %v3256_v39  ;;  %v6798_v39 = vld [vmem:[%s6069_s14 + $0x88] sm:$0xff]   ;;  %v3578_v62 = vrot.slane %v6481_v50, 3  ;;  %v3580_v40 = vrot.slane %v6485_v58, 3 }
 0x101   : > { %5503 = vmatprep.subr.bf16.mxu1 %v5972_v0  ;;  %v3250_v16 = vrot.slane %v3248_v17, 3  ;;  %v3563_v19 = vrot.slane %v4633_v42, 3  ;;  %v1503_v17 = vrot.slane %v6758_v23, 1  ;;  %v3567_v25 = vsel %vm3562_vm5, %v3564_v6, %v3566_v61 }
 0x102   : > { %v1498_v51 = vsel %vm1018_vm3, %v1495_v13, %v1497_v45  ;;  %v1500_v56 = vsel %vm1018_vm3, %v1497_v45, %v1499_v36  ;;  %v1513_v44 = vrot.slane %v6798_v39, 1  ;;  %v1901_v42 = vshrl.u32 %v6738_v53, 16 }
 0x103   : > { %5511 = vmatpush3.bf16.msra.mxu1 %v5972_v0  ;;  %v3251_v21 = vor.u32 %v3250_v16, %v3247_v5  ;;  %v3565_v33 = vsel %vm3562_vm5, %v3563_v19, %v3564_v6  ;;  %v1501_v0 = vrot.slane %v6753_v60, 1  ;;  %v6775_v5 = vld [vmem:[%s6069_s14 + $0x70] sm:$0xff]   ;;  %v3581_v50 = vsel %vm3562_vm5, %v3578_v62, %v3580_v40 }
 0x104   : > { %5504 = vmatprep.subr.bf16.mxu1 %v5973_v9  ;;  %v1507_v16 = vrot.slane %v6775_v5, 1  ;;  %v1903_v6 = vrot.slane %v1901_v42, 1  ;;  %v3582_v58 = vrot.slane %v6500_v8, 3 }
 0x105   : > { %v3252_v43 = vsel %vm3091_vm4, %v3242_v11, %v3251_v21  ;;  %v3261_v52 = vsel %vm3091_vm4, %v3251_v21, %v3260_v46  ;;  %v1504_v4 = vsel %vm1018_vm3, %v1501_v0, %v1503_v17  ;;  %v1511_v21 = vrot.slane %v6789_v20, 1  ;;  %v5948_v46 = vld [vmem:[%s6069_s14 + $0x98] ss:$0 sps:$4 sm:$0x11]  }
 0x106   : > { %5211 = vmatmul.mubr.bf16.gmra.mrb[4].mxu1 %v1490_v3  ;;  %v3568_v3 = vrot.slane %v6427_v31, 3 }
 0x107   : > { %5439 = vmatmul.mubr.bf16.gmra.mrb[24].mxu0 %v3225_v15  ;;  %5214 = vmatprep.mubr.bf16.mxu1 %v1492_v59  ;;  %v5984_v15 = vld [vmem:[%s7073_s1 + $0x138] sm:$0xff]   ;;  %v1502_v59 = vsel %vm1018_vm3, %v1499_v36, %v1501_v0  ;;  %v1514_v45 = vsel %vm1018_vm3, %v1511_v21, %v1513_v44  ;;  %v3584_v0 = vrot.slane %v6505_v2, 3 }
 0x108   : > { %5442 = vmatprep.mubr.bf16.mxu0 %v3234_v24  ;;  %5512 = vmatpush3.bf16.msra.mxu1 %v5973_v9  ;;  %v3569_v27 = vsel %vm3562_vm5, %v3566_v61, %v3568_v3  ;;  %v6770_v9 = vld [vmem:[%s6069_s14 + $0x68] sm:$0xff]   ;;  %v3570_v24 = vrot.slane %v6443_v38, 3  ;;  %v1509_v38 = vrot.slane %v6784_v18, 1 }
 0x109   : > { %5505 = vmatprep.subr.bf16.mxu1 %v5976_v26  ;;  %v1505_v31 = vrot.slane %v6770_v9, 1  ;;  %v3585_v8 = vsel %vm3562_vm5, %v3582_v58, %v3584_v0  ;;  %v1931_v2 = vshll.u32 %v6770_v9, 16 }
 0x10a   : > { %v3571_v11 = vsel %vm3562_vm5, %v3568_v3, %v3570_v24  ;;  %v3573_v13 = vsel %vm3562_vm5, %v3570_v24, %v3572_v41  ;;  %v1510_v22 = vsel %vm1018_vm3, %v1507_v16, %v1509_v38  ;;  %v1937_v24 = vshrl.u32 %v6775_v5, 16 }
 0x10b   : > { %v1506_v55 = vsel %vm1018_vm3, %v1503_v17, %v1505_v31  ;;  %v1508_v12 = vsel %vm1018_vm3, %v1505_v31, %v1507_v16  ;;  %v3588_v16 = vrot.slane %v6527_v57, 3  ;;  %v1949_v57 = vshll.u32 %v6784_v18, 16 }
 0x10c   : > { %5513 = vmatpush3.bf16.msra.mxu1 %v5976_v26  ;;  %v3576_v26 = vrot.slane %v6466_v35, 3  ;;  %v6803_v35 = vld [vmem:[%s6069_s14 + $0x90] sm:$0xff]  }
 0x10d   : > { %5506 = vmatprep.subr.bf16.mxu1 %v5977_v32 }
 0x10e   : > { %5215 = vmatmul.mubr.bf16.gmra.mrb[8].mxu1 %v1494_v30  ;;  %v3575_v30 = vsel %vm3562_vm5, %v3572_v41, %v3574_v1  ;;  %v3579_v36 = vsel %vm3562_vm5, %v3576_v26, %v3578_v62  ;;  %v1951_v62 = vrot.slane %v1949_v57, 2 }
 0x10f   : > { %5443 = vmatmul.mubr.bf16.gmra.mrb[28].mxu0 %v3243_v7  ;;  %5218 = vmatprep.mubr.bf16.mxu1 %v1496_v37  ;;  %v1512_v7 = vsel %vm1018_vm3, %v1509_v38, %v1511_v21  ;;  %v3577_v37 = vsel %vm3562_vm5, %v3574_v1, %v3576_v26  ;;  %v1939_v38 = vrot.slane %v1937_v24, 1  ;;  %v3590_v21 = vrot.slane %v6538_v29, 3 }
 0x110   : > { %5446 = vmatprep.mubr.bf16.mxu0 %v3252_v43  ;;  %5514 = vmatpush3.bf16.msra.mxu1 %v5977_v32  ;;  %v1515_v43 = vrot.slane %v6803_v35, 1  ;;  %v1904_v32 = vshll.u32 %v6738_v53, 16  ;;  %v1913_v53 = vshll.u32 %v6753_v60, 16 }
 0x111   : > { %5507 = vmatprep.subr.bf16.mxu1 %v5980_v49 }
 0x112   : > { %v1516_v19 = vsel %vm1018_vm3, %v1513_v44, %v1515_v43  ;;  %v1915_v3 = vrot.slane %v1913_v53, 2 }
 0x114   : > { %5515 = vmatpush3.bf16.msra.mxu1 %v5980_v49  ;;  %v1906_v49 = vrot.slane %v1904_v32, 2 }
 0x115   : > { %5508 = vmatprep.subr.bf16.mxu1 %v5981_v14 }
 0x116   : > { %5219 = vmatmul.mubr.bf16.gmra.mrb[12].mxu1 %v1498_v51  ;;  %v1517_v51 = vrot.slane %v5948_v46, 1 }
 0x117   : > { %5447 = vmatmul.mubr.bf16.gmra.mrb[32].mxu0 %v3261_v52  ;;  %5222 = vmatprep.mubr.bf16.mxu1 %v1500_v56  ;;  %v1910_v52 = vshrl.u32 %v6753_v60, 16  ;;  %v1907_v56 = vor.u32 %v1906_v49, %v1903_v6 }
 0x118   : > { %5466 = vmatprep.mubr.bf16.mxu0 %v3565_v33  ;;  %5516 = vmatpush3.bf16.msra.mxu1 %v5981_v14  ;;  %v1919_v33 = vshrl.u32 %v6758_v23, 16  ;;  %v1922_v14 = vshll.u32 %v6758_v23, 16  ;;  %v1518_v61 = vsel %vm1018_vm3, %v1515_v43, %v1517_v51  ;;  %v1928_v23 = vshrl.u32 %v6770_v9, 16 }
 0x119   : > { %5509 = vmatprep.subr.bf16.mxu1 %v5984_v15  ;;  %v1912_v17 = vrot.slane %v1910_v52, 1  ;;  %v3591_v43 = vsel %vm3562_vm5, %v3588_v16, %v3590_v21 }
 0x11a   : > { %v1921_v60 = vrot.slane %v1919_v33, 1 }
 0x11c   : > { %5517 = vmatpush3.bf16.msra.mxu1 %v5984_v15  ;;  %v3583_v15 = vsel %vm3562_vm5, %v3580_v40, %v3582_v58 }
 0x11e   : > { %5223 = vmatmul.mubr.bf16.gmra.mrb[16].mxu1 %v1502_v59  ;;  %v1908_v59 = vsel %vm1819_vm1, %v6230_v34, %v1907_v56  ;;  %v1940_v34 = vshll.u32 %v6775_v5, 16  ;;  %v1946_v5 = vshrl.u32 %v6784_v18, 16 }
 0x11f   : > { %5467 = vmatmul.mubr.bf16.vlgmr.msra.gmra.mrb[0].mxu0 %v3567_v25  ;;  %5226 = vmatprep.mubr.bf16.mxu1 %v1504_v4  ;;  %v1924_v25 = vrot.slane %v1922_v14, 2  ;;  %v1916_v4 = vor.u32 %v1915_v3, %v1912_v17 }
 0x120   : > { %5470 = vmatprep.mubr.bf16.mxu0 %v3569_v27  ;;  %v3586_v27 = vrot.slane %v6523_v10, 3  ;;  %v1942_v9 = vrot.slane %v1940_v34, 2  ;;  %v1948_v44 = vrot.slane %v1946_v5, 1 }
 0x121   : > { %v1925_v31 = vor.u32 %v1924_v25, %v1921_v60  ;;  %v1917_v41 = vsel %vm1819_vm1, %v1907_v56, %v1916_v4  ;;  %v5991_v56 = vld [vmem:[%s6069_s14 + $0x98] ss:$0 sps:$4 sm:$0x33]  }
 0x122   : > { %v3589_v1 = vsel %vm3562_vm5, %v3586_v27, %v3588_v16  ;;  %v1943_v26 = vor.u32 %v1942_v9, %v1939_v38  ;;  %v1952_v29 = vor.u32 %v1951_v62, %v1948_v44  ;;  %v1985_v33 = vshll.u32 %v5991_v56, 16  ;;  %v6885_v9 = vld [vmem:[%s7075_s3] ss:$0 sm:$0xff] }
 0x124   : > { %v1953_v6 = vsel %vm1819_vm1, %v1943_v26, %v1952_v29  ;;  %v1987_v17 = vrot.slane %v1985_v33, 2 }
 0x126   : > { %5227 = vmatmul.mubr.bf16.gmra.mrb[20].mxu1 %v1506_v55  ;;  %v1930_v55 = vrot.slane %v1928_v23, 1 }
 0x127   : > { %5471 = vmatmul.mubr.bf16.gmra.mrb[4].mxu0 %v3571_v11  ;;  %5230 = vmatprep.mubr.bf16.mxu1 %v1508_v12  ;;  %v1933_v11 = vrot.slane %v1931_v2, 2  ;;  %v3587_v12 = vsel %vm3562_vm5, %v3584_v0, %v3586_v27 }
 0x128   : > { %5474 = vmatprep.mubr.bf16.mxu0 %v3573_v13  ;;  %v1926_v13 = vsel %vm1819_vm1, %v1916_v4, %v1925_v31 }
 0x129   : > { %v1934_v10 = vor.u32 %v1933_v11, %v1930_v55 }
 0x12b   : > { %v1944_v42 = vsel %vm1819_vm1, %v1934_v10, %v1943_v26 }
 0x12e   : > { %5231 = vmatmul.mubr.bf16.gmra.mrb[24].mxu1 %v1510_v22  ;;  %v1955_v22 = vshrl.u32 %v6789_v20, 16 }
 0x12f   : > { %5475 = vmatmul.mubr.bf16.gmra.mrb[8].mxu0 %v3575_v30  ;;  %5234 = vmatprep.mubr.bf16.mxu1 %v1512_v7  ;;  %v1958_v30 = vshll.u32 %v6789_v20, 16  ;;  %v3592_v7 = vrot.slane %v6546_v54, 3  ;;  %v1964_v20 = vshrl.u32 %v6798_v39, 16  ;;  %v1967_v54 = vshll.u32 %v6798_v39, 16 }
 0x130   : > { %5478 = vmatprep.mubr.bf16.mxu0 %v3577_v37  ;;  %v1935_v37 = vsel %vm1819_vm1, %v1925_v31, %v1934_v10  ;;  %v1957_v32 = vrot.slane %v1955_v22, 1 }
 0x131   : > { %v1960_v18 = vrot.slane %v1958_v30, 2  ;;  %v3593_v40 = vsel %vm3562_vm5, %v3590_v21, %v3592_v7  ;;  %v1966_v49 = vrot.slane %v1964_v20, 1 }
 0x133   : > { %v1961_v46 = vor.u32 %v1960_v18, %v1957_v32 }
 0x135   : > { %v1962_v52 = vsel %vm1819_vm1, %v1952_v29, %v1961_v46 }
 0x136   : > { %5235 = vmatmul.mubr.bf16.gmra.mrb[28].mxu1 %v1514_v45  ;;  %v3594_v45 = vrot.slane %v6560_v48, 3 }
 0x137   : > { %5479 = vmatmul.mubr.bf16.gmra.mrb[12].mxu0 %v3579_v36  ;;  %5238 = vmatprep.mubr.bf16.mxu1 %v1516_v19  ;;  %v1973_v36 = vshrl.u32 %v6803_v35, 16  ;;  %v1976_v19 = vshll.u32 %v6803_v35, 16  ;;  %v1982_v35 = vshrl.u32 %v5991_v56, 16 }
 0x138   : > { %5482 = vmatprep.mubr.bf16.mxu0 %v3581_v50  ;;  %v1969_v50 = vrot.slane %v1967_v54, 2  ;;  %v3595_v51 = vsel %vm3562_vm5, %v3592_v7, %v3594_v45  ;;  %v3597_v48 = vsel %vm3562_vm5, %v3594_v45, %v3596_v28 }
 0x139   : > { %v1975_v53 = vrot.slane %v1973_v36, 1  ;;  %v1978_v58 = vrot.slane %v1976_v19, 2 }
 0x13a   : > { %v1970_v39 = vor.u32 %v1969_v50, %v1966_v49 }
 0x13b   : > { %v1979_v14 = vor.u32 %v1978_v58, %v1975_v53 }
 0x13c   : > { %v1971_v0 = vsel %vm1819_vm1, %v1961_v46, %v1970_v39 }
 0x13d   : > { %v1980_v3 = vsel %vm1819_vm1, %v1970_v39, %v1979_v14 }
 0x13e   : > { %5239 = vmatmul.mubr.bf16.gmra.mrb[32].mxu1 %v1518_v61  ;;  %v1984_v61 = vrot.slane %v1982_v35, 1 }
 0x13f   : > { %5483 = vmatmul.mubr.bf16.gmra.mrb[16].mxu0 %v3583_v15  ;;  %5274 = vmatprep.mubr.bf16.mxu1 %v1908_v59 }
 0x140   : > { %5486 = vmatprep.mubr.bf16.mxu0 %v3585_v8  ;;  %v1988_v47 = vor.u32 %v1987_v17, %v1984_v61 }
 0x142   : > { %v1989_v28 = vsel %vm1819_vm1, %v1979_v14, %v1988_v47 }
 0x146   : > { %5275 = vmatmul.mubr.bf16.vlgmr.msra.gmra.mrb[16].mxu1 %v1917_v41 }
 0x147   : > { %5487 = vmatmul.mubr.bf16.gmra.mrb[20].mxu0 %v3587_v12  ;;  %5278 = vmatprep.mubr.bf16.mxu1 %v1926_v13  ;;  %v6880_v12 = vld [vmem:[%s7074_s2] ss:$0 sm:$0xff] }
 0x148   : > { %5490 = vmatprep.mubr.bf16.mxu0 %v3589_v1 }
 0x14e   : > { %5279 = vmatmul.mubr.bf16.gmra.mrb[20].mxu1 %v1935_v37 }
 0x14f   : > { %5491 = vmatmul.mubr.bf16.gmra.mrb[24].mxu0 %v3591_v43  ;;  %5282 = vmatprep.mubr.bf16.mxu1 %v1944_v42 }
 0x150   : > { %5494 = vmatprep.mubr.bf16.mxu0 %v3593_v40 }
 0x156   : > { %5283 = vmatmul.mubr.bf16.gmra.mrb[24].mxu1 %v1953_v6 }
 0x157   : > { %5495 = vmatmul.mubr.bf16.gmra.mrb[28].mxu0 %v3595_v51  ;;  %5286 = vmatprep.mubr.bf16.mxu1 %v1962_v52 }
 0x158   : > { %5498 = vmatprep.mubr.bf16.mxu0 %v3597_v48 }
 0x15e   : > { %5287 = vmatmul.mubr.bf16.gmra.mrb[28].mxu1 %v1971_v0 }
 0x15f   : > { %5499 = vmatmul.mubr.bf16.gmra.mrb[32].mxu0 %v6648_v63  ;;  %5290 = vmatprep.mubr.bf16.mxu1 %v1980_v3 }
 0x166   : > { %5291 = vmatmul.mubr.bf16.gmra.mrb[32].mxu1 %v1989_v28 }
 0x1d1   : > { %v5208_v15 = vpop.f32.mrb[0].mxu1 }
 0x1d2   : > { %v1619_v59 = vpop.f32.mrb[1].mxu1 }
 0x1d3   : > { %v5209_v60 = vpop.f32.mrb[2].mxu1 }
 0x1d4   : > { %v1622_v25 = vpop.f32.mrb[3].mxu1 }
 0x1d9   : > { %v5212_v8 = vpop.f32.mrb[4].mxu1 }
 0x1da   : > { %v1635_v4 = vpop.f32.mrb[5].mxu1 }
 0x1db   : > { %v5213_v23 = vpop.f32.mrb[6].mxu1 }
 0x1dc   : > { %v1638_v2 = vpop.f32.mrb[7].mxu1 }
 0x1e1   : > { %v6861_v27 = vpop.f32.mrb[8].mxu1 }
 0x1e2   : > { %v6863_v31 = vpop.f32.mrb[9].mxu1 }
 0x1e3   : > { %v6865_v24 = vpop.f32.mrb[10].mxu1 }
 0x1e4   : > { %v6867_v63 = vpop.f32.mrb[11].mxu1 }
 0x1e9   : > { %v6869_v34 = vpop.f32.mrb[12].mxu1 }
 0x1ea   : > { %v6871_v16 = vpop.f32.mrb[13].mxu1 }
 0x1eb   : > { %v6873_v41 = vpop.f32.mrb[14].mxu1 }
 0x1ec   : > { %v6875_v55 = vpop.f32.mrb[15].mxu1 }
 0x1f2   : > { %v5468_v11 = vpop.f32.mrb[0].mxu0 }
 0x1f3   : > { %v5518_v13 = vadd.f32 %v5468_v11, %v5208_v15  ;;  %v3700_v38 = vpop.f32.mrb[1].mxu0 }
 0x1f4   : > { %v5519_v1 = vadd.f32 %v3700_v38, %v1619_v59  ;;  %v5469_v10 = vpop.f32.mrb[2].mxu0 }
 0x1f5   : > { %v3888_v5 = vmul.f32 %v5518_v13, %v6880_v12  ;;  %v5520_v57 = vadd.f32 %v5469_v10, %v5209_v60  ;;  %v3703_v21 = vpop.f32.mrb[3].mxu0 }
 0x1f6   : > { %v3886_v26 = vmul.f32 %v5519_v1, %v6880_v12  ;;  %v5521_v22 = vadd.f32 %v3703_v21, %v1622_v25 }
 0x1f7   : > { %v3931_v30 = vadd.f32 %v6885_v9, %v3888_v5  ;;  %v3889_v7 = vmul.f32 %v5520_v57, %v6880_v12 }
 0x1f8   : > { %v3929_v37 = vadd.f32 %v6885_v9, %v3886_v26  ;;  %v3887_v44 = vmul.f32 %v5521_v22, %v6880_v12 }
 0x1f9   : > { %v3967_v62 = vmax.f32 %v3931_v30, 0.0  ;;  %v3932_v43 = vadd.f32 %v6885_v9, %v3889_v7 }
 0x1fa   : > { %v3930_v42 = vadd.f32 %v6885_v9, %v3887_v44  ;;  %v5472_v32 = vpop.f32.mrb[4].mxu0  ;;  %v3965_v54 = vmax.f32 %v3929_v37, 0.0 }
 0x1fb   : > { %v4735_v18 = vpack.c.bf16 %v3967_v62, %v3967_v62  ;;  %v3968_v40 = vmax.f32 %v3932_v43, 0.0  ;;  %v5522_v29 = vadd.f32 %v5472_v32, %v5212_v8  ;;  %v3716_v20 = vpop.f32.mrb[5].mxu0 }
 0x1fc   : > { %v3966_v45 = vmax.f32 %v3930_v42, 0.0  ;;  %v5523_v46 = vadd.f32 %v3716_v20, %v1635_v4  ;;  %v5473_v36 = vpop.f32.mrb[6].mxu0 }
 0x1fd   : > { %v4736_v19 = vpack.c.bf16 %v3968_v40, %v3968_v40  ;;  %v3892_v6 = vmul.f32 %v5522_v29, %v6880_v12  ;;  %v5524_v49 = vadd.f32 %v5473_v36, %v5213_v23  ;;  %v3719_v50 = vpop.f32.mrb[7].mxu0  ;;  %v4649_v48 = vrot.slane %v4735_v18, 9 }
 0x1fe   : > { %v4780_v52 = vpack.c.bf16 %v3966_v45, %v3965_v54  ;;  %v3890_v53 = vmul.f32 %v5523_v46, %v6880_v12  ;;  %v5525_v58 = vadd.f32 %v3719_v50, %v1638_v2 }
 0x1ff   : > { %v4026_v39 = vrot.slane %v4736_v19, 5  ;;  %v3935_v56 = vadd.f32 %v6885_v9, %v3892_v6  ;;  %v3893_v35 = vmul.f32 %v5524_v49, %v6880_v12 }
 0x200   : > { %4781 = vst [vmem:[%s6899_s25] sm:$0xff] %v4780_v52   ;;  %v3933_v33 = vadd.f32 %v6885_v9, %v3890_v53  ;;  %v3891_v14 = vmul.f32 %v5525_v58, %v6880_v12 }
 0x201   : > { %v4027_v0 = vsel %vm6903_vm8, %v4649_v48, %v4026_v39  ;;  %v3971_v61 = vmax.f32 %v3935_v56, 0.0  ;;  %v3936_v17 = vadd.f32 %v6885_v9, %v3893_v35  ;;  %v4028_v1 = vrot.slane %v4026_v39, 4 }
 0x202   : > { %4650 = vst [vmem:[%s6899_s25 + $0x8] sm:$0xf] %v4027_v0  ;;  %v3969_v3 = vmax.f32 %v3933_v33, 0.0  ;;  %v3934_v47 = vadd.f32 %v6885_v9, %v3891_v14  ;;  %v5476_v28 = vpop.f32.mrb[8].mxu0 }
 0x203   : > { %v4740_v15 = vpack.c.bf16 %v3971_v61, %v3971_v61  ;;  %v3972_v59 = vmax.f32 %v3936_v17, 0.0  ;;  %v5526_v60 = vadd.f32 %v5476_v28, %v6861_v27  ;;  %v3732_v25 = vpop.f32.mrb[9].mxu0 }
 0x204   : > { %v4737_v8 = vpack.c.bf16 %v3969_v3, %v3969_v3  ;;  %v3970_v4 = vmax.f32 %v3934_v47, 0.0  ;;  %v5527_v23 = vadd.f32 %v3732_v25, %v6863_v31  ;;  %v5477_v2 = vpop.f32.mrb[10].mxu0 }
 0x205   : > { %v4742_v11 = vpack.c.bf16 %v3972_v59, %v3972_v59  ;;  %v3896_v13 = vmul.f32 %v5526_v60, %v6880_v12  ;;  %v3735_v38 = vpop.f32.mrb[11].mxu0  ;;  %v4661_v21 = vrot.slane %v4740_v15, 11  ;;  %v5528_v22 = vadd.f32 %v5477_v2, %v6865_v24 }
 0x206   : > { %v4029_v10 = vrot.slane %v4737_v8, 5  ;;  %v4739_v27 = vpack.c.bf16 %v3970_v4, %v3970_v4  ;;  %v3894_v57 = vmul.f32 %v5527_v23, %v6880_v12  ;;  %v5529_v30 = vadd.f32 %v3735_v38, %v6867_v63 }
 0x207   : > { %v4076_v31 = vrot.slane %v4742_v11, 7  ;;  %v4655_v37 = vrot.slane %v4737_v8, 10  ;;  %v4054_v43 = vrot.slane %v4740_v15, 6  ;;  %v3939_v32 = vadd.f32 %v6885_v9, %v3896_v13 }
 0x208   : > { %v4030_v7 = vsel %vm6903_vm8, %v4028_v1, %v4029_v10  ;;  %v4051_v44 = vrot.slane %v4739_v27, 6  ;;  %v3937_v62 = vadd.f32 %v6885_v9, %v3894_v57  ;;  %v3897_v18 = vmul.f32 %v5528_v22, %v6880_v12 }
 0x209   : > { %4651 = vst [vmem:[%s6899_s25 + $0xc] sm:$0xf] %v4030_v7  ;;  %v4077_v42 = vsel %vm6923_vm13, %v4661_v21, %v4076_v31  ;;  %v3895_v29 = vmul.f32 %v5529_v30, %v6880_v12  ;;  %v4078_v54 = vrot.slane %v4076_v31, 4  ;;  %v3975_v53 = vmax.f32 %v3939_v32, 0.0 }
 0x20a   : > { %4662 = vst [vmem:[%s6899_s25 + $0x18] sm:$0xf] %v4077_v42  ;;  %v4052_v24 = vsel %vm6929_vm14, %v4655_v37, %v4051_v44  ;;  %v4053_v63 = vrot.slane %v4051_v44, 4  ;;  %v3973_v40 = vmax.f32 %v3937_v62, 0.0  ;;  %v5480_v20 = vpop.f32.mrb[12].mxu0  ;;  %v3940_v45 = vadd.f32 %v6885_v9, %v3897_v18 }
 0x20b   : > { %4656 = vst [vmem:[%s6899_s25 + $0x10] sm:$0xf] %v4052_v24  ;;  %v5530_v46 = vadd.f32 %v5480_v20, %v6869_v34  ;;  %v3748_v36 = vpop.f32.mrb[13].mxu0  ;;  %v3938_v49 = vadd.f32 %v6885_v9, %v3895_v29 }
 0x20c   : > { %v4055_v19 = vsel %vm6929_vm14, %v4053_v63, %v4054_v43  ;;  %v4743_v6 = vpack.c.bf16 %v3973_v40, %v3973_v40  ;;  %v5531_v50 = vadd.f32 %v3748_v36, %v6871_v16  ;;  %v5481_v52 = vpop.f32.mrb[14].mxu0  ;;  %v3976_v58 = vmax.f32 %v3940_v45, 0.0 }
 0x20d   : > { %4657 = vst [vmem:[%s6899_s25 + $0x14] sm:$0xf] %v4055_v19  ;;  %v3900_v48 = vmul.f32 %v5530_v46, %v6880_v12  ;;  %v5532_v39 = vadd.f32 %v5481_v52, %v6873_v41  ;;  %v3751_v34 = vpop.f32.mrb[15].mxu0  ;;  %v3974_v35 = vmax.f32 %v3938_v49, 0.0 }
 0x20e   : > { %v4079_v56 = vrot.slane %v4743_v6, 7  ;;  %v3898_v33 = vmul.f32 %v5531_v50, %v6880_v12  ;;  %v5533_v14 = vadd.f32 %v3751_v34, %v6875_v55  ;;  %v4746_v15 = vpack.c.bf16 %v3976_v58, %v3976_v58 }
 0x20f   : > { %v3943_v0 = vadd.f32 %v6885_v9, %v3900_v48  ;;  %v3901_v16 = vmul.f32 %v5532_v39, %v6880_v12  ;;  %v4785_v17 = vpack.c.bf16 %v3975_v53, %v3974_v35 }
 0x210   : > { %v4080_v61 = vsel %vm6923_vm13, %v4078_v54, %v4079_v56  ;;  %v3941_v3 = vadd.f32 %v6885_v9, %v3898_v33  ;;  %v3899_v41 = vmul.f32 %v5533_v14, %v6880_v12  ;;  %v4671_v10 = vrot.slane %v4746_v15, 9 }
 0x211   : > { %4663 = vst [vmem:[%s6899_s25 + $0x1c] sm:$0xf] %v4080_v61  ;;  %v3979_v47 = vmax.f32 %v3943_v0, 0.0  ;;  %v3944_v28 = vadd.f32 %v6885_v9, %v3901_v16  ;;  %4797 = vst [vmem:[%s6899_s25 + $0x20] sm:$0xff] %v4785_v17  }
 0x212   : > { %v3977_v59 = vmax.f32 %v3941_v3, 0.0  ;;  %v3942_v55 = vadd.f32 %v6885_v9, %v3899_v41  ;;  %v5484_v60 = vpop.f32.mrb[16].mxu0 }
 0x213   : > { %v4750_v25 = vpack.c.bf16 %v3979_v47, %v3979_v47  ;;  %v3980_v8 = vmax.f32 %v3944_v28, 0.0  ;;  %v3764_v4 = vpop.f32.mrb[17].mxu0 }
 0x214   : > { %v4747_v23 = vpack.c.bf16 %v3977_v59, %v3977_v59  ;;  %v3978_v2 = vmax.f32 %v3942_v55, 0.0  ;;  %v5485_v11 = vpop.f32.mrb[18].mxu0 }
 0x215   : > { %v4131_v13 = vrot.slane %v4750_v25, 6  ;;  %v6969_v38 = vpack.c.bf16 %v3980_v8, %v3980_v8  ;;  %v3767_v1 = vpop.f32.mrb[19].mxu0 }
 0x216   : > { %v4109_v27 = vrot.slane %v4747_v23, 5  ;;  %v4748_v57 = vpack.c.bf16 %v3978_v2, %v3978_v2 }
 0x217   : > { %v4133_v21 = vrot.slane %v4131_v13, 4  ;;  %v4134_v31 = vrot.slane %v6969_v38, 6  ;;  %v4683_v47 = vrot.slane %v6969_v38, 11 }
 0x218   : > { %v4110_v22 = vsel %vm6903_vm8, %v4671_v10, %v4109_v27  ;;  %v4111_v30 = vrot.slane %v4109_v27, 4  ;;  %v4112_v7 = vrot.slane %v4748_v57, 5  ;;  %v4677_v37 = vrot.slane %v4748_v57, 10 }
 0x219   : > { %4672 = vst [vmem:[%s6899_s25 + $0x28] sm:$0xf] %v4110_v22  ;;  %v4135_v44 = vsel %vm6929_vm14, %v4133_v21, %v4134_v31  ;;  %v5276_v62 = vpop.f32.mrb[16].mxu1 }
 0x21a   : > { %4679 = vst [vmem:[%s6899_s25 + $0x34] sm:$0xf] %v4135_v44  ;;  %v4113_v43 = vsel %vm6903_vm8, %v4111_v30, %v4112_v7  ;;  %v4132_v42 = vsel %vm6929_vm14, %v4677_v37, %v4131_v13  ;;  %v5534_v32 = vadd.f32 %v5484_v60, %v5276_v62  ;;  %v5488_v18 = vpop.f32.mrb[20].mxu0  ;;  %v2154_v24 = vpop.f32.mrb[17].mxu1 }
 0x21b   : > { %4673 = vst [vmem:[%s6899_s25 + $0x2c] sm:$0xf] %v4113_v43  ;;  %4678 = vst [vmem:[%s6899_s25 + $0x30] sm:$0xf] %v4132_v42  ;;  %v5535_v63 = vadd.f32 %v3764_v4, %v2154_v24  ;;  %v3780_v40 = vpop.f32.mrb[21].mxu0  ;;  %v5277_v29 = vpop.f32.mrb[18].mxu1 }
 0x21c   : > { %v3904_v20 = vmul.f32 %v5534_v32, %v6880_v12  ;;  %v5536_v54 = vadd.f32 %v5485_v11, %v5277_v29  ;;  %v5489_v45 = vpop.f32.mrb[22].mxu0  ;;  %v2157_v46 = vpop.f32.mrb[19].mxu1 }
 0x21d   : > { %v3902_v36 = vmul.f32 %v5535_v63, %v6880_v12  ;;  %v5537_v19 = vadd.f32 %v3767_v1, %v2157_v46  ;;  %v3783_v6 = vpop.f32.mrb[23].mxu0 }
 0x21e   : > { %v3947_v49 = vadd.f32 %v6885_v9, %v3904_v20  ;;  %v3905_v50 = vmul.f32 %v5536_v54, %v6880_v12 }
 0x21f   : > { %v3945_v52 = vadd.f32 %v6885_v9, %v3902_v36  ;;  %v3903_v53 = vmul.f32 %v5537_v19, %v6880_v12 }
 0x220   : > { %v3948_v58 = vadd.f32 %v6885_v9, %v3905_v50  ;;  %v3983_v56 = vmax.f32 %v3947_v49, 0.0 }
 0x221   : > { %v3981_v48 = vmax.f32 %v3945_v52, 0.0  ;;  %v3946_v39 = vadd.f32 %v6885_v9, %v3903_v53  ;;  %v5280_v34 = vpop.f32.mrb[20].mxu1 }
 0x222   : > { %v3984_v35 = vmax.f32 %v3948_v58, 0.0  ;;  %v5538_v33 = vadd.f32 %v5488_v18, %v5280_v34  ;;  %v5492_v14 = vpop.f32.mrb[24].mxu0  ;;  %v2170_v0 = vpop.f32.mrb[21].mxu1 }
 0x223   : > { %v4753_v16 = vpack.c.bf16 %v3981_v48, %v3981_v48  ;;  %v3982_v61 = vmax.f32 %v3946_v39, 0.0  ;;  %v5539_v17 = vadd.f32 %v3780_v40, %v2170_v0  ;;  %v3796_v3 = vpop.f32.mrb[25].mxu0  ;;  %v5281_v41 = vpop.f32.mrb[22].mxu1 }
 0x224   : > { %v4790_v28 = vpack.c.bf16 %v3984_v35, %v3983_v56  ;;  %v3908_v15 = vmul.f32 %v5538_v33, %v6880_v12  ;;  %v5540_v59 = vadd.f32 %v5489_v45, %v5281_v41  ;;  %v5493_v55 = vpop.f32.mrb[26].mxu0  ;;  %v2173_v60 = vpop.f32.mrb[23].mxu1 }
 0x225   : > { %v4153_v25 = vrot.slane %v4753_v16, 7  ;;  %v4754_v8 = vpack.c.bf16 %v3982_v61, %v3982_v61  ;;  %v3906_v4 = vmul.f32 %v5539_v17, %v6880_v12  ;;  %v5541_v23 = vadd.f32 %v3783_v6, %v2173_v60  ;;  %v3799_v2 = vpop.f32.mrb[27].mxu0 }
 0x226   : > { %4798 = vst [vmem:[%s6899_s25 + $0x40] sm:$0xff] %v4790_v28   ;;  %v3951_v11 = vadd.f32 %v6885_v9, %v3908_v15  ;;  %v3909_v13 = vmul.f32 %v5540_v59, %v6880_v12 }
 0x227   : > { %v4154_v38 = vsel %vm6923_vm13, %v4683_v47, %v4153_v25  ;;  %v4155_v1 = vrot.slane %v4153_v25, 4  ;;  %v4156_v10 = vrot.slane %v4754_v8, 7  ;;  %v3949_v27 = vadd.f32 %v6885_v9, %v3906_v4 }
 0x228   : > { %4684 = vst [vmem:[%s6899_s25 + $0x38] sm:$0xf] %v4154_v38  ;;  %v3987_v57 = vmax.f32 %v3951_v11, 0.0  ;;  %v3952_v21 = vadd.f32 %v6885_v9, %v3909_v13  ;;  %v3907_v31 = vmul.f32 %v5541_v23, %v6880_v12 }
 0x229   : > { %v4157_v22 = vsel %vm6923_vm13, %v4155_v1, %v4156_v10  ;;  %v3985_v30 = vmax.f32 %v3949_v27, 0.0  ;;  %v5284_v7 = vpop.f32.mrb[24].mxu1 }
 0x22a   : > { %4685 = vst [vmem:[%s6899_s25 + $0x3c] sm:$0xf] %v4157_v22  ;;  %v4759_v37 = vpack.c.bf16 %v3987_v57, %v3987_v57  ;;  %v3988_v44 = vmax.f32 %v3952_v21, 0.0  ;;  %v3950_v62 = vadd.f32 %v6885_v9, %v3907_v31  ;;  %v5542_v43 = vadd.f32 %v5492_v14, %v5284_v7  ;;  %v5496_v42 = vpop.f32.mrb[28].mxu0  ;;  %v2186_v32 = vpop.f32.mrb[25].mxu1 }
 0x22b   : > { %v5543_v18 = vadd.f32 %v3796_v3, %v2186_v32  ;;  %v3812_v24 = vpop.f32.mrb[29].mxu0  ;;  %v5285_v63 = vpop.f32.mrb[26].mxu1  ;;  %v4757_v40 = vpack.c.bf16 %v3985_v30, %v3985_v30 }
 0x22c   : > { %v4761_v29 = vpack.c.bf16 %v3988_v44, %v3988_v44  ;;  %v3986_v20 = vmax.f32 %v3950_v62, 0.0  ;;  %v5497_v54 = vpop.f32.mrb[30].mxu0  ;;  %v2189_v45 = vpop.f32.mrb[27].mxu1  ;;  %v3912_v46 = vmul.f32 %v5542_v43, %v6880_v12  ;;  %v5544_v19 = vadd.f32 %v5493_v55, %v5285_v63 }
 0x22d   : > { %v3910_v36 = vmul.f32 %v5543_v18, %v6880_v12  ;;  %v3815_v6 = vpop.f32.mrb[31].mxu0  ;;  %v4699_v49 = vrot.slane %v4759_v37, 10  ;;  %v5545_v53 = vadd.f32 %v3799_v2, %v2189_v45  ;;  %v4693_v39 = vrot.slane %v4757_v40, 9 }
 0x22e   : > { %v4208_v50 = vrot.slane %v4761_v29, 6  ;;  %v4758_v52 = vpack.c.bf16 %v3986_v20, %v3986_v20  ;;  %v3955_v58 = vadd.f32 %v6885_v9, %v3912_v46  ;;  %v4189_v33 = vrot.slane %v4759_v37, 5 }
 0x22f   : > { %v3953_v48 = vadd.f32 %v6885_v9, %v3910_v36  ;;  %v3911_v35 = vmul.f32 %v5545_v53, %v6880_v12  ;;  %v3913_v16 = vmul.f32 %v5544_v19, %v6880_v12 }
 0x230   : > { %v4209_v34 = vsel %vm6929_vm14, %v4699_v49, %v4208_v50  ;;  %v4186_v56 = vrot.slane %v4758_v52, 5  ;;  %v3991_v14 = vmax.f32 %v3955_v58, 0.0  ;;  %v4210_v59 = vrot.slane %v4208_v50, 4 }
 0x231   : > { %4700 = vst [vmem:[%s6899_s25 + $0x50] sm:$0xf] %v4209_v34  ;;  %v3989_v0 = vmax.f32 %v3953_v48, 0.0  ;;  %v5288_v61 = vpop.f32.mrb[28].mxu1  ;;  %v3954_v41 = vadd.f32 %v6885_v9, %v3911_v35  ;;  %v3956_v27 = vadd.f32 %v6885_v9, %v3913_v16 }
 0x232   : > { %v4187_v17 = vsel %vm6903_vm8, %v4693_v39, %v4186_v56  ;;  %v4188_v3 = vrot.slane %v4186_v56, 4  ;;  %v5546_v47 = vadd.f32 %v5496_v42, %v5288_v61  ;;  %v5500_v28 = vpop.f32.mrb[32].mxu0  ;;  %v2202_v15 = vpop.f32.mrb[29].mxu1  ;;  %v4765_v1 = vpack.c.bf16 %v3991_v14, %v3991_v14 }
 0x233   : > { %4694 = vst [vmem:[%s6899_s25 + $0x48] sm:$0xf] %v4187_v17  ;;  %v4762_v55 = vpack.c.bf16 %v3989_v0, %v3989_v0  ;;  %v5547_v60 = vadd.f32 %v3812_v24, %v2202_v15  ;;  %v3828_v25 = vpop.f32.mrb[33].mxu0  ;;  %v5289_v8 = vpop.f32.mrb[30].mxu1  ;;  %v3990_v23 = vmax.f32 %v3954_v41, 0.0  ;;  %v3992_v63 = vmax.f32 %v3956_v27, 0.0 }
 0x234   : > { %v4190_v4 = vsel %vm6903_vm8, %v4188_v3, %v4189_v33  ;;  %v3916_v2 = vmul.f32 %v5546_v47, %v6880_v12  ;;  %v5548_v11 = vadd.f32 %v5497_v54, %v5289_v8  ;;  %v5501_v13 = vpop.f32.mrb[34].mxu0  ;;  %v2205_v38 = vpop.f32.mrb[31].mxu1  ;;  %v4233_v24 = vrot.slane %v4765_v1, 7 }
 0x235   : > { %4695 = vst [vmem:[%s6899_s25 + $0x4c] sm:$0xf] %v4190_v4  ;;  %v4211_v10 = vrot.slane %v4762_v55, 6  ;;  %v3914_v57 = vmul.f32 %v5547_v60, %v6880_v12  ;;  %v3831_v21 = vpop.f32.mrb[35].mxu0  ;;  %v4764_v31 = vpack.c.bf16 %v3990_v23, %v3990_v23  ;;  %v5549_v7 = vadd.f32 %v3815_v6, %v2205_v38 }
 0x236   : > { %v3959_v22 = vadd.f32 %v6885_v9, %v3916_v2  ;;  %v3917_v30 = vmul.f32 %v5548_v11, %v6880_v12  ;;  %v4705_v44 = vrot.slane %v4762_v55, 11 }
 0x237   : > { %v4212_v37 = vsel %vm6929_vm14, %v4210_v59, %v4211_v10  ;;  %v3957_v62 = vadd.f32 %v6885_v9, %v3914_v57  ;;  %v4230_v43 = vrot.slane %v4764_v31, 7  ;;  %v3915_v18 = vmul.f32 %v5549_v7, %v6880_v12 }
 0x238   : > { %4701 = vst [vmem:[%s6899_s25 + $0x54] sm:$0xf] %v4212_v37  ;;  %v3995_v42 = vmax.f32 %v3959_v22, 0.0  ;;  %v3960_v32 = vadd.f32 %v6885_v9, %v3917_v30 }
 0x239   : > { %v3993_v40 = vmax.f32 %v3957_v62, 0.0  ;;  %v5292_v29 = vpop.f32.mrb[32].mxu1  ;;  %v4231_v20 = vsel %vm6923_vm13, %v4705_v44, %v4230_v43  ;;  %v4232_v54 = vrot.slane %v4230_v43, 4  ;;  %v3958_v6 = vadd.f32 %v6885_v9, %v3915_v18 }
 0x23a   : > { %v4769_v45 = vpack.c.bf16 %v3995_v42, %v3995_v42  ;;  %v3996_v46 = vmax.f32 %v3960_v32, 0.0  ;;  %v2218_v36 = vpop.f32.mrb[33].mxu1  ;;  %4706 = vst [vmem:[%s6899_s25 + $0x58] sm:$0xf] %v4231_v20  ;;  %v5550_v49 = vadd.f32 %v5500_v28, %v5292_v29 }
 0x23b   : > { %v4795_v19 = vpack.c.bf16 %v3993_v40, %v3992_v63  ;;  %v5551_v50 = vadd.f32 %v3828_v25, %v2218_v36  ;;  %v5293_v52 = vpop.f32.mrb[34].mxu1  ;;  %v4234_v53 = vsel %vm6923_vm13, %v4232_v54, %v4233_v24  ;;  %v3994_v56 = vmax.f32 %v3958_v6, 0.0 }
 0x23c   : > { %v4263_v58 = vrot.slane %v4769_v45, 5  ;;  %v4770_v48 = vpack.c.bf16 %v3996_v46, %v3996_v46  ;;  %v5552_v39 = vadd.f32 %v5501_v13, %v5293_v52  ;;  %v2221_v34 = vpop.f32.mrb[35].mxu1  ;;  %4707 = vst [vmem:[%s6899_s25 + $0x5c] sm:$0xf] %v4234_v53  ;;  %v3920_v35 = vmul.f32 %v5550_v49, %v6880_v12 }
 0x23d   : > { %4799 = vst [vmem:[%s6899_s25 + $0x60] sm:$0xff] %v4795_v19   ;;  %v3918_v33 = vmul.f32 %v5551_v50, %v6880_v12  ;;  %v5553_v14 = vadd.f32 %v3831_v21, %v2221_v34  ;;  %v4768_v17 = vpack.c.bf16 %v3994_v56, %v3994_v56 }
 0x23e   : > { %v4265_v0 = vrot.slane %v4263_v58, 4  ;;  %v4266_v16 = vrot.slane %v4770_v48, 5  ;;  %v3921_v61 = vmul.f32 %v5552_v39, %v6880_v12  ;;  %v3963_v3 = vadd.f32 %v6885_v9, %v3920_v35 }
 0x23f   : > { %v3961_v41 = vadd.f32 %v6885_v9, %v3918_v33  ;;  %v3919_v47 = vmul.f32 %v5553_v14, %v6880_v12  ;;  %v4715_v59 = vrot.slane %v4768_v17, 9  ;;  %v4721_v13 = vrot.slane %v4770_v48, 10 }
 0x240   : > { %v4267_v28 = vsel %vm6903_vm8, %v4265_v0, %v4266_v16  ;;  %v3964_v15 = vadd.f32 %v6885_v9, %v3921_v61  ;;  %v3999_v55 = vmax.f32 %v3963_v3, 0.0 }
 0x241   : > { %4717 = vst [vmem:[%s6899_s25 + $0x6c] sm:$0xf] %v4267_v28  ;;  %v3997_v60 = vmax.f32 %v3961_v41, 0.0  ;;  %v3962_v25 = vadd.f32 %v6885_v9, %v3919_v47  ;;  %v4264_v4 = vsel %vm6903_vm8, %v4715_v59, %v4263_v58 }
 0x242   : > { %v4000_v8 = vmax.f32 %v3964_v15, 0.0  ;;  %v4775_v23 = vpack.c.bf16 %v3999_v55, %v3999_v55  ;;  %4716 = vst [vmem:[%s6899_s25 + $0x68] sm:$0xf] %v4264_v4 }
 0x243   : > { %v4772_v2 = vpack.c.bf16 %v3997_v60, %v3997_v60  ;;  %v3998_v11 = vmax.f32 %v3962_v25, 0.0 }
 0x244   : > { %v4776_v12 = vpack.c.bf16 %v4000_v8, %v4000_v8  ;;  %v4307_v38 = vrot.slane %v4775_v23, 7 }
 0x245   : > { %v4285_v1 = vrot.slane %v4772_v2, 6  ;;  %v4773_v10 = vpack.c.bf16 %v3998_v11, %v3998_v11 }
 0x246   : > { %v4310_v27 = vrot.slane %v4776_v12, 7  ;;  %v4309_v57 = vrot.slane %v4307_v38, 4 }
 0x247   : > { %v4286_v9 = vsel %vm6929_vm14, %v4721_v13, %v4285_v1  ;;  %v4287_v51 = vrot.slane %v4285_v1, 4  ;;  %v4288_v21 = vrot.slane %v4773_v10, 6  ;;  %v4727_v31 = vrot.slane %v4773_v10, 11 }
 0x248   : > { %4722 = vst [vmem:[%s6899_s25 + $0x70] sm:$0xf] %v4286_v9  ;;  %v4311_v22 = vsel %vm6923_vm13, %v4309_v57, %v4310_v27 }
 0x249   : > { %v4289_v30 = vsel %vm6929_vm14, %v4287_v51, %v4288_v21  ;;  %4729 = vst [vmem:[%s6899_s25 + $0x7c] sm:$0xf] %v4311_v22  ;;  %v4308_v7 = vsel %vm6923_vm13, %v4727_v31, %v4307_v38 }
 0x24a   : > { %4723 = vst [vmem:[%s6899_s25 + $0x74] sm:$0xf] %v4289_v30  ;;  %4728 = vst [vmem:[%s6899_s25 + $0x78] sm:$0xf] %v4308_v7 }
 0x24b PF: > { %s14_s15 = sadd.s32 1, %s5998_s15  }
 0x24c   : > { %p11_p4 = scmp.ge.s32.totalorder %s14_s15, 4  }
 0x24e   :  { %13 = sbr.rel (!%p11_p4) target bundleno = 1 (0x1), region = 89 }

// kernel: _lambda_.17
= control target key start
LH: loop header
LB: loop body
LE: loop exit
PB: predicated region body
PF: predicated region fallthrough
CT: control target
= control target key end

     0   :  { %11 = vsyncpa [#allocation3], 0  ;;  %s8817_s0 = inlined_call_operand.vmem [shape: bf16[2,110,128], index: 0, kind: input, shape index: {}]   ;;  %s8818_s1 = inlined_call_operand.vmem [shape: bf16[2,110,128], index: 1, kind: input, shape index: {}]   ;;  %s8819_s2 = inlined_call_operand.vmem [shape: bf16[2,110,128], index: 2, kind: input, shape index: {}]   ;;  %s8820_s3 = inlined_call_operand.vmem [shape: bf16[9,384,128], index: 3, kind: input, shape index: {}]   ;;  %s8821_s4 = inlined_call_operand.vmem [shape: f32[1,128], index: 4, kind: input, shape index: {}]   ;;  %s8822_s5 = inlined_call_operand.vmem [shape: f32[1,128], index: 5, kind: input, shape index: {}]   ;;  %s8823_s6 = inlined_call_operand.hbm [shape: f32[2,8,8,128], index: 6, kind: output, shape index: {}]  }
   0x1   :  { %13 = vsyncpa [#allocation3 + $0x1], 0  ;;  %s6979_s21 = smov 0   ;;  %s6981_s22 = smov 0  }
   0x2   :  { %s6983_s23 = smov 0   ;;  %s6985_s24 = smov 0  }
   0x3 LB: > { %s7000_s25 = sadd.s32 4294967295, %s6937_s24   ;;  %s4743_s26 = sadd.s32 4294967294, %s6937_s24   ;;  %s6937_s24 = sphi %s6985_s24, %s8833_s24   ;;  %s6933_s23 = sphi %s6983_s23, %s8832_s23   ;;  %s6929_s22 = sphi %s6981_s22, %s8831_s22   ;;  %s6925_s21 = sphi %s6979_s21, %s8830_s21  }
   0x4   : > { %s7004_s27 = sadd.s32 1, %s6937_s24   ;;  %s167_s28 = sadd.s32 1, %s6933_s23 }
   0x5   : > { %s164_s29 = ssub.s32 %s6937_s24, %s7004_s27  ;;  %p177_p0 = scmp.ne.s32.totalorder %s6933_s23, %s6929_s22 }
   0x6   : > { %p165_p1 = scmp.eq.s32.totalorder %s164_s29, 0  ;;  %p178_p2 = scmp.eq.s32.totalorder %s7000_s25, 1 }
   0x7   : > { %p183_p3 = scmp.ne.s32.totalorder %s6929_s22, %s6925_s21  ;;  %p184_p4 = scmp.eq.s32.totalorder %s4743_s26, 1 }
   0x8   : > { %s7015_s30 = scalar_select %p165_p1, %s6933_s23, %s167_s28  }
   0x9   : > { %p7017_p5 = por %p178_p2, %p177_p0  ;;  %p7021_p6 = por %p184_p4, %p183_p3 }
   0xa   : > { %p4746_p7 = scmp.ge.s32.totalorder %s6937_s24, 1  ;;  %p235_p8 = scmp.lt.s32.totalorder %s6937_s24, 3 }
   0xc   : > { %p236_p9 = pnand %p4746_p7, %p235_p8 }
   0xd   : > { %v6590_v0 = vld [vmem:[%s8820_s3 + $0x100] sm:$0xff] (!%p236_p9)   ;;  %v6939_v1 = vmov (!%p236_p9), 0.0   ;;  %vm6940_vm0 = vmmov (!%p236_p9), 0   ;;  %v6593_v4 = vld [vmem:[%s8820_s3 + $0x108] sm:$0xff] (!%p236_p9)   ;;  %v6596_v7 = vld [vmem:[%s8820_s3 + $0x110] sm:$0xff] (!%p236_p9)   ;;  %p275_p10 = scmp.lt.s32.totalorder (!%p236_p9), %s7000_s25, 1 }
   0xe   : > { %239 = sbr.rel (%p236_p9) target bundleno = 642 (0x282), region = 44  ;;  %5972 = vmatprep.subr.bf16.mxu1 (!%p236_p9), %v6939_v1  ;;  %v6591_v2 = vld [vmem:[%s8820_s3 + $0x140] sm:$0xff] (!%p236_p9)   ;;  %5441 = vmatprep.subr.bf16.mxu0 (!%p236_p9), %v6590_v0  ;;  %v6594_v5 = vld [vmem:[%s8820_s3 + $0x148] sm:$0xff] (!%p236_p9)   ;;  %v6597_v8 = vld [vmem:[%s8820_s3 + $0x150] sm:$0xff] (!%p236_p9)   ;;  %vm520_vm1 = vsmask.f32 (!%p236_p9), 7424 }
   0xf   : > { %v6592_v3 = vld [vmem:[%s8820_s3 + $0xc0] sm:$0xff] (!%p236_p9)   ;;  %5988 = vmatprep.mubr.msk.bf16.mxu1 (!%p236_p9), %vm6940_vm0, %v6939_v1  ;;  %5973 = vmatpush3.bf16.msra.mxu1 (!%p236_p9), %v6591_v2  ;;  %v6595_v6 = vld [vmem:[%s8820_s3 + $0xc8] sm:$0xff] (!%p236_p9)   ;;  %v6598_v9 = vld [vmem:[%s8820_s3 + $0xd0] sm:$0xff] (!%p236_p9)   ;;  %vm1309_vm2 = vcmask (!%p236_p9), 1046528   ;;  %vm2233_vm3 = vsmask.f32 (!%p236_p9), 6400 }
  0x10   : > { %5442 = vmatpush3.bf16.msra.mxu0 (!%p236_p9), %v6592_v3  ;;  %5974 = vmatprep.subr.bf16.mxu1 (!%p236_p9), %v6939_v1  ;;  %v6599_v10 = vld [vmem:[%s8820_s3 + $0x118] sm:$0xff] (!%p236_p9)   ;;  %v6602_v13 = vld [vmem:[%s8820_s3 + $0x120] sm:$0xff] (!%p236_p9)   ;;  %v6605_v16 = vld [vmem:[%s8820_s3 + $0x128] sm:$0xff] (!%p236_p9)   ;;  %vm2769_vm4 = vcmask (!%p236_p9), 1045504   ;;  %vm4229_vm5 = vcmask (!%p236_p9), 1044480   ;;  %s5440_s14 = sshll.u32 (!%p236_p9), %s7000_s25, 10 }
  0x11   : > { %5443 = vmatprep.subr.bf16.mxu0 (!%p236_p9), %v6593_v4  ;;  %v6600_v11 = vld [vmem:[%s8820_s3 + $0x158] sm:$0xff] (!%p236_p9)   ;;  %v6603_v14 = vld [vmem:[%s8820_s3 + $0x160] sm:$0xff] (!%p236_p9)   ;;  %v6606_v17 = vld [vmem:[%s8820_s3 + $0x168] sm:$0xff] (!%p236_p9)   ;;  %vm3693_vm6 = vsmask.f32 (!%p236_p9), 5376  ;;  %s8767_s18 = scalar_lea.hbm (!%p236_p9), %s8823_s6, %s5440_s14  ;;  %s6941_s26 = smov (!%p236_p9), [#allocation2]  }
  0x12   : > { %v6601_v12 = vld [vmem:[%s8820_s3 + $0xd8] sm:$0xff] (!%p236_p9)   ;;  %v6604_v15 = vld [vmem:[%s8820_s3 + $0xe0] sm:$0xff] (!%p236_p9)   ;;  %v6607_v18 = vld [vmem:[%s8820_s3 + $0xe8] sm:$0xff] (!%p236_p9)   ;;  %s6879_s28 = sshll.u32 (!%p236_p9), %s6941_s26, 4  ;;  %s6880_s28 = int_to_ptr.vmem [resolvable:$false] %s6879_s28 }
  0x13   : > { %5975 = vmatpush3.bf16.msra.mxu1 (!%p236_p9), %v6594_v5  ;;  %v6608_v19 = vld [vmem:[%s8820_s3 + $0x130] sm:$0xff] (!%p236_p9)   ;;  %v6611_v22 = vld [vmem:[%s8820_s3 + $0x138] sm:$0xff] (!%p236_p9)   ;;  %v6620_v40 = vld [vmem:[%s8820_s3 + $0x40] sm:$0xff] (!%p236_p9)  }
  0x14   : > { %5444 = vmatpush3.bf16.msra.mxu0 (!%p236_p9), %v6595_v6  ;;  %5976 = vmatprep.subr.bf16.mxu1 (!%p236_p9), %v6939_v1  ;;  %v6609_v20 = vld [vmem:[%s8820_s3 + $0x170] sm:$0xff] (!%p236_p9)   ;;  %v6612_v25 = vld [vmem:[%s8820_s3 + $0x178] sm:$0xff] (!%p236_p9)   ;;  %v6621_v56 = vld [vmem:[%s8820_s3] sm:$0xff] (!%p236_p9)  }
  0x15   : > { %5445 = vmatprep.subr.bf16.mxu0 %v6596_v7  ;;  %s276_s20 = scalar_select %p275_p10, %s7000_s25, 1  ;;  %v6610_v21 = vld [vmem:[%s8820_s3 + $0xf0] sm:$0xff]   ;;  %v6613_v29 = vld [vmem:[%s8820_s3 + $0xf8] sm:$0xff]   ;;  %v6622_v58 = vld [vmem:[%s8820_s3 + $0x48] sm:$0xff]  }
  0x16   : > { %v6624_v59 = vld [vmem:[%s8820_s3 + $0x80] sm:$0xff]   ;;  %v6623_v7 = vld [vmem:[%s8820_s3 + $0x8] sm:$0xff]  }
  0x17   : > { %5977 = vmatpush3.bf16.msra.mxu1 %v6597_v8  ;;  %s6546_s12 = smul.u32 56, %s276_s20 }
  0x18   : > { %5446 = vmatpush3.bf16.msra.mxu0 %v6598_v9  ;;  %5978 = vmatprep.subr.bf16.mxu1 %v6939_v1 }
  0x19   : > { %5447 = vmatprep.subr.bf16.mxu0 %v6599_v10  ;;  %s7100_s29 = scalar_lea.vmem %s8818_s1, %s6546_s12  ;;  %s7111_s16 = scalar_lea.vmem %s8819_s2, %s6546_s12 }
  0x1a   : > { %v301_v23 = vld [vmem:[%s7100_s29] sm:$0xf]  ;;  %v7116_v24 = vld [vmem:[%s7100_s29 + $0x4] sm:$0xf]  ;;  %v7125_v27 = vld [vmem:[%s7100_s29 + $0x8] sm:$0xff]   ;;  %s7133_s20 = scalar_lea.vmem %s8817_s0, %s6546_s12 }
  0x1b   : > { %5979 = vmatpush3.bf16.msra.mxu1 %v6600_v11  ;;  %v7122_v26 = vcombine.low %v301_v23, %v7116_v24  ;;  %v7128_v28 = vld [vmem:[%s7111_s16 + $0x8] sm:$0xff]   ;;  %v311_v30 = vld [vmem:[%s7111_s16] sm:$0xf]  ;;  %v7140_v31 = vld [vmem:[%s7111_s16 + $0x4] sm:$0xf]  ;;  %v541_v34 = vshll.u32 %v7125_v27, 16 }
  0x1c   : > { %5448 = vmatpush3.bf16.msra.mxu0 %v6601_v12  ;;  %5980 = vmatprep.subr.bf16.mxu1 %v6939_v1  ;;  %v7146_v35 = vcombine.low %v311_v30, %v7140_v31  ;;  %v7149_v36 = vld [vmem:[%s7133_s20 + $0x8] sm:$0xff]   ;;  %v553_v37 = vshll.u32 %v7128_v28, 16  ;;  %v291_v38 = vld [vmem:[%s7133_s20] sm:$0xf]  ;;  %v7155_v39 = vld [vmem:[%s7133_s20 + $0x4] sm:$0xf] }
  0x1d   : > { %5449 = vmatprep.subr.bf16.mxu0 %v6602_v13  ;;  %v534_v32 = vshrl.u32 %v7122_v26, 16  ;;  %v536_v33 = vshll.u32 %v7122_v26, 16  ;;  %v543_v42 = vrot.slane %v541_v34, 1  ;;  %v7163_v45 = vcombine.low %v291_v38, %v7155_v39  ;;  %v7182_v62 = vld [vmem:[%s7100_s29 + $0x10] sm:$0xff]   ;;  %v7219_v23 = vld [vmem:[%s7111_s16 + $0x18] sm:$0xff]  }
  0x1e   : > { %v546_v43 = vshrl.u32 %v7146_v35, 16  ;;  %v548_v44 = vshll.u32 %v7146_v35, 16  ;;  %v529_v46 = vshll.u32 %v7149_v36, 16  ;;  %v555_v49 = vrot.slane %v553_v37, 1  ;;  %v7188_v0 = vld [vmem:[%s7111_s16 + $0x10] sm:$0xff]   ;;  %v7231_v38 = vld [vmem:[%s7133_s20 + $0x18] sm:$0xff]  }
  0x1f   : > { %5981 = vmatpush3.bf16.msra.mxu1 %v6603_v14  ;;  %v538_v41 = vrot.slane %v536_v33, 1  ;;  %v522_v50 = vshrl.u32 %v7163_v45, 16  ;;  %v524_v51 = vshll.u32 %v7163_v45, 16  ;;  %v565_v60 = vshrl.u32 %v7125_v27, 16  ;;  %v7194_v6 = vld [vmem:[%s7133_s20 + $0x10] sm:$0xff]   ;;  %v6630_v14 = vld [vmem:[%s8820_s3 + $0x88] sm:$0xff]  }
  0x20   : > { %5450 = vmatpush3.bf16.msra.mxu0 %v6604_v15  ;;  %5982 = vmatprep.subr.bf16.mxu1 %v6939_v1  ;;  %v550_v48 = vrot.slane %v548_v44, 1  ;;  %v531_v55 = vrot.slane %v529_v46, 1  ;;  %v573_v63 = vshrl.u32 %v7128_v28, 16  ;;  %v557_v2 = vshrl.u32 %v7149_v36, 16  ;;  %v6628_v13 = vld [vmem:[%s8820_s3 + $0x50] sm:$0xff]  }
  0x21   : > { %5451 = vmatprep.subr.bf16.mxu0 %v6605_v16  ;;  %v539_v47 = vor.u32 %v538_v41, %v534_v32  ;;  %v526_v54 = vrot.slane %v524_v51, 1  ;;  %v567_v4 = vor.u32 %v565_v60, %v543_v42  ;;  %v569_v5 = vshll.u32 %v7182_v62, 16  ;;  %v7209_v16 = vld [vmem:[%s7100_s29 + $0x18] sm:$0xff]  }
  0x22   : > { %v551_v53 = vor.u32 %v550_v48, %v546_v43  ;;  %v575_v8 = vor.u32 %v573_v63, %v555_v49  ;;  %v577_v9 = vshll.u32 %v7188_v0, 16  ;;  %v559_v11 = vor.u32 %v557_v2, %v531_v55  ;;  %v6633_v32 = vld [vmem:[%s8820_s3 + $0x58] sm:$0xff]  }
  0x23   : > { %5983 = vmatpush3.bf16.msra.mxu1 %v6606_v17  ;;  %v544_v52 = vsel %vm520_vm1, %v539_v47, %v543_v42  ;;  %v527_v61 = vor.u32 %v526_v54, %v522_v50  ;;  %v571_v10 = vrot.slane %v569_v5, 1  ;;  %v561_v12 = vshll.u32 %v7194_v6, 16  ;;  %v6635_v43 = vld [vmem:[%s8820_s3 + $0x18] sm:$0xff]   ;;  %v6636_v47 = vld [vmem:[%s8820_s3 + $0x90] sm:$0xff]  }
  0x24   : > { %5452 = vmatpush3.bf16.msra.mxu0 %v6607_v18  ;;  %5984 = vmatprep.subr.bf16.mxu1 %v6939_v1  ;;  %v556_v57 = vsel %vm520_vm1, %v551_v53, %v555_v49  ;;  %v579_v15 = vrot.slane %v577_v9, 1  ;;  %v597_v30 = vshrl.u32 %v7188_v0, 16  ;;  %v601_v34 = vshll.u32 %v7219_v23, 16  ;;  %v6637_v49 = vld [vmem:[%s8820_s3 + $0x60] sm:$0xff]   ;;  %v6645_v9 = vld [vmem:[%s8820_s3 + $0x28] sm:$0xff]  }
  0x25   : > { %5453 = vmatprep.subr.bf16.mxu0 %v6608_v19  ;;  %844 = vmatprep.mubr.bf16.mxu0 %v544_v52  ;;  %v532_v3 = vsel %vm520_vm1, %v527_v61, %v531_v55  ;;  %v572_v17 = vsel %vm520_vm1, %v567_v4, %v571_v10  ;;  %v563_v18 = vrot.slane %v561_v12, 1  ;;  %v6629_v19 = vld [vmem:[%s8820_s3 + $0x10] sm:$0xff]   ;;  %v585_v46 = vshll.u32 %v7231_v38, 16  ;;  %v6638_v52 = vld [vmem:[%s8820_s3 + $0x98] sm:$0xff]   ;;  %v6639_v53 = vld [vmem:[%s8820_s3 + $0x20] sm:$0xff]  }
  0x26   : > { %v599_v37 = vor.u32 %v597_v30, %v579_v15  ;;  %v603_v42 = vrot.slane %v601_v34, 1  ;;  %v613_v50 = vshrl.u32 %v7209_v16, 16  ;;  %v621_v54 = vshrl.u32 %v7219_v23, 16  ;;  %v7267_v61 = vld [vmem:[%s7133_s20 + $0x20] sm:$0xff]  }
  0x27   : > { %5985 = vmatpush3.bf16.msra.mxu1 %v6609_v20  ;;  %v589_v20 = vshrl.u32 %v7182_v62, 16  ;;  %v587_v51 = vrot.slane %v585_v46, 1 }
  0x28   : > { %5454 = vmatpush3.bf16.msra.mxu0 %v6610_v21  ;;  %5986 = vmatprep.subr.bf16.mxu1 %v6939_v1  ;;  %v580_v21 = vsel %vm520_vm1, %v575_v8, %v579_v15  ;;  %v604_v48 = vsel %vm520_vm1, %v599_v37, %v603_v42  ;;  %v623_v63 = vor.u32 %v621_v54, %v603_v42  ;;  %v6644_v8 = vld [vmem:[%s8820_s3 + $0x68] sm:$0xff]   ;;  %v1321_v54 = vrot.slane %v7182_v62, 1 }
  0x29   : > { %5455 = vmatprep.subr.bf16.mxu0 %v6611_v22  ;;  %v593_v22 = vshll.u32 %v7209_v16, 16  ;;  %v7312_v37 = vld [vmem:[%s7133_s20 + $0x28] ss:$0 sps:$4 sm:$0x11]  }
  0x2b   : > { %5987 = vmatpush3.bf16.msra.mxu1 %v6612_v25  ;;  %v564_v25 = vsel %vm520_vm1, %v559_v11, %v563_v18  ;;  %v595_v33 = vrot.slane %v593_v22, 1  ;;  %v6646_v11 = vld [vmem:[%s8820_s3 + $0xa8] sm:$0xff]  }
  0x2c   : > { %5456 = vmatpush3.bf16.msra.mxu0 %v6613_v29  ;;  %6008 = vmatprep.subr.bf16.mxu1 %v6939_v1  ;;  %v591_v29 = vor.u32 %v589_v20, %v571_v10  ;;  %v7294_v20 = vld [vmem:[%s7100_s29 + $0x28] ss:$0 sps:$4 sm:$0x11]  }
  0x2d   : > { %5500 = vmatprep.subr.bf16.mxu0 %v6620_v40  ;;  %v581_v40 = vshrl.u32 %v7194_v6, 16  ;;  %v7302_v22 = vld [vmem:[%s7111_s16 + $0x28] ss:$0 sps:$4 sm:$0x11]   ;;  %v641_v30 = vshll.u32 %v7294_v20, 16 }
  0x2e   : > { %5989 = vmatmul.mubr.bf16.vlgmr.msra.gmra.mrb[0].mxu1 %v556_v57  ;;  %v596_v41 = vsel %vm520_vm1, %v591_v29, %v595_v33  ;;  %v605_v57 = vshrl.u32 %v7231_v38, 16  ;;  %v649_v34 = vshll.u32 %v7302_v22, 16 }
  0x2f   : > { %5992 = vmatprep.mubr.msk.bf16.mxu1 %vm6940_vm0, %v6939_v1  ;;  %6009 = vmatpush3.bf16.msra.mxu1 %v6624_v59  ;;  %v583_v44 = vor.u32 %v581_v40, %v563_v18  ;;  %v615_v59 = vor.u32 %v613_v50, %v595_v33  ;;  %v643_v40 = vrot.slane %v641_v30, 1  ;;  %v6655_v50 = vld [vmem:[%s8820_s3 + $0xb8] sm:$0xff]  }
  0x30   : > { %6010 = vmatprep.subr.bf16.mxu1 %v6939_v1  ;;  %845 = vmatmul.mubr.bf16.vlgmr.msra.gmra.mrb[0].mxu0 %v532_v3  ;;  %v6643_v3 = vld [vmem:[%s8820_s3 + $0xa0] sm:$0xff]   ;;  %v607_v5 = vor.u32 %v605_v57, %v587_v51  ;;  %v651_v42 = vrot.slane %v649_v34, 1  ;;  %v1323_v57 = vrot.slane %v7188_v0, 1  ;;  %v6662_v34 = vld [vmem:[%s8820_s3 + $0x190] sm:$0xff]  }
  0x31   : > { %5501 = vmatpush3.bf16.msra.mxu0 %v6621_v56  ;;  %852 = vmatprep.mubr.bf16.mxu0 %v572_v17  ;;  %v588_v55 = vsel %vm520_vm1, %v583_v44, %v587_v51  ;;  %v7257_v56 = vld [vmem:[%s7100_s29 + $0x20] sm:$0xff]   ;;  %v633_v44 = vshll.u32 %v7312_v37, 16 }
  0x32   : > { %5502 = vmatprep.subr.bf16.mxu0 %v6622_v58  ;;  %v7263_v58 = vld [vmem:[%s7111_s16 + $0x20] sm:$0xff]   ;;  %v617_v60 = vshll.u32 %v7257_v56, 16  ;;  %v637_v17 = vshrl.u32 %v7257_v56, 16 }
  0x33   : > { %6011 = vmatpush3.bf16.msra.mxu1 %v6630_v14  ;;  %v625_v2 = vshll.u32 %v7263_v58, 16  ;;  %v6647_v14 = vld [vmem:[%s8820_s3 + $0x70] sm:$0xff]   ;;  %v645_v18 = vshrl.u32 %v7263_v58, 16  ;;  %v6656_v51 = vld [vmem:[%s8820_s3 + $0x1c0] sm:$0xff]  }
  0x34   : > { %6012 = vmatprep.subr.bf16.mxu1 %v6939_v1  ;;  %v619_v4 = vrot.slane %v617_v60, 1 }
  0x35   : > { %5503 = vmatpush3.bf16.msra.mxu0 %v6623_v7  ;;  %v609_v7 = vshll.u32 %v7267_v61, 16  ;;  %v627_v10 = vrot.slane %v625_v2, 1 }
  0x36   : > { %5993 = vmatmul.mubr.bf16.gmra.mrb[4].mxu1 %v580_v21  ;;  %5504 = vmatprep.subr.bf16.mxu0 %v6628_v13  ;;  %v620_v12 = vsel %vm520_vm1, %v615_v59, %v619_v4  ;;  %v6650_v21 = vld [vmem:[%s8820_s3 + $0x30] sm:$0xff]   ;;  %v639_v29 = vor.u32 %v637_v17, %v619_v4  ;;  %v1311_v59 = vrot.slane %v7149_v36, 1  ;;  %v6660_v4 = vld [vmem:[%s8820_s3 + $0x200] sm:$0xff]  }
  0x37   : > { %5996 = vmatprep.mubr.msk.bf16.mxu1 %vm6940_vm0, %v6939_v1  ;;  %6013 = vmatpush3.bf16.msra.mxu1 %v6636_v47  ;;  %v611_v13 = vrot.slane %v609_v7, 1  ;;  %v628_v15 = vsel %vm520_vm1, %v623_v63, %v627_v10  ;;  %v647_v33 = vor.u32 %v645_v18, %v627_v10  ;;  %v6654_v47 = vld [vmem:[%s8820_s3 + $0x38] sm:$0xff]   ;;  %v1319_v63 = vrot.slane %v7194_v6, 1 }
  0x38   : > { %853 = vmatmul.mubr.bf16.gmra.mrb[4].mxu0 %v564_v25  ;;  %6014 = vmatprep.subr.bf16.mxu1 %v6939_v1  ;;  %v629_v25 = vshrl.u32 %v7267_v61, 16  ;;  %v644_v46 = vsel %vm520_vm1, %v639_v29, %v643_v40  ;;  %v1329_v7 = vrot.slane %v7219_v23, 1  ;;  %v6659_v29 = vld [vmem:[%s8820_s3 + $0x188] sm:$0xff]   ;;  %v6668_v40 = vld [vmem:[%s8820_s3 + $0x218] sm:$0xff]  }
  0x39   : > { %5505 = vmatpush3.bf16.msra.mxu0 %v6629_v19  ;;  %860 = vmatprep.mubr.bf16.mxu0 %v596_v41  ;;  %v612_v19 = vsel %vm520_vm1, %v607_v5, %v611_v13  ;;  %v6653_v41 = vld [vmem:[%s8820_s3 + $0x78] sm:$0xff]   ;;  %v7358_v5 = vsel %vm1309_vm2, %v1311_v59, %v1319_v63 }
  0x3a   : > { %5506 = vmatprep.subr.bf16.mxu0 %v6633_v32  ;;  %v6652_v32 = vld [vmem:[%s8820_s3 + $0xb0] sm:$0xff]   ;;  %v7369_v10 = vsel %vm1309_vm2, %v1323_v57, %v1329_v7 }
  0x3b   : > { %6015 = vmatpush3.bf16.msra.mxu1 %v6638_v52 }
  0x3c   : > { %6016 = vmatprep.subr.bf16.mxu1 %v6939_v1 }
  0x3d   : > { %5507 = vmatpush3.bf16.msra.mxu0 %v6635_v43  ;;  %v631_v43 = vor.u32 %v629_v25, %v611_v13  ;;  %v1341_v25 = vrot.slane %v7302_v22, 1  ;;  %v6666_v22 = vld [vmem:[%s8820_s3 + $0x210] sm:$0xff]  }
  0x3e   : > { %5997 = vmatmul.mubr.bf16.gmra.mrb[8].mxu1 %v604_v48  ;;  %5508 = vmatprep.subr.bf16.mxu0 %v6637_v49  ;;  %v652_v48 = vsel %vm520_vm1, %v647_v33, %v651_v42  ;;  %v635_v49 = vrot.slane %v633_v44, 1  ;;  %v6667_v42 = vld [vmem:[%s8820_s3 + $0x1e0] sm:$0xff]  }
  0x3f   : > { %6000 = vmatprep.mubr.msk.bf16.mxu1 %vm6940_vm0, %v6939_v1  ;;  %6017 = vmatpush3.bf16.msra.mxu1 %v6643_v3  ;;  %v1327_v3 = vrot.slane %v7209_v16, 1  ;;  %v1248_v44 = vld [vmem:[%s7133_s20] sm:$0xe] }
  0x40   : > { %861 = vmatmul.mubr.bf16.gmra.mrb[8].mxu0 %v588_v55  ;;  %6018 = vmatprep.subr.bf16.mxu1 %v6939_v1  ;;  %v636_v52 = vsel %vm520_vm1, %v631_v43, %v635_v49  ;;  %v1317_v55 = vrot.slane %v7128_v28, 1  ;;  %v6670_v43 = vld [vmem:[%s8820_s3 + $0x220] sm:$0xff]   ;;  %v6674_v49 = vld [vmem:[%s8820_s3 + $0x1f0] sm:$0xff]  }
  0x41   : > { %5509 = vmatpush3.bf16.msra.mxu0 %v6639_v53  ;;  %868 = vmatprep.mubr.bf16.mxu0 %v620_v12  ;;  %v1314_v53 = vrot.slane %v7125_v27, 1  ;;  %v6658_v12 = vld [vmem:[%s8820_s3 + $0x1c8] sm:$0xff]  }
  0x42   : > { %5510 = vmatprep.subr.bf16.mxu0 %v6644_v8  ;;  %v7349_v2 = vsel %vm1309_vm2, %v1317_v55, %v1323_v57  ;;  %v1325_v8 = vrot.slane %v7231_v38, 1  ;;  %v1250_v57 = vld [vmem:[%s7111_s16] sm:$0xe] }
  0x43   : > { %6019 = vmatpush3.bf16.msra.mxu1 %v6646_v11  ;;  %v7342_v60 = vsel %vm1309_vm2, %v1314_v53, %v1321_v54  ;;  %v1333_v11 = vrot.slane %v7257_v56, 1 }
  0x44   : > { %6020 = vmatprep.subr.bf16.mxu1 %v6939_v1  ;;  %v7377_v13 = vsel %vm1309_vm2, %v1319_v63, %v1325_v8  ;;  %v4867_v63 = vcombine.low %v1250_v57, %v7140_v31  ;;  %v6723_v57 = vld [vmem:[%s8820_s3 + $0x388] sm:$0xff]  }
  0x45   : > { %5511 = vmatpush3.bf16.msra.mxu0 %v6645_v9  ;;  %v6657_v9 = vld [vmem:[%s8820_s3 + $0x180] sm:$0xff]   ;;  %v7386_v17 = vsel %vm1309_vm2, %v1327_v3, %v1333_v11 }
  0x46   : > { %6001 = vmatmul.mubr.bf16.gmra.mrb[12].mxu1 %v628_v15  ;;  %5512 = vmatprep.subr.bf16.mxu0 %v6647_v14  ;;  %v1335_v14 = vrot.slane %v7263_v58, 1  ;;  %v6663_v15 = vld [vmem:[%s8820_s3 + $0x208] sm:$0xff]  }
  0x47   : > { %6004 = vmatprep.mubr.msk.bf16.mxu1 %vm6940_vm0, %v6939_v1  ;;  %6021 = vmatpush3.bf16.msra.mxu1 %v6652_v32  ;;  %v1337_v32 = vrot.slane %v7312_v37, 1  ;;  %v6664_v37 = vld [vmem:[%s8820_s3 + $0x1d8] sm:$0xff]  }
  0x48   : > { %869 = vmatmul.mubr.bf16.gmra.mrb[12].mxu0 %v612_v19  ;;  %6022 = vmatprep.subr.bf16.mxu1 %v6939_v1  ;;  %v7391_v18 = vsel %vm1309_vm2, %v1329_v7, %v1335_v14  ;;  %v1339_v19 = vrot.slane %v7294_v20, 1  ;;  %v7411_v20 = vsel %vm1309_vm2, %v1335_v14, %v1341_v25  ;;  %v6695_v7 = vld [vmem:[%s8820_s3 + $0x2d8] sm:$0xff]   ;;  %v6699_v14 = vld [vmem:[%s8820_s3 + $0x268] sm:$0xff]  }
  0x49   : > { %5513 = vmatpush3.bf16.msra.mxu0 %v6650_v21  ;;  %876 = vmatprep.mubr.bf16.mxu0 %v644_v46  ;;  %v6671_v46 = vld [vmem:[%s8820_s3 + $0x1e8] sm:$0xff]  }
  0x4a   : > { %5514 = vmatprep.subr.bf16.mxu0 %v6653_v41  ;;  %v7404_v30 = vsel %vm1309_vm2, %v1333_v11, %v1339_v19  ;;  %v6665_v41 = vld [vmem:[%s8820_s3 + $0x198] sm:$0xff]   ;;  %v6700_v11 = vld [vmem:[%s8820_s3 + $0x2e8] sm:$0xff]  }
  0x4b   : > { %6023 = vmatpush3.bf16.msra.mxu1 %v6655_v50  ;;  %v6704_v19 = vld [vmem:[%s8820_s3 + $0x2b8] sm:$0xff]   ;;  %v7601_v25 = vld [vmem:[%s7100_s29 + $0xc] sm:$0xff]  }
  0x4c   : > { %6044 = vmatprep.subr.bf16.mxu1 %v6939_v1 }
  0x4d   : > { %5515 = vmatpush3.bf16.msra.mxu0 %v6654_v47  ;;  %v4865_v47 = vcombine.low %v1248_v44, %v7155_v39  ;;  %v6676_v39 = vld [vmem:[%s8820_s3 + $0x230] sm:$0xff]  }
  0x4e   : > { %6005 = vmatmul.mubr.bf16.gmra.mrb[16].mxu1 %v652_v48  ;;  %5559 = vmatprep.subr.bf16.mxu0 %v6656_v51  ;;  %v6672_v48 = vld [vmem:[%s8820_s3 + $0x1a8] sm:$0xff]   ;;  %v1249_v51 = vld [vmem:[%s7100_s29] sm:$0xe] }
  0x4f   : > { %6024 = vmatprep.mubr.msk.bf16.mxu1 %vm6940_vm0, %v6939_v1  ;;  %v1310_v50 = vrot.slane %v4865_v47, 1 }
  0x50   : > { %877 = vmatmul.mubr.bf16.gmra.mrb[16].mxu0 %v636_v52  ;;  %v6675_v52 = vld [vmem:[%s8820_s3 + $0x1b0] sm:$0xff]  }
  0x51   : > { %1134 = vmatprep.mubr.bf16.mxu0 %v7122_v26  ;;  %v7362_v26 = vsel %vm1309_vm2, %v1321_v54, %v1327_v3  ;;  %v4866_v54 = vcombine.low %v1249_v51, %v7116_v24  ;;  %v6683_v24 = vld [vmem:[%s8820_s3 + $0x280] sm:$0xff]   ;;  %v6693_v3 = vld [vmem:[%s8820_s3 + $0x2d0] sm:$0xff]  }
  0x56   : > { %6025 = vmatmul.mubr.bf16.vlgmr.msra.gmra.mrb[0].mxu1 %v7146_v35  ;;  %v1331_v35 = vrot.slane %v7267_v61, 1 }
  0x57   : > { %6028 = vmatprep.mubr.msk.bf16.mxu1 %vm6940_vm0, %v6939_v1  ;;  %6045 = vmatpush3.bf16.msra.mxu1 %v6660_v4  ;;  %v6689_v4 = vld [vmem:[%s8820_s3 + $0x250] sm:$0xff]  }
  0x58   : > { %6046 = vmatprep.subr.bf16.mxu1 %v6939_v1  ;;  %1135 = vmatmul.mubr.bf16.vlgmr.msra.gmra.mrb[20].mxu0 %v7163_v45  ;;  %v7396_v21 = vsel %vm1309_vm2, %v1325_v8, %v1331_v35  ;;  %v6661_v45 = vld [vmem:[%s8820_s3 + $0x1d0] sm:$0xff]   ;;  %v7418_v33 = vsel %vm1309_vm2, %v1331_v35, %v1337_v32  ;;  %v6694_v8 = vld [vmem:[%s8820_s3 + $0x2a0] sm:$0xff]   ;;  %v7608_v32 = vld [vmem:[%s7111_s16 + $0x8] sm:$0xf] }
  0x59   : > { %5560 = vmatpush3.bf16.msra.mxu0 %v6657_v9  ;;  %1142 = vmatprep.mubr.bf16.mxu0 %v7125_v27  ;;  %v6684_v27 = vld [vmem:[%s8820_s3 + $0x240] sm:$0xff]   ;;  %v6703_v35 = vld [vmem:[%s8820_s3 + $0x2f0] sm:$0xff]  }
  0x5a   : > { %5561 = vmatprep.subr.bf16.mxu0 %v6658_v12  ;;  %v6696_v9 = vld [vmem:[%s8820_s3 + $0x260] sm:$0xff]  }
  0x5b   : > { %6047 = vmatpush3.bf16.msra.mxu1 %v6663_v15  ;;  %v1669_v12 = vld [vmem:[%s7100_s29 + $0x4] sm:$0xe]  ;;  %v6701_v15 = vld [vmem:[%s8820_s3 + $0x2b0] sm:$0xff]  }
  0x5c   : > { %6048 = vmatprep.subr.bf16.mxu1 %v6939_v1 }
  0x5d   : > { %5562 = vmatpush3.bf16.msra.mxu0 %v6659_v29  ;;  %v1680_v29 = vld [vmem:[%s7111_s16 + $0x4] sm:$0xe] }
  0x5e   : > { %6029 = vmatmul.mubr.bf16.gmra.mrb[4].mxu1 %v7128_v28  ;;  %5563 = vmatprep.subr.bf16.mxu0 %v6661_v45  ;;  %v6690_v28 = vld [vmem:[%s8820_s3 + $0x2c8] sm:$0xff]   ;;  %v6705_v45 = vld [vmem:[%s8820_s3 + $0x278] sm:$0xff]  }
  0x5f   : > { %6032 = vmatprep.mubr.msk.bf16.mxu1 %vm6940_vm0, %v6939_v1  ;;  %6049 = vmatpush3.bf16.msra.mxu1 %v6666_v22  ;;  %v6706_v22 = vld [vmem:[%s8820_s3 + $0x2f8] sm:$0xff]  }
  0x60   : > { %1143 = vmatmul.mubr.bf16.gmra.mrb[24].mxu0 %v7149_v36  ;;  %6050 = vmatprep.subr.bf16.mxu1 %v6939_v1  ;;  %v6679_v36 = vld [vmem:[%s8820_s3 + $0x238] sm:$0xff]  }
  0x61   : > { %5564 = vmatpush3.bf16.msra.mxu0 %v6662_v34  ;;  %1150 = vmatprep.mubr.bf16.mxu0 %v7182_v62  ;;  %v6669_v62 = vld [vmem:[%s8820_s3 + $0x1a0] sm:$0xff]   ;;  %v7620_v34 = vld [vmem:[%s7111_s16 + $0xc] sm:$0xff]  }
  0x62   : > { %5565 = vmatprep.subr.bf16.mxu0 %v6664_v37  ;;  %v1658_v37 = vld [vmem:[%s7133_s20 + $0x4] sm:$0xe] }
  0x63   : > { %6051 = vmatpush3.bf16.msra.mxu1 %v6668_v40  ;;  %v7625_v40 = vcombine.low %v1680_v29, %v7608_v32  ;;  %v6741_v29 = vld [vmem:[%s7100_s29 + $0x2c] ss:$0 sps:$4 sm:$0x11]  }
  0x64   : > { %6052 = vmatprep.subr.bf16.mxu1 %v6939_v1 }
  0x65   : > { %5566 = vmatpush3.bf16.msra.mxu0 %v6665_v41  ;;  %v7628_v41 = vld [vmem:[%s7133_s20 + $0x8] sm:$0xf] }
  0x66   : > { %6033 = vmatmul.mubr.bf16.gmra.mrb[8].mxu1 %v7188_v0  ;;  %5567 = vmatprep.subr.bf16.mxu0 %v6667_v42  ;;  %v6673_v0 = vld [vmem:[%s8820_s3 + $0x228] sm:$0xff]   ;;  %v1828_v42 = vrot.slane %v7601_v25, 1 }
  0x67   : > { %6036 = vmatprep.mubr.msk.bf16.mxu1 %vm6940_vm0, %v6939_v1  ;;  %6053 = vmatpush3.bf16.msra.mxu1 %v6670_v43  ;;  %v7638_v43 = vcombine.low %v1658_v37, %v7628_v41  ;;  %v6732_v37 = vld [vmem:[%s8820_s3 + $0x320] sm:$0xff]  }
  0x68   : > { %1151 = vmatmul.mubr.bf16.gmra.mrb[28].mxu0 %v7194_v6  ;;  %6054 = vmatprep.subr.bf16.mxu1 %v6939_v1  ;;  %v1312_v6 = vsel %vm1309_vm2, %v1310_v50, %v1311_v59  ;;  %v1313_v59 = vrot.slane %v4866_v54, 1 }
  0x69   : > { %5568 = vmatpush3.bf16.msra.mxu0 %v6669_v62  ;;  %1158 = vmatprep.mubr.bf16.mxu0 %v7209_v16  ;;  %v6677_v16 = vld [vmem:[%s8820_s3 + $0x1f8] sm:$0xff]   ;;  %v7641_v62 = vld [vmem:[%s7133_s20 + $0xc] sm:$0xff]   ;;  %v1824_v47 = vrot.slane %v7638_v43, 1 }
  0x6a   : > { %5569 = vmatprep.subr.bf16.mxu0 %v6671_v46  ;;  %v1831_v46 = vrot.slane %v7620_v34, 1 }
  0x6b   : > { %6055 = vmatpush3.bf16.msra.mxu1 %v6673_v0  ;;  %v1825_v0 = vrot.slane %v7641_v62, 1 }
  0x6c   : > { %6056 = vmatprep.subr.bf16.mxu1 %v6939_v1 }
  0x6d   : > { %5570 = vmatpush3.bf16.msra.mxu0 %v6672_v48  ;;  %v1826_v51 = vsel %vm1309_vm2, %v1824_v47, %v1825_v0 }
  0x6e   : > { %6037 = vmatmul.mubr.bf16.gmra.mrb[12].mxu1 %v7219_v23  ;;  %5571 = vmatprep.subr.bf16.mxu0 %v6674_v49  ;;  %v6678_v23 = vld [vmem:[%s8820_s3 + $0x1b8] sm:$0xff]   ;;  %v6717_v49 = vld [vmem:[%s8820_s3 + $0x380] sm:$0xff]  }
  0x6f   : > { %6040 = vmatprep.mubr.msk.bf16.mxu1 %vm6940_vm0, %v6939_v1  ;;  %6057 = vmatpush3.bf16.msra.mxu1 %v6676_v39  ;;  %v7659_v39 = vld [vmem:[%s7111_s16 + $0x14] sm:$0xff]  }
  0x70   : > { %1159 = vmatmul.mubr.bf16.gmra.mrb[32].mxu0 %v7231_v38  ;;  %6058 = vmatprep.subr.bf16.mxu1 %v6939_v1  ;;  %v1315_v38 = vsel %vm1309_vm2, %v1313_v59, %v1314_v53  ;;  %v6685_v53 = vld [vmem:[%s8820_s3 + $0x288] sm:$0xff]   ;;  %v1837_v54 = vrot.slane %v7659_v39, 1 }
  0x71   : > { %1166 = vmatprep.mubr.bf16.mxu0 %v7257_v56  ;;  %5572 = vmatpush3.bf16.msra.mxu0 %v6675_v52  ;;  %v1316_v56 = vrot.slane %v4867_v63, 1  ;;  %v7669_v52 = vld [vmem:[%s7100_s29 + $0x1c] sm:$0xff]  }
  0x72   : > { %5573 = vmatprep.subr.bf16.mxu0 %v6677_v16  ;;  %v6715_v16 = vld [vmem:[%s8820_s3 + $0x348] sm:$0xff]  }
  0x73   : > { %6059 = vmatpush3.bf16.msra.mxu1 %v6679_v36  ;;  %v1318_v31 = vsel %vm1309_vm2, %v1316_v56, %v1317_v55  ;;  %v6688_v55 = vld [vmem:[%s8820_s3 + $0x290] sm:$0xff]   ;;  %v7692_v56 = vld [vmem:[%s7111_s16 + $0x1c] sm:$0xff]  }
  0x74   : > { %6080 = vmatprep.subr.bf16.mxu1 %v6939_v1 }
  0x75   : > { %5574 = vmatpush3.bf16.msra.mxu0 %v6678_v23  ;;  %v6716_v23 = vld [vmem:[%s8820_s3 + $0x308] sm:$0xff]  }
  0x76   : > { %6041 = vmatmul.mubr.bf16.gmra.mrb[16].mxu1 %v7263_v58  ;;  %5618 = vmatprep.subr.bf16.mxu0 %v6683_v24  ;;  %v6687_v58 = vld [vmem:[%s8820_s3 + $0x2c0] sm:$0xff]   ;;  %v6721_v24 = vld [vmem:[%s8820_s3 + $0x350] sm:$0xff]  }
  0x77   : > { %6060 = vmatprep.mubr.msk.bf16.mxu1 %vm6940_vm0, %v6939_v1 }
  0x78   : > { %1167 = vmatmul.mubr.bf16.gmra.mrb[36].mxu0 %v7267_v61  ;;  %v6686_v61 = vld [vmem:[%s8820_s3 + $0x248] sm:$0xff]  }
  0x79   : > { %1534 = vmatprep.mubr.bf16.mxu0 %v1315_v38  ;;  %v1841_v38 = vrot.slane %v7669_v52, 1 }
  0x7e   : > { %6061 = vmatmul.mubr.bf16.vlgmr.msra.gmra.mrb[0].mxu1 %v1318_v31  ;;  %v1838_v31 = vsel %vm1309_vm2, %v1831_v46, %v1837_v54 }
  0x7f   : > { %6064 = vmatprep.mubr.msk.bf16.mxu1 %vm6940_vm0, %v6939_v1  ;;  %6081 = vmatpush3.bf16.msra.mxu1 %v6687_v58  ;;  %v6729_v58 = vld [vmem:[%s8820_s3 + $0x390] sm:$0xff]  }
  0x80   : > { %6082 = vmatprep.subr.bf16.mxu1 %v6939_v1  ;;  %1535 = vmatmul.mubr.bf16.vlgmr.msra.gmra.mrb[40].mxu0 %v1312_v6  ;;  %v6714_v6 = vld [vmem:[%s8820_s3 + $0x300] sm:$0xff]  }
  0x81   : > { %5619 = vmatpush3.bf16.msra.mxu0 %v6684_v27  ;;  %1542 = vmatprep.mubr.bf16.mxu0 %v7342_v60  ;;  %v6691_v60 = vld [vmem:[%s8820_s3 + $0x298] sm:$0xff]  }
  0x82   : > { %5620 = vmatprep.subr.bf16.mxu0 %v6685_v53  ;;  %v7701_v53 = vld [vmem:[%s7133_s20 + $0x1c] sm:$0xff]  }
  0x83   : > { %6083 = vmatpush3.bf16.msra.mxu1 %v6690_v28 }
  0x84   : > { %6084 = vmatprep.subr.bf16.mxu1 %v6939_v1 }
  0x85   : > { %5621 = vmatpush3.bf16.msra.mxu0 %v6686_v61  ;;  %v6722_v61 = vld [vmem:[%s8820_s3 + $0x310] sm:$0xff]  }
  0x86   : > { %6065 = vmatmul.mubr.bf16.gmra.mrb[4].mxu1 %v7349_v2  ;;  %5622 = vmatprep.subr.bf16.mxu0 %v6688_v55  ;;  %v6692_v2 = vld [vmem:[%s8820_s3 + $0x258] sm:$0xff]  }
  0x87   : > { %6068 = vmatprep.mubr.msk.bf16.mxu1 %vm6940_vm0, %v6939_v1  ;;  %6085 = vmatpush3.bf16.msra.mxu1 %v6693_v3 }
  0x88   : > { %1543 = vmatmul.mubr.bf16.gmra.mrb[44].mxu0 %v7358_v5  ;;  %6086 = vmatprep.subr.bf16.mxu1 %v6939_v1  ;;  %v6697_v5 = vld [vmem:[%s8820_s3 + $0x2e0] sm:$0xff]  }
  0x89   : > { %5623 = vmatpush3.bf16.msra.mxu0 %v6689_v4  ;;  %1550 = vmatprep.mubr.bf16.mxu0 %v7362_v26  ;;  %v6698_v26 = vld [vmem:[%s8820_s3 + $0x2a8] sm:$0xff]   ;;  %v1843_v4 = vrot.slane %v7692_v56, 1 }
  0x8a   : > { %5624 = vmatprep.subr.bf16.mxu0 %v6691_v60  ;;  %v6726_v60 = vld [vmem:[%s8820_s3 + $0x358] sm:$0xff]  }
  0x8b   : > { %6087 = vmatpush3.bf16.msra.mxu1 %v6695_v7  ;;  %v7717_v7 = vld [vmem:[%s7100_s29 + $0x24] sm:$0xff]  }
  0x8c   : > { %6088 = vmatprep.subr.bf16.mxu1 %v6939_v1 }
  0x8d   : > { %5625 = vmatpush3.bf16.msra.mxu0 %v6692_v2  ;;  %v2260_v2 = vshrl.u32 %v7601_v25, 16 }
  0x8e   : > { %6069 = vmatmul.mubr.bf16.gmra.mrb[8].mxu1 %v7369_v10  ;;  %5626 = vmatprep.subr.bf16.mxu0 %v6694_v8  ;;  %v7578_v10 = vld [vmem:[%s7100_s29 + $0x8] sm:$0xf]  ;;  %v6731_v8 = vld [vmem:[%s8820_s3 + $0x398] sm:$0xff]  }
  0x8f   : > { %6072 = vmatprep.mubr.msk.bf16.mxu1 %vm6940_vm0, %v6939_v1  ;;  %6089 = vmatpush3.bf16.msra.mxu1 %v6697_v5 }
  0x90   : > { %1551 = vmatmul.mubr.bf16.gmra.mrb[48].mxu0 %v7377_v13  ;;  %6090 = vmatprep.subr.bf16.mxu1 %v6939_v1  ;;  %v6702_v13 = vld [vmem:[%s8820_s3 + $0x270] sm:$0xff]  }
  0x91   : > { %5627 = vmatpush3.bf16.msra.mxu0 %v6696_v9  ;;  %1558 = vmatprep.mubr.bf16.mxu0 %v7386_v17  ;;  %v7594_v17 = vcombine.low %v1669_v12, %v7578_v10  ;;  %v1839_v9 = vrot.slane %v7701_v53, 1  ;;  %v2269_v12 = vshrl.u32 %v7625_v40, 16 }
  0x92   : > { %5628 = vmatprep.subr.bf16.mxu0 %v6698_v26  ;;  %v6728_v26 = vld [vmem:[%s8820_s3 + $0x318] sm:$0xff]  }
  0x93   : > { %6091 = vmatpush3.bf16.msra.mxu1 %v6700_v11  ;;  %v2252_v59 = vshrl.u32 %v7594_v17, 16  ;;  %v2255_v27 = vshll.u32 %v7594_v17, 16  ;;  %v2263_v11 = vshll.u32 %v7601_v25, 16 }
  0x94   : > { %6092 = vmatprep.subr.bf16.mxu1 %v6939_v1 }
  0x95   : > { %5629 = vmatpush3.bf16.msra.mxu0 %v6699_v14  ;;  %v7707_v55 = vrot.slane %v2252_v59, 1  ;;  %v7723_v5 = vrot.slane %v2255_v27, 2  ;;  %v6730_v14 = vld [vmem:[%s8820_s3 + $0x360] sm:$0xff]   ;;  %v2235_v59 = vshrl.u32 %v7638_v43, 16  ;;  %v6746_v27 = vld [vmem:[%s8820_s3 + $0x378] sm:$0xff]  }
  0x96   : > { %6073 = vmatmul.mubr.bf16.gmra.mrb[12].mxu1 %v7391_v18  ;;  %5630 = vmatprep.subr.bf16.mxu0 %v6701_v15  ;;  %v1827_v18 = vrot.slane %v7594_v17, 1  ;;  %v2272_v15 = vshll.u32 %v7625_v40, 16  ;;  %v7739_v17 = vld [vmem:[%s7111_s16 + $0x24] sm:$0xff]  }
  0x97   : > { %6076 = vmatprep.mubr.msk.bf16.mxu1 %vm6940_vm0, %v6939_v1  ;;  %6093 = vmatpush3.bf16.msra.mxu1 %v6703_v35  ;;  %v1847_v35 = vrot.slane %v7717_v7, 1 }
  0x98   : > { %1559 = vmatmul.mubr.bf16.gmra.mrb[52].mxu0 %v7396_v21  ;;  %6094 = vmatprep.subr.bf16.mxu1 %v6939_v1  ;;  %v6713_v21 = vld [vmem:[%s8820_s3 + $0x340] sm:$0xff]   ;;  %v1829_v44 = vsel %vm1309_vm2, %v1827_v18, %v1828_v42  ;;  %v7765_v47 = vrot.slane %v2272_v15, 2  ;;  %v2307_v15 = vshll.u32 %v7659_v39, 16 }
  0x99   : > { %1566 = vmatprep.mubr.bf16.mxu0 %v7404_v30  ;;  %5631 = vmatpush3.bf16.msra.mxu0 %v6702_v13  ;;  %v1830_v30 = vrot.slane %v7625_v40, 1  ;;  %v1844_v13 = vsel %vm1309_vm2, %v1837_v54, %v1843_v4  ;;  %v2265_v40 = vrot.slane %v2263_v11, 2  ;;  %v6744_v54 = vld [vmem:[%s7133_s20 + $0x2c] ss:$0 sps:$4 sm:$0x11]  }
  0x9a   : > { %5632 = vmatprep.subr.bf16.mxu0 %v6704_v19  ;;  %v6736_v19 = vld [vmem:[%s8820_s3 + $0x3a0] sm:$0xff]  }
  0x9b   : > { %6095 = vmatpush3.bf16.msra.mxu1 %v6706_v22  ;;  %v1832_v48 = vsel %vm1309_vm2, %v1830_v30, %v1831_v46  ;;  %v2262_v22 = vrot.slane %v2260_v2, 1  ;;  %v6737_v30 = vld [vmem:[%s8820_s3 + $0x368] sm:$0xff]   ;;  %v7763_v46 = vrot.slane %v2269_v12, 1  ;;  %v2243_v2 = vshrl.u32 %v7641_v62, 16 }
  0x9c   : > { %6116 = vmatprep.subr.bf16.mxu1 %v6939_v1 }
  0x9d   : > { %5633 = vmatpush3.bf16.msra.mxu0 %v6705_v45  ;;  %v7747_v45 = vld [vmem:[%s7133_s20 + $0x24] sm:$0xff]  }
  0x9e   : > { %6077 = vmatmul.mubr.bf16.gmra.mrb[16].mxu1 %v7411_v20  ;;  %5677 = vmatprep.subr.bf16.mxu0 %v6713_v21  ;;  %v7648_v20 = vld [vmem:[%s7100_s29 + $0x14] sm:$0xff]   ;;  %v1849_v21 = vrot.slane %v7739_v17, 1 }
  0x9f   : > { %6096 = vmatprep.mubr.msk.bf16.mxu1 %vm6940_vm0, %v6939_v1  ;;  %v1835_v50 = vrot.slane %v7648_v20, 1  ;;  %v2295_v11 = vshrl.u32 %v7648_v20, 16 }
  0xa0   : > { %1567 = vmatmul.mubr.bf16.gmra.mrb[56].mxu0 %v7418_v33  ;;  %v7665_v33 = vld [vmem:[%s7133_s20 + $0x14] sm:$0xff]  }
  0xa1   : > { %2048 = vmatprep.mubr.bf16.mxu0 %v1829_v44  ;;  %v1836_v36 = vsel %vm1309_vm2, %v1828_v42, %v1835_v50  ;;  %v1833_v63 = vrot.slane %v7665_v33, 1  ;;  %v1842_v3 = vsel %vm1309_vm2, %v1835_v50, %v1841_v38  ;;  %v1848_v42 = vsel %vm1309_vm2, %v1841_v38, %v1847_v35  ;;  %v6739_v44 = vld [vmem:[%s8820_s3 + $0x3a8] sm:$0xff]   ;;  %v6740_v50 = vld [vmem:[%s8820_s3 + $0x370] sm:$0xff]  }
  0xa2   : > { %v6743_v38 = vld [vmem:[%s8820_s3 + $0x330] sm:$0xff]  }
  0xa3   : > { %v1834_v28 = vsel %vm1309_vm2, %v1825_v0, %v1833_v63  ;;  %v1840_v18 = vsel %vm1309_vm2, %v1833_v63, %v1839_v9  ;;  %v2277_v0 = vshrl.u32 %v7620_v34, 16 }
  0xa6   : > { %6097 = vmatmul.mubr.bf16.vlgmr.msra.gmra.mrb[0].mxu1 %v1832_v48  ;;  %v1845_v48 = vrot.slane %v7747_v45, 1 }
  0xa7   : > { %6100 = vmatprep.mubr.msk.bf16.mxu1 %vm6940_vm0, %v6939_v1  ;;  %6117 = vmatpush3.bf16.msra.mxu1 %v6717_v49  ;;  %v6738_v49 = vld [vmem:[%s8820_s3 + $0x328] sm:$0xff]  }
  0xa8   : > { %6118 = vmatprep.subr.bf16.mxu1 %v6939_v1  ;;  %2049 = vmatmul.mubr.bf16.vlgmr.msra.gmra.mrb[60].mxu0 %v1826_v51  ;;  %v1853_v51 = vrot.slane %v6741_v29, 1  ;;  %v1846_v63 = vsel %vm1309_vm2, %v1839_v9, %v1845_v48  ;;  %v2266_v9 = vor.u32 %v2265_v40, %v2262_v22  ;;  %v2245_v29 = vrot.slane %v2243_v2, 1 }
  0xa9   : > { %5678 = vmatpush3.bf16.msra.mxu0 %v6714_v6  ;;  %2056 = vmatprep.mubr.bf16.mxu0 %v1836_v36  ;;  %v2280_v6 = vshll.u32 %v7620_v34, 16  ;;  %v1850_v36 = vsel %vm1309_vm2, %v1843_v4, %v1849_v21  ;;  %v6748_v4 = vld [vmem:[%s8820_s3 + $0x3b8] sm:$0xff]   ;;  %v2787_v2 = vrot.slane %v7669_v52, 2 }
  0xaa   : > { %5679 = vmatprep.subr.bf16.mxu0 %v6715_v16  ;;  %v6742_v16 = vld [vmem:[%s7111_s16 + $0x2c] ss:$0 sps:$4 sm:$0x11]  }
  0xab   : > { %6119 = vmatpush3.bf16.msra.mxu1 %v6723_v57  ;;  %v6745_v57 = vld [vmem:[%s8820_s3 + $0x3b0] sm:$0xff]  }
  0xac   : > { %6120 = vmatprep.subr.bf16.mxu1 %v6939_v1 }
  0xad   : > { %5680 = vmatpush3.bf16.msra.mxu0 %v6716_v23  ;;  %v2279_v23 = vrot.slane %v2277_v0, 1 }
  0xae   : > { %6101 = vmatmul.mubr.bf16.gmra.mrb[4].mxu1 %v1838_v31  ;;  %5681 = vmatprep.subr.bf16.mxu0 %v6721_v24  ;;  %v1855_v24 = vrot.slane %v6742_v16, 1  ;;  %v1854_v31 = vsel %vm1309_vm2, %v1847_v35, %v1853_v51  ;;  %v2289_v35 = vshll.u32 %v7665_v33, 16  ;;  %v2774_v16 = vrot.slane %v7601_v25, 2 }
  0xaf   : > { %6104 = vmatprep.mubr.msk.bf16.mxu1 %vm6940_vm0, %v6939_v1  ;;  %6121 = vmatpush3.bf16.msra.mxu1 %v6729_v58  ;;  %v1851_v58 = vrot.slane %v6744_v54, 1  ;;  %v6753_v54 = vld [vmem:[%s8820_s3 + $0x440] sm:$0xff]  }
  0xb0   : > { %2057 = vmatmul.mubr.bf16.gmra.mrb[64].mxu0 %v1834_v28  ;;  %6122 = vmatprep.subr.bf16.mxu1 %v6939_v1  ;;  %v2282_v28 = vrot.slane %v2280_v6, 2 }
  0xb1   : > { %5682 = vmatpush3.bf16.msra.mxu0 %v6722_v61  ;;  %2064 = vmatprep.mubr.bf16.mxu0 %v1842_v3  ;;  %v2238_v61 = vshll.u32 %v7638_v43, 16  ;;  %v6747_v3 = vld [vmem:[%s8820_s3 + $0x338] sm:$0xff]   ;;  %v2246_v43 = vshll.u32 %v7641_v62, 16 }
  0xb2   : > { %5683 = vmatprep.subr.bf16.mxu0 %v6726_v60  ;;  %v2258_v60 = vor.u32 %v7723_v5, %v7707_v55  ;;  %v2298_v55 = vshll.u32 %v7648_v20, 16  ;;  %v2304_v5 = vshrl.u32 %v7659_v39, 16  ;;  %v2283_v40 = vor.u32 %v2282_v28, %v2279_v23  ;;  %v6756_v28 = vld [vmem:[%s8820_s3 + $0x448] sm:$0xff]  }
  0xb3   : > { %6123 = vmatpush3.bf16.msra.mxu1 %v6731_v8  ;;  %v1856_v8 = vsel %vm1309_vm2, %v1849_v21, %v1855_v24  ;;  %v2240_v12 = vrot.slane %v2238_v61, 2  ;;  %v2248_v22 = vrot.slane %v2246_v43, 2  ;;  %v6750_v24 = vld [vmem:[%s8820_s3 + $0x3c0] sm:$0xff]   ;;  %v2771_v61 = vrot.slane %v7641_v62, 2  ;;  %v6782_v62 = vld [vmem:[%s8820_s3 + $0x488] sm:$0xff]  }
  0xb4   : > { %6124 = vmatprep.subr.bf16.mxu1 %v6939_v1  ;;  %v2300_v21 = vrot.slane %v2298_v55, 2  ;;  %v2316_v55 = vshll.u32 %v7701_v53, 16 }
  0xb5   : > { %5684 = vmatpush3.bf16.msra.mxu0 %v6728_v26  ;;  %v2237_v26 = vrot.slane %v2235_v59, 1  ;;  %v7827_v6 = vor.u32 %v2248_v22, %v2245_v29  ;;  %v2795_v29 = vrot.slane %v7739_v17, 2  ;;  %v2352_v22 = vshll.u32 %v7717_v7, 16 }
  0xb6   : > { %6105 = vmatmul.mubr.bf16.gmra.mrb[8].mxu1 %v1844_v13  ;;  %5685 = vmatprep.subr.bf16.mxu0 %v6730_v14  ;;  %v6749_v14 = vld [vmem:[%s8820_s3 + $0x400] sm:$0xff]   ;;  %v2286_v13 = vshrl.u32 %v7665_v33, 16 }
  0xb7   : > { %6108 = vmatprep.mubr.msk.bf16.mxu1 %vm6940_vm0, %v6939_v1  ;;  %6125 = vmatpush3.bf16.msra.mxu1 %v6736_v19  ;;  %v2275_v19 = vor.u32 %v7765_v47, %v7763_v46  ;;  %v2325_v46 = vshll.u32 %v7669_v52, 16  ;;  %v2309_v47 = vrot.slane %v2307_v15, 2  ;;  %v2793_v15 = vrot.slane %v7717_v7, 2 }
  0xb8   : > { %2065 = vmatmul.mubr.bf16.gmra.mrb[68].mxu0 %v1840_v18  ;;  %6126 = vmatprep.subr.bf16.mxu1 %v6939_v1  ;;  %v1852_v18 = vsel %vm1309_vm2, %v1845_v48, %v1851_v58  ;;  %v2288_v0 = vrot.slane %v2286_v13, 1  ;;  %v2331_v48 = vshrl.u32 %v7692_v56, 16 }
  0xb9   : > { %5686 = vmatpush3.bf16.msra.mxu0 %v6732_v37  ;;  %2072 = vmatprep.mubr.bf16.mxu0 %v1848_v42  ;;  %v2267_v37 = vsel %vm2233_vm3, %v2258_v60, %v2266_v9  ;;  %v2297_v42 = vrot.slane %v2295_v11, 1  ;;  %v2284_v51 = vsel %vm2233_vm3, %v2275_v19, %v2283_v40  ;;  %v2327_v59 = vrot.slane %v2325_v46, 2  ;;  %v6752_v11 = vld [vmem:[%s8820_s3 + $0x3c8] sm:$0xff]  }
  0xba   : > { %5687 = vmatprep.subr.bf16.mxu0 %v6737_v30  ;;  %v2306_v30 = vrot.slane %v2304_v5, 1  ;;  %v2333_v60 = vrot.slane %v2331_v48, 1  ;;  %v2318_v46 = vrot.slane %v2316_v55, 2  ;;  %v2358_v48 = vshrl.u32 %v7739_v17, 16 }
  0xbb   : > { %6127 = vmatpush3.bf16.msra.mxu1 %v6739_v44  ;;  %v2322_v44 = vshrl.u32 %v7669_v52, 16  ;;  %v2313_v52 = vshrl.u32 %v7701_v53, 16 }
  0xbc   : > { %6128 = vmatprep.subr.bf16.mxu1 %v6939_v1 }
  0xbd   : > { %5688 = vmatpush3.bf16.msra.mxu0 %v6738_v49  ;;  %v2291_v49 = vrot.slane %v2289_v35, 2  ;;  %v2324_v23 = vrot.slane %v2322_v44, 1  ;;  %v2349_v35 = vshrl.u32 %v7717_v7, 16  ;;  %v2315_v44 = vrot.slane %v2313_v52, 1  ;;  %v6801_v7 = vld [vmem:[%s8820_s3 + $0x4b8] sm:$0xff]  }
  0xbe   : > { %6109 = vmatmul.mubr.bf16.gmra.mrb[12].mxu1 %v1850_v36  ;;  %5689 = vmatprep.subr.bf16.mxu0 %v6740_v50  ;;  %v2241_v50 = vor.u32 %v2240_v12, %v2237_v26  ;;  %v2781_v36 = vrot.slane %v7648_v20, 2  ;;  %v2789_v26 = vrot.slane %v7692_v56, 2 }
  0xbf   : > { %6112 = vmatprep.mubr.msk.bf16.mxu1 %vm6940_vm0, %v6939_v1  ;;  %6129 = vmatpush3.bf16.msra.mxu1 %v6745_v57  ;;  %v7835_v57 = vor.u32 %v2300_v21, %v2297_v42  ;;  %v6759_v42 = vld [vmem:[%s8820_s3 + $0x450] sm:$0xff]  }
  0xc0   : > { %2073 = vmatmul.mubr.bf16.gmra.mrb[72].mxu0 %v1846_v63  ;;  %6130 = vmatprep.subr.bf16.mxu1 %v6939_v1  ;;  %v2334_v63 = vshll.u32 %v7692_v56, 16  ;;  %v7845_v20 = vsel %vm2769_vm4, %v2774_v16, %v2781_v36  ;;  %v2250_v58 = vsel %vm2233_vm3, %v2241_v50, %v7827_v6  ;;  %v7882_v12 = vsel %vm2769_vm4, %v2781_v36, %v2787_v2  ;;  %v6754_v56 = vld [vmem:[%s8820_s3 + $0x410] sm:$0xff]  }
  0xc1   : > { %2080 = vmatprep.mubr.bf16.mxu0 %v1854_v31  ;;  %5690 = vmatpush3.bf16.msra.mxu0 %v6743_v38  ;;  %v2777_v38 = vrot.slane %v7620_v34, 2  ;;  %v2783_v31 = vrot.slane %v7659_v39, 2  ;;  %v2302_v43 = vsel %vm2233_vm3, %v2266_v9, %v7835_v57  ;;  %v2785_v9 = vrot.slane %v7701_v53, 2  ;;  %v6786_v34 = vld [vmem:[%s8820_s3 + $0x508] sm:$0xff]  }
  0xc2   : > { %5691 = vmatprep.subr.bf16.mxu0 %v6746_v27  ;;  %v6751_v27 = vld [vmem:[%s8820_s3 + $0x408] sm:$0xff]   ;;  %v2328_v53 = vor.u32 %v2327_v59, %v2324_v23  ;;  %v7919_v21 = vsel %vm2769_vm4, %v2789_v26, %v2795_v29  ;;  %v2361_v50 = vshll.u32 %v7739_v17, 16  ;;  %v2354_v23 = vrot.slane %v2352_v22, 2  ;;  %v6758_v59 = vld [vmem:[%s8820_s3 + $0x3d8] sm:$0xff]  }
  0xc3   : > { %6131 = vmatpush3.bf16.msra.mxu1 %v6748_v4  ;;  %v7858_v4 = vor.u32 %v2309_v47, %v2306_v30  ;;  %v7863_v39 = vsel %vm2769_vm4, %v2777_v38, %v2783_v31  ;;  %v7892_v5 = vsel %vm2769_vm4, %v2783_v31, %v2789_v26  ;;  %v6757_v30 = vld [vmem:[%s8820_s3 + $0x418] sm:$0xff]   ;;  %v7925_v47 = vld [vmem:[%s7100_s29 + $0x2c] ss:$0 sps:$4 sm:$0x33]   ;;  %v2343_v31 = vshll.u32 %v7747_v45, 16  ;;  %v6763_v26 = vld [vmem:[%s8820_s3 + $0x460] sm:$0xff]  }
  0xc4   : > { %6152 = vmatprep.subr.bf16.mxu1 %v6939_v1 }
  0xc5   : > { %5692 = vmatpush3.bf16.msra.mxu0 %v6747_v3  ;;  %v2779_v3 = vrot.slane %v7665_v33, 2  ;;  %v2311_v13 = vsel %vm2233_vm3, %v2283_v40, %v7858_v4  ;;  %v6755_v40 = vld [vmem:[%s8820_s3 + $0x3d0] sm:$0xff]   ;;  %v2345_v52 = vrot.slane %v2343_v31, 2 }
  0xc6   : > { %6113 = vmatmul.mubr.bf16.gmra.mrb[16].mxu1 %v1856_v8  ;;  %5736 = vmatprep.subr.bf16.mxu0 %v6749_v14  ;;  %v2336_v8 = vrot.slane %v2334_v63, 2  ;;  %v7885_v14 = vor.u32 %v2291_v49, %v2288_v0  ;;  %v7948_v63 = vld [vmem:[%s7111_s16 + $0x2c] ss:$0 sps:$4 sm:$0x33]  }
  0xc7   : > { %6132 = vmatprep.mubr.msk.bf16.mxu1 %vm6940_vm0, %v6939_v1  ;;  %v7873_v33 = vsel %vm2769_vm4, %v2771_v61, %v2779_v3  ;;  %v7899_v19 = vsel %vm2769_vm4, %v2779_v3, %v2785_v9  ;;  %v2385_v55 = vshrl.u32 %v7948_v63, 16 }
  0xc8   : > { %2081 = vmatmul.mubr.bf16.gmra.mrb[76].mxu0 %v1852_v18  ;;  %v7906_v18 = vsel %vm2769_vm4, %v2787_v2, %v2793_v15  ;;  %v2293_v49 = vsel %vm2233_vm3, %v7827_v6, %v7885_v14  ;;  %v2337_v36 = vor.u32 %v2336_v8, %v2333_v60  ;;  %v6761_v6 = vld [vmem:[%s8820_s3 + $0x458] sm:$0xff]   ;;  %v2376_v2 = vshrl.u32 %v7925_v47, 16  ;;  %v6762_v8 = vld [vmem:[%s8820_s3 + $0x3e0] sm:$0xff]  }
  0xc9   : > { %2584 = vmatprep.mubr.bf16.mxu0 %v2267_v37  ;;  %v2791_v37 = vrot.slane %v7747_v45, 2 }
  0xca   : > { %v2338_v3 = vsel %vm2233_vm3, %v7858_v4, %v2337_v36 }
  0xcb   : > { %v7930_v0 = vsel %vm2769_vm4, %v2785_v9, %v2791_v37  ;;  %v6764_v9 = vld [vmem:[%s8820_s3 + $0x428] sm:$0xff]  }
  0xce   : > { %6133 = vmatmul.mubr.bf16.vlgmr.msra.gmra.mrb[0].mxu1 %v2284_v51  ;;  %v2329_v51 = vsel %vm2233_vm3, %v7835_v57, %v2328_v53  ;;  %v6760_v57 = vld [vmem:[%s8820_s3 + $0x420] sm:$0xff]  }
  0xcf   : > { %6136 = vmatprep.mubr.msk.bf16.mxu1 %vm6940_vm0, %v6939_v1  ;;  %6153 = vmatpush3.bf16.msra.mxu1 %v6753_v54  ;;  %v2351_v54 = vrot.slane %v2349_v35, 1 }
  0xd0   : > { %6154 = vmatprep.subr.bf16.mxu1 %v6939_v1  ;;  %2585 = vmatmul.mubr.bf16.vlgmr.msra.gmra.mrb[80].mxu0 %v2250_v58  ;;  %v2319_v58 = vor.u32 %v2318_v46, %v2315_v44  ;;  %v6765_v44 = vld [vmem:[%s8820_s3 + $0x3e8] sm:$0xff]  }
  0xd1   : > { %5737 = vmatpush3.bf16.msra.mxu0 %v6750_v24  ;;  %2592 = vmatprep.mubr.bf16.mxu0 %v2302_v43  ;;  %v2340_v24 = vshrl.u32 %v7747_v45, 16  ;;  %v2355_v60 = vor.u32 %v2354_v23, %v2351_v54  ;;  %v2379_v43 = vshll.u32 %v7925_v47, 16  ;;  %v6770_v23 = vld [vmem:[%s8820_s3 + $0x3f0] sm:$0xff]  }
  0xd2   : > { %5738 = vmatprep.subr.bf16.mxu0 %v6751_v27  ;;  %v2360_v27 = vrot.slane %v2358_v48, 1 }
  0xd3   : > { %6155 = vmatpush3.bf16.msra.mxu1 %v6756_v28  ;;  %v2363_v28 = vrot.slane %v2361_v50, 2  ;;  %v2342_v4 = vrot.slane %v2340_v24, 1  ;;  %v2356_v35 = vsel %vm2233_vm3, %v2328_v53, %v2355_v60  ;;  %v6767_v53 = vld [vmem:[%s8820_s3 + $0x430] sm:$0xff]  }
  0xd4   : > { %6156 = vmatprep.subr.bf16.mxu1 %v6939_v1 }
  0xd5   : > { %5739 = vmatpush3.bf16.msra.mxu0 %v6752_v11  ;;  %v7967_v11 = vld [vmem:[%s7133_s20 + $0x2c] ss:$0 sps:$4 sm:$0x33]   ;;  %v2364_v22 = vor.u32 %v2363_v28, %v2360_v27 }
  0xd6   : > { %6137 = vmatmul.mubr.bf16.gmra.mrb[4].mxu1 %v2311_v13  ;;  %5740 = vmatprep.subr.bf16.mxu0 %v6754_v56  ;;  %v2320_v56 = vsel %vm2233_vm3, %v7885_v14, %v2319_v58  ;;  %v2388_v13 = vshll.u32 %v7948_v63, 16  ;;  %v2346_v14 = vor.u32 %v2345_v52, %v2342_v4  ;;  %v2367_v46 = vshrl.u32 %v7967_v11, 16 }
  0xd7   : > { %6140 = vmatprep.mubr.msk.bf16.mxu1 %vm6940_vm0, %v6939_v1  ;;  %6157 = vmatpush3.bf16.msra.mxu1 %v6759_v42  ;;  %v2381_v42 = vrot.slane %v2379_v43, 2  ;;  %v2365_v48 = vsel %vm2233_vm3, %v2337_v36, %v2364_v22  ;;  %v6773_v36 = vld [vmem:[%s8820_s3 + $0x438] sm:$0xff]   ;;  %v2710_v43 = vld [vmem:[%s7111_s16 + $0x4] sm:$0xc] }
  0xd8   : > { %2593 = vmatmul.mubr.bf16.gmra.mrb[84].mxu0 %v2293_v49  ;;  %6158 = vmatprep.subr.bf16.mxu1 %v6939_v1  ;;  %v2370_v49 = vshll.u32 %v7967_v11, 16  ;;  %v2390_v54 = vrot.slane %v2388_v13, 2  ;;  %v2369_v24 = vrot.slane %v2367_v46, 1  ;;  %v5107_v52 = vcombine.low %v2710_v43, %v7608_v32  ;;  %v6792_v46 = vld [vmem:[%s8820_s3 + $0x4a0] sm:$0xff]  }
  0xd9   : > { %5741 = vmatpush3.bf16.msra.mxu0 %v6755_v40  ;;  %2600 = vmatprep.mubr.bf16.mxu0 %v2329_v51  ;;  %v2378_v40 = vrot.slane %v2376_v2, 1  ;;  %v2387_v51 = vrot.slane %v2385_v55, 1 }
  0xda   : > { %5742 = vmatprep.subr.bf16.mxu0 %v6757_v30  ;;  %v6766_v30 = vld [vmem:[%s8820_s3 + $0x468] sm:$0xff]   ;;  %v2372_v31 = vrot.slane %v2370_v49, 2  ;;  %v2776_v55 = vrot.slane %v5107_v52, 2 }
  0xdb   : > { %6159 = vmatpush3.bf16.msra.mxu1 %v6761_v6  ;;  %v2382_v50 = vor.u32 %v2381_v42, %v2378_v40  ;;  %v2709_v6 = vld [vmem:[%s7100_s29 + $0x4] sm:$0xc]  ;;  %v2391_v28 = vor.u32 %v2390_v54, %v2387_v51  ;;  %v6785_v40 = vld [vmem:[%s8820_s3 + $0x490] sm:$0xff]   ;;  %v6791_v42 = vld [vmem:[%s8820_s3 + $0x518] sm:$0xff]  }
  0xdc   : > { %6160 = vmatprep.subr.bf16.mxu1 %v6939_v1  ;;  %v5106_v2 = vcombine.low %v2709_v6, %v7578_v10  ;;  %v6779_v10 = vld [vmem:[%s8820_s3 + $0x4c0] sm:$0xff]   ;;  %v6795_v51 = vld [vmem:[%s8820_s3 + $0x4a8] sm:$0xff]   ;;  %v6797_v54 = vld [vmem:[%s8820_s3 + $0x4f0] sm:$0xff]  }
  0xdd   : > { %5743 = vmatpush3.bf16.msra.mxu0 %v6758_v59  ;;  %v6772_v59 = vld [vmem:[%s8820_s3 + $0x470] sm:$0xff]   ;;  %v2383_v27 = vsel %vm2233_vm3, %v2355_v60, %v2382_v50  ;;  %v2708_v60 = vld [vmem:[%s7133_s20 + $0x4] sm:$0xc]  ;;  %v8116_v6 = vld [vmem:[%s7100_s29 + $0xc] sm:$0xf] }
  0xde   : > { %6141 = vmatmul.mubr.bf16.gmra.mrb[8].mxu1 %v2338_v3  ;;  %5744 = vmatprep.subr.bf16.mxu0 %v6760_v57  ;;  %v2347_v57 = vsel %vm2233_vm3, %v2319_v58, %v2346_v14  ;;  %v6775_v3 = vld [vmem:[%s8820_s3 + $0x478] sm:$0xff]   ;;  %v2773_v4 = vrot.slane %v5106_v2, 2 }
  0xdf   : > { %6144 = vmatprep.mubr.msk.bf16.mxu1 %vm6940_vm0, %v6939_v1  ;;  %6161 = vmatpush3.bf16.msra.mxu1 %v6763_v26  ;;  %v6774_v58 = vld [vmem:[%s8820_s3 + $0x3f8] sm:$0xff]   ;;  %v2392_v26 = vsel %vm2233_vm3, %v2364_v22, %v2391_v28  ;;  %v6780_v22 = vld [vmem:[%s8820_s3 + $0x480] sm:$0xff]  }
  0xe0   : > { %2601 = vmatmul.mubr.bf16.gmra.mrb[88].mxu0 %v2320_v56  ;;  %6162 = vmatprep.subr.bf16.mxu1 %v6939_v1  ;;  %v5105_v56 = vcombine.low %v2708_v60, %v7628_v41  ;;  %v2775_v32 = vsel %vm2769_vm4, %v2773_v4, %v2774_v16  ;;  %v6783_v41 = vld [vmem:[%s8820_s3 + $0x500] sm:$0xff]   ;;  %v6781_v16 = vld [vmem:[%s8820_s3 + $0x4c8] sm:$0xff]   ;;  %v2797_v60 = vrot.slane %v7967_v11, 2 }
  0xe1   : > { %5745 = vmatpush3.bf16.msra.mxu0 %v6762_v8  ;;  %2608 = vmatprep.mubr.bf16.mxu0 %v2356_v35  ;;  %v2373_v8 = vor.u32 %v2372_v31, %v2369_v24  ;;  %v2778_v35 = vsel %vm2769_vm4, %v2776_v55, %v2777_v38  ;;  %v6784_v38 = vld [vmem:[%s8820_s3 + $0x4d0] sm:$0xff]   ;;  %v3118_v4 = vld [vmem:[%s7133_s20 + $0x8] sm:$0xc] }
  0xe2   : > { %5746 = vmatprep.subr.bf16.mxu0 %v6764_v9  ;;  %v2770_v13 = vrot.slane %v5105_v56, 2  ;;  %v6798_v24 = vld [vmem:[%s8820_s3 + $0x4b0] sm:$0xff]  }
  0xe3   : > { %6163 = vmatpush3.bf16.msra.mxu1 %v6766_v30  ;;  %v2374_v9 = vsel %vm2233_vm3, %v2346_v14, %v2373_v8  ;;  %v6790_v30 = vld [vmem:[%s8820_s3 + $0x4e0] sm:$0xff]   ;;  %v8150_v8 = vld [vmem:[%s7111_s16 + $0xc] sm:$0xf] }
  0xe4   : > { %6164 = vmatprep.subr.bf16.mxu1 %v6939_v1  ;;  %v2772_v25 = vsel %vm2769_vm4, %v2770_v13, %v2771_v61  ;;  %v6789_v61 = vld [vmem:[%s8820_s3 + $0x510] sm:$0xff]   ;;  %v2798_v13 = vsel %vm2769_vm4, %v2791_v37, %v2797_v60 }
  0xe5   : > { %5747 = vmatpush3.bf16.msra.mxu0 %v6765_v44 }
  0xe6   : > { %6145 = vmatmul.mubr.bf16.gmra.mrb[12].mxu1 %v2365_v48  ;;  %5748 = vmatprep.subr.bf16.mxu0 %v6767_v53  ;;  %v6794_v48 = vld [vmem:[%s8820_s3 + $0x4e8] sm:$0xff]  }
  0xe7   : > { %6148 = vmatprep.mubr.msk.bf16.mxu1 %vm6940_vm0, %v6939_v1  ;;  %6165 = vmatpush3.bf16.msra.mxu1 %v6772_v59  ;;  %v3129_v59 = vld [vmem:[%s7100_s29 + $0x8] sm:$0xc] }
  0xe8   : > { %2609 = vmatmul.mubr.bf16.gmra.mrb[92].mxu0 %v2347_v57  ;;  %6166 = vmatprep.subr.bf16.mxu1 %v6939_v1  ;;  %v2801_v57 = vrot.slane %v7948_v63, 2  ;;  %v6802_v63 = vld [vmem:[%s8820_s3 + $0x538] sm:$0xff]   ;;  %v8136_v28 = vcombine.low %v3129_v59, %v8116_v6  ;;  %v6812_v59 = vld [vmem:[%s8820_s3 + $0x548] sm:$0xff]  }
  0xe9   : > { %2616 = vmatprep.mubr.bf16.mxu0 %v2383_v27  ;;  %5749 = vmatpush3.bf16.msra.mxu0 %v6770_v23  ;;  %v2799_v23 = vrot.slane %v7925_v47, 2  ;;  %v6800_v47 = vld [vmem:[%s8820_s3 + $0x4f8] sm:$0xff]  }
  0xea   : > { %5750 = vmatprep.subr.bf16.mxu0 %v6773_v36 }
  0xeb   : > { %6167 = vmatpush3.bf16.msra.mxu1 %v6775_v3  ;;  %v2800_v2 = vsel %vm2769_vm4, %v2793_v15, %v2799_v23  ;;  %v3287_v15 = vrot.slane %v8136_v28, 2 }
  0xec   : > { %6188 = vmatprep.subr.bf16.mxu1 %v6939_v1 }
  0xed   : > { %5751 = vmatpush3.bf16.msra.mxu0 %v6774_v58  ;;  %v3140_v58 = vld [vmem:[%s7111_s16 + $0x8] sm:$0xc] }
  0xee   : > { %6149 = vmatmul.mubr.bf16.gmra.mrb[16].mxu1 %v2392_v26  ;;  %5795 = vmatprep.subr.bf16.mxu0 %v6779_v10  ;;  %v8160_v26 = vld [vmem:[%s7111_s16 + $0x10] sm:$0xff]   ;;  %v8168_v52 = vcombine.low %v3140_v58, %v8150_v8  ;;  %v8171_v10 = vld [vmem:[%s7133_s20 + $0xc] sm:$0xf] }
  0xef   : > { %6168 = vmatprep.mubr.msk.bf16.mxu1 %vm6940_vm0, %v6939_v1 }
  0xf0   : > { %2617 = vmatmul.mubr.bf16.gmra.mrb[96].mxu0 %v2374_v9  ;;  %v6809_v9 = vld [vmem:[%s8820_s3 + $0x580] sm:$0xff]  }
  0xf1   : > { %2994 = vmatprep.mubr.bf16.mxu0 %v2775_v32  ;;  %v8177_v32 = vld [vmem:[%s7133_s20 + $0x10] sm:$0xff]  }
  0xf2   : > { %v3285_v37 = vrot.slane %v8177_v32, 2 }
  0xf6   : > { %6169 = vmatmul.mubr.bf16.vlgmr.msra.gmra.mrb[0].mxu1 %v2778_v35  ;;  %v8186_v35 = vcombine.low %v3118_v4, %v8171_v10 }
  0xf7   : > { %6172 = vmatprep.mubr.msk.bf16.mxu1 %vm6940_vm0, %v6939_v1  ;;  %6189 = vmatpush3.bf16.msra.mxu1 %v6783_v41 }
  0xf8   : > { %6190 = vmatprep.subr.bf16.mxu1 %v6939_v1  ;;  %2995 = vmatmul.mubr.bf16.vlgmr.msra.gmra.mrb[100].mxu0 %v2772_v25  ;;  %v3290_v25 = vrot.slane %v8168_v52, 2 }
  0xf9   : > { %5796 = vmatpush3.bf16.msra.mxu0 %v6780_v22  ;;  %3002 = vmatprep.mubr.bf16.mxu0 %v7845_v20  ;;  %v6787_v20 = vld [vmem:[%s8820_s3 + $0x4d8] sm:$0xff]  }
  0xfa   : > { %5797 = vmatprep.subr.bf16.mxu0 %v6781_v16  ;;  %v3291_v16 = vrot.slane %v8160_v26, 2 }
  0xfb   : > { %6191 = vmatpush3.bf16.msra.mxu1 %v6786_v34  ;;  %v8194_v34 = vld [vmem:[%s7100_s29 + $0x18] sm:$0xff]  }
  0xfc   : > { %6192 = vmatprep.subr.bf16.mxu1 %v6939_v1 }
  0xfd   : > { %5798 = vmatpush3.bf16.msra.mxu0 %v6782_v62  ;;  %v3284_v62 = vrot.slane %v8186_v35, 2 }
  0xfe   : > { %6173 = vmatmul.mubr.bf16.gmra.mrb[4].mxu1 %v7863_v39  ;;  %5799 = vmatprep.subr.bf16.mxu0 %v6784_v38  ;;  %v6788_v39 = vld [vmem:[%s8820_s3 + $0x498] sm:$0xff]   ;;  %v6813_v38 = vld [vmem:[%s8820_s3 + $0x5c0] sm:$0xff]  }
  0xff   : > { %6176 = vmatprep.mubr.msk.bf16.mxu1 %vm6940_vm0, %v6939_v1  ;;  %6193 = vmatpush3.bf16.msra.mxu1 %v6789_v61  ;;  %v3292_v61 = vsel %vm2769_vm4, %v3290_v25, %v3291_v16  ;;  %v3715_v25 = vshll.u32 %v8136_v28, 16 }
 0x100   : > { %3003 = vmatmul.mubr.bf16.gmra.mrb[104].mxu0 %v7873_v33  ;;  %6194 = vmatprep.subr.bf16.mxu1 %v6939_v1  ;;  %v6793_v33 = vld [vmem:[%s8820_s3 + $0x520] sm:$0xff]  }
 0x101   : > { %5800 = vmatpush3.bf16.msra.mxu0 %v6785_v40  ;;  %3010 = vmatprep.mubr.bf16.mxu0 %v7882_v12  ;;  %v3295_v40 = vrot.slane %v8194_v34, 2 }
 0x102   : > { %5801 = vmatprep.subr.bf16.mxu0 %v6787_v20  ;;  %v8206_v20 = vld [vmem:[%s7111_s16 + $0x18] sm:$0xff]  }
 0x103   : > { %v5457_v14 = vpop.f32.mrb[0].mxu0  ;;  %6195 = vmatpush3.bf16.msra.mxu1 %v6791_v42 }
 0x104   : > { %v5458_v44 = vpop.f32.mrb[1].mxu0  ;;  %6196 = vmatprep.subr.bf16.mxu1 %v6939_v1 }
 0x105   : > { %v8088_v53 = vadd.f32 %v5458_v44, %v5457_v14  ;;  %v5460_v12 = vpop.f32.mrb[2].mxu0  ;;  %5802 = vmatpush3.bf16.msra.mxu0 %v6788_v39  ;;  %v3286_v44 = vsel %vm2769_vm4, %v3284_v62, %v3285_v37  ;;  %v8286_v62 = vld [vmem:[%s7111_s16 + $0x28] sm:$0xff]  }
 0x106   : > { %6177 = vmatmul.mubr.bf16.gmra.mrb[8].mxu1 %v7892_v5  ;;  %v5461_v49 = vpop.f32.mrb[3].mxu0  ;;  %5803 = vmatprep.subr.bf16.mxu0 %v6790_v30  ;;  %v6796_v5 = vld [vmem:[%s8820_s3 + $0x528] sm:$0xff]   ;;  %v6810_v30 = vld [vmem:[%s8820_s3 + $0x540] sm:$0xff]  }
 0x107   : > { %6180 = vmatprep.mubr.msk.bf16.mxu1 %vm6940_vm0, %v6939_v1  ;;  %v8099_v50 = vadd.f32 %v5461_v49, %v5460_v12  ;;  %6197 = vmatpush3.bf16.msra.mxu1 %v6793_v33  ;;  %v6811_v12 = vld [vmem:[%s8820_s3 + $0x588] sm:$0xff]  }
 0x108   : > { %3011 = vmatmul.mubr.bf16.gmra.mrb[108].mxu0 %v7899_v19  ;;  %6198 = vmatprep.subr.bf16.mxu1 %v6939_v1 }
 0x109   : > { %5804 = vmatpush3.bf16.msra.mxu0 %v6792_v46  ;;  %3018 = vmatprep.mubr.bf16.mxu0 %v7906_v18  ;;  %v6799_v18 = vld [vmem:[%s8820_s3 + $0x530] sm:$0xff]   ;;  %v8218_v46 = vld [vmem:[%s7133_s20 + $0x18] sm:$0xff]  }
 0x10a   : > { %5805 = vmatprep.subr.bf16.mxu0 %v6794_v48 }
 0x10b   : > { %v5463_v19 = vpop.f32.mrb[4].mxu0  ;;  %6199 = vmatpush3.bf16.msra.mxu1 %v6796_v5  ;;  %v3297_v5 = vrot.slane %v8206_v20, 2 }
 0x10c   : > { %v5464_v36 = vpop.f32.mrb[5].mxu0  ;;  %6200 = vmatprep.subr.bf16.mxu1 %v6939_v1 }
 0x10d   : > { %v8129_v31 = vadd.f32 %v5464_v36, %v5463_v19  ;;  %v5466_v27 = vpop.f32.mrb[6].mxu0  ;;  %5806 = vmatpush3.bf16.msra.mxu0 %v6795_v51  ;;  %v6819_v51 = vld [vmem:[%s8820_s3 + $0x5c8] sm:$0xff]   ;;  %v3293_v19 = vrot.slane %v8218_v46, 2  ;;  %v3298_v36 = vsel %vm2769_vm4, %v3291_v16, %v3297_v5 }
 0x10e   : > { %6181 = vmatmul.mubr.bf16.gmra.mrb[12].mxu1 %v7919_v21  ;;  %v5467_v3 = vpop.f32.mrb[7].mxu0  ;;  %5807 = vmatprep.subr.bf16.mxu0 %v6797_v54  ;;  %v8144_v21 = vld [vmem:[%s7100_s29 + $0x10] sm:$0xff]   ;;  %v8228_v54 = vld [vmem:[%s7100_s29 + $0x20] sm:$0xff]  }
 0x10f   : > { %6184 = vmatprep.mubr.msk.bf16.mxu1 %vm6940_vm0, %v6939_v1  ;;  %v8146_v43 = vadd.f32 %v5467_v3, %v5466_v27  ;;  %6201 = vmatpush3.bf16.msra.mxu1 %v6799_v18  ;;  %v3288_v11 = vrot.slane %v8144_v21, 2  ;;  %v6817_v18 = vld [vmem:[%s8820_s3 + $0x590] sm:$0xff]   ;;  %v8250_v3 = vld [vmem:[%s7133_s20 + $0x20] sm:$0xff]   ;;  %v3294_v60 = vsel %vm2769_vm4, %v3285_v37, %v3293_v19 }
 0x110   : > { %3019 = vmatmul.mubr.bf16.gmra.mrb[112].mxu0 %v7930_v0  ;;  %6202 = vmatprep.subr.bf16.mxu1 %v6939_v1  ;;  %v2802_v0 = vsel %vm2769_vm4, %v2795_v29, %v2801_v57  ;;  %v3301_v57 = vrot.slane %v8228_v54, 2  ;;  %v6825_v27 = vld [vmem:[%s8820_s3 + $0x5d0] sm:$0xff]  }
 0x111   : > { %3026 = vmatprep.mubr.bf16.mxu0 %v2800_v2  ;;  %5808 = vmatpush3.bf16.msra.mxu0 %v6798_v24  ;;  %v3289_v22 = vsel %vm2769_vm4, %v3287_v15, %v3288_v11  ;;  %v3296_v48 = vsel %vm2769_vm4, %v3288_v11, %v3295_v40  ;;  %v8243_v24 = vld [vmem:[%s7111_s16 + $0x20] sm:$0xff]   ;;  %v6822_v11 = vld [vmem:[%s8820_s3 + $0x598] sm:$0xff]  }
 0x112   : > { %5809 = vmatprep.subr.bf16.mxu0 %v6800_v47  ;;  %v3302_v4 = vsel %vm2769_vm4, %v3295_v40, %v3301_v57 }
 0x113   : > { %v5469_v56 = vpop.f32.mrb[8].mxu0  ;;  %6203 = vmatpush3.bf16.msra.mxu1 %v6802_v63 }
 0x114   : > { %v5470_v17 = vpop.f32.mrb[9].mxu0  ;;  %6224 = vmatprep.subr.bf16.mxu1 %v6939_v1 }
 0x115   : > { %v8180_v29 = vadd.f32 %v5470_v17, %v5469_v56  ;;  %v5472_v55 = vpop.f32.mrb[10].mxu0  ;;  %5810 = vmatpush3.bf16.msra.mxu0 %v6801_v7  ;;  %v6818_v7 = vld [vmem:[%s8820_s3 + $0x550] sm:$0xff]   ;;  %v6827_v17 = vld [vmem:[%s8820_s3 + $0x5d8] sm:$0xff]  }
 0x116   : > { %6185 = vmatmul.mubr.bf16.gmra.mrb[16].mxu1 %v2802_v0  ;;  %v5473_v41 = vpop.f32.mrb[11].mxu0  ;;  %5854 = vmatprep.subr.bf16.mxu0 %v6809_v9  ;;  %v3303_v0 = vrot.slane %v8243_v24, 2  ;;  %v8266_v9 = vld [vmem:[%s7100_s29 + $0x28] sm:$0xff]  }
 0x117   : > { %6204 = vmatprep.mubr.msk.bf16.mxu1 %vm6940_vm0, %v6939_v1  ;;  %v8196_v45 = vadd.f32 %v5473_v41, %v5472_v55  ;;  %v3299_v55 = vrot.slane %v8250_v3, 2  ;;  %v6826_v41 = vld [vmem:[%s8820_s3 + $0x5a0] sm:$0xff]   ;;  %v3307_v37 = vrot.slane %v8266_v9, 2 }
 0x118   : > { %3027 = vmatmul.mubr.bf16.gmra.mrb[116].mxu0 %v2798_v13  ;;  %v6824_v13 = vld [vmem:[%s8820_s3 + $0x558] sm:$0xff]   ;;  %v3304_v16 = vsel %vm2769_vm4, %v3297_v5, %v3303_v0 }
 0x119   : > { %3508 = vmatprep.mubr.bf16.mxu0 %v3289_v22  ;;  %v3712_v22 = vshrl.u32 %v8136_v28, 16 }
 0x11b   : > { %v5475_v42 = vpop.f32.mrb[12].mxu0  ;;  %v8292_v28 = vrot.slane %v3712_v22, 2 }
 0x11c   : > { %v5476_v39 = vpop.f32.mrb[13].mxu0 }
 0x11d   : > { %v8211_v14 = vadd.f32 %v5476_v39, %v5475_v42  ;;  %v5478_v33 = vpop.f32.mrb[14].mxu0  ;;  %v3720_v42 = vshrl.u32 %v8144_v21, 16 }
 0x11e   : > { %6205 = vmatmul.mubr.bf16.vlgmr.msra.gmra.mrb[0].mxu1 %v3292_v61  ;;  %v5479_v49 = vpop.f32.mrb[15].mxu0  ;;  %v6832_v61 = vld [vmem:[%s8820_s3 + $0x5e0] sm:$0xff]  }
 0x11f   : > { %6208 = vmatprep.mubr.msk.bf16.mxu1 %vm6940_vm0, %v6939_v1  ;;  %6225 = vmatpush3.bf16.msra.mxu1 %v6813_v38  ;;  %v8230_v23 = vadd.f32 %v5479_v49, %v5478_v33  ;;  %v3300_v33 = vsel %vm2769_vm4, %v3293_v19, %v3299_v55  ;;  %v8304_v49 = vrot.slane %v3715_v25, 3  ;;  %v6833_v19 = vld [vmem:[%s8820_s3 + $0x5a8] sm:$0xff]   ;;  %v6841_v25 = vld [vmem:[%s8820_s3 + $0x5f0] sm:$0xff]  }
 0x120   : > { %6226 = vmatprep.subr.bf16.mxu1 %v6939_v1  ;;  %3509 = vmatmul.mubr.bf16.vlgmr.msra.gmra.mrb[120].mxu0 %v3286_v44  ;;  %v6828_v44 = vld [vmem:[%s8820_s3 + $0x560] sm:$0xff]  }
 0x121   : > { %5855 = vmatpush3.bf16.msra.mxu0 %v6810_v30  ;;  %3516 = vmatprep.mubr.bf16.mxu0 %v3296_v48  ;;  %v3723_v48 = vshll.u32 %v8144_v21, 16 }
 0x122   : > { %5856 = vmatprep.subr.bf16.mxu0 %v6811_v12  ;;  %v8302_v12 = vld [vmem:[%s7133_s20 + $0x28] sm:$0xff]  }
 0x123   : > { %6227 = vmatpush3.bf16.msra.mxu1 %v6819_v51  ;;  %v5481_v47 = vpop.f32.mrb[16].mxu0  ;;  %v3308_v51 = vsel %vm2769_vm4, %v3301_v57, %v3307_v37  ;;  %v3722_v57 = vrot.slane %v3720_v42, 2  ;;  %v4245_v42 = vrot.slane %v8250_v3, 3 }
 0x124   : > { %6228 = vmatprep.subr.bf16.mxu1 %v6939_v1  ;;  %v5482_v63 = vpop.f32.mrb[17].mxu0 }
 0x125   : > { %v8252_v2 = vadd.f32 %v5482_v63, %v5481_v47  ;;  %v5484_v58 = vpop.f32.mrb[18].mxu0  ;;  %5857 = vmatpush3.bf16.msra.mxu0 %v6812_v59  ;;  %v3309_v59 = vrot.slane %v8286_v62, 2  ;;  %v3729_v63 = vshrl.u32 %v8168_v52, 16 }
 0x126   : > { %6209 = vmatmul.mubr.bf16.gmra.mrb[4].mxu1 %v3298_v36  ;;  %v5485_v15 = vpop.f32.mrb[19].mxu0  ;;  %5858 = vmatprep.subr.bf16.mxu0 %v6817_v18  ;;  %v6837_v18 = vld [vmem:[%s7100_s29 + $0x30] ss:$0 sps:$4 sm:$0x33]  }
 0x127   : > { %6212 = vmatprep.mubr.msk.bf16.mxu1 %vm6940_vm0, %v6939_v1  ;;  %v8268_v56 = vadd.f32 %v5485_v15, %v5484_v58  ;;  %6229 = vmatpush3.bf16.msra.mxu1 %v6825_v27  ;;  %v6835_v27 = vld [vmem:[%s8820_s3 + $0x5e8] sm:$0xff]   ;;  %v3725_v15 = vrot.slane %v3723_v48, 3  ;;  %v6839_v48 = vld [vmem:[%s8820_s3 + $0x570] sm:$0xff]  }
 0x128   : > { %3517 = vmatmul.mubr.bf16.gmra.mrb[124].mxu0 %v3294_v60  ;;  %6230 = vmatprep.subr.bf16.mxu1 %v6939_v1  ;;  %v6834_v60 = vld [vmem:[%s8820_s3 + $0x568] sm:$0xff]  }
 0x129   : > { %5859 = vmatpush3.bf16.msra.mxu0 %v6818_v7  ;;  %3524 = vmatprep.mubr.bf16.mxu0 %v3302_v4  ;;  %v6838_v7 = vld [vmem:[%s7111_s16 + $0x30] ss:$0 sps:$4 sm:$0x33]   ;;  %v3310_v4 = vsel %vm2769_vm4, %v3303_v0, %v3309_v59  ;;  %v3737_v0 = vshrl.u32 %v8160_v26, 16 }
 0x12a   : > { %5860 = vmatprep.subr.bf16.mxu0 %v6822_v11  ;;  %v3313_v11 = vrot.slane %v6837_v18, 2  ;;  %v3315_v18 = vrot.slane %v6838_v7, 2 }
 0x12b   : > { %v5516_v38 = vpop.f32.mrb[20].mxu0  ;;  %6231 = vmatpush3.bf16.msra.mxu1 %v6827_v17  ;;  %v8340_v17 = vld [vmem:[%s7133_s20 + $0x30] ss:$0 sps:$4 sm:$0x33]  }
 0x12c   : > { %v5517_v40 = vpop.f32.mrb[21].mxu0  ;;  %6232 = vmatprep.subr.bf16.mxu1 %v6939_v1 }
 0x12d   : > { %v5518_v39 = vadd.f32 %v5517_v40, %v5516_v38  ;;  %v5519_v30 = vpop.f32.mrb[22].mxu0  ;;  %5861 = vmatpush3.bf16.msra.mxu0 %v6824_v13  ;;  %v3718_v13 = vor.u32 %v8304_v49, %v8292_v28  ;;  %v4253_v38 = vrot.slane %v8266_v9, 3 }
 0x12e   : > { %6213 = vmatmul.mubr.bf16.gmra.mrb[8].mxu1 %v3304_v16  ;;  %v5520_v5 = vpop.f32.mrb[23].mxu0  ;;  %5862 = vmatprep.subr.bf16.mxu0 %v6826_v41  ;;  %v3732_v41 = vshll.u32 %v8168_v52, 16  ;;  %v4247_v16 = vrot.slane %v8228_v54, 3  ;;  %v4249_v52 = vrot.slane %v8243_v24, 3 }
 0x12f   : > { %6216 = vmatprep.mubr.msk.bf16.mxu1 %vm6940_vm0, %v6939_v1  ;;  %v8318_v36 = vadd.f32 %v5518_v39, %v8088_v53  ;;  %v5521_v47 = vadd.f32 %v5520_v5, %v5519_v30  ;;  %6233 = vmatpush3.bf16.msra.mxu1 %v6832_v61  ;;  %v3305_v53 = vrot.slane %v8302_v12, 2  ;;  %v8825_v61 = vrot.slane %v8286_v62, 3 }
 0x130   : > { %3525 = vmatmul.mubr.bf16.gmra.mrb[128].mxu0 %v3300_v33  ;;  %6234 = vmatprep.subr.bf16.mxu1 %v6939_v1  ;;  %v8824_v39 = vrot.slane %v8302_v12, 3  ;;  %v3740_v5 = vshll.u32 %v8160_v26, 16 }
 0x131   : > { %v8326_v58 = vadd.f32 %v5521_v47, %v8099_v50  ;;  %5863 = vmatpush3.bf16.msra.mxu0 %v6828_v44  ;;  %3532 = vmatprep.mubr.bf16.mxu0 %v3308_v51  ;;  %v6836_v50 = vld [vmem:[%s8820_s3 + $0x5b0] sm:$0xff]   ;;  %v3306_v44 = vsel %vm2769_vm4, %v3299_v55, %v3305_v53  ;;  %v8370_v51 = vsel %vm4229_vm5, %v4247_v16, %v4253_v38  ;;  %v6842_v47 = vld [vmem:[%s8820_s3 + $0x5b8] sm:$0xff]  }
 0x132   : > { %5864 = vmatprep.subr.bf16.mxu0 %v6833_v19  ;;  %v3314_v55 = vsel %vm2769_vm4, %v3307_v37, %v3313_v11  ;;  %v3734_v11 = vrot.slane %v3732_v41, 3  ;;  %v8411_v41 = vor.u32 %v3725_v15, %v3722_v57 }
 0x133   : > { %v5522_v22 = vpop.f32.mrb[24].mxu0  ;;  %6235 = vmatpush3.bf16.msra.mxu1 %v6835_v27  ;;  %v8385_v27 = vsel %vm4229_vm5, %v4249_v52, %v8825_v61  ;;  %v3764_v61 = vshrl.u32 %v8206_v20, 16 }
 0x134   : > { %v5523_v40 = vpop.f32.mrb[25].mxu0  ;;  %6236 = vmatprep.subr.bf16.mxu1 %v6939_v1 }
 0x135   : > { %v5524_v30 = vadd.f32 %v5523_v40, %v5522_v22  ;;  %v5525_v33 = vpop.f32.mrb[26].mxu0  ;;  %5865 = vmatpush3.bf16.msra.mxu0 %v6834_v60  ;;  %v8392_v60 = vsel %vm4229_vm5, %v4245_v42, %v8824_v39  ;;  %v3311_v22 = vrot.slane %v8340_v17, 2  ;;  %v3695_v40 = vshrl.u32 %v8186_v35, 16 }
 0x136   : > { %6217 = vmatmul.mubr.bf16.gmra.mrb[12].mxu1 %v3310_v4  ;;  %v5526_v19 = vpop.f32.mrb[27].mxu0  ;;  %5866 = vmatprep.subr.bf16.mxu0 %v6836_v50  ;;  %v6844_v4 = vld [vmem:[%s8820_s3 + $0x5f8] sm:$0xff]   ;;  %v3731_v50 = vrot.slane %v3729_v63, 2  ;;  %v3698_v39 = vshll.u32 %v8186_v35, 16  ;;  %v3739_v17 = vrot.slane %v3737_v0, 2  ;;  %v3316_v35 = vsel %vm2769_vm4, %v3309_v59, %v3315_v18 }
 0x137   : > { %6220 = vmatprep.mubr.msk.bf16.mxu1 %vm6940_vm0, %v6939_v1  ;;  %v8395_v37 = vadd.f32 %v5524_v30, %v8129_v31  ;;  %v5527_v7 = vadd.f32 %v5526_v19, %v5525_v33  ;;  %6237 = vmatpush3.bf16.msra.mxu1 %v6841_v25  ;;  %v3703_v31 = vshrl.u32 %v8177_v32, 16  ;;  %v6843_v63 = vld [vmem:[%s8820_s3 + $0x578] sm:$0xff]   ;;  %v3706_v25 = vshll.u32 %v8177_v32, 16 }
 0x138   : > { %3533 = vmatmul.mubr.bf16.gmra.mrb[132].mxu0 %v3306_v44  ;;  %6238 = vmatprep.subr.bf16.mxu1 %v6939_v1  ;;  %v3742_v33 = vrot.slane %v3740_v5, 3  ;;  %v3755_v44 = vshrl.u32 %v8194_v34, 16  ;;  %v3735_v57 = vor.u32 %v3734_v11, %v3731_v50  ;;  %v3312_v0 = vsel %vm2769_vm4, %v3305_v53, %v3311_v22 }
 0x139   : > { %v8406_v30 = vadd.f32 %v5527_v7, %v8146_v43  ;;  %3540 = vmatprep.mubr.bf16.mxu0 %v3314_v55  ;;  %5867 = vmatpush3.bf16.msra.mxu0 %v6839_v48  ;;  %v6845_v43 = vld [vmem:[%s8820_s3 + $0x640] sm:$0xff]   ;;  %v3758_v48 = vshll.u32 %v8194_v34, 16  ;;  %v3697_v59 = vrot.slane %v3695_v40, 2  ;;  %v3700_v55 = vrot.slane %v3698_v39, 3 }
 0x13a   : > { %5868 = vmatprep.subr.bf16.mxu0 %v6842_v47  ;;  %v3705_v5 = vrot.slane %v3703_v31, 2  ;;  %v3708_v7 = vrot.slane %v3706_v25, 3  ;;  %v3727_v53 = vsel %vm3693_vm6, %v3718_v13, %v8411_v41  ;;  %v3743_v39 = vor.u32 %v3742_v33, %v3739_v17 }
 0x13b   : > { %v5528_v19 = vpop.f32.mrb[28].mxu0  ;;  %6239 = vmatpush3.bf16.msra.mxu1 %v6844_v4  ;;  %v3767_v4 = vshll.u32 %v8206_v20, 16  ;;  %v3757_v11 = vrot.slane %v3755_v44, 2  ;;  %v3760_v22 = vrot.slane %v3758_v48, 3  ;;  %v3746_v25 = vshrl.u32 %v8218_v46, 16 }
 0x13c   : > { %v5529_v15 = vpop.f32.mrb[29].mxu0  ;;  %6260 = vmatprep.subr.bf16.mxu1 %v6939_v1  ;;  %v3709_v28 = vor.u32 %v3708_v7, %v3705_v5  ;;  %v3766_v49 = vrot.slane %v3764_v61, 2  ;;  %v3744_v17 = vsel %vm3693_vm6, %v3735_v57, %v3743_v39  ;;  %v3785_v44 = vshll.u32 %v8228_v54, 16  ;;  %v6846_v57 = vld [vmem:[%s8820_s3 + $0x600] sm:$0xff]   ;;  %v6847_v7 = vld [vmem:[%s8820_s3 + $0x648] sm:$0xff]  }
 0x13d   : > { %v5530_v18 = vadd.f32 %v5529_v15, %v5528_v19  ;;  %v5531_v47 = vpop.f32.mrb[30].mxu0  ;;  %5869 = vmatpush3.bf16.msra.mxu0 %v6843_v63  ;;  %v3701_v63 = vor.u32 %v3700_v55, %v3697_v59  ;;  %v3769_v13 = vrot.slane %v3767_v4, 3  ;;  %v8447_v33 = vor.u32 %v3760_v22, %v3757_v11 }
 0x13e   : > { %6221 = vmatmul.mubr.bf16.gmra.mrb[16].mxu1 %v3316_v35  ;;  %v5532_v50 = vpop.f32.mrb[31].mxu0  ;;  %5913 = vmatprep.subr.bf16.mxu0 %v6845_v43  ;;  %v3749_v35 = vshll.u32 %v8218_v46, 16  ;;  %v3782_v43 = vshrl.u32 %v8228_v54, 16  ;;  %v3787_v11 = vrot.slane %v3785_v44, 3  ;;  %v3794_v22 = vshll.u32 %v8243_v24, 16 }
 0x13f   : > { %6240 = vmatprep.mubr.msk.bf16.mxu1 %vm6940_vm0, %v6939_v1  ;;  %v8436_v40 = vadd.f32 %v5530_v18, %v8180_v29  ;;  %v5533_v31 = vadd.f32 %v5532_v50, %v5531_v47  ;;  %v6849_v29 = vld [vmem:[%s8820_s3 + $0x680] sm:$0xff]   ;;  %v3710_v61 = vsel %vm3693_vm6, %v3701_v63, %v3709_v28  ;;  %v8455_v5 = vor.u32 %v3769_v13, %v3766_v49  ;;  %v6852_v50 = vld [vmem:[%s8820_s3 + $0x688] sm:$0xff]  }
 0x140   : > { %3541 = vmatmul.mubr.bf16.gmra.mrb[136].mxu0 %v3312_v0  ;;  %v3751_v0 = vrot.slane %v3749_v35, 3  ;;  %v3791_v18 = vshrl.u32 %v8243_v24, 16  ;;  %v3762_v4 = vsel %vm3693_vm6, %v8411_v41, %v8447_v33  ;;  %v3773_v35 = vshrl.u32 %v8250_v3, 16 }
 0x141   : > { %v8441_v19 = vadd.f32 %v5533_v31, %v8196_v45  ;;  %4044 = vmatprep.mubr.bf16.mxu0 %v3727_v53  ;;  %v3748_v45 = vrot.slane %v3746_v25, 2  ;;  %v3784_v53 = vrot.slane %v3782_v43, 2  ;;  %v3776_v41 = vshll.u32 %v8250_v3, 16  ;;  %v6850_v43 = vld [vmem:[%s8820_s3 + $0x650] sm:$0xff]  }
 0x142   : > { %v3809_v49 = vshrl.u32 %v8266_v9, 16 }
 0x143   : > { %v5534_v48 = vpop.f32.mrb[32].mxu0  ;;  %v8474_v25 = vor.u32 %v3751_v0, %v3748_v45  ;;  %v3788_v44 = vor.u32 %v3787_v11, %v3784_v53  ;;  %v6855_v45 = vld [vmem:[%s8820_s3 + $0x690] sm:$0xff]  }
 0x144   : > { %v5535_v15 = vpop.f32.mrb[33].mxu0 }
 0x145   : > { %v5536_v59 = vadd.f32 %v5535_v15, %v5534_v48  ;;  %v5537_v55 = vpop.f32.mrb[34].mxu0  ;;  %v3796_v48 = vrot.slane %v3794_v22, 3  ;;  %v6853_v22 = vld [vmem:[%s8820_s3 + $0x658] sm:$0xff]  }
 0x146   : > { %6241 = vmatmul.mubr.bf16.vlgmr.msra.gmra.mrb[0].mxu1 %v3744_v17  ;;  %v5538_v47 = vpop.f32.mrb[35].mxu0  ;;  %v3812_v17 = vshll.u32 %v8266_v9, 16 }
 0x147   : > { %6244 = vmatprep.mubr.msk.bf16.mxu1 %vm6940_vm0, %v6939_v1  ;;  %6261 = vmatpush3.bf16.msra.mxu1 %v6849_v29  ;;  %v8471_v31 = vadd.f32 %v5536_v59, %v8211_v14  ;;  %v5539_v63 = vadd.f32 %v5538_v47, %v5537_v55  ;;  %v6848_v14 = vld [vmem:[%s8820_s3 + $0x608] sm:$0xff]   ;;  %v3771_v29 = vsel %vm3693_vm6, %v3743_v39, %v8455_v5  ;;  %v3775_v39 = vrot.slane %v3773_v35, 2 }
 0x148   : > { %6262 = vmatprep.subr.bf16.mxu1 %v6939_v1  ;;  %4045 = vmatmul.mubr.bf16.vlgmr.msra.gmra.mrb[140].mxu0 %v3710_v61  ;;  %v3753_v59 = vsel %vm3693_vm6, %v3709_v28, %v8474_v25  ;;  %v3778_v55 = vrot.slane %v3776_v41, 3  ;;  %v3811_v61 = vrot.slane %v3809_v49, 2  ;;  %v3789_v28 = vsel %vm3693_vm6, %v8447_v33, %v3788_v44  ;;  %v6857_v49 = vld [vmem:[%s8820_s3 + $0x698] sm:$0xff]  }
 0x149   : > { %v8480_v13 = vadd.f32 %v5539_v63, %v8230_v23  ;;  %5914 = vmatpush3.bf16.msra.mxu0 %v6846_v57  ;;  %4052 = vmatprep.mubr.bf16.mxu0 %v3762_v4  ;;  %v3793_v23 = vrot.slane %v3791_v18, 2  ;;  %v6851_v18 = vld [vmem:[%s8820_s3 + $0x610] sm:$0xff]   ;;  %v3818_v4 = vshrl.u32 %v8286_v62, 16  ;;  %v3800_v33 = vshrl.u32 %v8302_v12, 16 }
 0x14a   : > { %5915 = vmatprep.subr.bf16.mxu0 %v6847_v7  ;;  %v3814_v7 = vrot.slane %v3812_v17, 3  ;;  %v8512_v63 = vld [vmem:[%s7100_s29 + $0x30] ss:$0 sps:$4 sm:$0x77]   ;;  %v3803_v17 = vshll.u32 %v8302_v12, 16 }
 0x14b   : > { %6263 = vmatpush3.bf16.msra.mxu1 %v6852_v50  ;;  %v5540_v15 = vpop.f32.mrb[36].mxu0  ;;  %v3821_v50 = vshll.u32 %v8286_v62, 16  ;;  %v8506_v11 = vor.u32 %v3796_v48, %v3793_v23  ;;  %v3820_v23 = vrot.slane %v3818_v4, 2 }
 0x14c   : > { %6264 = vmatprep.subr.bf16.mxu1 %v6939_v1  ;;  %v5541_v0 = vpop.f32.mrb[37].mxu0 }
 0x14d   : > { %v5542_v57 = vadd.f32 %v5541_v0, %v5540_v15  ;;  %v5543_v47 = vpop.f32.mrb[38].mxu0  ;;  %5916 = vmatpush3.bf16.msra.mxu0 %v6848_v14  ;;  %v8520_v14 = vor.u32 %v3778_v55, %v3775_v39  ;;  %v3823_v48 = vrot.slane %v3821_v50, 3  ;;  %v3798_v15 = vsel %vm3693_vm6, %v8455_v5, %v8506_v11  ;;  %v6859_v55 = vld [vmem:[%s8820_s3 + $0x6a0] sm:$0xff]  }
 0x14e   : > { %6245 = vmatmul.mubr.bf16.gmra.mrb[4].mxu1 %v3771_v29  ;;  %v5544_v53 = vpop.f32.mrb[39].mxu0  ;;  %5917 = vmatprep.subr.bf16.mxu0 %v6850_v43  ;;  %v8531_v43 = vor.u32 %v3814_v7, %v3811_v61  ;;  %v3839_v0 = vshll.u32 %v8512_v63, 16  ;;  %v6858_v7 = vld [vmem:[%s8820_s3 + $0x620] sm:$0xff]  }
 0x14f   : > { %6248 = vmatprep.mubr.msk.bf16.mxu1 %vm6940_vm0, %v6939_v1  ;;  %v8515_v35 = vadd.f32 %v5542_v57, %v8252_v2  ;;  %v5545_v41 = vadd.f32 %v5544_v53, %v5543_v47  ;;  %6265 = vmatpush3.bf16.msra.mxu1 %v6855_v45  ;;  %v6854_v2 = vld [vmem:[%s8820_s3 + $0x618] sm:$0xff]   ;;  %v3836_v45 = vshrl.u32 %v8512_v63, 16  ;;  %v3780_v5 = vsel %vm3693_vm6, %v8474_v25, %v8520_v14 }
 0x150   : > { %4053 = vmatmul.mubr.bf16.gmra.mrb[144].mxu0 %v3753_v59  ;;  %6266 = vmatprep.subr.bf16.mxu1 %v6939_v1  ;;  %v8542_v59 = vld [vmem:[%s7111_s16 + $0x30] ss:$0 sps:$4 sm:$0x77]   ;;  %v3802_v57 = vrot.slane %v3800_v33, 2  ;;  %v3816_v4 = vsel %vm3693_vm6, %v3788_v44, %v8531_v43  ;;  %v8556_v50 = vor.u32 %v3823_v48, %v3820_v23  ;;  %v3805_v53 = vrot.slane %v3803_v17, 3  ;;  %v6862_v23 = vld [vmem:[%s8820_s3 + $0x6a8] sm:$0xff]  }
 0x151   : > { %v8526_v29 = vadd.f32 %v5545_v41, %v8268_v56  ;;  %5918 = vmatpush3.bf16.msra.mxu0 %v6851_v18  ;;  %4060 = vmatprep.mubr.bf16.mxu0 %v3789_v28  ;;  %v6856_v56 = vld [vmem:[%s8820_s3 + $0x660] sm:$0xff]   ;;  %v8559_v28 = vld [vmem:[%s7133_s20 + $0x30] ss:$0 sps:$4 sm:$0x77]   ;;  %v3838_v41 = vrot.slane %v3836_v45, 2  ;;  %v3845_v33 = vshrl.u32 %v8542_v59, 16 }
 0x152   : > { %5919 = vmatprep.subr.bf16.mxu0 %v6853_v22  ;;  %v6860_v22 = vld [vmem:[%s8820_s3 + $0x668] sm:$0xff]   ;;  %v3848_v44 = vshll.u32 %v8542_v59, 16  ;;  %v3830_v45 = vshll.u32 %v8559_v28, 16 }
 0x153   : > { %v5575_v39 = vpop.f32.mrb[40].mxu0  ;;  %6267 = vmatpush3.bf16.msra.mxu1 %v6857_v49  ;;  %v3841_v49 = vrot.slane %v3839_v0, 3  ;;  %v3825_v0 = vsel %vm3693_vm6, %v8506_v11, %v8556_v50 }
 0x154   : > { %v5576_v61 = vpop.f32.mrb[41].mxu0  ;;  %6268 = vmatprep.subr.bf16.mxu1 %v6939_v1 }
 0x155   : > { %v5577_v47 = vadd.f32 %v5576_v61, %v5575_v39  ;;  %v5578_v18 = vpop.f32.mrb[42].mxu0  ;;  %5920 = vmatpush3.bf16.msra.mxu0 %v6854_v2  ;;  %v3842_v39 = vor.u32 %v3841_v49, %v3838_v41  ;;  %v3850_v61 = vrot.slane %v3848_v44, 3 }
 0x156   : > { %6249 = vmatmul.mubr.bf16.gmra.mrb[8].mxu1 %v3798_v15  ;;  %v5579_v25 = vpop.f32.mrb[43].mxu0  ;;  %5921 = vmatprep.subr.bf16.mxu0 %v6856_v56  ;;  %v3806_v15 = vor.u32 %v3805_v53, %v3802_v57  ;;  %v3827_v56 = vshrl.u32 %v8559_v28, 16  ;;  %v6868_v57 = vld [vmem:[%s8820_s3 + $0x6b0] sm:$0xff]  }
 0x157   : > { %6252 = vmatprep.mubr.msk.bf16.mxu1 %vm6940_vm0, %v6939_v1  ;;  %v8569_v2 = vadd.f32 %v8318_v36, %v5577_v47  ;;  %v5580_v17 = vadd.f32 %v5579_v25, %v5578_v18  ;;  %6269 = vmatpush3.bf16.msra.mxu1 %v6859_v55  ;;  %v6861_v36 = vld [vmem:[%s8820_s3 + $0x628] sm:$0xff]   ;;  %v3847_v55 = vrot.slane %v3845_v33, 2  ;;  %v6866_v53 = vld [vmem:[%s8820_s3 + $0x630] sm:$0xff]   ;;  %v3843_v49 = vsel %vm3693_vm6, %v8531_v43, %v3842_v39 }
 0x158   : > { %4061 = vmatmul.mubr.bf16.gmra.mrb[148].mxu0 %v3780_v5  ;;  %6270 = vmatprep.subr.bf16.mxu1 %v6939_v1  ;;  %v4169_v47 = vld [vmem:[%s7100_s29 + $0x8] sm:$0x8]  ;;  %v3829_v25 = vrot.slane %v3827_v56, 2 }
 0x159   : > { %v8576_v48 = vadd.f32 %v8326_v58, %v5580_v17  ;;  %5922 = vmatpush3.bf16.msra.mxu0 %v6858_v7  ;;  %4068 = vmatprep.mubr.bf16.mxu0 %v3816_v4  ;;  %v6863_v58 = vld [vmem:[%s8820_s3 + $0x670] sm:$0xff]   ;;  %v3807_v4 = vsel %vm3693_vm6, %v8520_v14, %v3806_v15  ;;  %v3851_v33 = vor.u32 %v3850_v61, %v3847_v55  ;;  %v6869_v14 = vld [vmem:[%s8820_s3 + $0x678] sm:$0xff]   ;;  %v4170_v56 = vld [vmem:[%s7111_s16 + $0x8] sm:$0x8]  ;;  %s272_s16 = sand.u32 1, %s6929_s22  }
 0x15a   : > { %5923 = vmatprep.subr.bf16.mxu0 %v6860_v22  ;;  %v3832_v22 = vrot.slane %v3830_v45, 3  ;;  %v5346_v44 = vcombine.low %v4169_v47, %v8116_v6  ;;  %v5347_v39 = vcombine.low %v4170_v56, %v8150_v8  ;;  %v4168_v55 = vld [vmem:[%s7133_s20 + $0x8] sm:$0x8]  ;;  %v4237_v8 = vrot.slane %v8160_v26, 3  ;;  %s4747_s11 = sshll.u32 %s272_s16, 6  ;;  %s8776_s25 = scalar_lea.sflag [#allocation3], %s272_s16 }
 0x15b   : > { %v5581_v5 = vpop.f32.mrb[44].mxu0  ;;  %6271 = vmatpush3.bf16.msra.mxu1 %v6862_v23  ;;  %v3852_v45 = vsel %vm3693_vm6, %v8556_v50, %v3851_v33  ;;  %s8726_s13 = scalar_lea.vmem [#allocation2], %s4747_s11  ;;  %s6881_s20 = scalar_lea.vmem %s6880_s28, 2048 }
 0x15c   : > { %v5582_v18 = vpop.f32.mrb[45].mxu0  ;;  %6272 = vmatprep.subr.bf16.mxu1 %v6939_v1  ;;  %v3833_v6 = vor.u32 %v3832_v22, %v3829_v25  ;;  %v4236_v50 = vrot.slane %v5347_v39, 3  ;;  %v4241_v22 = vrot.slane %v8194_v34, 3  ;;  %s4657_s15 = sshll.u32 %s8726_s13, 4  ;;  %s8769_s15 = int_to_ptr.vmem [resolvable:$true] %s4657_s15 }
 0x15d   : > { %v5583_v7 = vadd.f32 %v5582_v18, %v5581_v5  ;;  %v5584_v11 = vpop.f32.mrb[46].mxu0  ;;  %5924 = vmatpush3.bf16.msra.mxu0 %v6861_v36  ;;  %v6871_v36 = vld [vmem:[%s8820_s3 + $0x6b8] sm:$0xff]   ;;  %v5345_v18 = vcombine.low %v4168_v55, %v8171_v10  ;;  %v4231_v10 = vrot.slane %v8177_v32, 3  ;;  %s6875_s19 = scalar_lea.vmem %s8769_s15, 1024  ;;  %p6882_p0 = scmp.lt.s32.totalorder %s8769_s15, %s6880_s28 }
 0x15e   : > { %6253 = vmatmul.mubr.bf16.gmra.mrb[12].mxu1 %v3825_v0  ;;  %v5585_v41 = vpop.f32.mrb[47].mxu0  ;;  %5925 = vmatprep.subr.bf16.mxu0 %v6863_v58  ;;  %v4233_v0 = vrot.slane %v5346_v44, 3  ;;  %v4234_v58 = vrot.slane %v8144_v21, 3  ;;  %v3834_v47 = vsel %vm3693_vm6, %v3806_v15, %v3833_v6  ;;  %v4238_v25 = vsel %vm4229_vm5, %v4236_v50, %v4237_v8  ;;  %p6876_p11 = scmp.ne.s32.totalorder %s8769_s15, %s6875_s19  ;;  %p6883_p1 = scmp.lt.s32.totalorder %s6881_s20, %s6875_s19 }
 0x15f   : > { %6256 = vmatprep.mubr.msk.bf16.mxu1 %vm6940_vm0, %v6939_v1  ;;  %v8608_v17 = vadd.f32 %v8395_v37, %v5583_v7  ;;  %v5586_v23 = vadd.f32 %v5585_v41, %v5584_v11  ;;  %6273 = vmatpush3.bf16.msra.mxu1 %v6868_v57  ;;  %v6870_v37 = vld [vmem:[%s8820_s3 + $0x638] sm:$0xff]   ;;  %v4230_v15 = vrot.slane %v5345_v18, 3  ;;  %v4243_v44 = vrot.slane %v8206_v20, 3 }
 0x160   : > { %4069 = vmatmul.mubr.bf16.gmra.mrb[152].mxu0 %v3807_v4  ;;  %6274 = vmatprep.subr.bf16.mxu1 %v6939_v1  ;;  %v4235_v21 = vsel %vm4229_vm5, %v4233_v0, %v4234_v58  ;;  %v8828_v50 = vrot.slane %v8286_v62, 3  ;;  %p6877_p12 = pnand %p6876_p11, %p7017_p5  ;;  %p6884_p2 = por %p6883_p1, %p6882_p0 }
 0x161   : > { %v8616_v43 = vadd.f32 %v8406_v30, %v5586_v23  ;;  %4076 = vmatprep.mubr.bf16.mxu0 %v3843_v49  ;;  %5926 = vmatpush3.bf16.msra.mxu0 %v6866_v53  ;;  %v4244_v56 = vsel %vm4229_vm5, %v4237_v8, %v4243_v44  ;;  %v4250_v55 = vsel %vm4229_vm5, %v4243_v44, %v4249_v52  ;;  %v4259_v52 = vrot.slane %v8512_v63, 3 }
 0x162   : > { %5927 = vmatprep.subr.bf16.mxu0 %v6869_v14  ;;  %p6878_p13 = pneg %p6877_p12 }
 0x163   : > { %v5587_v61 = vpop.f32.mrb[48].mxu0  ;;  %6275 = vmatpush3.bf16.msra.mxu1 %v6871_v36  ;;  %v4239_v36 = vrot.slane %v8218_v46, 3 }
 0x164   : > { %v5588_v30 = vpop.f32.mrb[49].mxu0  ;;  %p6885_p3 = pnand %p6884_p2, %p6878_p13 }
 0x165   : > { %v5589_v5 = vadd.f32 %v5588_v30, %v5587_v61  ;;  %v5590_v57 = vpop.f32.mrb[50].mxu0  ;;  %5928 = vmatpush3.bf16.msra.mxu0 %v6870_v37  ;;  %v4240_v20 = vsel %vm4229_vm5, %v4231_v10, %v4239_v36  ;;  %v4246_v54 = vsel %vm4229_vm5, %v4239_v36, %v4245_v42 }
 0x166   : > { %6257 = vmatmul.mubr.bf16.gmra.mrb[16].mxu1 %v3852_v45  ;;  %v5591_v7 = vpop.f32.mrb[51].mxu0 }
 0x167   : > { %6276 = vmatprep.mubr.msk.bf16.mxu1 %vm6940_vm0, %v6939_v1  ;;  %v8633_v11 = vadd.f32 %v8436_v40, %v5589_v5  ;;  %v5592_v4 = vadd.f32 %v5591_v7, %v5590_v57  ;;  %v4232_v40 = vsel %vm4229_vm5, %v4230_v15, %v4231_v10 }
 0x168   : > { %4077 = vmatmul.mubr.bf16.gmra.mrb[156].mxu0 %v3834_v47 }
 0x169   : > { %v8636_v53 = vadd.f32 %v8441_v19, %v5592_v4  ;;  %4454 = vmatprep.mubr.bf16.mxu0 %v4235_v21  ;;  %v4242_v19 = vsel %vm4229_vm5, %v4234_v58, %v4241_v22 }
 0x16b   : > { %v5593_v41 = vpop.f32.mrb[52].mxu0 }
 0x16c   : > { %v5594_v49 = vpop.f32.mrb[53].mxu0 }
 0x16d   : > { %v5595_v33 = vadd.f32 %v5594_v49, %v5593_v41  ;;  %v5596_v26 = vpop.f32.mrb[54].mxu0 }
 0x16e   : > { %6277 = vmatmul.mubr.bf16.vlgmr.msra.gmra.mrb[0].mxu1 %v4238_v25  ;;  %v5597_v14 = vpop.f32.mrb[55].mxu0 }
 0x16f   : > { %6280 = vmatprep.mubr.msk.bf16.mxu1 %vm6940_vm0, %v6939_v1  ;;  %v8647_v32 = vadd.f32 %v8471_v31, %v5595_v33  ;;  %v5598_v23 = vadd.f32 %v5597_v14, %v5596_v26  ;;  %v4248_v31 = vsel %vm4229_vm5, %v4241_v22, %v4247_v16 }
 0x170   : > { %4455 = vmatmul.mubr.bf16.vlgmr.msra.gmra.mrb[160].mxu0 %v4232_v40 }
 0x171   : > { %v8650_v34 = vadd.f32 %v8480_v13, %v5598_v23  ;;  %4462 = vmatprep.mubr.bf16.mxu0 %v4242_v19 }
 0x173   : > { %v5599_v6 = vpop.f32.mrb[56].mxu0 }
 0x174   : > { %v5600_v37 = vpop.f32.mrb[57].mxu0 }
 0x175   : > { %v5601_v45 = vadd.f32 %v5600_v37, %v5599_v6  ;;  %v5602_v0 = vpop.f32.mrb[58].mxu0 }
 0x176   : > { %6281 = vmatmul.mubr.bf16.gmra.mrb[4].mxu1 %v4244_v56  ;;  %v5603_v58 = vpop.f32.mrb[59].mxu0 }
 0x177   : > { %6284 = vmatprep.mubr.msk.bf16.mxu1 %vm6940_vm0, %v6939_v1  ;;  %v6369_v13 = vadd.f32 %v8515_v35, %v5601_v45  ;;  %v5604_v46 = vadd.f32 %v5603_v58, %v5602_v0 }
 0x178   : > { %4463 = vmatmul.mubr.bf16.gmra.mrb[164].mxu0 %v4240_v20 }
 0x179   : > { %v6378_v39 = vadd.f32 %v8526_v29, %v5604_v46  ;;  %4470 = vmatprep.mubr.bf16.mxu0 %v4248_v31 }
 0x17b   : > { %v5634_v61 = vpop.f32.mrb[60].mxu0 }
 0x17c   : > { %v5635_v30 = vpop.f32.mrb[61].mxu0 }
 0x17d   : > { %v5636_v5 = vadd.f32 %v5635_v30, %v5634_v61  ;;  %v5637_v57 = vpop.f32.mrb[62].mxu0 }
 0x17e   : > { %6285 = vmatmul.mubr.bf16.gmra.mrb[8].mxu1 %v4250_v55  ;;  %v5638_v16 = vpop.f32.mrb[63].mxu0 }
 0x17f   : > { %6288 = vmatprep.mubr.msk.bf16.mxu1 %vm6940_vm0, %v6939_v1  ;;  %v6298_v35 = vadd.f32 %v8569_v2, %v5636_v5  ;;  %v5639_v29 = vadd.f32 %v5638_v16, %v5637_v57  ;;  %v4260_v2 = vsel %vm4229_vm5, %v4253_v38, %v4259_v52 }
 0x180   : > { %4471 = vmatmul.mubr.bf16.gmra.mrb[168].mxu0 %v4246_v54 }
 0x181   : > { %v6307_v24 = vadd.f32 %v8576_v48, %v5639_v29  ;;  %4478 = vmatprep.mubr.bf16.mxu0 %v8370_v51  ;;  %v4261_v48 = vrot.slane %v8542_v59, 3  ;;  %v8829_v59 = vrot.slane %v8302_v12, 3 }
 0x183   : > { %v5640_v47 = vpop.f32.mrb[64].mxu0 }
 0x184   : > { %v5641_v18 = vpop.f32.mrb[65].mxu0 }
 0x185   : > { %v5642_v7 = vadd.f32 %v5641_v18, %v5640_v47  ;;  %v5643_v3 = vpop.f32.mrb[66].mxu0 }
 0x186   : > { %6289 = vmatmul.mubr.bf16.gmra.mrb[12].mxu1 %v8385_v27  ;;  %v5644_v42 = vpop.f32.mrb[67].mxu0  ;;  %v4257_v27 = vrot.slane %v8559_v28, 3 }
 0x187   : > { %6292 = vmatprep.mubr.msk.bf16.mxu1 %vm6940_vm0, %v6939_v1  ;;  %v6316_v51 = vadd.f32 %v8608_v17, %v5642_v7  ;;  %v5645_v21 = vadd.f32 %v5644_v42, %v5643_v3  ;;  %v4262_v1 = vsel %vm4229_vm5, %v8828_v50, %v4261_v48 }
 0x188   : > { %4479 = vmatmul.mubr.bf16.gmra.mrb[172].mxu0 %v8392_v60  ;;  %v4258_v17 = vsel %vm4229_vm5, %v8829_v59, %v4257_v27 }
 0x189   : > { %v6325_v63 = vadd.f32 %v8616_v43, %v5645_v21  ;;  %4486 = vmatprep.mubr.bf16.mxu0 %v4260_v2 }
 0x18b   : > { %v5646_v8 = vpop.f32.mrb[68].mxu0 }
 0x18c   : > { %v5647_v9 = vpop.f32.mrb[69].mxu0 }
 0x18d   : > { %v5648_v4 = vadd.f32 %v5647_v9, %v5646_v8  ;;  %v5649_v38 = vpop.f32.mrb[70].mxu0 }
 0x18e   : > { %6293 = vmatmul.mubr.bf16.gmra.mrb[16].mxu1 %v4262_v1  ;;  %v5650_v15 = vpop.f32.mrb[71].mxu0 }
 0x18f   : > { %v6334_v60 = vadd.f32 %v8633_v11, %v5648_v4  ;;  %v5651_v43 = vadd.f32 %v5650_v15, %v5649_v38 }
 0x190   : > { %4487 = vmatmul.mubr.bf16.gmra.mrb[176].mxu0 %v4258_v17 }
 0x191   : > { %v6343_v28 = vadd.f32 %v8636_v53, %v5651_v43 }
 0x193   : > { %v5652_v10 = vpop.f32.mrb[72].mxu0 }
 0x194   : > { %v5653_v62 = vpop.f32.mrb[73].mxu0 }
 0x195   : > { %v5654_v25 = vadd.f32 %v5653_v62, %v5652_v10  ;;  %v5655_v22 = vpop.f32.mrb[74].mxu0 }
 0x196   : > { %v5656_v41 = vpop.f32.mrb[75].mxu0 }
 0x197   : > { %v6352_v49 = vadd.f32 %v8647_v32, %v5654_v25  ;;  %v5657_v33 = vadd.f32 %v5656_v41, %v5655_v22 }
 0x199   : > { %v6361_v26 = vadd.f32 %v8650_v34, %v5657_v33 }
 0x19b   : > { %v5658_v12 = vpop.f32.mrb[76].mxu0 }
 0x19c   : > { %v5659_v40 = vpop.f32.mrb[77].mxu0 }
 0x19d   : > { %v5660_v14 = vadd.f32 %v5659_v40, %v5658_v12  ;;  %v5661_v19 = vpop.f32.mrb[78].mxu0 }
 0x19e   : > { %v5662_v44 = vpop.f32.mrb[79].mxu0 }
 0x19f   : > { %v6370_v11 = vadd.f32 %v6369_v13, %v5660_v14  ;;  %v5663_v23 = vadd.f32 %v5662_v44, %v5661_v19 }
 0x1a1   : > { %v6379_v36 = vadd.f32 %v6378_v39, %v5663_v23 }
 0x1a3   : > { %v5693_v56 = vpop.f32.mrb[80].mxu0 }
 0x1a4   : > { %v5694_v53 = vpop.f32.mrb[81].mxu0 }
 0x1a5   : > { %v5695_v6 = vadd.f32 %v5694_v53, %v5693_v56  ;;  %v5696_v37 = vpop.f32.mrb[82].mxu0 }
 0x1a6   : > { %v5697_v45 = vpop.f32.mrb[83].mxu0 }
 0x1a7   : > { %v6299_v0 = vadd.f32 %v6298_v35, %v5695_v6  ;;  %v5698_v20 = vadd.f32 %v5697_v45, %v5696_v37 }
 0x1a9   : > { %v6308_v58 = vadd.f32 %v6307_v24, %v5698_v20 }
 0x1ab   : > { %v5699_v32 = vpop.f32.mrb[84].mxu0 }
 0x1ac   : > { %v5700_v31 = vpop.f32.mrb[85].mxu0 }
 0x1ad   : > { %v5701_v46 = vadd.f32 %v5700_v31, %v5699_v32  ;;  %v5702_v34 = vpop.f32.mrb[86].mxu0 }
 0x1ae   : > { %v5703_v55 = vpop.f32.mrb[87].mxu0 }
 0x1af   : > { %v6317_v61 = vadd.f32 %v6316_v51, %v5701_v46  ;;  %v5704_v30 = vadd.f32 %v5703_v55, %v5702_v34 }
 0x1b1   : > { %v6326_v5 = vadd.f32 %v6325_v63, %v5704_v30 }
 0x1b3   : > { %v5705_v57 = vpop.f32.mrb[88].mxu0 }
 0x1b4   : > { %v5706_v13 = vpop.f32.mrb[89].mxu0 }
 0x1b5   : > { %v5707_v54 = vadd.f32 %v5706_v13, %v5705_v57  ;;  %v5708_v39 = vpop.f32.mrb[90].mxu0 }
 0x1b6   : > { %v5709_v16 = vpop.f32.mrb[91].mxu0 }
 0x1b7   : > { %v6335_v29 = vadd.f32 %v6334_v60, %v5707_v54  ;;  %v5710_v52 = vadd.f32 %v5709_v16, %v5708_v39 }
 0x1b9   : > { %v6344_v47 = vadd.f32 %v6343_v28, %v5710_v52 }
 0x1bb   : > { %v5711_v18 = vpop.f32.mrb[92].mxu0 }
 0x1bc   : > { %v5712_v35 = vpop.f32.mrb[93].mxu0 }
 0x1bd   : > { %v5713_v7 = vadd.f32 %v5712_v35, %v5711_v18  ;;  %v5714_v24 = vpop.f32.mrb[94].mxu0 }
 0x1be   : > { %v5715_v3 = vpop.f32.mrb[95].mxu0 }
 0x1bf   : > { %v6353_v42 = vadd.f32 %v6352_v49, %v5713_v7  ;;  %v5716_v2 = vadd.f32 %v5715_v3, %v5714_v24 }
 0x1c1   : > { %v6362_v48 = vadd.f32 %v6361_v26, %v5716_v2 }
 0x1c3   : > { %v5717_v21 = vpop.f32.mrb[96].mxu0 }
 0x1c4   : > { %v5718_v51 = vpop.f32.mrb[97].mxu0 }
 0x1c5   : > { %v5719_v27 = vadd.f32 %v5718_v51, %v5717_v21  ;;  %v5720_v63 = vpop.f32.mrb[98].mxu0 }
 0x1c6   : > { %v5721_v50 = vpop.f32.mrb[99].mxu0 }
 0x1c7   : > { %v6371_v1 = vadd.f32 %v6370_v11, %v5719_v27  ;;  %v5722_v8 = vadd.f32 %v5721_v50, %v5720_v63 }
 0x1c9   : > { %v6380_v9 = vadd.f32 %v6379_v36, %v5722_v8 }
 0x1cb   : > { %v5752_v4 = vpop.f32.mrb[100].mxu0 }
 0x1cc   : > { %v5753_v38 = vpop.f32.mrb[101].mxu0 }
 0x1cd   : > { %v5754_v59 = vadd.f32 %v5753_v38, %v5752_v4  ;;  %v5755_v17 = vpop.f32.mrb[102].mxu0 }
 0x1ce   : > { %v5756_v15 = vpop.f32.mrb[103].mxu0 }
 0x1cf   : > { %v6300_v60 = vadd.f32 %v6299_v0, %v5754_v59  ;;  %v5757_v43 = vadd.f32 %v5756_v15, %v5755_v17 }
 0x1d1   : > { %v6309_v28 = vadd.f32 %v6308_v58, %v5757_v43 }
 0x1d3   : > { %v5758_v10 = vpop.f32.mrb[104].mxu0 }
 0x1d4   : > { %v5759_v62 = vpop.f32.mrb[105].mxu0 }
 0x1d5   : > { %v5760_v25 = vadd.f32 %v5759_v62, %v5758_v10  ;;  %v5761_v22 = vpop.f32.mrb[106].mxu0 }
 0x1d6   : > { %v5762_v41 = vpop.f32.mrb[107].mxu0 }
 0x1d7   : > { %v6318_v49 = vadd.f32 %v6317_v61, %v5760_v25  ;;  %v5763_v33 = vadd.f32 %v5762_v41, %v5761_v22 }
 0x1d9   : > { %v6327_v26 = vadd.f32 %v6326_v5, %v5763_v33 }
 0x1db   : > { %v5764_v12 = vpop.f32.mrb[108].mxu0 }
 0x1dc   : > { %v5765_v40 = vpop.f32.mrb[109].mxu0 }
 0x1dd   : > { %v5766_v14 = vadd.f32 %v5765_v40, %v5764_v12  ;;  %v5767_v19 = vpop.f32.mrb[110].mxu0 }
 0x1de   : > { %v5768_v44 = vpop.f32.mrb[111].mxu0 }
 0x1df   : > { %v6336_v11 = vadd.f32 %v6335_v29, %v5766_v14  ;;  %v5769_v23 = vadd.f32 %v5768_v44, %v5767_v19 }
 0x1e1   : > { %v6345_v36 = vadd.f32 %v6344_v47, %v5769_v23 }
 0x1e3   : > { %v5770_v56 = vpop.f32.mrb[112].mxu0 }
 0x1e4   : > { %v5771_v53 = vpop.f32.mrb[113].mxu0 }
 0x1e5   : > { %v5772_v6 = vadd.f32 %v5771_v53, %v5770_v56  ;;  %v5773_v37 = vpop.f32.mrb[114].mxu0 }
 0x1e6   : > { %v5774_v45 = vpop.f32.mrb[115].mxu0 }
 0x1e7   : > { %v6354_v0 = vadd.f32 %v6353_v42, %v5772_v6  ;;  %v5775_v20 = vadd.f32 %v5774_v45, %v5773_v37 }
 0x1e9   : > { %v6363_v58 = vadd.f32 %v6362_v48, %v5775_v20 }
 0x1eb   : > { %v5776_v32 = vpop.f32.mrb[116].mxu0 }
 0x1ec   : > { %v5777_v31 = vpop.f32.mrb[117].mxu0 }
 0x1ed   : > { %v5778_v46 = vadd.f32 %v5777_v31, %v5776_v32  ;;  %v5779_v34 = vpop.f32.mrb[118].mxu0 }
 0x1ee   : > { %v5780_v55 = vpop.f32.mrb[119].mxu0 }
 0x1ef   : > { %v6372_v61 = vadd.f32 %v6371_v1, %v5778_v46  ;;  %v5781_v30 = vadd.f32 %v5780_v55, %v5779_v34 }
 0x1f1   : > { %v6381_v5 = vadd.f32 %v6380_v9, %v5781_v30 }
 0x1f3   : > { %v5811_v57 = vpop.f32.mrb[120].mxu0 }
 0x1f4   : > { %v5812_v13 = vpop.f32.mrb[121].mxu0 }
 0x1f5   : > { %v5813_v54 = vadd.f32 %v5812_v13, %v5811_v57  ;;  %v5814_v39 = vpop.f32.mrb[122].mxu0 }
 0x1f6   : > { %v5815_v16 = vpop.f32.mrb[123].mxu0 }
 0x1f7   : > { %v6301_v29 = vadd.f32 %v6300_v60, %v5813_v54  ;;  %v5816_v52 = vadd.f32 %v5815_v16, %v5814_v39 }
 0x1f9   : > { %v6310_v47 = vadd.f32 %v6309_v28, %v5816_v52 }
 0x1fb   : > { %v5817_v18 = vpop.f32.mrb[124].mxu0 }
 0x1fc   : > { %v5818_v35 = vpop.f32.mrb[125].mxu0 }
 0x1fd   : > { %v5819_v7 = vadd.f32 %v5818_v35, %v5817_v18  ;;  %v5820_v24 = vpop.f32.mrb[126].mxu0 }
 0x1fe   : > { %v5821_v3 = vpop.f32.mrb[127].mxu0 }
 0x1ff   : > { %v6319_v42 = vadd.f32 %v6318_v49, %v5819_v7  ;;  %v5822_v2 = vadd.f32 %v5821_v3, %v5820_v24 }
 0x201   : > { %v6328_v48 = vadd.f32 %v6327_v26, %v5822_v2 }
 0x203   : > { %v5823_v21 = vpop.f32.mrb[128].mxu0 }
 0x204   : > { %v5824_v51 = vpop.f32.mrb[129].mxu0 }
 0x205   : > { %v5825_v27 = vadd.f32 %v5824_v51, %v5823_v21  ;;  %v5826_v63 = vpop.f32.mrb[130].mxu0 }
 0x206   : > { %v5827_v50 = vpop.f32.mrb[131].mxu0 }
 0x207   : > { %v6337_v1 = vadd.f32 %v6336_v11, %v5825_v27  ;;  %v5828_v8 = vadd.f32 %v5827_v50, %v5826_v63 }
 0x209   : > { %v6346_v9 = vadd.f32 %v6345_v36, %v5828_v8 }
 0x20b   : > { %v5829_v4 = vpop.f32.mrb[132].mxu0 }
 0x20c   : > { %v5830_v38 = vpop.f32.mrb[133].mxu0 }
 0x20d   : > { %v5831_v59 = vadd.f32 %v5830_v38, %v5829_v4  ;;  %v5832_v17 = vpop.f32.mrb[134].mxu0 }
 0x20e   : > { %v5833_v15 = vpop.f32.mrb[135].mxu0 }
 0x20f   : > { %v6355_v60 = vadd.f32 %v6354_v0, %v5831_v59  ;;  %v5834_v43 = vadd.f32 %v5833_v15, %v5832_v17  ;;  %v8713_v17 = vld [vmem:[%s8821_s4] ss:$0 sm:$0xff] }
 0x211   : > { %v6364_v28 = vadd.f32 %v6363_v58, %v5834_v43 }
 0x213   : > { %v5835_v10 = vpop.f32.mrb[136].mxu0 }
 0x214   : > { %v5836_v62 = vpop.f32.mrb[137].mxu0 }
 0x215   : > { %v5837_v25 = vadd.f32 %v5836_v62, %v5835_v10  ;;  %v5838_v22 = vpop.f32.mrb[138].mxu0  ;;  %v8718_v10 = vld [vmem:[%s8822_s5] ss:$0 sm:$0xff] }
 0x216   : > { %v5839_v41 = vpop.f32.mrb[139].mxu0 }
 0x217   : > { %v6373_v49 = vadd.f32 %v6372_v61, %v5837_v25  ;;  %v5840_v33 = vadd.f32 %v5839_v41, %v5838_v22 }
 0x219   : > { %v6382_v26 = vadd.f32 %v6381_v5, %v5840_v33 }
 0x21b   : > { %v5870_v12 = vpop.f32.mrb[140].mxu0 }
 0x21c   : > { %v5871_v40 = vpop.f32.mrb[141].mxu0 }
 0x21d   : > { %v5872_v14 = vadd.f32 %v5871_v40, %v5870_v12  ;;  %v5873_v19 = vpop.f32.mrb[142].mxu0 }
 0x21e   : > { %v5874_v44 = vpop.f32.mrb[143].mxu0 }
 0x21f   : > { %v6302_v11 = vadd.f32 %v6301_v29, %v5872_v14  ;;  %v5875_v23 = vadd.f32 %v5874_v44, %v5873_v19 }
 0x221   : > { %v6311_v36 = vadd.f32 %v6310_v47, %v5875_v23 }
 0x223   : > { %v5876_v56 = vpop.f32.mrb[144].mxu0 }
 0x224   : > { %v5877_v53 = vpop.f32.mrb[145].mxu0 }
 0x225   : > { %v5878_v6 = vadd.f32 %v5877_v53, %v5876_v56  ;;  %v5879_v37 = vpop.f32.mrb[146].mxu0 }
 0x226   : > { %v5880_v45 = vpop.f32.mrb[147].mxu0 }
 0x227   : > { %v6320_v0 = vadd.f32 %v6319_v42, %v5878_v6  ;;  %v5881_v20 = vadd.f32 %v5880_v45, %v5879_v37 }
 0x229   : > { %v8695_v58 = vadd.f32 %v6328_v48, %v5881_v20 }
 0x22b   : > { %v5882_v32 = vpop.f32.mrb[148].mxu0 }
 0x22c   : > { %v5883_v31 = vpop.f32.mrb[149].mxu0 }
 0x22d   : > { %v5884_v46 = vadd.f32 %v5883_v31, %v5882_v32  ;;  %v5885_v34 = vpop.f32.mrb[150].mxu0 }
 0x22e   : > { %v5886_v55 = vpop.f32.mrb[151].mxu0 }
 0x22f   : > { %v8697_v61 = vadd.f32 %v6337_v1, %v5884_v46  ;;  %v5887_v30 = vadd.f32 %v5886_v55, %v5885_v34 }
 0x231   : > { %v8699_v5 = vadd.f32 %v6346_v9, %v5887_v30 }
 0x233   : > { %v5888_v57 = vpop.f32.mrb[152].mxu0 }
 0x234   : > { %v5889_v13 = vpop.f32.mrb[153].mxu0 }
 0x235   : > { %v5890_v54 = vadd.f32 %v5889_v13, %v5888_v57  ;;  %v5891_v39 = vpop.f32.mrb[154].mxu0 }
 0x236   : > { %v5892_v16 = vpop.f32.mrb[155].mxu0 }
 0x237   : > { %v8701_v29 = vadd.f32 %v6355_v60, %v5890_v54  ;;  %v5893_v52 = vadd.f32 %v5892_v16, %v5891_v39 }
 0x239   : > { %v8703_v47 = vadd.f32 %v6364_v28, %v5893_v52 }
 0x23b   : > { %v5894_v18 = vpop.f32.mrb[156].mxu0 }
 0x23c   : > { %v5895_v35 = vpop.f32.mrb[157].mxu0 }
 0x23d   : > { %v5896_v7 = vadd.f32 %v5895_v35, %v5894_v18  ;;  %v5897_v24 = vpop.f32.mrb[158].mxu0 }
 0x23e   : > { %v5898_v3 = vpop.f32.mrb[159].mxu0 }
 0x23f   : > { %v8705_v42 = vadd.f32 %v6373_v49, %v5896_v7  ;;  %v5899_v2 = vadd.f32 %v5898_v3, %v5897_v24 }
 0x241   : > { %v4529_v48 = vpop.f32.mrb[0].mxu1  ;;  %v8707_v21 = vadd.f32 %v6382_v26, %v5899_v2 }
 0x242   : > { %v6278_v51 = vpop.f32.mrb[1].mxu1 }
 0x243   : > { %v4532_v27 = vpop.f32.mrb[2].mxu1  ;;  %v5929_v63 = vpop.f32.mrb[160].mxu0 }
 0x244   : > { %v6279_v50 = vpop.f32.mrb[3].mxu1  ;;  %v5930_v1 = vpop.f32.mrb[161].mxu0 }
 0x245   : > { %v5931_v8 = vadd.f32 %v5930_v1, %v5929_v63  ;;  %v5932_v9 = vpop.f32.mrb[162].mxu0 }
 0x246   : > { %v5933_v4 = vpop.f32.mrb[163].mxu0 }
 0x247   : > { %v6303_v38 = vadd.f32 %v6302_v11, %v5931_v8  ;;  %v5934_v59 = vadd.f32 %v5933_v4, %v5932_v9 }
 0x249   : > { %v4537_v15 = vpop.f32.mrb[4].mxu1  ;;  %v6304_v60 = vadd.f32 %v6303_v38, %v4529_v48  ;;  %v6312_v43 = vadd.f32 %v6311_v36, %v5934_v59 }
 0x24a   : > { %v6282_v28 = vpop.f32.mrb[5].mxu1 }
 0x24b   : > { %v4540_v62 = vpop.f32.mrb[6].mxu1  ;;  %v4585_v25 = vmul.f32 %v6304_v60, %v8713_v17  ;;  %v6313_v22 = vadd.f32 %v6312_v43, %v4532_v27  ;;  %v5935_v41 = vpop.f32.mrb[164].mxu0 }
 0x24c   : > { %v6283_v49 = vpop.f32.mrb[7].mxu1  ;;  %v5936_v33 = vpop.f32.mrb[165].mxu0 }
 0x24d   : > { %v4602_v26 = vadd.f32 %v8718_v10, %v4585_v25  ;;  %v4586_v12 = vmul.f32 %v6313_v22, %v8713_v17  ;;  %v5937_v40 = vadd.f32 %v5936_v33, %v5935_v41  ;;  %v5938_v14 = vpop.f32.mrb[166].mxu0 }
 0x24e   : > { %v5939_v19 = vpop.f32.mrb[167].mxu0 }
 0x24f   : > { %v4612_v44 = vmax.f32 %v4602_v26, 0.0  ;;  %v4603_v11 = vadd.f32 %v8718_v10, %v4586_v12  ;;  %v6321_v23 = vadd.f32 %v6320_v0, %v5937_v40  ;;  %v5940_v36 = vadd.f32 %v5939_v19, %v5938_v14 }
 0x251   : > { %v4545_v56 = vpop.f32.mrb[8].mxu1  ;;  %4622 = vst [vmem:[%s8726_s13] sm:$0xff] %v4612_v44  ;;  %v4613_v53 = vmax.f32 %v4603_v11, 0.0  ;;  %v6322_v6 = vadd.f32 %v6321_v23, %v4537_v15  ;;  %v6330_v37 = vadd.f32 %v8695_v58, %v5940_v36 }
 0x252   : > { %v6286_v45 = vpop.f32.mrb[9].mxu1 }
 0x253   : > { %v4548_v20 = vpop.f32.mrb[10].mxu1  ;;  %5422 = vst [vmem:[%s8726_s13 + $0x6] sm:$0xfc] %v4613_v53  ;;  %v4587_v32 = vmul.f32 %v6322_v6, %v8713_v17  ;;  %v6331_v31 = vadd.f32 %v6330_v37, %v4540_v62  ;;  %v5941_v0 = vpop.f32.mrb[168].mxu0 }
 0x254   : > { %v6287_v46 = vpop.f32.mrb[11].mxu1  ;;  %v5942_v34 = vpop.f32.mrb[169].mxu0 }
 0x255   : > { %v4604_v55 = vadd.f32 %v8718_v10, %v4587_v32  ;;  %v4588_v30 = vmul.f32 %v6331_v31, %v8713_v17  ;;  %v5943_v57 = vadd.f32 %v5942_v34, %v5941_v0  ;;  %v5944_v13 = vpop.f32.mrb[170].mxu0 }
 0x256   : > { %v5945_v58 = vpop.f32.mrb[171].mxu0 }
 0x257   : > { %v4614_v54 = vmax.f32 %v4604_v55, 0.0  ;;  %v4605_v39 = vadd.f32 %v8718_v10, %v4588_v30  ;;  %v6339_v16 = vadd.f32 %v8697_v61, %v5943_v57  ;;  %v5946_v52 = vadd.f32 %v5945_v58, %v5944_v13 }
 0x259   : > { %v4553_v18 = vpop.f32.mrb[12].mxu1  ;;  %5423 = vst [vmem:[%s8726_s13 + $0xe] sm:$0x3] %v4614_v54  ;;  %5424 = vst [vmem:[%s8726_s13 + $0xc] sm:$0xf0] %v4614_v54  ;;  %v4615_v35 = vmax.f32 %v4605_v39, 0.0  ;;  %v6340_v7 = vadd.f32 %v6339_v16, %v4545_v56  ;;  %v6348_v24 = vadd.f32 %v8699_v5, %v5946_v52 }
 0x25a   : > { %v6290_v3 = vpop.f32.mrb[13].mxu1 }
 0x25b   : > { %v4556_v2 = vpop.f32.mrb[14].mxu1  ;;  %5425 = vst [vmem:[%s8726_s13 + $0x14] sm:$0xf] %v4615_v35  ;;  %5426 = vst [vmem:[%s8726_s13 + $0x12] sm:$0xc0] %v4615_v35  ;;  %v4589_v48 = vmul.f32 %v6340_v7, %v8713_v17  ;;  %v6349_v51 = vadd.f32 %v6348_v24, %v4548_v20  ;;  %v5947_v27 = vpop.f32.mrb[172].mxu0 }
 0x25c   : > { %v6291_v63 = vpop.f32.mrb[15].mxu1  ;;  %v5948_v50 = vpop.f32.mrb[173].mxu0 }
 0x25d   : > { %v4606_v61 = vadd.f32 %v8718_v10, %v4589_v48  ;;  %v4590_v1 = vmul.f32 %v6349_v51, %v8713_v17  ;;  %v5949_v8 = vadd.f32 %v5948_v50, %v5947_v27  ;;  %v5950_v9 = vpop.f32.mrb[174].mxu0 }
 0x25e   : > { %v5951_v4 = vpop.f32.mrb[175].mxu0 }
 0x25f   : > { %v4616_v5 = vmax.f32 %v4606_v61, 0.0  ;;  %v4607_v38 = vadd.f32 %v8718_v10, %v4590_v1  ;;  %v6357_v59 = vadd.f32 %v8701_v29, %v5949_v8  ;;  %v5952_v15 = vadd.f32 %v5951_v4, %v5950_v9 }
 0x261   : > { %v4561_v60 = vpop.f32.mrb[16].mxu1  ;;  %5427 = vst [vmem:[%s8726_s13 + $0x1a] sm:$0x3f] %v4616_v5  ;;  %v4617_v43 = vmax.f32 %v4607_v38, 0.0  ;;  %v6358_v28 = vadd.f32 %v6357_v59, %v4553_v18  ;;  %v6366_v62 = vadd.f32 %v8703_v47, %v5952_v15 }
 0x262   : > { %v6294_v25 = vpop.f32.mrb[17].mxu1 }
 0x263   : > { %v4564_v22 = vpop.f32.mrb[18].mxu1  ;;  %5428 = vst [vmem:[%s8726_s13 + $0x20] sm:$0xff] %v4617_v43  ;;  %v4591_v41 = vmul.f32 %v6358_v28, %v8713_v17  ;;  %v6367_v49 = vadd.f32 %v6366_v62, %v4556_v2  ;;  %v5953_v33 = vpop.f32.mrb[176].mxu0 }
 0x264   : > { %v6295_v26 = vpop.f32.mrb[19].mxu1  ;;  %v5954_v12 = vpop.f32.mrb[177].mxu0 }
 0x265   : > { %v4608_v29 = vadd.f32 %v8718_v10, %v4591_v41  ;;  %v4592_v40 = vmul.f32 %v6367_v49, %v8713_v17  ;;  %v5955_v14 = vadd.f32 %v5954_v12, %v5953_v33  ;;  %v5956_v19 = vpop.f32.mrb[178].mxu0 }
 0x266   : > { %v5957_v47 = vpop.f32.mrb[179].mxu0 }
 0x267   : > { %v4618_v44 = vmax.f32 %v4608_v29, 0.0  ;;  %v4609_v11 = vadd.f32 %v8718_v10, %v4592_v40  ;;  %v6375_v23 = vadd.f32 %v8705_v42, %v5955_v14  ;;  %v5958_v36 = vadd.f32 %v5957_v47, %v5956_v19 }
 0x269   : > { %5429 = vst [vmem:[%s8726_s13 + $0x26] sm:$0xfc] %v4618_v44  ;;  %v4619_v56 = vmax.f32 %v4609_v11, 0.0  ;;  %v6376_v53 = vadd.f32 %v6375_v23, %v4561_v60  ;;  %v6384_v6 = vadd.f32 %v8707_v21, %v5958_v36 }
 0x26b   : > { %5430 = vst [vmem:[%s8726_s13 + $0x2e] sm:$0x3] %v4619_v56  ;;  %5431 = vst [vmem:[%s8726_s13 + $0x2c] sm:$0xf0] %v4619_v56  ;;  %v4593_v37 = vmul.f32 %v6376_v53, %v8713_v17  ;;  %v6385_v45 = vadd.f32 %v6384_v6, %v4564_v22 }
 0x26d   : > { %v4610_v20 = vadd.f32 %v8718_v10, %v4593_v37  ;;  %v4594_v42 = vmul.f32 %v6385_v45, %v8713_v17 }
 0x26f   : > { %v4620_v32 = vmax.f32 %v4610_v20, 0.0  ;;  %v4611_v31 = vadd.f32 %v8718_v10, %v4594_v42 }
 0x271   : > { %5432 = vst [vmem:[%s8726_s13 + $0x34] sm:$0xf] %v4620_v32  ;;  %5433 = vst [vmem:[%s8726_s13 + $0x32] sm:$0xc0] %v4620_v32  ;;  %v4621_v21 = vmax.f32 %v4611_v31, 0.0 }
 0x273   : > { %5434 = vst [vmem:[%s8726_s13 + $0x3a] sm:$0x3f] %v4621_v21 }
 0x274   : > { %6888 = shalt.err (!%p6885_p3)
}
 0x275   : > { %s6889_s16 = scalar_lea.hbm %s8767_s18, 1024  ;;  %s6893_s10 = scalar_lea.hbm %s8823_s6, 2048 }
 0x276   : > { %p6890_p4 = scmp.ne.s32.totalorder %s8767_s18, %s6889_s16  ;;  %p6894_p9 = scmp.lt.u32.totalorder %s8767_s18, %s8823_s6 }
 0x277   : > { %p6895_p10 = scmp.lt.u32.totalorder %s6893_s10, %s6889_s16  ;;  %p6897_p12 = scmp.lt.u32.totalorder %s6889_s16, %s8767_s18 }
 0x278   : > { %p6891_p7 = pnand %p6890_p4, %p7017_p5 }
 0x279   : > { %p6896_p11 = por %p6895_p10, %p6894_p9 }
 0x27a   : > { %p6892_p8 = pneg %p6891_p7 }
 0x27b   : > { %p6898_p13 = por %p6897_p12, %p6896_p11 }
 0x27d   : > { %p6899_p0 = pnand %p6898_p13, %p6892_p8 }
 0x27f   : > { %6902 = shalt.err (!%p6899_p0)
}
 0x280   : > { %s6942_s14 = smov 128   ;;  %s6943_s29 = smov 8  }
 0x281   : > { %6547 = dma.vmem_to_hbm [thread:$0]  (%p7017_p5), %s8769_s15, 1024, %s8767_s18, %s8776_s25, %s6942_s14, %s6942_s14, %s6943_s29  }
 0x282 PF: > { %p6553_p1 = scmp.ge.s32.totalorder %s6937_s24, 2  ;;  %s4672_s17 = sand.u32 1, %s6925_s21  }
 0x283   : > { %s4673_s19 = scalar_lea.sflag [#allocation3], %s4672_s17 }
 0x284   : > { %p6550_p2 = pnand %p6553_p1, %p7021_p6 }
 0x286   : > { %6920 = dma.done.wait (!%p6550_p2), %s4673_s19, 1024  }
 0x287   : > { %6922 = vsyncadd (!%p6550_p2), %s4673_s19, 4294966272  ;;  %p16_p3 = scmp.ge.s32.totalorder %s7004_s27, 4   ;;  %s8830_s21 = smov %s6929_s22 }
 0x288   : > { %s8831_s22 = smov %s6933_s23  ;;  %s8832_s23 = smov %s7015_s30 }
 0x289   : > { %s8833_s24 = smov %s7004_s27  ;;  %18 = sbr.rel (!%p16_p3) target bundleno = 3 (0x3), region = 100 }
 0x290   :  { %4678 = vsyncpa [#allocation3], 1 }
 0x291   :  { %4680 = vsyncpa [#allocation3 + $0x1], 1 }

</bundles_post_ra>
